<compile_context>
chip_gen: v5e
topology: v5e:2x2
jax: 0.10.0
libtpu: 0.0.40
codegen_flags: <defaults>
</compile_context>

<pallas_src>
import math
import numpy as np
import jax
import jax.numpy as jnp
from jax.experimental import pallas as pl
from jax.experimental.pallas import tpu as pltpu

# ---------------- configuration (small shapes consistent with the module) ----
B           = 2                      # batch
SEQ_LEN     = 24                     # L
ENC_IN      = 4                      # M channels
PATCH       = 3                      # patch_len == stride
STRIDE      = 3
PATCH_NUM   = SEQ_LEN // STRIDE      # 8 tokens
ADAPTER_LEN = 8                      # == PATCH_NUM so adapter tokens line up
GPT_LAYERS  = 3
D_MODEL     = 32                     # scaled-down GPT2 width (768 in the real model)
N_HEAD      = 4
HEAD_DIM    = D_MODEL // N_HEAD
D_FF        = 16
SCALE       = 1000.0                 # module sets h[i].attn.scale = 1000
FREQ_LEN    = PATCH_NUM // 2 + 1     # rfft bins over the patch-token axis (=5)
SIGMA_DIM   = 12                     # hard-coded in sigma_proj
LA          = SEQ_LEN // PATCH_NUM   # repeat factor for the attention maps (=3)


def _ln(v, w, b, eps=1e-5):
    mu = jnp.mean(v, axis=-1, keepdims=True)
    var = jnp.mean((v - mu) ** 2, axis=-1, keepdims=True)
    return (v - mu) * jax.lax.rsqrt(var + eps) * w + b


# ============================= Pallas kernels ================================

def _trunk_kernel(enc_ref, encln_ref, wpe_ref, wspecT_ref, aw_ref, ab_ref,
                  ln1w_ref, ln1b_ref, wqkv_ref, bqkv_ref, wo_ref, bo_ref,
                  ln2w_ref, ln2b_ref, wfc_ref, bfc_ref, wpr_ref, bpr_ref,
                  iw_ref, ib_ref, lnfw_ref, lnfb_ref, pw_ref, pb_ref,
                  ow_ref, ob_ref, out_ref, attn_ref):
    # One grid step == one batch element: Mc = ENC_IN channels (= sequences) of
    # N = PATCH_NUM tokens -> R = Mc*N token rows resident for all 3 layers.
    Mc, N, D = ENC_IN, PATCH_NUM, D_MODEL
    R = Mc * N

    enc = enc_ref[0]                                        # (R, P)
    encln = encln_ref[0]                                    # (Mc, N, P)

    # in_layer + GPT2 position embedding (wpe pre-tiled to token rows in glue)
    h = jnp.dot(enc, iw_ref[...], preferred_element_type=jnp.float32) + ib_ref[...]
    h = h + wpe_ref[...]                                    # (R, D)

    # masks hoisted out of the layer loop
    row = jax.lax.broadcasted_iota(jnp.int32, (N, N), 0)
    col = jax.lax.broadcasted_iota(jnp.int32, (N, N), 1)
    causal = row >= col
    diag_half = jnp.where(row == col, 0.5, 1.0)
    attn_c = 1.0 / (Mc * LA * LA)

    for l in range(GPT_LAYERS):
        # ---- spectral adapter: (rfft -> mix -> irfft) folded into WspecT -----
        wsp = jnp.broadcast_to(wspecT_ref[l][None], (Mc, ADAPTER_LEN, N))
        specT = jnp.einsum('man,mnp->map', wsp, encln,
                           preferred_element_type=jnp.float32)       # (Mc, A, P)
        adapt = jnp.dot(specT.reshape(R, PATCH), aw_ref[l],
                        preferred_element_type=jnp.float32) + ab_ref[l]   # (R, D)

        # TODO(synk): custom GPT2Block source unavailable -- adapter is added to
        # the block input, logits divided by scale, T/C adapters (zero gates)
        # skipped.
        x = h + adapt

        # ---- attention (all Mc sequences batched; heads statically unrolled) -
        hn = _ln(x, ln1w_ref[l], ln1b_ref[l])
        qkv = (jnp.dot(hn, wqkv_ref[l], preferred_element_type=jnp.float32)
               + bqkv_ref[l])                                          # (R, 3D)
        q3 = qkv[:, :D].reshape(Mc, N, D)
        k3 = qkv[:, D:2 * D].reshape(Mc, N, D)
        v3 = qkv[:, 2 * D:].reshape(Mc, N, D)
        wo_l = wo_ref[l]

        a_acc = None
        for hd in range(N_HEAD):
            sl = slice(hd * HEAD_DIM, (hd + 1) * HEAD_DIM)
            s = jnp.einsum('bnd,bmd->bnm', q3[:, :, sl], k3[:, :, sl],
                           preferred_element_type=jnp.float32) * (1.0 / SCALE)
            s = jnp.where(causal[None], s, -1e30)
            s = s - jnp.max(s, axis=-1, keepdims=True)
            e = jnp.exp(s)
            p = e / jnp.sum(e, axis=-1, keepdims=True)                 # (Mc, N, N)

            ctx = jnp.einsum('bnm,bmd->bnd', p, v3[:, :, sl],
                             preferred_element_type=jnp.float32)       # (Mc, N, HD)
            part = jnp.dot(ctx.reshape(R, HEAD_DIM), wo_l[sl, :],
                           preferred_element_type=jnp.float32)         # (R, D)
            a_acc = part if a_acc is None else a_acc + part

            # fused attention summary: channel mean + symmetrise + halved
            # diagonal + /la/la.  The (la x la) block repeat stays in glue.
            psum = p[0]
            for c in range(1, Mc):
                psum = psum + p[c]
            attn_ref[0, l * N_HEAD + hd] = (psum + psum.T) * diag_half * attn_c

        x = x + a_acc + bo_ref[l]

        # ---- MLP --------------------------------------------------------------
        hn2 = _ln(x, ln2w_ref[l], ln2b_ref[l])
        m1 = (jnp.dot(hn2, wfc_ref[l], preferred_element_type=jnp.float32)
              + bfc_ref[l])
        m1 = jax.nn.gelu(m1, approximate=True)                         # gelu_new
        m2 = (jnp.dot(m1, wpr_ref[l], preferred_element_type=jnp.float32)
              + bpr_ref[l])
        h = x + m2

    # ---- ln_f + proj_layer + out_layer (fused) -------------------------------
    hf = _ln(h, lnfw_ref[...], lnfb_ref[...])
    hp = jnp.dot(hf, pw_ref[...], preferred_element_type=jnp.float32) + pb_ref[...]
    hp3 = hp.reshape(Mc, N, D_FF)
    out = ob_ref[...]                                                  # (1, L)
    for n in range(N):
        # out_layer contraction over (token, d_ff) done token-by-token to keep
        # every reshape an aligned leading-dim split (no lane<->sublane moves).
        out = out + jnp.dot(hp3[:, n, :], ow_ref[n * D_FF:(n + 1) * D_FF, :],
                            preferred_element_type=jnp.float32)
    out_ref[0] = out                                                   # (Mc, L)


def _prior_kernel(xnt_ref, wsig_ref, bsig_ref, dist_ref, prior_ref):
    # All 3 sigma_proj layers in one matmul, all 3 priors in one kernel.
    xnt = xnt_ref[0]                                                   # (M, L)
    sig = (jnp.dot(wsig_ref[...], xnt, preferred_element_type=jnp.float32)
           + bsig_ref[...])                                            # (3*12, L)
    sig = jax.nn.sigmoid(sig * 5.0) + 1e-5
    sig = jnp.exp(sig * math.log(3.0)) - 1.0                           # 3**sig - 1
    inv_s = 1.0 / sig                                                  # reused twice
    d2 = dist_ref[...] * dist_ref[...]
    c = 1.0 / math.sqrt(2.0 * math.pi)
    for l in range(GPT_LAYERS):
        inv_l = inv_s[l * SIGMA_DIM:(l + 1) * SIGMA_DIM, :][:, :, None]  # (12, L, 1)
        prior_ref[0, l * SIGMA_DIM:(l + 1) * SIGMA_DIM] = (
            c * inv_l * jnp.exp(-0.5 * d2[None] * inv_l * inv_l))


# ============================= pallas_call wrappers ==========================

def _bcast_spec(a):
    nd = a.ndim
    return pl.BlockSpec(a.shape, lambda i, nd=nd: (0,) * nd)


def trunk_call(enc_rows, enc_ln, wpe_rows, wspecT, p):
    Bb = enc_rows.shape[0]
    R = ENC_IN * PATCH_NUM
    weights = (wpe_rows, wspecT, p['aw'], p['ab'],
               p['ln1w'], p['ln1b'], p['wqkv'], p['bqkv'], p['wo'], p['bo'],
               p['ln2w'], p['ln2b'], p['wfc'], p['bfc'], p['wpr'], p['bpr'],
               p['iw'], p['ib'], p['lnfw'], p['lnfb'], p['pw'], p['pb'],
               p['ow'], p['ob'])
    in_specs = ([pl.BlockSpec((1, R, PATCH), lambda i: (i, 0, 0)),
                 pl.BlockSpec((1, ENC_IN, PATCH_NUM, PATCH),
                              lambda i: (i, 0, 0, 0))]
                + [_bcast_spec(w) for w in weights])
    out_specs = (
        pl.BlockSpec((1, ENC_IN, SEQ_LEN), lambda i: (i, 0, 0)),
        pl.BlockSpec((1, GPT_LAYERS * N_HEAD, PATCH_NUM, PATCH_NUM),
                     lambda i: (i, 0, 0, 0)),
    )
    out_shape = (
        jax.ShapeDtypeStruct((Bb, ENC_IN, SEQ_LEN), jnp.float32),
        jax.ShapeDtypeStruct((Bb, GPT_LAYERS * N_HEAD, PATCH_NUM, PATCH_NUM),
                             jnp.float32),
    )
    return pl.pallas_call(
        _trunk_kernel,
        out_shape=out_shape,
        grid=(Bb,),
        in_specs=in_specs,
        out_specs=out_specs,
        compiler_params=pltpu.CompilerParams(dimension_semantics=("parallel",)),
    )(enc_rows, enc_ln, *weights)


def prior_call(xnt, wsig, bsig, distances):
    Bb = xnt.shape[0]
    return pl.pallas_call(
        _prior_kernel,
        out_shape=jax.ShapeDtypeStruct(
            (Bb, GPT_LAYERS * SIGMA_DIM, SEQ_LEN, SEQ_LEN), jnp.float32),
        grid=(Bb,),
        in_specs=[pl.BlockSpec((1, ENC_IN, SEQ_LEN), lambda i: (i, 0, 0)),
                  _bcast_spec(wsig), _bcast_spec(bsig), _bcast_spec(distances)],
        out_specs=pl.BlockSpec(
            (1, GPT_LAYERS * SIGMA_DIM, SEQ_LEN, SEQ_LEN),
            lambda i: (i, 0, 0, 0)),
        compiler_params=pltpu.CompilerParams(dimension_semantics=("parallel",)),
    )(xnt, wsig, bsig, distances)


# ============================= parameters ====================================

def make_dft_matrices():
    # Exact DFT matrices for rfft over the token axis and irfft(n=ADAPTER_LEN)
    # with the (absent) Nyquist bin zero-padded and the DC imag part ignored,
    # matching torch.fft.rfft / irfft on a truncated complex spectrum.
    N, F, A = PATCH_NUM, FREQ_LEN, ADAPTER_LEN
    d = A // 2
    n = np.arange(N)[:, None]
    k = np.arange(F)[None, :]
    dc = np.cos(2.0 * np.pi * n * k / N)                    # rfft real part
    ds = -np.sin(2.0 * np.pi * n * k / N)                   # rfft imag part
    kk = np.arange(d)[:, None]
    t = np.arange(A)[None, :]
    coef = np.where(kk == 0, 1.0, 2.0)
    icr = coef * np.cos(2.0 * np.pi * kk * t / A) / A       # irfft, real bins
    ici = -coef * np.sin(2.0 * np.pi * kk * t / A) / A      # irfft, imag bins
    f32 = lambda a: jnp.asarray(a, jnp.float32)
    return f32(dc), f32(ds), f32(icr), f32(ici)


def init_params(key):
    keys = iter(jax.random.split(key, 64))
    D = D_MODEL

    def rn(shape, scale=0.02):
        return (scale * jax.random.normal(next(keys), shape)).astype(jnp.float32)

    def ru(shape):
        return jax.random.uniform(next(keys), shape, dtype=jnp.float32)

    p = {}
    # GPT2 block weights stacked along a leading layer axis
    p['ln1w'] = jnp.ones((GPT_LAYERS, 1, D), jnp.float32)
    p['ln1b'] = jnp.zeros((GPT_LAYERS, 1, D), jnp.float32)
    p['wqkv'] = rn((GPT_LAYERS, D, 3 * D))
    p['bqkv'] = jnp.zeros((GPT_LAYERS, 1, 3 * D), jnp.float32)
    p['wo'] = rn((GPT_LAYERS, D, D))
    p['bo'] = jnp.zeros((GPT_LAYERS, 1, D), jnp.float32)
    p['ln2w'] = jnp.ones((GPT_LAYERS, 1, D), jnp.float32)
    p['ln2b'] = jnp.zeros((GPT_LAYERS, 1, D), jnp.float32)
    p['wfc'] = rn((GPT_LAYERS, D, 4 * D))
    p['bfc'] = jnp.zeros((GPT_LAYERS, 1, 4 * D), jnp.float32)
    p['wpr'] = rn((GPT_LAYERS, 4 * D, D))
    p['bpr'] = jnp.zeros((GPT_LAYERS, 1, D), jnp.float32)
    p['wpe'] = rn((PATCH_NUM, D))
    p['lnfw'] = jnp.ones((1, D), jnp.float32)
    p['lnfb'] = jnp.zeros((1, D), jnp.float32)
    # SpectModule weights (torch.rand-style) and adapter_in linears
    p['fft'] = [(ru((FREQ_LEN, ADAPTER_LEN // 2)), ru((FREQ_LEN, ADAPTER_LEN // 2)))
                for _ in range(GPT_LAYERS)]
    p['aw'] = rn((GPT_LAYERS, PATCH, D), 0.1)
    p['ab'] = jnp.zeros((GPT_LAYERS, 1, D), jnp.float32)
    # in/proj/out layers
    p['iw'] = rn((PATCH, D), 0.1)
    p['ib'] = jnp.zeros((1, D), jnp.float32)
    p['pw'] = rn((D, D_FF), 0.1)
    p['pb'] = jnp.zeros((1, D_FF), jnp.float32)
    p['ow'] = rn((D_FF * PATCH_NUM, SEQ_LEN), 0.1)
    p['ob'] = jnp.zeros((1, SEQ_LEN), jnp.float32)
    # the 3 sigma_proj linears packed into one (36, M) matrix
    p['wsig'] = rn((GPT_LAYERS * SIGMA_DIM, ENC_IN), 0.1)
    p['bsig'] = jnp.zeros((GPT_LAYERS * SIGMA_DIM, 1), jnp.float32)
    idx = jnp.arange(SEQ_LEN, dtype=jnp.float32)
    p['distances'] = jnp.abs(idx[:, None] - idx[None, :])
    p['dft'] = make_dft_matrices()
    return p


# ============================= forward =======================================

def gpt4ts_forward(params, x):
    Bb, L, M = x.shape
    means = jnp.mean(x, axis=1, keepdims=True)
    xc = x - means
    stdev = jnp.sqrt(jnp.var(xc, axis=1, keepdims=True) + 1e-5)
    xn = xc / stdev                                               # (B, L, M)

    # 'b (n p) m -> b m n p'
    enc = xn.reshape(Bb, PATCH_NUM, PATCH, M).transpose(0, 3, 1, 2)   # (B,M,N,P)

    # SpectBlock.ln_1: LayerNorm over the channel axis (default weight=1, bias=0)
    t = enc.transpose(0, 2, 3, 1)                                 # (B, N, P, M)
    mu = jnp.mean(t, axis=-1, keepdims=True)
    var = jnp.mean((t - mu) ** 2, axis=-1, keepdims=True)
    enc_ln = ((t - mu) * jax.lax.rsqrt(var + 1e-5)).transpose(0, 3, 1, 2)  # (B,M,N,P)

    # fold rfft -> complex mixing -> irfft into a single (N, A) matrix per layer
    dc, ds, icr, ici = params['dft']
    wspecT = jnp.stack(
        [(dc @ wr @ icr + ds @ wi @ ici).T for (wr, wi) in params['fft']], axis=0)

    enc_rows = enc.reshape(Bb, M * PATCH_NUM, PATCH)              # token rows (m, n)
    wpe_rows = jnp.tile(params['wpe'], (M, 1))                    # wpe per token row

    out, attn_all = trunk_call(enc_rows, enc_ln, wpe_rows, wspecT, params)

    out = out.transpose(0, 2, 1) * stdev + means                  # (B, L, M)

    attn5 = attn_all.reshape(Bb, GPT_LAYERS, N_HEAD, PATCH_NUM, PATCH_NUM)
    attns = [jnp.repeat(jnp.repeat(attn5[:, l], LA, axis=2), LA, axis=3)
             for l in range(GPT_LAYERS)]                          # (B, H, L, L)

    xnt = xn.transpose(0, 2, 1)                                   # (B, M, L)
    prior_all = prior_call(xnt, params['wsig'], params['bsig'], params['distances'])
    prior5 = prior_all.reshape(Bb, GPT_LAYERS, SIGMA_DIM, L, L)
    priors = [prior5[:, l] for l in range(GPT_LAYERS)]            # (B, 12, L, L)

    return out, attns, priors, None


# ============================= main ==========================================

if __name__ == "__main__":
    key = jax.random.PRNGKey(0)
    pkey, xkey = jax.random.split(key)
    params = init_params(pkey)
    x = jax.random.normal(xkey, (B, SEQ_LEN, ENC_IN), dtype=jnp.float32)

    fwd = jax.jit(gpt4ts_forward)
    out, attns, priors, _ = fwd(params, x)
    jax.block_until_ready(out)
    jax.block_until_ready(attns)
    jax.block_until_ready(priors)

    assert out.shape == (B, SEQ_LEN, ENC_IN)
    assert len(attns) == GPT_LAYERS and attns[0].shape == (B, N_HEAD, SEQ_LEN, SEQ_LEN)
    assert len(priors) == GPT_LAYERS and priors[0].shape == (B, SIGMA_DIM, SEQ_LEN, SEQ_LEN)
    assert bool(jnp.all(jnp.isfinite(out)))
    assert bool(jnp.all(jnp.isfinite(attns[0])))
    assert bool(jnp.all(jnp.isfinite(priors[0])))
    print("KERNEL_OK")
</pallas_src>

<mosaic_0001>
module attributes {stable_mosaic.version = 11 : i64} {
  func.func @_prior_kernel(%arg0: i32, %arg1: memref<1x4x24xf32, #tpu.memory_space<vmem>>, %arg2: memref<36x4xf32, #tpu.memory_space<vmem>>, %arg3: memref<36x1xf32, #tpu.memory_space<vmem>>, %arg4: memref<24x24xf32, #tpu.memory_space<vmem>>, %arg5: memref<1x36x24x24xf32, #tpu.memory_space<vmem>>) attributes {dimension_semantics = [#tpu.dimension_semantics<parallel>], iteration_bounds = array<i64: 2>, scalar_prefetch = 0 : i64, scratch_operands = 0 : i64, tpu.core_type = #tpu.core_type<tc>, window_params = [{transform_indices = @transform_0, window_bounds = array<i64: 1, 4, 24>}, {pipeline_mode = #tpu.pipeline_mode<synchronous>, transform_indices = @transform_1, window_bounds = array<i64: 36, 4>}, {pipeline_mode = #tpu.pipeline_mode<synchronous>, transform_indices = @transform_2, window_bounds = array<i64: 36, 1>}, {pipeline_mode = #tpu.pipeline_mode<synchronous>, transform_indices = @transform_3, window_bounds = array<i64: 24, 24>}, {transform_indices = @transform_4, window_bounds = array<i64: 1, 36, 24, 24>}]} {
    %c0 = arith.constant 0 : index
    %c0_0 = arith.constant 0 : index
    %c0_1 = arith.constant 0 : index
    %0 = vector.load %arg1[%c0, %c0_0, %c0_1] : memref<1x4x24xf32, #tpu.memory_space<vmem>>, vector<1x4x24xf32>
    %1 = vector.shape_cast %0 : vector<1x4x24xf32> to vector<4x24xf32>
    %c0_2 = arith.constant 0 : index
    %c0_3 = arith.constant 0 : index
    %2 = vector.load %arg2[%c0_2, %c0_3] : memref<36x4xf32, #tpu.memory_space<vmem>>, vector<36x4xf32>
    %cst = arith.constant dense<0.000000e+00> : vector<36x24xf32>
    %3 = tpu.matmul %2, %1, %cst {dimension_numbers = #tpu.dot_dimension_numbers<[1], [0], [0], [1], [0, 0, 1, 1], [], []>} : vector<36x4xf32>, vector<4x24xf32>, vector<36x24xf32> -> vector<36x24xf32>
    %c0_4 = arith.constant 0 : index
    %c0_5 = arith.constant 0 : index
    %4 = vector.load %arg3[%c0_4, %c0_5] : memref<36x1xf32, #tpu.memory_space<vmem>>, vector<36x1xf32>
    %5 = vector.broadcast %4 : vector<36x1xf32> to vector<36x24xf32>
    %6 = arith.addf %3, %5 : vector<36x24xf32>
    %cst_6 = arith.constant 5.000000e+00 : f32
    %7 = vector.broadcast %cst_6 : f32 to vector<36x24xf32>
    %8 = arith.mulf %6, %7 : vector<36x24xf32>
    %9 = arith.negf %8 : vector<36x24xf32>
    %10 = math.exp %9 : vector<36x24xf32>
    %cst_7 = arith.constant 1.000000e+00 : f32
    %11 = vector.broadcast %cst_7 : f32 to vector<36x24xf32>
    %12 = arith.addf %11, %10 : vector<36x24xf32>
    %13 = arith.divf %11, %12 : vector<36x24xf32>
    %cst_8 = arith.constant 9.99999974E-6 : f32
    %14 = vector.broadcast %cst_8 : f32 to vector<36x24xf32>
    %15 = arith.addf %13, %14 : vector<36x24xf32>
    %cst_9 = arith.constant 1.09861231 : f32
    %16 = vector.broadcast %cst_9 : f32 to vector<36x24xf32>
    %17 = arith.mulf %15, %16 : vector<36x24xf32>
    %18 = math.exp %17 : vector<36x24xf32>
    %cst_10 = arith.constant 1.000000e+00 : f32
    %19 = vector.broadcast %cst_10 : f32 to vector<36x24xf32>
    %20 = arith.subf %18, %19 : vector<36x24xf32>
    %cst_11 = arith.constant 1.000000e+00 : f32
    %21 = vector.broadcast %cst_11 : f32 to vector<36x24xf32>
    %22 = arith.divf %21, %20 : vector<36x24xf32>
    %c0_12 = arith.constant 0 : index
    %c0_13 = arith.constant 0 : index
    %23 = vector.load %arg4[%c0_12, %c0_13] : memref<24x24xf32, #tpu.memory_space<vmem>>, vector<24x24xf32>
    %c0_14 = arith.constant 0 : index
    %c0_15 = arith.constant 0 : index
    %24 = vector.load %arg4[%c0_14, %c0_15] : memref<24x24xf32, #tpu.memory_space<vmem>>, vector<24x24xf32>
    %25 = arith.mulf %23, %24 : vector<24x24xf32>
    %26 = vector.extract_strided_slice %22 {offsets = [0, 0], sizes = [12, 24], strides = [1, 1]} : vector<36x24xf32> to vector<12x24xf32>
    %27 = vector.shape_cast %26 : vector<12x24xf32> to vector<12x24x1xf32>
    %cst_16 = arith.constant 0.398942292 : f32
    %28 = vector.broadcast %cst_16 : f32 to vector<12x24x1xf32>
    %29 = arith.mulf %28, %27 : vector<12x24x1xf32>
    %30 = vector.shape_cast %25 : vector<24x24xf32> to vector<1x24x24xf32>
    %cst_17 = arith.constant -5.000000e-01 : f32
    %31 = vector.broadcast %cst_17 : f32 to vector<1x24x24xf32>
    %32 = arith.mulf %31, %30 : vector<1x24x24xf32>
    %33 = vector.broadcast %32 : vector<1x24x24xf32> to vector<12x24x24xf32>
    %34 = vector.broadcast %27 : vector<12x24x1xf32> to vector<12x24x24xf32>
    %35 = arith.mulf %33, %34 : vector<12x24x24xf32>
    %36 = vector.broadcast %27 : vector<12x24x1xf32> to vector<12x24x24xf32>
    %37 = arith.mulf %35, %36 : vector<12x24x24xf32>
    %38 = math.exp %37 : vector<12x24x24xf32>
    %39 = vector.broadcast %29 : vector<12x24x1xf32> to vector<12x24x24xf32>
    %40 = arith.mulf %39, %38 : vector<12x24x24xf32>
    %c0_18 = arith.constant 0 : index
    %c0_19 = arith.constant 0 : index
    %c0_20 = arith.constant 0 : index
    %c0_21 = arith.constant 0 : index
    %41 = vector.load %arg5[%c0_18, %c0_19, %c0_20, %c0_21] : memref<1x36x24x24xf32, #tpu.memory_space<vmem>>, vector<1x12x24x24xf32>
    %42 = vector.shape_cast %41 : vector<1x12x24x24xf32> to vector<12x24x24xf32>
    %43 = vector.shape_cast %40 : vector<12x24x24xf32> to vector<1x12x24x24xf32>
    tpu.vector_store %arg5[%c0_18, %c0_19, %c0_20, %c0_21], %43 {strides = array<i32>} : memref<1x36x24x24xf32, #tpu.memory_space<vmem>>, vector<1x12x24x24xf32>,
    %44 = vector.extract_strided_slice %22 {offsets = [12, 0], sizes = [12, 24], strides = [1, 1]} : vector<36x24xf32> to vector<12x24xf32>
    %45 = vector.shape_cast %44 : vector<12x24xf32> to vector<12x24x1xf32>
    %cst_22 = arith.constant 0.398942292 : f32
    %46 = vector.broadcast %cst_22 : f32 to vector<12x24x1xf32>
    %47 = arith.mulf %46, %45 : vector<12x24x1xf32>
    %48 = vector.shape_cast %25 : vector<24x24xf32> to vector<1x24x24xf32>
    %cst_23 = arith.constant -5.000000e-01 : f32
    %49 = vector.broadcast %cst_23 : f32 to vector<1x24x24xf32>
    %50 = arith.mulf %49, %48 : vector<1x24x24xf32>
    %51 = vector.broadcast %50 : vector<1x24x24xf32> to vector<12x24x24xf32>
    %52 = vector.broadcast %45 : vector<12x24x1xf32> to vector<12x24x24xf32>
    %53 = arith.mulf %51, %52 : vector<12x24x24xf32>
    %54 = vector.broadcast %45 : vector<12x24x1xf32> to vector<12x24x24xf32>
    %55 = arith.mulf %53, %54 : vector<12x24x24xf32>
    %56 = math.exp %55 : vector<12x24x24xf32>
    %57 = vector.broadcast %47 : vector<12x24x1xf32> to vector<12x24x24xf32>
    %58 = arith.mulf %57, %56 : vector<12x24x24xf32>
    %c0_24 = arith.constant 0 : index
    %c12 = arith.constant 12 : index
    %c0_25 = arith.constant 0 : index
    %c0_26 = arith.constant 0 : index
    %59 = vector.load %arg5[%c0_24, %c12, %c0_25, %c0_26] : memref<1x36x24x24xf32, #tpu.memory_space<vmem>>, vector<1x12x24x24xf32>
    %60 = vector.shape_cast %59 : vector<1x12x24x24xf32> to vector<12x24x24xf32>
    %61 = vector.shape_cast %58 : vector<12x24x24xf32> to vector<1x12x24x24xf32>
    tpu.vector_store %arg5[%c0_24, %c12, %c0_25, %c0_26], %61 {strides = array<i32>} : memref<1x36x24x24xf32, #tpu.memory_space<vmem>>, vector<1x12x24x24xf32>,
    %62 = vector.extract_strided_slice %22 {offsets = [24, 0], sizes = [12, 24], strides = [1, 1]} : vector<36x24xf32> to vector<12x24xf32>
    %63 = vector.shape_cast %62 : vector<12x24xf32> to vector<12x24x1xf32>
    %cst_27 = arith.constant 0.398942292 : f32
    %64 = vector.broadcast %cst_27 : f32 to vector<12x24x1xf32>
    %65 = arith.mulf %64, %63 : vector<12x24x1xf32>
    %66 = vector.shape_cast %25 : vector<24x24xf32> to vector<1x24x24xf32>
    %cst_28 = arith.constant -5.000000e-01 : f32
    %67 = vector.broadcast %cst_28 : f32 to vector<1x24x24xf32>
    %68 = arith.mulf %67, %66 : vector<1x24x24xf32>
    %69 = vector.broadcast %68 : vector<1x24x24xf32> to vector<12x24x24xf32>
    %70 = vector.broadcast %63 : vector<12x24x1xf32> to vector<12x24x24xf32>
    %71 = arith.mulf %69, %70 : vector<12x24x24xf32>
    %72 = vector.broadcast %63 : vector<12x24x1xf32> to vector<12x24x24xf32>
    %73 = arith.mulf %71, %72 : vector<12x24x24xf32>
    %74 = math.exp %73 : vector<12x24x24xf32>
    %75 = vector.broadcast %65 : vector<12x24x1xf32> to vector<12x24x24xf32>
    %76 = arith.mulf %75, %74 : vector<12x24x24xf32>
    %c0_29 = arith.constant 0 : index
    %c24 = arith.constant 24 : index
    %c0_30 = arith.constant 0 : index
    %c0_31 = arith.constant 0 : index
    %77 = vector.load %arg5[%c0_29, %c24, %c0_30, %c0_31] : memref<1x36x24x24xf32, #tpu.memory_space<vmem>>, vector<1x12x24x24xf32>
    %78 = vector.shape_cast %77 : vector<1x12x24x24xf32> to vector<12x24x24xf32>
    %79 = vector.shape_cast %76 : vector<12x24x24xf32> to vector<1x12x24x24xf32>
    tpu.vector_store %arg5[%c0_29, %c24, %c0_30, %c0_31], %79 {strides = array<i32>} : memref<1x36x24x24xf32, #tpu.memory_space<vmem>>, vector<1x12x24x24xf32>,
    return
  }
  func.func @transform_0(%arg0: i32) -> (i32, i32, i32) {
    %c0_i32 = arith.constant 0 : i32
    %c0_i32_0 = arith.constant 0 : i32
    %c0_i32_1 = arith.constant 0 : i32
    return %arg0, %c0_i32, %c0_i32_0 : i32, i32, i32
  }
  func.func @transform_1(%arg0: i32) -> (i32, i32) {
    %c0_i32 = arith.constant 0 : i32
    %c0_i32_0 = arith.constant 0 : i32
    %c0_i32_1 = arith.constant 0 : i32
    return %c0_i32, %c0_i32_0 : i32, i32
  }
  func.func @transform_2(%arg0: i32) -> (i32, i32) {
    %c0_i32 = arith.constant 0 : i32
    %c0_i32_0 = arith.constant 0 : i32
    %c0_i32_1 = arith.constant 0 : i32
    return %c0_i32, %c0_i32_0 : i32, i32
  }
  func.func @transform_3(%arg0: i32) -> (i32, i32) {
    %c0_i32 = arith.constant 0 : i32
    %c0_i32_0 = arith.constant 0 : i32
    %c0_i32_1 = arith.constant 0 : i32
    return %c0_i32, %c0_i32_0 : i32, i32
  }
  func.func @transform_4(%arg0: i32) -> (i32, i32, i32, i32) {
    %c0_i32 = arith.constant 0 : i32
    %c0_i32_0 = arith.constant 0 : i32
    %c0_i32_1 = arith.constant 0 : i32
    %c0_i32_2 = arith.constant 0 : i32
    return %arg0, %c0_i32, %c0_i32_0, %c0_i32_1 : i32, i32, i32, i32
  }
}

module attributes {stable_mosaic.version = 11 : i64} {
  func.func @_trunk_kernel(%arg0: i32, %arg1: memref<1x32x3xf32, #tpu.memory_space<vmem>>, %arg2: memref<1x4x8x3xf32, #tpu.memory_space<vmem>>, %arg3: memref<32x32xf32, #tpu.memory_space<vmem>>, %arg4: memref<3x8x8xf32, #tpu.memory_space<vmem>>, %arg5: memref<3x3x32xf32, #tpu.memory_space<vmem>>, %arg6: memref<3x1x32xf32, #tpu.memory_space<vmem>>, %arg7: memref<3x1x32xf32, #tpu.memory_space<vmem>>, %arg8: memref<3x1x32xf32, #tpu.memory_space<vmem>>, %arg9: memref<3x32x96xf32, #tpu.memory_space<vmem>>, %arg10: memref<3x1x96xf32, #tpu.memory_space<vmem>>, %arg11: memref<3x32x32xf32, #tpu.memory_space<vmem>>, %arg12: memref<3x1x32xf32, #tpu.memory_space<vmem>>, %arg13: memref<3x1x32xf32, #tpu.memory_space<vmem>>, %arg14: memref<3x1x32xf32, #tpu.memory_space<vmem>>, %arg15: memref<3x32x128xf32, #tpu.memory_space<vmem>>, %arg16: memref<3x1x128xf32, #tpu.memory_space<vmem>>, %arg17: memref<3x128x32xf32, #tpu.memory_space<vmem>>, %arg18: memref<3x1x32xf32, #tpu.memory_space<vmem>>, %arg19: memref<3x32xf32, #tpu.memory_space<vmem>>, %arg20: memref<1x32xf32, #tpu.memory_space<vmem>>, %arg21: memref<1x32xf32, #tpu.memory_space<vmem>>, %arg22: memref<1x32xf32, #tpu.memory_space<vmem>>, %arg23: memref<32x16xf32, #tpu.memory_space<vmem>>, %arg24: memref<1x16xf32, #tpu.memory_space<vmem>>, %arg25: memref<128x24xf32, #tpu.memory_space<vmem>>, %arg26: memref<1x24xf32, #tpu.memory_space<vmem>>, %arg27: memref<1x4x24xf32, #tpu.memory_space<vmem>>, %arg28: memref<1x12x8x8xf32, #tpu.memory_space<vmem>>) attributes {dimension_semantics = [#tpu.dimension_semantics<parallel>], iteration_bounds = array<i64: 2>, scalar_prefetch = 0 : i64, scratch_operands = 0 : i64, tpu.core_type = #tpu.core_type<tc>, window_params = [{transform_indices = @transform_0, window_bounds = array<i64: 1, 32, 3>}, {transform_indices = @transform_1, window_bounds = array<i64: 1, 4, 8, 3>}, {pipeline_mode = #tpu.pipeline_mode<synchronous>, transform_indices = @transform_2, window_bounds = array<i64: 32, 32>}, {pipeline_mode = #tpu.pipeline_mode<synchronous>, transform_indices = @transform_3, window_bounds = array<i64: 3, 8, 8>}, {pipeline_mode = #tpu.pipeline_mode<synchronous>, transform_indices = @transform_4, window_bounds = array<i64: 3, 3, 32>}, {pipeline_mode = #tpu.pipeline_mode<synchronous>, transform_indices = @transform_5, window_bounds = array<i64: 3, 1, 32>}, {pipeline_mode = #tpu.pipeline_mode<synchronous>, transform_indices = @transform_6, window_bounds = array<i64: 3, 1, 32>}, {pipeline_mode = #tpu.pipeline_mode<synchronous>, transform_indices = @transform_7, window_bounds = array<i64: 3, 1, 32>}, {pipeline_mode = #tpu.pipeline_mode<synchronous>, transform_indices = @transform_8, window_bounds = array<i64: 3, 32, 96>}, {pipeline_mode = #tpu.pipeline_mode<synchronous>, transform_indices = @transform_9, window_bounds = array<i64: 3, 1, 96>}, {pipeline_mode = #tpu.pipeline_mode<synchronous>, transform_indices = @transform_10, window_bounds = array<i64: 3, 32, 32>}, {pipeline_mode = #tpu.pipeline_mode<synchronous>, transform_indices = @transform_11, window_bounds = array<i64: 3, 1, 32>}, {pipeline_mode = #tpu.pipeline_mode<synchronous>, transform_indices = @transform_12, window_bounds = array<i64: 3, 1, 32>}, {pipeline_mode = #tpu.pipeline_mode<synchronous>, transform_indices = @transform_13, window_bounds = array<i64: 3, 1, 32>}, {pipeline_mode = #tpu.pipeline_mode<synchronous>, transform_indices = @transform_14, window_bounds = array<i64: 3, 32, 128>}, {pipeline_mode = #tpu.pipeline_mode<synchronous>, transform_indices = @transform_15, window_bounds = array<i64: 3, 1, 128>}, {pipeline_mode = #tpu.pipeline_mode<synchronous>, transform_indices = @transform_16, window_bounds = array<i64: 3, 128, 32>}, {pipeline_mode = #tpu.pipeline_mode<synchronous>, transform_indices = @transform_17, window_bounds = array<i64: 3, 1, 32>}, {pipeline_mode = #tpu.pipeline_mode<synchronous>, transform_indices = @transform_18, window_bounds = array<i64: 3, 32>}, {pipeline_mode = #tpu.pipeline_mode<synchronous>, transform_indices = @transform_19, window_bounds = array<i64: 1, 32>}, {pipeline_mode = #tpu.pipeline_mode<synchronous>, transform_indices = @transform_20, window_bounds = array<i64: 1, 32>}, {pipeline_mode = #tpu.pipeline_mode<synchronous>, transform_indices = @transform_21, window_bounds = array<i64: 1, 32>}, {pipeline_mode = #tpu.pipeline_mode<synchronous>, transform_indices = @transform_22, window_bounds = array<i64: 32, 16>}, {pipeline_mode = #tpu.pipeline_mode<synchronous>, transform_indices = @transform_23, window_bounds = array<i64: 1, 16>}, {pipeline_mode = #tpu.pipeline_mode<synchronous>, transform_indices = @transform_24, window_bounds = array<i64: 128, 24>}, {pipeline_mode = #tpu.pipeline_mode<synchronous>, transform_indices = @transform_25, window_bounds = array<i64: 1, 24>}, {transform_indices = @transform_26, window_bounds = array<i64: 1, 4, 24>}, {transform_indices = @transform_27, window_bounds = array<i64: 1, 12, 8, 8>}]} {
    %c0 = arith.constant 0 : index
    %c0_0 = arith.constant 0 : index
    %c0_1 = arith.constant 0 : index
    %0 = vector.load %arg1[%c0, %c0_0, %c0_1] : memref<1x32x3xf32, #tpu.memory_space<vmem>>, vector<1x32x3xf32>
    %1 = vector.shape_cast %0 : vector<1x32x3xf32> to vector<32x3xf32>
    %c0_2 = arith.constant 0 : index
    %c0_3 = arith.constant 0 : index
    %c0_4 = arith.constant 0 : index
    %c0_5 = arith.constant 0 : index
    %2 = vector.load %arg2[%c0_2, %c0_3, %c0_4, %c0_5] : memref<1x4x8x3xf32, #tpu.memory_space<vmem>>, vector<1x4x8x3xf32>
    %3 = vector.shape_cast %2 : vector<1x4x8x3xf32> to vector<4x8x3xf32>
    %c0_6 = arith.constant 0 : index
    %c0_7 = arith.constant 0 : index
    %4 = vector.load %arg19[%c0_6, %c0_7] : memref<3x32xf32, #tpu.memory_space<vmem>>, vector<3x32xf32>
    %cst = arith.constant dense<0.000000e+00> : vector<32x32xf32>
    %5 = tpu.matmul %1, %4, %cst {dimension_numbers = #tpu.dot_dimension_numbers<[1], [0], [0], [1], [0, 0, 1, 1], [], []>} : vector<32x3xf32>, vector<3x32xf32>, vector<32x32xf32> -> vector<32x32xf32>
    %c0_8 = arith.constant 0 : index
    %c0_9 = arith.constant 0 : index
    %6 = vector.load %arg20[%c0_8, %c0_9] : memref<1x32xf32, #tpu.memory_space<vmem>>, vector<1x32xf32>
    %7 = vector.broadcast %6 : vector<1x32xf32> to vector<32x32xf32>
    %8 = arith.addf %5, %7 : vector<32x32xf32>
    %c0_10 = arith.constant 0 : index
    %c0_11 = arith.constant 0 : index
    %9 = vector.load %arg3[%c0_10, %c0_11] : memref<32x32xf32, #tpu.memory_space<vmem>>, vector<32x32xf32>
    %10 = arith.addf %8, %9 : vector<32x32xf32>
    %11 = tpu.iota {dimensions = array<i32: 0>} : vector<8x8xi32>
    %12 = tpu.iota {dimensions = array<i32: 1>} : vector<8x8xi32>
    %13 = arith.cmpi sge, %11, %12 : vector<8x8xi32>
    %14 = arith.cmpi eq, %11, %12 : vector<8x8xi32>
    %cst_12 = arith.constant 5.000000e-01 : f32
    %cst_13 = arith.constant 1.000000e+00 : f32
    %15 = vector.broadcast %cst_12 : f32 to vector<8x8xf32>
    %16 = vector.broadcast %cst_13 : f32 to vector<8x8xf32>
    %17 = arith.select %14, %15, %16 : vector<8x8xi1>, vector<8x8xf32>
    %c0_14 = arith.constant 0 : index
    %c0_15 = arith.constant 0 : index
    %c0_16 = arith.constant 0 : index
    %18 = vector.load %arg4[%c0_14, %c0_15, %c0_16] : memref<3x8x8xf32, #tpu.memory_space<vmem>>, vector<1x8x8xf32>
    %19 = vector.shape_cast %18 : vector<1x8x8xf32> to vector<8x8xf32>
    %20 = vector.shape_cast %19 : vector<8x8xf32> to vector<1x8x8xf32>
    %21 = vector.shape_cast %20 : vector<1x8x8xf32> to vector<1x8x8xf32>
    %22 = vector.broadcast %21 : vector<1x8x8xf32> to vector<4x8x8xf32>
    "tpu.trace_start"() <{level = 10 : i32, message = "man,mnp->map"}> : () -> ()
    %cst_17 = arith.constant dense<0.000000e+00> : vector<4x8x3xf32>
    %23 = tpu.matmul %22, %3, %cst_17 {dimension_numbers = #tpu.dot_dimension_numbers<[2], [1], [1], [2], [0, 0, 0, 1, 1, 2], [0], [0]>} : vector<4x8x8xf32>, vector<4x8x3xf32>, vector<4x8x3xf32> -> vector<4x8x3xf32>
    "tpu.trace_stop"() : () -> ()
    %24 = vector.shape_cast %23 : vector<4x8x3xf32> to vector<32x3xf32>
    %c0_18 = arith.constant 0 : index
    %c0_19 = arith.constant 0 : index
    %c0_20 = arith.constant 0 : index
    %25 = vector.load %arg5[%c0_18, %c0_19, %c0_20] : memref<3x3x32xf32, #tpu.memory_space<vmem>>, vector<1x3x32xf32>
    %26 = vector.shape_cast %25 : vector<1x3x32xf32> to vector<3x32xf32>
    %cst_21 = arith.constant dense<0.000000e+00> : vector<32x32xf32>
    %27 = tpu.matmul %24, %26, %cst_21 {dimension_numbers = #tpu.dot_dimension_numbers<[1], [0], [0], [1], [0, 0, 1, 1], [], []>} : vector<32x3xf32>, vector<3x32xf32>, vector<32x32xf32> -> vector<32x32xf32>
    %c0_22 = arith.constant 0 : index
    %c0_23 = arith.constant 0 : index
    %c0_24 = arith.constant 0 : index
    %28 = vector.load %arg6[%c0_22, %c0_23, %c0_24] : memref<3x1x32xf32, #tpu.memory_space<vmem>>, vector<1x1x32xf32>
    %29 = vector.shape_cast %28 : vector<1x1x32xf32> to vector<1x32xf32>
    %30 = vector.broadcast %29 : vector<1x32xf32> to vector<32x32xf32>
    %31 = arith.addf %27, %30 : vector<32x32xf32>
    %32 = arith.addf %10, %31 : vector<32x32xf32>
    %c0_25 = arith.constant 0 : index
    %c0_26 = arith.constant 0 : index
    %c0_27 = arith.constant 0 : index
    %33 = vector.load %arg7[%c0_25, %c0_26, %c0_27] : memref<3x1x32xf32, #tpu.memory_space<vmem>>, vector<1x1x32xf32>
    %34 = vector.shape_cast %33 : vector<1x1x32xf32> to vector<1x32xf32>
    %c0_28 = arith.constant 0 : index
    %c0_29 = arith.constant 0 : index
    %c0_30 = arith.constant 0 : index
    %35 = vector.load %arg8[%c0_28, %c0_29, %c0_30] : memref<3x1x32xf32, #tpu.memory_space<vmem>>, vector<1x1x32xf32>
    %36 = vector.shape_cast %35 : vector<1x1x32xf32> to vector<1x32xf32>
    %cst_31 = arith.constant dense<0.000000e+00> : vector<32xf32>
    %37 = vector.multi_reduction <add>, %32, %cst_31 [1] : vector<32x32xf32> to vector<32xf32>
    %38 = vector.shape_cast %37 : vector<32xf32> to vector<32x1xf32>
    %cst_32 = arith.constant 3.200000e+01 : f32
    %39 = vector.broadcast %cst_32 : f32 to vector<32x1xf32>
    %40 = arith.divf %38, %39 : vector<32x1xf32>
    %41 = vector.broadcast %40 : vector<32x1xf32> to vector<32x32xf32>
    %42 = arith.subf %32, %41 : vector<32x32xf32>
    %43 = arith.mulf %42, %42 : vector<32x32xf32>
    %cst_33 = arith.constant dense<0.000000e+00> : vector<32xf32>
    %44 = vector.multi_reduction <add>, %43, %cst_33 [1] : vector<32x32xf32> to vector<32xf32>
    %45 = vector.shape_cast %44 : vector<32xf32> to vector<32x1xf32>
    %cst_34 = arith.constant 3.200000e+01 : f32
    %46 = vector.broadcast %cst_34 : f32 to vector<32x1xf32>
    %47 = arith.divf %45, %46 : vector<32x1xf32>
    %48 = vector.broadcast %40 : vector<32x1xf32> to vector<32x32xf32>
    %49 = arith.subf %32, %48 : vector<32x32xf32>
    %cst_35 = arith.constant 9.99999974E-6 : f32
    %50 = vector.broadcast %cst_35 : f32 to vector<32x1xf32>
    %51 = arith.addf %47, %50 : vector<32x1xf32>
    %52 = math.rsqrt %51 : vector<32x1xf32>
    %53 = vector.broadcast %52 : vector<32x1xf32> to vector<32x32xf32>
    %54 = arith.mulf %49, %53 : vector<32x32xf32>
    %55 = vector.broadcast %34 : vector<1x32xf32> to vector<32x32xf32>
    %56 = arith.mulf %54, %55 : vector<32x32xf32>
    %57 = vector.broadcast %36 : vector<1x32xf32> to vector<32x32xf32>
    %58 = arith.addf %56, %57 : vector<32x32xf32>
    %c0_36 = arith.constant 0 : index
    %c0_37 = arith.constant 0 : index
    %c0_38 = arith.constant 0 : index
    %59 = vector.load %arg9[%c0_36, %c0_37, %c0_38] : memref<3x32x96xf32, #tpu.memory_space<vmem>>, vector<1x32x96xf32>
    %60 = vector.shape_cast %59 : vector<1x32x96xf32> to vector<32x96xf32>
    %cst_39 = arith.constant dense<0.000000e+00> : vector<32x96xf32>
    %61 = tpu.matmul %58, %60, %cst_39 {dimension_numbers = #tpu.dot_dimension_numbers<[1], [0], [0], [1], [0, 0, 1, 1], [], []>} : vector<32x32xf32>, vector<32x96xf32>, vector<32x96xf32> -> vector<32x96xf32>
    %c0_40 = arith.constant 0 : index
    %c0_41 = arith.constant 0 : index
    %c0_42 = arith.constant 0 : index
    %62 = vector.load %arg10[%c0_40, %c0_41, %c0_42] : memref<3x1x96xf32, #tpu.memory_space<vmem>>, vector<1x1x96xf32>
    %63 = vector.shape_cast %62 : vector<1x1x96xf32> to vector<1x96xf32>
    %64 = vector.broadcast %63 : vector<1x96xf32> to vector<32x96xf32>
    %65 = arith.addf %61, %64 : vector<32x96xf32>
    %66 = vector.extract_strided_slice %65 {offsets = [0, 0], sizes = [32, 32], strides = [1, 1]} : vector<32x96xf32> to vector<32x32xf32>
    %67 = vector.shape_cast %66 : vector<32x32xf32> to vector<4x8x32xf32>
    %68 = vector.extract_strided_slice %65 {offsets = [0, 32], sizes = [32, 32], strides = [1, 1]} : vector<32x96xf32> to vector<32x32xf32>
    %69 = vector.shape_cast %68 : vector<32x32xf32> to vector<4x8x32xf32>
    %70 = vector.extract_strided_slice %65 {offsets = [0, 64], sizes = [32, 32], strides = [1, 1]} : vector<32x96xf32> to vector<32x32xf32>
    %71 = vector.shape_cast %70 : vector<32x32xf32> to vector<4x8x32xf32>
    %c0_43 = arith.constant 0 : index
    %c0_44 = arith.constant 0 : index
    %c0_45 = arith.constant 0 : index
    %72 = vector.load %arg11[%c0_43, %c0_44, %c0_45] : memref<3x32x32xf32, #tpu.memory_space<vmem>>, vector<1x32x32xf32>
    %73 = vector.shape_cast %72 : vector<1x32x32xf32> to vector<32x32xf32>
    %74 = vector.extract_strided_slice %67 {offsets = [0, 0, 0], sizes = [4, 8, 8], strides = [1, 1, 1]} : vector<4x8x32xf32> to vector<4x8x8xf32>
    %75 = vector.extract_strided_slice %69 {offsets = [0, 0, 0], sizes = [4, 8, 8], strides = [1, 1, 1]} : vector<4x8x32xf32> to vector<4x8x8xf32>
    "tpu.trace_start"() <{level = 10 : i32, message = "bnd,bmd->bnm"}> : () -> ()
    %cst_46 = arith.constant dense<0.000000e+00> : vector<4x8x8xf32>
    %76 = tpu.matmul %74, %75, %cst_46 {dimension_numbers = #tpu.dot_dimension_numbers<[2], [2], [1], [1], [0, 0, 0, 1, 1, 1], [0], [0]>} : vector<4x8x8xf32>, vector<4x8x8xf32>, vector<4x8x8xf32> -> vector<4x8x8xf32>
    "tpu.trace_stop"() : () -> ()
    %cst_47 = arith.constant 1.000000e-03 : f32
    %77 = vector.broadcast %cst_47 : f32 to vector<4x8x8xf32>
    %78 = arith.mulf %76, %77 : vector<4x8x8xf32>
    %79 = vector.shape_cast %13 : vector<8x8xi1> to vector<1x8x8xi1>
    %cst_48 = arith.constant -1.000000e+30 : f32
    %80 = vector.shape_cast %79 : vector<1x8x8xi1> to vector<1x8x8xi1>
    %81 = vector.broadcast %80 : vector<1x8x8xi1> to vector<4x8x8xi1>
    %82 = vector.broadcast %cst_48 : f32 to vector<4x8x8xf32>
    %83 = arith.select %81, %78, %82 : vector<4x8x8xi1>, vector<4x8x8xf32>
    %cst_49 = arith.constant dense<0xFF800000> : vector<4x8xf32>
    %84 = vector.multi_reduction <maximumf>, %83, %cst_49 [2] : vector<4x8x8xf32> to vector<4x8xf32>
    %85 = vector.shape_cast %84 : vector<4x8xf32> to vector<4x8x1xf32>
    %86 = vector.broadcast %85 : vector<4x8x1xf32> to vector<4x8x8xf32>
    %87 = arith.subf %83, %86 : vector<4x8x8xf32>
    %88 = math.exp %87 : vector<4x8x8xf32>
    %cst_50 = arith.constant dense<0.000000e+00> : vector<4x8xf32>
    %89 = vector.multi_reduction <add>, %88, %cst_50 [2] : vector<4x8x8xf32> to vector<4x8xf32>
    %90 = vector.shape_cast %89 : vector<4x8xf32> to vector<4x8x1xf32>
    %91 = vector.broadcast %90 : vector<4x8x1xf32> to vector<4x8x8xf32>
    %92 = arith.divf %88, %91 : vector<4x8x8xf32>
    %93 = vector.extract_strided_slice %71 {offsets = [0, 0, 0], sizes = [4, 8, 8], strides = [1, 1, 1]} : vector<4x8x32xf32> to vector<4x8x8xf32>
    "tpu.trace_start"() <{level = 10 : i32, message = "bnm,bmd->bnd"}> : () -> ()
    %cst_51 = arith.constant dense<0.000000e+00> : vector<4x8x8xf32>
    %94 = tpu.matmul %92, %93, %cst_51 {dimension_numbers = #tpu.dot_dimension_numbers<[2], [1], [1], [2], [0, 0, 0, 1, 1, 2], [0], [0]>} : vector<4x8x8xf32>, vector<4x8x8xf32>, vector<4x8x8xf32> -> vector<4x8x8xf32>
    "tpu.trace_stop"() : () -> ()
    %95 = vector.shape_cast %94 : vector<4x8x8xf32> to vector<32x8xf32>
    %96 = vector.extract_strided_slice %73 {offsets = [0, 0], sizes = [8, 32], strides = [1, 1]} : vector<32x32xf32> to vector<8x32xf32>
    %cst_52 = arith.constant dense<0.000000e+00> : vector<32x32xf32>
    %97 = tpu.matmul %95, %96, %cst_52 {dimension_numbers = #tpu.dot_dimension_numbers<[1], [0], [0], [1], [0, 0, 1, 1], [], []>} : vector<32x8xf32>, vector<8x32xf32>, vector<32x32xf32> -> vector<32x32xf32>
    %98 = vector.extract_strided_slice %92 {offsets = [0, 0, 0], sizes = [1, 8, 8], strides = [1, 1, 1]} : vector<4x8x8xf32> to vector<1x8x8xf32>
    %99 = vector.shape_cast %98 : vector<1x8x8xf32> to vector<8x8xf32>
    %100 = vector.extract_strided_slice %92 {offsets = [1, 0, 0], sizes = [1, 8, 8], strides = [1, 1, 1]} : vector<4x8x8xf32> to vector<1x8x8xf32>
    %101 = vector.shape_cast %100 : vector<1x8x8xf32> to vector<8x8xf32>
    %102 = arith.addf %99, %101 : vector<8x8xf32>
    %103 = vector.extract_strided_slice %92 {offsets = [2, 0, 0], sizes = [1, 8, 8], strides = [1, 1, 1]} : vector<4x8x8xf32> to vector<1x8x8xf32>
    %104 = vector.shape_cast %103 : vector<1x8x8xf32> to vector<8x8xf32>
    %105 = arith.addf %102, %104 : vector<8x8xf32>
    %106 = vector.extract_strided_slice %92 {offsets = [3, 0, 0], sizes = [1, 8, 8], strides = [1, 1, 1]} : vector<4x8x8xf32> to vector<1x8x8xf32>
    %107 = vector.shape_cast %106 : vector<1x8x8xf32> to vector<8x8xf32>
    %108 = arith.addf %105, %107 : vector<8x8xf32>
    %109 = tpu.transpose %108, [1, 0] : vector<8x8xf32> -> vector<8x8xf32>
    %110 = arith.addf %108, %109 : vector<8x8xf32>
    %111 = arith.mulf %110, %17 : vector<8x8xf32>
    %cst_53 = arith.constant 0.027777778 : f32
    %112 = vector.broadcast %cst_53 : f32 to vector<8x8xf32>
    %113 = arith.mulf %111, %112 : vector<8x8xf32>
    %c0_54 = arith.constant 0 : index
    %c0_55 = arith.constant 0 : index
    %c0_56 = arith.constant 0 : index
    %c0_57 = arith.constant 0 : index
    %114 = vector.load %arg28[%c0_54, %c0_55, %c0_56, %c0_57] : memref<1x12x8x8xf32, #tpu.memory_space<vmem>>, vector<1x1x8x8xf32>
    %115 = vector.shape_cast %114 : vector<1x1x8x8xf32> to vector<8x8xf32>
    %116 = vector.shape_cast %113 : vector<8x8xf32> to vector<1x1x8x8xf32>
    tpu.vector_store %arg28[%c0_54, %c0_55, %c0_56, %c0_57], %116 {strides = array<i32>} : memref<1x12x8x8xf32, #tpu.memory_space<vmem>>, vector<1x1x8x8xf32>,
    %117 = vector.extract_strided_slice %67 {offsets = [0, 0, 8], sizes = [4, 8, 8], strides = [1, 1, 1]} : vector<4x8x32xf32> to vector<4x8x8xf32>
    %118 = vector.extract_strided_slice %69 {offsets = [0, 0, 8], sizes = [4, 8, 8], strides = [1, 1, 1]} : vector<4x8x32xf32> to vector<4x8x8xf32>
    "tpu.trace_start"() <{level = 10 : i32, message = "bnd,bmd->bnm"}> : () -> ()
    %cst_58 = arith.constant dense<0.000000e+00> : vector<4x8x8xf32>
    %119 = tpu.matmul %117, %118, %cst_58 {dimension_numbers = #tpu.dot_dimension_numbers<[2], [2], [1], [1], [0, 0, 0, 1, 1, 1], [0], [0]>} : vector<4x8x8xf32>, vector<4x8x8xf32>, vector<4x8x8xf32> -> vector<4x8x8xf32>
    "tpu.trace_stop"() : () -> ()
    %cst_59 = arith.constant 1.000000e-03 : f32
    %120 = vector.broadcast %cst_59 : f32 to vector<4x8x8xf32>
    %121 = arith.mulf %119, %120 : vector<4x8x8xf32>
    %122 = vector.shape_cast %13 : vector<8x8xi1> to vector<1x8x8xi1>
    %cst_60 = arith.constant -1.000000e+30 : f32
    %123 = vector.shape_cast %122 : vector<1x8x8xi1> to vector<1x8x8xi1>
    %124 = vector.broadcast %123 : vector<1x8x8xi1> to vector<4x8x8xi1>
    %125 = vector.broadcast %cst_60 : f32 to vector<4x8x8xf32>
    %126 = arith.select %124, %121, %125 : vector<4x8x8xi1>, vector<4x8x8xf32>
    %cst_61 = arith.constant dense<0xFF800000> : vector<4x8xf32>
    %127 = vector.multi_reduction <maximumf>, %126, %cst_61 [2] : vector<4x8x8xf32> to vector<4x8xf32>
    %128 = vector.shape_cast %127 : vector<4x8xf32> to vector<4x8x1xf32>
    %129 = vector.broadcast %128 : vector<4x8x1xf32> to vector<4x8x8xf32>
    %130 = arith.subf %126, %129 : vector<4x8x8xf32>
    %131 = math.exp %130 : vector<4x8x8xf32>
    %cst_62 = arith.constant dense<0.000000e+00> : vector<4x8xf32>
    %132 = vector.multi_reduction <add>, %131, %cst_62 [2] : vector<4x8x8xf32> to vector<4x8xf32>
    %133 = vector.shape_cast %132 : vector<4x8xf32> to vector<4x8x1xf32>
    %134 = vector.broadcast %133 : vector<4x8x1xf32> to vector<4x8x8xf32>
    %135 = arith.divf %131, %134 : vector<4x8x8xf32>
    %136 = vector.extract_strided_slice %71 {offsets = [0, 0, 8], sizes = [4, 8, 8], strides = [1, 1, 1]} : vector<4x8x32xf32> to vector<4x8x8xf32>
    "tpu.trace_start"() <{level = 10 : i32, message = "bnm,bmd->bnd"}> : () -> ()
    %cst_63 = arith.constant dense<0.000000e+00> : vector<4x8x8xf32>
    %137 = tpu.matmul %135, %136, %cst_63 {dimension_numbers = #tpu.dot_dimension_numbers<[2], [1], [1], [2], [0, 0, 0, 1, 1, 2], [0], [0]>} : vector<4x8x8xf32>, vector<4x8x8xf32>, vector<4x8x8xf32> -> vector<4x8x8xf32>
    "tpu.trace_stop"() : () -> ()
    %138 = vector.shape_cast %137 : vector<4x8x8xf32> to vector<32x8xf32>
    %139 = vector.extract_strided_slice %73 {offsets = [8, 0], sizes = [8, 32], strides = [1, 1]} : vector<32x32xf32> to vector<8x32xf32>
    %cst_64 = arith.constant dense<0.000000e+00> : vector<32x32xf32>
    %140 = tpu.matmul %138, %139, %cst_64 {dimension_numbers = #tpu.dot_dimension_numbers<[1], [0], [0], [1], [0, 0, 1, 1], [], []>} : vector<32x8xf32>, vector<8x32xf32>, vector<32x32xf32> -> vector<32x32xf32>
    %141 = arith.addf %97, %140 : vector<32x32xf32>
    %142 = vector.extract_strided_slice %135 {offsets = [0, 0, 0], sizes = [1, 8, 8], strides = [1, 1, 1]} : vector<4x8x8xf32> to vector<1x8x8xf32>
    %143 = vector.shape_cast %142 : vector<1x8x8xf32> to vector<8x8xf32>
    %144 = vector.extract_strided_slice %135 {offsets = [1, 0, 0], sizes = [1, 8, 8], strides = [1, 1, 1]} : vector<4x8x8xf32> to vector<1x8x8xf32>
    %145 = vector.shape_cast %144 : vector<1x8x8xf32> to vector<8x8xf32>
    %146 = arith.addf %143, %145 : vector<8x8xf32>
    %147 = vector.extract_strided_slice %135 {offsets = [2, 0, 0], sizes = [1, 8, 8], strides = [1, 1, 1]} : vector<4x8x8xf32> to vector<1x8x8xf32>
    %148 = vector.shape_cast %147 : vector<1x8x8xf32> to vector<8x8xf32>
    %149 = arith.addf %146, %148 : vector<8x8xf32>
    %150 = vector.extract_strided_slice %135 {offsets = [3, 0, 0], sizes = [1, 8, 8], strides = [1, 1, 1]} : vector<4x8x8xf32> to vector<1x8x8xf32>
    %151 = vector.shape_cast %150 : vector<1x8x8xf32> to vector<8x8xf32>
    %152 = arith.addf %149, %151 : vector<8x8xf32>
    %153 = tpu.transpose %152, [1, 0] : vector<8x8xf32> -> vector<8x8xf32>
    %154 = arith.addf %152, %153 : vector<8x8xf32>
    %155 = arith.mulf %154, %17 : vector<8x8xf32>
    %cst_65 = arith.constant 0.027777778 : f32
    %156 = vector.broadcast %cst_65 : f32 to vector<8x8xf32>
    %157 = arith.mulf %155, %156 : vector<8x8xf32>
    %c0_66 = arith.constant 0 : index
    %c1 = arith.constant 1 : index
    %c0_67 = arith.constant 0 : index
    %c0_68 = arith.constant 0 : index
    %158 = vector.load %arg28[%c0_66, %c1, %c0_67, %c0_68] : memref<1x12x8x8xf32, #tpu.memory_space<vmem>>, vector<1x1x8x8xf32>
    %159 = vector.shape_cast %158 : vector<1x1x8x8xf32> to vector<8x8xf32>
    %160 = vector.shape_cast %157 : vector<8x8xf32> to vector<1x1x8x8xf32>
    tpu.vector_store %arg28[%c0_66, %c1, %c0_67, %c0_68], %160 {strides = array<i32>} : memref<1x12x8x8xf32, #tpu.memory_space<vmem>>, vector<1x1x8x8xf32>,
    %161 = vector.extract_strided_slice %67 {offsets = [0, 0, 16], sizes = [4, 8, 8], strides = [1, 1, 1]} : vector<4x8x32xf32> to vector<4x8x8xf32>
    %162 = vector.extract_strided_slice %69 {offsets = [0, 0, 16], sizes = [4, 8, 8], strides = [1, 1, 1]} : vector<4x8x32xf32> to vector<4x8x8xf32>
    "tpu.trace_start"() <{level = 10 : i32, message = "bnd,bmd->bnm"}> : () -> ()
    %cst_69 = arith.constant dense<0.000000e+00> : vector<4x8x8xf32>
    %163 = tpu.matmul %161, %162, %cst_69 {dimension_numbers = #tpu.dot_dimension_numbers<[2], [2], [1], [1], [0, 0, 0, 1, 1, 1], [0], [0]>} : vector<4x8x8xf32>, vector<4x8x8xf32>, vector<4x8x8xf32> -> vector<4x8x8xf32>
    "tpu.trace_stop"() : () -> ()
    %cst_70 = arith.constant 1.000000e-03 : f32
    %164 = vector.broadcast %cst_70 : f32 to vector<4x8x8xf32>
    %165 = arith.mulf %163, %164 : vector<4x8x8xf32>
    %166 = vector.shape_cast %13 : vector<8x8xi1> to vector<1x8x8xi1>
    %cst_71 = arith.constant -1.000000e+30 : f32
    %167 = vector.shape_cast %166 : vector<1x8x8xi1> to vector<1x8x8xi1>
    %168 = vector.broadcast %167 : vector<1x8x8xi1> to vector<4x8x8xi1>
    %169 = vector.broadcast %cst_71 : f32 to vector<4x8x8xf32>
    %170 = arith.select %168, %165, %169 : vector<4x8x8xi1>, vector<4x8x8xf32>
    %cst_72 = arith.constant dense<0xFF800000> : vector<4x8xf32>
    %171 = vector.multi_reduction <maximumf>, %170, %cst_72 [2] : vector<4x8x8xf32> to vector<4x8xf32>
    %172 = vector.shape_cast %171 : vector<4x8xf32> to vector<4x8x1xf32>
    %173 = vector.broadcast %172 : vector<4x8x1xf32> to vector<4x8x8xf32>
    %174 = arith.subf %170, %173 : vector<4x8x8xf32>
    %175 = math.exp %174 : vector<4x8x8xf32>
    %cst_73 = arith.constant dense<0.000000e+00> : vector<4x8xf32>
    %176 = vector.multi_reduction <add>, %175, %cst_73 [2] : vector<4x8x8xf32> to vector<4x8xf32>
    %177 = vector.shape_cast %176 : vector<4x8xf32> to vector<4x8x1xf32>
    %178 = vector.broadcast %177 : vector<4x8x1xf32> to vector<4x8x8xf32>
    %179 = arith.divf %175, %178 : vector<4x8x8xf32>
    %180 = vector.extract_strided_slice %71 {offsets = [0, 0, 16], sizes = [4, 8, 8], strides = [1, 1, 1]} : vector<4x8x32xf32> to vector<4x8x8xf32>
    "tpu.trace_start"() <{level = 10 : i32, message = "bnm,bmd->bnd"}> : () -> ()
    %cst_74 = arith.constant dense<0.000000e+00> : vector<4x8x8xf32>
    %181 = tpu.matmul %179, %180, %cst_74 {dimension_numbers = #tpu.dot_dimension_numbers<[2], [1], [1], [2], [0, 0, 0, 1, 1, 2], [0], [0]>} : vector<4x8x8xf32>, vector<4x8x8xf32>, vector<4x8x8xf32> -> vector<4x8x8xf32>
    "tpu.trace_stop"() : () -> ()
    %182 = vector.shape_cast %181 : vector<4x8x8xf32> to vector<32x8xf32>
    %183 = vector.extract_strided_slice %73 {offsets = [16, 0], sizes = [8, 32], strides = [1, 1]} : vector<32x32xf32> to vector<8x32xf32>
    %cst_75 = arith.constant dense<0.000000e+00> : vector<32x32xf32>
    %184 = tpu.matmul %182, %183, %cst_75 {dimension_numbers = #tpu.dot_dimension_numbers<[1], [0], [0], [1], [0, 0, 1, 1], [], []>} : vector<32x8xf32>, vector<8x32xf32>, vector<32x32xf32> -> vector<32x32xf32>
    %185 = arith.addf %141, %184 : vector<32x32xf32>
    %186 = vector.extract_strided_slice %179 {offsets = [0, 0, 0], sizes = [1, 8, 8], strides = [1, 1, 1]} : vector<4x8x8xf32> to vector<1x8x8xf32>
    %187 = vector.shape_cast %186 : vector<1x8x8xf32> to vector<8x8xf32>
    %188 = vector.extract_strided_slice %179 {offsets = [1, 0, 0], sizes = [1, 8, 8], strides = [1, 1, 1]} : vector<4x8x8xf32> to vector<1x8x8xf32>
    %189 = vector.shape_cast %188 : vector<1x8x8xf32> to vector<8x8xf32>
    %190 = arith.addf %187, %189 : vector<8x8xf32>
    %191 = vector.extract_strided_slice %179 {offsets = [2, 0, 0], sizes = [1, 8, 8], strides = [1, 1, 1]} : vector<4x8x8xf32> to vector<1x8x8xf32>
    %192 = vector.shape_cast %191 : vector<1x8x8xf32> to vector<8x8xf32>
    %193 = arith.addf %190, %192 : vector<8x8xf32>
    %194 = vector.extract_strided_slice %179 {offsets = [3, 0, 0], sizes = [1, 8, 8], strides = [1, 1, 1]} : vector<4x8x8xf32> to vector<1x8x8xf32>
    %195 = vector.shape_cast %194 : vector<1x8x8xf32> to vector<8x8xf32>
    %196 = arith.addf %193, %195 : vector<8x8xf32>
    %197 = tpu.transpose %196, [1, 0] : vector<8x8xf32> -> vector<8x8xf32>
    %198 = arith.addf %196, %197 : vector<8x8xf32>
    %199 = arith.mulf %198, %17 : vector<8x8xf32>
    %cst_76 = arith.constant 0.027777778 : f32
    %200 = vector.broadcast %cst_76 : f32 to vector<8x8xf32>
    %201 = arith.mulf %199, %200 : vector<8x8xf32>
    %c0_77 = arith.constant 0 : index
    %c2 = arith.constant 2 : index
    %c0_78 = arith.constant 0 : index
    %c0_79 = arith.constant 0 : index
    %202 = vector.load %arg28[%c0_77, %c2, %c0_78, %c0_79] : memref<1x12x8x8xf32, #tpu.memory_space<vmem>>, vector<1x1x8x8xf32>
    %203 = vector.shape_cast %202 : vector<1x1x8x8xf32> to vector<8x8xf32>
    %204 = vector.shape_cast %201 : vector<8x8xf32> to vector<1x1x8x8xf32>
    tpu.vector_store %arg28[%c0_77, %c2, %c0_78, %c0_79], %204 {strides = array<i32>} : memref<1x12x8x8xf32, #tpu.memory_space<vmem>>, vector<1x1x8x8xf32>,
    %205 = vector.extract_strided_slice %67 {offsets = [0, 0, 24], sizes = [4, 8, 8], strides = [1, 1, 1]} : vector<4x8x32xf32> to vector<4x8x8xf32>
    %206 = vector.extract_strided_slice %69 {offsets = [0, 0, 24], sizes = [4, 8, 8], strides = [1, 1, 1]} : vector<4x8x32xf32> to vector<4x8x8xf32>
    "tpu.trace_start"() <{level = 10 : i32, message = "bnd,bmd->bnm"}> : () -> ()
    %cst_80 = arith.constant dense<0.000000e+00> : vector<4x8x8xf32>
    %207 = tpu.matmul %205, %206, %cst_80 {dimension_numbers = #tpu.dot_dimension_numbers<[2], [2], [1], [1], [0, 0, 0, 1, 1, 1], [0], [0]>} : vector<4x8x8xf32>, vector<4x8x8xf32>, vector<4x8x8xf32> -> vector<4x8x8xf32>
    "tpu.trace_stop"() : () -> ()
    %cst_81 = arith.constant 1.000000e-03 : f32
    %208 = vector.broadcast %cst_81 : f32 to vector<4x8x8xf32>
    %209 = arith.mulf %207, %208 : vector<4x8x8xf32>
    %210 = vector.shape_cast %13 : vector<8x8xi1> to vector<1x8x8xi1>
    %cst_82 = arith.constant -1.000000e+30 : f32
    %211 = vector.shape_cast %210 : vector<1x8x8xi1> to vector<1x8x8xi1>
    %212 = vector.broadcast %211 : vector<1x8x8xi1> to vector<4x8x8xi1>
    %213 = vector.broadcast %cst_82 : f32 to vector<4x8x8xf32>
    %214 = arith.select %212, %209, %213 : vector<4x8x8xi1>, vector<4x8x8xf32>
    %cst_83 = arith.constant dense<0xFF800000> : vector<4x8xf32>
    %215 = vector.multi_reduction <maximumf>, %214, %cst_83 [2] : vector<4x8x8xf32> to vector<4x8xf32>
    %216 = vector.shape_cast %215 : vector<4x8xf32> to vector<4x8x1xf32>
    %217 = vector.broadcast %216 : vector<4x8x1xf32> to vector<4x8x8xf32>
    %218 = arith.subf %214, %217 : vector<4x8x8xf32>
    %219 = math.exp %218 : vector<4x8x8xf32>
    %cst_84 = arith.constant dense<0.000000e+00> : vector<4x8xf32>
    %220 = vector.multi_reduction <add>, %219, %cst_84 [2] : vector<4x8x8xf32> to vector<4x8xf32>
    %221 = vector.shape_cast %220 : vector<4x8xf32> to vector<4x8x1xf32>
    %222 = vector.broadcast %221 : vector<4x8x1xf32> to vector<4x8x8xf32>
    %223 = arith.divf %219, %222 : vector<4x8x8xf32>
    %224 = vector.extract_strided_slice %71 {offsets = [0, 0, 24], sizes = [4, 8, 8], strides = [1, 1, 1]} : vector<4x8x32xf32> to vector<4x8x8xf32>
    "tpu.trace_start"() <{level = 10 : i32, message = "bnm,bmd->bnd"}> : () -> ()
    %cst_85 = arith.constant dense<0.000000e+00> : vector<4x8x8xf32>
    %225 = tpu.matmul %223, %224, %cst_85 {dimension_numbers = #tpu.dot_dimension_numbers<[2], [1], [1], [2], [0, 0, 0, 1, 1, 2], [0], [0]>} : vector<4x8x8xf32>, vector<4x8x8xf32>, vector<4x8x8xf32> -> vector<4x8x8xf32>
    "tpu.trace_stop"() : () -> ()
    %226 = vector.shape_cast %225 : vector<4x8x8xf32> to vector<32x8xf32>
    %227 = vector.extract_strided_slice %73 {offsets = [24, 0], sizes = [8, 32], strides = [1, 1]} : vector<32x32xf32> to vector<8x32xf32>
    %cst_86 = arith.constant dense<0.000000e+00> : vector<32x32xf32>
    %228 = tpu.matmul %226, %227, %cst_86 {dimension_numbers = #tpu.dot_dimension_numbers<[1], [0], [0], [1], [0, 0, 1, 1], [], []>} : vector<32x8xf32>, vector<8x32xf32>, vector<32x32xf32> -> vector<32x32xf32>
    %229 = arith.addf %185, %228 : vector<32x32xf32>
    %230 = vector.extract_strided_slice %223 {offsets = [0, 0, 0], sizes = [1, 8, 8], strides = [1, 1, 1]} : vector<4x8x8xf32> to vector<1x8x8xf32>
    %231 = vector.shape_cast %230 : vector<1x8x8xf32> to vector<8x8xf32>
    %232 = vector.extract_strided_slice %223 {offsets = [1, 0, 0], sizes = [1, 8, 8], strides = [1, 1, 1]} : vector<4x8x8xf32> to vector<1x8x8xf32>
    %233 = vector.shape_cast %232 : vector<1x8x8xf32> to vector<8x8xf32>
    %234 = arith.addf %231, %233 : vector<8x8xf32>
    %235 = vector.extract_strided_slice %223 {offsets = [2, 0, 0], sizes = [1, 8, 8], strides = [1, 1, 1]} : vector<4x8x8xf32> to vector<1x8x8xf32>
    %236 = vector.shape_cast %235 : vector<1x8x8xf32> to vector<8x8xf32>
    %237 = arith.addf %234, %236 : vector<8x8xf32>
    %238 = vector.extract_strided_slice %223 {offsets = [3, 0, 0], sizes = [1, 8, 8], strides = [1, 1, 1]} : vector<4x8x8xf32> to vector<1x8x8xf32>
    %239 = vector.shape_cast %238 : vector<1x8x8xf32> to vector<8x8xf32>
    %240 = arith.addf %237, %239 : vector<8x8xf32>
    %241 = tpu.transpose %240, [1, 0] : vector<8x8xf32> -> vector<8x8xf32>
    %242 = arith.addf %240, %241 : vector<8x8xf32>
    %243 = arith.mulf %242, %17 : vector<8x8xf32>
    %cst_87 = arith.constant 0.027777778 : f32
    %244 = vector.broadcast %cst_87 : f32 to vector<8x8xf32>
    %245 = arith.mulf %243, %244 : vector<8x8xf32>
    %c0_88 = arith.constant 0 : index
    %c3 = arith.constant 3 : index
    %c0_89 = arith.constant 0 : index
    %c0_90 = arith.constant 0 : index
    %246 = vector.load %arg28[%c0_88, %c3, %c0_89, %c0_90] : memref<1x12x8x8xf32, #tpu.memory_space<vmem>>, vector<1x1x8x8xf32>
    %247 = vector.shape_cast %246 : vector<1x1x8x8xf32> to vector<8x8xf32>
    %248 = vector.shape_cast %245 : vector<8x8xf32> to vector<1x1x8x8xf32>
    tpu.vector_store %arg28[%c0_88, %c3, %c0_89, %c0_90], %248 {strides = array<i32>} : memref<1x12x8x8xf32, #tpu.memory_space<vmem>>, vector<1x1x8x8xf32>,
    %249 = arith.addf %32, %229 : vector<32x32xf32>
    %c0_91 = arith.constant 0 : index
    %c0_92 = arith.constant 0 : index
    %c0_93 = arith.constant 0 : index
    %250 = vector.load %arg12[%c0_91, %c0_92, %c0_93] : memref<3x1x32xf32, #tpu.memory_space<vmem>>, vector<1x1x32xf32>
    %251 = vector.shape_cast %250 : vector<1x1x32xf32> to vector<1x32xf32>
    %252 = vector.broadcast %251 : vector<1x32xf32> to vector<32x32xf32>
    %253 = arith.addf %249, %252 : vector<32x32xf32>
    %c0_94 = arith.constant 0 : index
    %c0_95 = arith.constant 0 : index
    %c0_96 = arith.constant 0 : index
    %254 = vector.load %arg13[%c0_94, %c0_95, %c0_96] : memref<3x1x32xf32, #tpu.memory_space<vmem>>, vector<1x1x32xf32>
    %255 = vector.shape_cast %254 : vector<1x1x32xf32> to vector<1x32xf32>
    %c0_97 = arith.constant 0 : index
    %c0_98 = arith.constant 0 : index
    %c0_99 = arith.constant 0 : index
    %256 = vector.load %arg14[%c0_97, %c0_98, %c0_99] : memref<3x1x32xf32, #tpu.memory_space<vmem>>, vector<1x1x32xf32>
    %257 = vector.shape_cast %256 : vector<1x1x32xf32> to vector<1x32xf32>
    %cst_100 = arith.constant dense<0.000000e+00> : vector<32xf32>
    %258 = vector.multi_reduction <add>, %253, %cst_100 [1] : vector<32x32xf32> to vector<32xf32>
    %259 = vector.shape_cast %258 : vector<32xf32> to vector<32x1xf32>
    %cst_101 = arith.constant 3.200000e+01 : f32
    %260 = vector.broadcast %cst_101 : f32 to vector<32x1xf32>
    %261 = arith.divf %259, %260 : vector<32x1xf32>
    %262 = vector.broadcast %261 : vector<32x1xf32> to vector<32x32xf32>
    %263 = arith.subf %253, %262 : vector<32x32xf32>
    %264 = arith.mulf %263, %263 : vector<32x32xf32>
    %cst_102 = arith.constant dense<0.000000e+00> : vector<32xf32>
    %265 = vector.multi_reduction <add>, %264, %cst_102 [1] : vector<32x32xf32> to vector<32xf32>
    %266 = vector.shape_cast %265 : vector<32xf32> to vector<32x1xf32>
    %cst_103 = arith.constant 3.200000e+01 : f32
    %267 = vector.broadcast %cst_103 : f32 to vector<32x1xf32>
    %268 = arith.divf %266, %267 : vector<32x1xf32>
    %269 = vector.broadcast %261 : vector<32x1xf32> to vector<32x32xf32>
    %270 = arith.subf %253, %269 : vector<32x32xf32>
    %cst_104 = arith.constant 9.99999974E-6 : f32
    %271 = vector.broadcast %cst_104 : f32 to vector<32x1xf32>
    %272 = arith.addf %268, %271 : vector<32x1xf32>
    %273 = math.rsqrt %272 : vector<32x1xf32>
    %274 = vector.broadcast %273 : vector<32x1xf32> to vector<32x32xf32>
    %275 = arith.mulf %270, %274 : vector<32x32xf32>
    %276 = vector.broadcast %255 : vector<1x32xf32> to vector<32x32xf32>
    %277 = arith.mulf %275, %276 : vector<32x32xf32>
    %278 = vector.broadcast %257 : vector<1x32xf32> to vector<32x32xf32>
    %279 = arith.addf %277, %278 : vector<32x32xf32>
    %c0_105 = arith.constant 0 : index
    %c0_106 = arith.constant 0 : index
    %c0_107 = arith.constant 0 : index
    %280 = vector.load %arg15[%c0_105, %c0_106, %c0_107] : memref<3x32x128xf32, #tpu.memory_space<vmem>>, vector<1x32x128xf32>
    %281 = vector.shape_cast %280 : vector<1x32x128xf32> to vector<32x128xf32>
    %cst_108 = arith.constant dense<0.000000e+00> : vector<32x128xf32>
    %282 = tpu.matmul %279, %281, %cst_108 {dimension_numbers = #tpu.dot_dimension_numbers<[1], [0], [0], [1], [0, 0, 1, 1], [], []>} : vector<32x32xf32>, vector<32x128xf32>, vector<32x128xf32> -> vector<32x128xf32>
    %c0_109 = arith.constant 0 : index
    %c0_110 = arith.constant 0 : index
    %c0_111 = arith.constant 0 : index
    %283 = vector.load %arg16[%c0_109, %c0_110, %c0_111] : memref<3x1x128xf32, #tpu.memory_space<vmem>>, vector<1x1x128xf32>
    %284 = vector.shape_cast %283 : vector<1x1x128xf32> to vector<1x128xf32>
    %285 = vector.broadcast %284 : vector<1x128xf32> to vector<32x128xf32>
    %286 = arith.addf %282, %285 : vector<32x128xf32>
    %287 = arith.mulf %286, %286 : vector<32x128xf32>
    %288 = arith.mulf %286, %287 : vector<32x128xf32>
    %cst_112 = arith.constant 4.471500e-02 : f32
    %289 = vector.broadcast %cst_112 : f32 to vector<32x128xf32>
    %290 = arith.mulf %289, %288 : vector<32x128xf32>
    %291 = arith.addf %286, %290 : vector<32x128xf32>
    %cst_113 = arith.constant 0.797884583 : f32
    %292 = vector.broadcast %cst_113 : f32 to vector<32x128xf32>
    %293 = arith.mulf %292, %291 : vector<32x128xf32>
    %294 = math.tanh %293 : vector<32x128xf32>
    %cst_114 = arith.constant 1.000000e+00 : f32
    %295 = vector.broadcast %cst_114 : f32 to vector<32x128xf32>
    %296 = arith.addf %295, %294 : vector<32x128xf32>
    %cst_115 = arith.constant 5.000000e-01 : f32
    %297 = vector.broadcast %cst_115 : f32 to vector<32x128xf32>
    %298 = arith.mulf %297, %296 : vector<32x128xf32>
    %299 = arith.mulf %286, %298 : vector<32x128xf32>
    %c0_116 = arith.constant 0 : index
    %c0_117 = arith.constant 0 : index
    %c0_118 = arith.constant 0 : index
    %300 = vector.load %arg17[%c0_116, %c0_117, %c0_118] : memref<3x128x32xf32, #tpu.memory_space<vmem>>, vector<1x128x32xf32>
    %301 = vector.shape_cast %300 : vector<1x128x32xf32> to vector<128x32xf32>
    %cst_119 = arith.constant dense<0.000000e+00> : vector<32x32xf32>
    %302 = tpu.matmul %299, %301, %cst_119 {dimension_numbers = #tpu.dot_dimension_numbers<[1], [0], [0], [1], [0, 0, 1, 1], [], []>} : vector<32x128xf32>, vector<128x32xf32>, vector<32x32xf32> -> vector<32x32xf32>
    %c0_120 = arith.constant 0 : index
    %c0_121 = arith.constant 0 : index
    %c0_122 = arith.constant 0 : index
    %303 = vector.load %arg18[%c0_120, %c0_121, %c0_122] : memref<3x1x32xf32, #tpu.memory_space<vmem>>, vector<1x1x32xf32>
    %304 = vector.shape_cast %303 : vector<1x1x32xf32> to vector<1x32xf32>
    %305 = vector.broadcast %304 : vector<1x32xf32> to vector<32x32xf32>
    %306 = arith.addf %302, %305 : vector<32x32xf32>
    %307 = arith.addf %253, %306 : vector<32x32xf32>
    %c1_123 = arith.constant 1 : index
    %c0_124 = arith.constant 0 : index
    %c0_125 = arith.constant 0 : index
    %308 = vector.load %arg4[%c1_123, %c0_124, %c0_125] : memref<3x8x8xf32, #tpu.memory_space<vmem>>, vector<1x8x8xf32>
    %309 = vector.shape_cast %308 : vector<1x8x8xf32> to vector<8x8xf32>
    %310 = vector.shape_cast %309 : vector<8x8xf32> to vector<1x8x8xf32>
    %311 = vector.shape_cast %310 : vector<1x8x8xf32> to vector<1x8x8xf32>
    %312 = vector.broadcast %311 : vector<1x8x8xf32> to vector<4x8x8xf32>
    "tpu.trace_start"() <{level = 10 : i32, message = "man,mnp->map"}> : () -> ()
    %cst_126 = arith.constant dense<0.000000e+00> : vector<4x8x3xf32>
    %313 = tpu.matmul %312, %3, %cst_126 {dimension_numbers = #tpu.dot_dimension_numbers<[2], [1], [1], [2], [0, 0, 0, 1, 1, 2], [0], [0]>} : vector<4x8x8xf32>, vector<4x8x3xf32>, vector<4x8x3xf32> -> vector<4x8x3xf32>
    "tpu.trace_stop"() : () -> ()
    %314 = vector.shape_cast %313 : vector<4x8x3xf32> to vector<32x3xf32>
    %c1_127 = arith.constant 1 : index
    %c0_128 = arith.constant 0 : index
    %c0_129 = arith.constant 0 : index
    %315 = vector.load %arg5[%c1_127, %c0_128, %c0_129] : memref<3x3x32xf32, #tpu.memory_space<vmem>>, vector<1x3x32xf32>
    %316 = vector.shape_cast %315 : vector<1x3x32xf32> to vector<3x32xf32>
    %cst_130 = arith.constant dense<0.000000e+00> : vector<32x32xf32>
    %317 = tpu.matmul %314, %316, %cst_130 {dimension_numbers = #tpu.dot_dimension_numbers<[1], [0], [0], [1], [0, 0, 1, 1], [], []>} : vector<32x3xf32>, vector<3x32xf32>, vector<32x32xf32> -> vector<32x32xf32>
    %c1_131 = arith.constant 1 : index
    %c0_132 = arith.constant 0 : index
    %c0_133 = arith.constant 0 : index
    %318 = vector.load %arg6[%c1_131, %c0_132, %c0_133] : memref<3x1x32xf32, #tpu.memory_space<vmem>>, vector<1x1x32xf32>
    %319 = vector.shape_cast %318 : vector<1x1x32xf32> to vector<1x32xf32>
    %320 = vector.broadcast %319 : vector<1x32xf32> to vector<32x32xf32>
    %321 = arith.addf %317, %320 : vector<32x32xf32>
    %322 = arith.addf %307, %321 : vector<32x32xf32>
    %c1_134 = arith.constant 1 : index
    %c0_135 = arith.constant 0 : index
    %c0_136 = arith.constant 0 : index
    %323 = vector.load %arg7[%c1_134, %c0_135, %c0_136] : memref<3x1x32xf32, #tpu.memory_space<vmem>>, vector<1x1x32xf32>
    %324 = vector.shape_cast %323 : vector<1x1x32xf32> to vector<1x32xf32>
    %c1_137 = arith.constant 1 : index
    %c0_138 = arith.constant 0 : index
    %c0_139 = arith.constant 0 : index
    %325 = vector.load %arg8[%c1_137, %c0_138, %c0_139] : memref<3x1x32xf32, #tpu.memory_space<vmem>>, vector<1x1x32xf32>
    %326 = vector.shape_cast %325 : vector<1x1x32xf32> to vector<1x32xf32>
    %cst_140 = arith.constant dense<0.000000e+00> : vector<32xf32>
    %327 = vector.multi_reduction <add>, %322, %cst_140 [1] : vector<32x32xf32> to vector<32xf32>
    %328 = vector.shape_cast %327 : vector<32xf32> to vector<32x1xf32>
    %cst_141 = arith.constant 3.200000e+01 : f32
    %329 = vector.broadcast %cst_141 : f32 to vector<32x1xf32>
    %330 = arith.divf %328, %329 : vector<32x1xf32>
    %331 = vector.broadcast %330 : vector<32x1xf32> to vector<32x32xf32>
    %332 = arith.subf %322, %331 : vector<32x32xf32>
    %333 = arith.mulf %332, %332 : vector<32x32xf32>
    %cst_142 = arith.constant dense<0.000000e+00> : vector<32xf32>
    %334 = vector.multi_reduction <add>, %333, %cst_142 [1] : vector<32x32xf32> to vector<32xf32>
    %335 = vector.shape_cast %334 : vector<32xf32> to vector<32x1xf32>
    %cst_143 = arith.constant 3.200000e+01 : f32
    %336 = vector.broadcast %cst_143 : f32 to vector<32x1xf32>
    %337 = arith.divf %335, %336 : vector<32x1xf32>
    %338 = vector.broadcast %330 : vector<32x1xf32> to vector<32x32xf32>
    %339 = arith.subf %322, %338 : vector<32x32xf32>
    %cst_144 = arith.constant 9.99999974E-6 : f32
    %340 = vector.broadcast %cst_144 : f32 to vector<32x1xf32>
    %341 = arith.addf %337, %340 : vector<32x1xf32>
    %342 = math.rsqrt %341 : vector<32x1xf32>
    %343 = vector.broadcast %342 : vector<32x1xf32> to vector<32x32xf32>
    %344 = arith.mulf %339, %343 : vector<32x32xf32>
    %345 = vector.broadcast %324 : vector<1x32xf32> to vector<32x32xf32>
    %346 = arith.mulf %344, %345 : vector<32x32xf32>
    %347 = vector.broadcast %326 : vector<1x32xf32> to vector<32x32xf32>
    %348 = arith.addf %346, %347 : vector<32x32xf32>
    %c1_145 = arith.constant 1 : index
    %c0_146 = arith.constant 0 : index
    %c0_147 = arith.constant 0 : index
    %349 = vector.load %arg9[%c1_145, %c0_146, %c0_147] : memref<3x32x96xf32, #tpu.memory_space<vmem>>, vector<1x32x96xf32>
    %350 = vector.shape_cast %349 : vector<1x32x96xf32> to vector<32x96xf32>
    %cst_148 = arith.constant dense<0.000000e+00> : vector<32x96xf32>
    %351 = tpu.matmul %348, %350, %cst_148 {dimension_numbers = #tpu.dot_dimension_numbers<[1], [0], [0], [1], [0, 0, 1, 1], [], []>} : vector<32x32xf32>, vector<32x96xf32>, vector<32x96xf32> -> vector<32x96xf32>
    %c1_149 = arith.constant 1 : index
    %c0_150 = arith.constant 0 : index
    %c0_151 = arith.constant 0 : index
    %352 = vector.load %arg10[%c1_149, %c0_150, %c0_151] : memref<3x1x96xf32, #tpu.memory_space<vmem>>, vector<1x1x96xf32>
    %353 = vector.shape_cast %352 : vector<1x1x96xf32> to vector<1x96xf32>
    %354 = vector.broadcast %353 : vector<1x96xf32> to vector<32x96xf32>
    %355 = arith.addf %351, %354 : vector<32x96xf32>
    %356 = vector.extract_strided_slice %355 {offsets = [0, 0], sizes = [32, 32], strides = [1, 1]} : vector<32x96xf32> to vector<32x32xf32>
    %357 = vector.shape_cast %356 : vector<32x32xf32> to vector<4x8x32xf32>
    %358 = vector.extract_strided_slice %355 {offsets = [0, 32], sizes = [32, 32], strides = [1, 1]} : vector<32x96xf32> to vector<32x32xf32>
    %359 = vector.shape_cast %358 : vector<32x32xf32> to vector<4x8x32xf32>
    %360 = vector.extract_strided_slice %355 {offsets = [0, 64], sizes = [32, 32], strides = [1, 1]} : vector<32x96xf32> to vector<32x32xf32>
    %361 = vector.shape_cast %360 : vector<32x32xf32> to vector<4x8x32xf32>
    %c1_152 = arith.constant 1 : index
    %c0_153 = arith.constant 0 : index
    %c0_154 = arith.constant 0 : index
    %362 = vector.load %arg11[%c1_152, %c0_153, %c0_154] : memref<3x32x32xf32, #tpu.memory_space<vmem>>, vector<1x32x32xf32>
    %363 = vector.shape_cast %362 : vector<1x32x32xf32> to vector<32x32xf32>
    %364 = vector.extract_strided_slice %357 {offsets = [0, 0, 0], sizes = [4, 8, 8], strides = [1, 1, 1]} : vector<4x8x32xf32> to vector<4x8x8xf32>
    %365 = vector.extract_strided_slice %359 {offsets = [0, 0, 0], sizes = [4, 8, 8], strides = [1, 1, 1]} : vector<4x8x32xf32> to vector<4x8x8xf32>
    "tpu.trace_start"() <{level = 10 : i32, message = "bnd,bmd->bnm"}> : () -> ()
    %cst_155 = arith.constant dense<0.000000e+00> : vector<4x8x8xf32>
    %366 = tpu.matmul %364, %365, %cst_155 {dimension_numbers = #tpu.dot_dimension_numbers<[2], [2], [1], [1], [0, 0, 0, 1, 1, 1], [0], [0]>} : vector<4x8x8xf32>, vector<4x8x8xf32>, vector<4x8x8xf32> -> vector<4x8x8xf32>
    "tpu.trace_stop"() : () -> ()
    %cst_156 = arith.constant 1.000000e-03 : f32
    %367 = vector.broadcast %cst_156 : f32 to vector<4x8x8xf32>
    %368 = arith.mulf %366, %367 : vector<4x8x8xf32>
    %369 = vector.shape_cast %13 : vector<8x8xi1> to vector<1x8x8xi1>
    %cst_157 = arith.constant -1.000000e+30 : f32
    %370 = vector.shape_cast %369 : vector<1x8x8xi1> to vector<1x8x8xi1>
    %371 = vector.broadcast %370 : vector<1x8x8xi1> to vector<4x8x8xi1>
    %372 = vector.broadcast %cst_157 : f32 to vector<4x8x8xf32>
    %373 = arith.select %371, %368, %372 : vector<4x8x8xi1>, vector<4x8x8xf32>
    %cst_158 = arith.constant dense<0xFF800000> : vector<4x8xf32>
    %374 = vector.multi_reduction <maximumf>, %373, %cst_158 [2] : vector<4x8x8xf32> to vector<4x8xf32>
    %375 = vector.shape_cast %374 : vector<4x8xf32> to vector<4x8x1xf32>
    %376 = vector.broadcast %375 : vector<4x8x1xf32> to vector<4x8x8xf32>
    %377 = arith.subf %373, %376 : vector<4x8x8xf32>
    %378 = math.exp %377 : vector<4x8x8xf32>
    %cst_159 = arith.constant dense<0.000000e+00> : vector<4x8xf32>
    %379 = vector.multi_reduction <add>, %378, %cst_159 [2] : vector<4x8x8xf32> to vector<4x8xf32>
    %380 = vector.shape_cast %379 : vector<4x8xf32> to vector<4x8x1xf32>
    %381 = vector.broadcast %380 : vector<4x8x1xf32> to vector<4x8x8xf32>
    %382 = arith.divf %378, %381 : vector<4x8x8xf32>
    %383 = vector.extract_strided_slice %361 {offsets = [0, 0, 0], sizes = [4, 8, 8], strides = [1, 1, 1]} : vector<4x8x32xf32> to vector<4x8x8xf32>
    "tpu.trace_start"() <{level = 10 : i32, message = "bnm,bmd->bnd"}> : () -> ()
    %cst_160 = arith.constant dense<0.000000e+00> : vector<4x8x8xf32>
    %384 = tpu.matmul %382, %383, %cst_160 {dimension_numbers = #tpu.dot_dimension_numbers<[2], [1], [1], [2], [0, 0, 0, 1, 1, 2], [0], [0]>} : vector<4x8x8xf32>, vector<4x8x8xf32>, vector<4x8x8xf32> -> vector<4x8x8xf32>
    "tpu.trace_stop"() : () -> ()
    %385 = vector.shape_cast %384 : vector<4x8x8xf32> to vector<32x8xf32>
    %386 = vector.extract_strided_slice %363 {offsets = [0, 0], sizes = [8, 32], strides = [1, 1]} : vector<32x32xf32> to vector<8x32xf32>
    %cst_161 = arith.constant dense<0.000000e+00> : vector<32x32xf32>
    %387 = tpu.matmul %385, %386, %cst_161 {dimension_numbers = #tpu.dot_dimension_numbers<[1], [0], [0], [1], [0, 0, 1, 1], [], []>} : vector<32x8xf32>, vector<8x32xf32>, vector<32x32xf32> -> vector<32x32xf32>
    %388 = vector.extract_strided_slice %382 {offsets = [0, 0, 0], sizes = [1, 8, 8], strides = [1, 1, 1]} : vector<4x8x8xf32> to vector<1x8x8xf32>
    %389 = vector.shape_cast %388 : vector<1x8x8xf32> to vector<8x8xf32>
    %390 = vector.extract_strided_slice %382 {offsets = [1, 0, 0], sizes = [1, 8, 8], strides = [1, 1, 1]} : vector<4x8x8xf32> to vector<1x8x8xf32>
    %391 = vector.shape_cast %390 : vector<1x8x8xf32> to vector<8x8xf32>
    %392 = arith.addf %389, %391 : vector<8x8xf32>
    %393 = vector.extract_strided_slice %382 {offsets = [2, 0, 0], sizes = [1, 8, 8], strides = [1, 1, 1]} : vector<4x8x8xf32> to vector<1x8x8xf32>
    %394 = vector.shape_cast %393 : vector<1x8x8xf32> to vector<8x8xf32>
    %395 = arith.addf %392, %394 : vector<8x8xf32>
    %396 = vector.extract_strided_slice %382 {offsets = [3, 0, 0], sizes = [1, 8, 8], strides = [1, 1, 1]} : vector<4x8x8xf32> to vector<1x8x8xf32>
    %397 = vector.shape_cast %396 : vector<1x8x8xf32> to vector<8x8xf32>
    %398 = arith.addf %395, %397 : vector<8x8xf32>
    %399 = tpu.transpose %398, [1, 0] : vector<8x8xf32> -> vector<8x8xf32>
    %400 = arith.addf %398, %399 : vector<8x8xf32>
    %401 = arith.mulf %400, %17 : vector<8x8xf32>
    %cst_162 = arith.constant 0.027777778 : f32
    %402 = vector.broadcast %cst_162 : f32 to vector<8x8xf32>
    %403 = arith.mulf %401, %402 : vector<8x8xf32>
    %c0_163 = arith.constant 0 : index
    %c4 = arith.constant 4 : index
    %c0_164 = arith.constant 0 : index
    %c0_165 = arith.constant 0 : index
    %404 = vector.load %arg28[%c0_163, %c4, %c0_164, %c0_165] : memref<1x12x8x8xf32, #tpu.memory_space<vmem>>, vector<1x1x8x8xf32>
    %405 = vector.shape_cast %404 : vector<1x1x8x8xf32> to vector<8x8xf32>
    %406 = vector.shape_cast %403 : vector<8x8xf32> to vector<1x1x8x8xf32>
    tpu.vector_store %arg28[%c0_163, %c4, %c0_164, %c0_165], %406 {strides = array<i32>} : memref<1x12x8x8xf32, #tpu.memory_space<vmem>>, vector<1x1x8x8xf32>,
    %407 = vector.extract_strided_slice %357 {offsets = [0, 0, 8], sizes = [4, 8, 8], strides = [1, 1, 1]} : vector<4x8x32xf32> to vector<4x8x8xf32>
    %408 = vector.extract_strided_slice %359 {offsets = [0, 0, 8], sizes = [4, 8, 8], strides = [1, 1, 1]} : vector<4x8x32xf32> to vector<4x8x8xf32>
    "tpu.trace_start"() <{level = 10 : i32, message = "bnd,bmd->bnm"}> : () -> ()
    %cst_166 = arith.constant dense<0.000000e+00> : vector<4x8x8xf32>
    %409 = tpu.matmul %407, %408, %cst_166 {dimension_numbers = #tpu.dot_dimension_numbers<[2], [2], [1], [1], [0, 0, 0, 1, 1, 1], [0], [0]>} : vector<4x8x8xf32>, vector<4x8x8xf32>, vector<4x8x8xf32> -> vector<4x8x8xf32>
    "tpu.trace_stop"() : () -> ()
    %cst_167 = arith.constant 1.000000e-03 : f32
    %410 = vector.broadcast %cst_167 : f32 to vector<4x8x8xf32>
    %411 = arith.mulf %409, %410 : vector<4x8x8xf32>
    %412 = vector.shape_cast %13 : vector<8x8xi1> to vector<1x8x8xi1>
    %cst_168 = arith.constant -1.000000e+30 : f32
    %413 = vector.shape_cast %412 : vector<1x8x8xi1> to vector<1x8x8xi1>
    %414 = vector.broadcast %413 : vector<1x8x8xi1> to vector<4x8x8xi1>
    %415 = vector.broadcast %cst_168 : f32 to vector<4x8x8xf32>
    %416 = arith.select %414, %411, %415 : vector<4x8x8xi1>, vector<4x8x8xf32>
    %cst_169 = arith.constant dense<0xFF800000> : vector<4x8xf32>
    %417 = vector.multi_reduction <maximumf>, %416, %cst_169 [2] : vector<4x8x8xf32> to vector<4x8xf32>
    %418 = vector.shape_cast %417 : vector<4x8xf32> to vector<4x8x1xf32>
    %419 = vector.broadcast %418 : vector<4x8x1xf32> to vector<4x8x8xf32>
    %420 = arith.subf %416, %419 : vector<4x8x8xf32>
    %421 = math.exp %420 : vector<4x8x8xf32>
    %cst_170 = arith.constant dense<0.000000e+00> : vector<4x8xf32>
    %422 = vector.multi_reduction <add>, %421, %cst_170 [2] : vector<4x8x8xf32> to vector<4x8xf32>
    %423 = vector.shape_cast %422 : vector<4x8xf32> to vector<4x8x1xf32>
    %424 = vector.broadcast %423 : vector<4x8x1xf32> to vector<4x8x8xf32>
    %425 = arith.divf %421, %424 : vector<4x8x8xf32>
    %426 = vector.extract_strided_slice %361 {offsets = [0, 0, 8], sizes = [4, 8, 8], strides = [1, 1, 1]} : vector<4x8x32xf32> to vector<4x8x8xf32>
    "tpu.trace_start"() <{level = 10 : i32, message = "bnm,bmd->bnd"}> : () -> ()
    %cst_171 = arith.constant dense<0.000000e+00> : vector<4x8x8xf32>
    %427 = tpu.matmul %425, %426, %cst_171 {dimension_numbers = #tpu.dot_dimension_numbers<[2], [1], [1], [2], [0, 0, 0, 1, 1, 2], [0], [0]>} : vector<4x8x8xf32>, vector<4x8x8xf32>, vector<4x8x8xf32> -> vector<4x8x8xf32>
    "tpu.trace_stop"() : () -> ()
    %428 = vector.shape_cast %427 : vector<4x8x8xf32> to vector<32x8xf32>
    %429 = vector.extract_strided_slice %363 {offsets = [8, 0], sizes = [8, 32], strides = [1, 1]} : vector<32x32xf32> to vector<8x32xf32>
    %cst_172 = arith.constant dense<0.000000e+00> : vector<32x32xf32>
    %430 = tpu.matmul %428, %429, %cst_172 {dimension_numbers = #tpu.dot_dimension_numbers<[1], [0], [0], [1], [0, 0, 1, 1], [], []>} : vector<32x8xf32>, vector<8x32xf32>, vector<32x32xf32> -> vector<32x32xf32>
    %431 = arith.addf %387, %430 : vector<32x32xf32>
    %432 = vector.extract_strided_slice %425 {offsets = [0, 0, 0], sizes = [1, 8, 8], strides = [1, 1, 1]} : vector<4x8x8xf32> to vector<1x8x8xf32>
    %433 = vector.shape_cast %432 : vector<1x8x8xf32> to vector<8x8xf32>
    %434 = vector.extract_strided_slice %425 {offsets = [1, 0, 0], sizes = [1, 8, 8], strides = [1, 1, 1]} : vector<4x8x8xf32> to vector<1x8x8xf32>
    %435 = vector.shape_cast %434 : vector<1x8x8xf32> to vector<8x8xf32>
    %436 = arith.addf %433, %435 : vector<8x8xf32>
    %437 = vector.extract_strided_slice %425 {offsets = [2, 0, 0], sizes = [1, 8, 8], strides = [1, 1, 1]} : vector<4x8x8xf32> to vector<1x8x8xf32>
    %438 = vector.shape_cast %437 : vector<1x8x8xf32> to vector<8x8xf32>
    %439 = arith.addf %436, %438 : vector<8x8xf32>
    %440 = vector.extract_strided_slice %425 {offsets = [3, 0, 0], sizes = [1, 8, 8], strides = [1, 1, 1]} : vector<4x8x8xf32> to vector<1x8x8xf32>
    %441 = vector.shape_cast %440 : vector<1x8x8xf32> to vector<8x8xf32>
    %442 = arith.addf %439, %441 : vector<8x8xf32>
    %443 = tpu.transpose %442, [1, 0] : vector<8x8xf32> -> vector<8x8xf32>
    %444 = arith.addf %442, %443 : vector<8x8xf32>
    %445 = arith.mulf %444, %17 : vector<8x8xf32>
    %cst_173 = arith.constant 0.027777778 : f32
    %446 = vector.broadcast %cst_173 : f32 to vector<8x8xf32>
    %447 = arith.mulf %445, %446 : vector<8x8xf32>
    %c0_174 = arith.constant 0 : index
    %c5 = arith.constant 5 : index
    %c0_175 = arith.constant 0 : index
    %c0_176 = arith.constant 0 : index
    %448 = vector.load %arg28[%c0_174, %c5, %c0_175, %c0_176] : memref<1x12x8x8xf32, #tpu.memory_space<vmem>>, vector<1x1x8x8xf32>
    %449 = vector.shape_cast %448 : vector<1x1x8x8xf32> to vector<8x8xf32>
    %450 = vector.shape_cast %447 : vector<8x8xf32> to vector<1x1x8x8xf32>
    tpu.vector_store %arg28[%c0_174, %c5, %c0_175, %c0_176], %450 {strides = array<i32>} : memref<1x12x8x8xf32, #tpu.memory_space<vmem>>, vector<1x1x8x8xf32>,
    %451 = vector.extract_strided_slice %357 {offsets = [0, 0, 16], sizes = [4, 8, 8], strides = [1, 1, 1]} : vector<4x8x32xf32> to vector<4x8x8xf32>
    %452 = vector.extract_strided_slice %359 {offsets = [0, 0, 16], sizes = [4, 8, 8], strides = [1, 1, 1]} : vector<4x8x32xf32> to vector<4x8x8xf32>
    "tpu.trace_start"() <{level = 10 : i32, message = "bnd,bmd->bnm"}> : () -> ()
    %cst_177 = arith.constant dense<0.000000e+00> : vector<4x8x8xf32>
    %453 = tpu.matmul %451, %452, %cst_177 {dimension_numbers = #tpu.dot_dimension_numbers<[2], [2], [1], [1], [0, 0, 0, 1, 1, 1], [0], [0]>} : vector<4x8x8xf32>, vector<4x8x8xf32>, vector<4x8x8xf32> -> vector<4x8x8xf32>
    "tpu.trace_stop"() : () -> ()
    %cst_178 = arith.constant 1.000000e-03 : f32
    %454 = vector.broadcast %cst_178 : f32 to vector<4x8x8xf32>
    %455 = arith.mulf %453, %454 : vector<4x8x8xf32>
    %456 = vector.shape_cast %13 : vector<8x8xi1> to vector<1x8x8xi1>
    %cst_179 = arith.constant -1.000000e+30 : f32
    %457 = vector.shape_cast %456 : vector<1x8x8xi1> to vector<1x8x8xi1>
    %458 = vector.broadcast %457 : vector<1x8x8xi1> to vector<4x8x8xi1>
    %459 = vector.broadcast %cst_179 : f32 to vector<4x8x8xf32>
    %460 = arith.select %458, %455, %459 : vector<4x8x8xi1>, vector<4x8x8xf32>
    %cst_180 = arith.constant dense<0xFF800000> : vector<4x8xf32>
    %461 = vector.multi_reduction <maximumf>, %460, %cst_180 [2] : vector<4x8x8xf32> to vector<4x8xf32>
    %462 = vector.shape_cast %461 : vector<4x8xf32> to vector<4x8x1xf32>
    %463 = vector.broadcast %462 : vector<4x8x1xf32> to vector<4x8x8xf32>
    %464 = arith.subf %460, %463 : vector<4x8x8xf32>
    %465 = math.exp %464 : vector<4x8x8xf32>
    %cst_181 = arith.constant dense<0.000000e+00> : vector<4x8xf32>
    %466 = vector.multi_reduction <add>, %465, %cst_181 [2] : vector<4x8x8xf32> to vector<4x8xf32>
    %467 = vector.shape_cast %466 : vector<4x8xf32> to vector<4x8x1xf32>
    %468 = vector.broadcast %467 : vector<4x8x1xf32> to vector<4x8x8xf32>
    %469 = arith.divf %465, %468 : vector<4x8x8xf32>
    %470 = vector.extract_strided_slice %361 {offsets = [0, 0, 16], sizes = [4, 8, 8], strides = [1, 1, 1]} : vector<4x8x32xf32> to vector<4x8x8xf32>
    "tpu.trace_start"() <{level = 10 : i32, message = "bnm,bmd->bnd"}> : () -> ()
    %cst_182 = arith.constant dense<0.000000e+00> : vector<4x8x8xf32>
    %471 = tpu.matmul %469, %470, %cst_182 {dimension_numbers = #tpu.dot_dimension_numbers<[2], [1], [1], [2], [0, 0, 0, 1, 1, 2], [0], [0]>} : vector<4x8x8xf32>, vector<4x8x8xf32>, vector<4x8x8xf32> -> vector<4x8x8xf32>
    "tpu.trace_stop"() : () -> ()
    %472 = vector.shape_cast %471 : vector<4x8x8xf32> to vector<32x8xf32>
    %473 = vector.extract_strided_slice %363 {offsets = [16, 0], sizes = [8, 32], strides = [1, 1]} : vector<32x32xf32> to vector<8x32xf32>
    %cst_183 = arith.constant dense<0.000000e+00> : vector<32x32xf32>
    %474 = tpu.matmul %472, %473, %cst_183 {dimension_numbers = #tpu.dot_dimension_numbers<[1], [0], [0], [1], [0, 0, 1, 1], [], []>} : vector<32x8xf32>, vector<8x32xf32>, vector<32x32xf32> -> vector<32x32xf32>
    %475 = arith.addf %431, %474 : vector<32x32xf32>
    %476 = vector.extract_strided_slice %469 {offsets = [0, 0, 0], sizes = [1, 8, 8], strides = [1, 1, 1]} : vector<4x8x8xf32> to vector<1x8x8xf32>
    %477 = vector.shape_cast %476 : vector<1x8x8xf32> to vector<8x8xf32>
    %478 = vector.extract_strided_slice %469 {offsets = [1, 0, 0], sizes = [1, 8, 8], strides = [1, 1, 1]} : vector<4x8x8xf32> to vector<1x8x8xf32>
    %479 = vector.shape_cast %478 : vector<1x8x8xf32> to vector<8x8xf32>
    %480 = arith.addf %477, %479 : vector<8x8xf32>
    %481 = vector.extract_strided_slice %469 {offsets = [2, 0, 0], sizes = [1, 8, 8], strides = [1, 1, 1]} : vector<4x8x8xf32> to vector<1x8x8xf32>
    %482 = vector.shape_cast %481 : vector<1x8x8xf32> to vector<8x8xf32>
    %483 = arith.addf %480, %482 : vector<8x8xf32>
    %484 = vector.extract_strided_slice %469 {offsets = [3, 0, 0], sizes = [1, 8, 8], strides = [1, 1, 1]} : vector<4x8x8xf32> to vector<1x8x8xf32>
    %485 = vector.shape_cast %484 : vector<1x8x8xf32> to vector<8x8xf32>
    %486 = arith.addf %483, %485 : vector<8x8xf32>
    %487 = tpu.transpose %486, [1, 0] : vector<8x8xf32> -> vector<8x8xf32>
    %488 = arith.addf %486, %487 : vector<8x8xf32>
    %489 = arith.mulf %488, %17 : vector<8x8xf32>
    %cst_184 = arith.constant 0.027777778 : f32
    %490 = vector.broadcast %cst_184 : f32 to vector<8x8xf32>
    %491 = arith.mulf %489, %490 : vector<8x8xf32>
    %c0_185 = arith.constant 0 : index
    %c6 = arith.constant 6 : index
    %c0_186 = arith.constant 0 : index
    %c0_187 = arith.constant 0 : index
    %492 = vector.load %arg28[%c0_185, %c6, %c0_186, %c0_187] : memref<1x12x8x8xf32, #tpu.memory_space<vmem>>, vector<1x1x8x8xf32>
    %493 = vector.shape_cast %492 : vector<1x1x8x8xf32> to vector<8x8xf32>
    %494 = vector.shape_cast %491 : vector<8x8xf32> to vector<1x1x8x8xf32>
    tpu.vector_store %arg28[%c0_185, %c6, %c0_186, %c0_187], %494 {strides = array<i32>} : memref<1x12x8x8xf32, #tpu.memory_space<vmem>>, vector<1x1x8x8xf32>,
    %495 = vector.extract_strided_slice %357 {offsets = [0, 0, 24], sizes = [4, 8, 8], strides = [1, 1, 1]} : vector<4x8x32xf32> to vector<4x8x8xf32>
    %496 = vector.extract_strided_slice %359 {offsets = [0, 0, 24], sizes = [4, 8, 8], strides = [1, 1, 1]} : vector<4x8x32xf32> to vector<4x8x8xf32>
    "tpu.trace_start"() <{level = 10 : i32, message = "bnd,bmd->bnm"}> : () -> ()
    %cst_188 = arith.constant dense<0.000000e+00> : vector<4x8x8xf32>
    %497 = tpu.matmul %495, %496, %cst_188 {dimension_numbers = #tpu.dot_dimension_numbers<[2], [2], [1], [1], [0, 0, 0, 1, 1, 1], [0], [0]>} : vector<4x8x8xf32>, vector<4x8x8xf32>, vector<4x8x8xf32> -> vector<4x8x8xf32>
    "tpu.trace_stop"() : () -> ()
    %cst_189 = arith.constant 1.000000e-03 : f32
    %498 = vector.broadcast %cst_189 : f32 to vector<4x8x8xf32>
    %499 = arith.mulf %497, %498 : vector<4x8x8xf32>
    %500 = vector.shape_cast %13 : vector<8x8xi1> to vector<1x8x8xi1>
    %cst_190 = arith.constant -1.000000e+30 : f32
    %501 = vector.shape_cast %500 : vector<1x8x8xi1> to vector<1x8x8xi1>
    %502 = vector.broadcast %501 : vector<1x8x8xi1> to vector<4x8x8xi1>
    %503 = vector.broadcast %cst_190 : f32 to vector<4x8x8xf32>
    %504 = arith.select %502, %499, %503 : vector<4x8x8xi1>, vector<4x8x8xf32>
    %cst_191 = arith.constant dense<0xFF800000> : vector<4x8xf32>
    %505 = vector.multi_reduction <maximumf>, %504, %cst_191 [2] : vector<4x8x8xf32> to vector<4x8xf32>
    %506 = vector.shape_cast %505 : vector<4x8xf32> to vector<4x8x1xf32>
    %507 = vector.broadcast %506 : vector<4x8x1xf32> to vector<4x8x8xf32>
    %508 = arith.subf %504, %507 : vector<4x8x8xf32>
    %509 = math.exp %508 : vector<4x8x8xf32>
    %cst_192 = arith.constant dense<0.000000e+00> : vector<4x8xf32>
    %510 = vector.multi_reduction <add>, %509, %cst_192 [2] : vector<4x8x8xf32> to vector<4x8xf32>
    %511 = vector.shape_cast %510 : vector<4x8xf32> to vector<4x8x1xf32>
    %512 = vector.broadcast %511 : vector<4x8x1xf32> to vector<4x8x8xf32>
    %513 = arith.divf %509, %512 : vector<4x8x8xf32>
    %514 = vector.extract_strided_slice %361 {offsets = [0, 0, 24], sizes = [4, 8, 8], strides = [1, 1, 1]} : vector<4x8x32xf32> to vector<4x8x8xf32>
    "tpu.trace_start"() <{level = 10 : i32, message = "bnm,bmd->bnd"}> : () -> ()
    %cst_193 = arith.constant dense<0.000000e+00> : vector<4x8x8xf32>
    %515 = tpu.matmul %513, %514, %cst_193 {dimension_numbers = #tpu.dot_dimension_numbers<[2], [1], [1], [2], [0, 0, 0, 1, 1, 2], [0], [0]>} : vector<4x8x8xf32>, vector<4x8x8xf32>, vector<4x8x8xf32> -> vector<4x8x8xf32>
    "tpu.trace_stop"() : () -> ()
    %516 = vector.shape_cast %515 : vector<4x8x8xf32> to vector<32x8xf32>
    %517 = vector.extract_strided_slice %363 {offsets = [24, 0], sizes = [8, 32], strides = [1, 1]} : vector<32x32xf32> to vector<8x32xf32>
    %cst_194 = arith.constant dense<0.000000e+00> : vector<32x32xf32>
    %518 = tpu.matmul %516, %517, %cst_194 {dimension_numbers = #tpu.dot_dimension_numbers<[1], [0], [0], [1], [0, 0, 1, 1], [], []>} : vector<32x8xf32>, vector<8x32xf32>, vector<32x32xf32> -> vector<32x32xf32>
    %519 = arith.addf %475, %518 : vector<32x32xf32>
    %520 = vector.extract_strided_slice %513 {offsets = [0, 0, 0], sizes = [1, 8, 8], strides = [1, 1, 1]} : vector<4x8x8xf32> to vector<1x8x8xf32>
    %521 = vector.shape_cast %520 : vector<1x8x8xf32> to vector<8x8xf32>
    %522 = vector.extract_strided_slice %513 {offsets = [1, 0, 0], sizes = [1, 8, 8], strides = [1, 1, 1]} : vector<4x8x8xf32> to vector<1x8x8xf32>
    %523 = vector.shape_cast %522 : vector<1x8x8xf32> to vector<8x8xf32>
    %524 = arith.addf %521, %523 : vector<8x8xf32>
    %525 = vector.extract_strided_slice %513 {offsets = [2, 0, 0], sizes = [1, 8, 8], strides = [1, 1, 1]} : vector<4x8x8xf32> to vector<1x8x8xf32>
    %526 = vector.shape_cast %525 : vector<1x8x8xf32> to vector<8x8xf32>
    %527 = arith.addf %524, %526 : vector<8x8xf32>
    %528 = vector.extract_strided_slice %513 {offsets = [3, 0, 0], sizes = [1, 8, 8], strides = [1, 1, 1]} : vector<4x8x8xf32> to vector<1x8x8xf32>
    %529 = vector.shape_cast %528 : vector<1x8x8xf32> to vector<8x8xf32>
    %530 = arith.addf %527, %529 : vector<8x8xf32>
    %531 = tpu.transpose %530, [1, 0] : vector<8x8xf32> -> vector<8x8xf32>
    %532 = arith.addf %530, %531 : vector<8x8xf32>
    %533 = arith.mulf %532, %17 : vector<8x8xf32>
    %cst_195 = arith.constant 0.027777778 : f32
    %534 = vector.broadcast %cst_195 : f32 to vector<8x8xf32>
    %535 = arith.mulf %533, %534 : vector<8x8xf32>
    %c0_196 = arith.constant 0 : index
    %c7 = arith.constant 7 : index
    %c0_197 = arith.constant 0 : index
    %c0_198 = arith.constant 0 : index
    %536 = vector.load %arg28[%c0_196, %c7, %c0_197, %c0_198] : memref<1x12x8x8xf32, #tpu.memory_space<vmem>>, vector<1x1x8x8xf32>
    %537 = vector.shape_cast %536 : vector<1x1x8x8xf32> to vector<8x8xf32>
    %538 = vector.shape_cast %535 : vector<8x8xf32> to vector<1x1x8x8xf32>
    tpu.vector_store %arg28[%c0_196, %c7, %c0_197, %c0_198], %538 {strides = array<i32>} : memref<1x12x8x8xf32, #tpu.memory_space<vmem>>, vector<1x1x8x8xf32>,
    %539 = arith.addf %322, %519 : vector<32x32xf32>
    %c1_199 = arith.constant 1 : index
    %c0_200 = arith.constant 0 : index
    %c0_201 = arith.constant 0 : index
    %540 = vector.load %arg12[%c1_199, %c0_200, %c0_201] : memref<3x1x32xf32, #tpu.memory_space<vmem>>, vector<1x1x32xf32>
    %541 = vector.shape_cast %540 : vector<1x1x32xf32> to vector<1x32xf32>
    %542 = vector.broadcast %541 : vector<1x32xf32> to vector<32x32xf32>
    %543 = arith.addf %539, %542 : vector<32x32xf32>
    %c1_202 = arith.constant 1 : index
    %c0_203 = arith.constant 0 : index
    %c0_204 = arith.constant 0 : index
    %544 = vector.load %arg13[%c1_202, %c0_203, %c0_204] : memref<3x1x32xf32, #tpu.memory_space<vmem>>, vector<1x1x32xf32>
    %545 = vector.shape_cast %544 : vector<1x1x32xf32> to vector<1x32xf32>
    %c1_205 = arith.constant 1 : index
    %c0_206 = arith.constant 0 : index
    %c0_207 = arith.constant 0 : index
    %546 = vector.load %arg14[%c1_205, %c0_206, %c0_207] : memref<3x1x32xf32, #tpu.memory_space<vmem>>, vector<1x1x32xf32>
    %547 = vector.shape_cast %546 : vector<1x1x32xf32> to vector<1x32xf32>
    %cst_208 = arith.constant dense<0.000000e+00> : vector<32xf32>
    %548 = vector.multi_reduction <add>, %543, %cst_208 [1] : vector<32x32xf32> to vector<32xf32>
    %549 = vector.shape_cast %548 : vector<32xf32> to vector<32x1xf32>
    %cst_209 = arith.constant 3.200000e+01 : f32
    %550 = vector.broadcast %cst_209 : f32 to vector<32x1xf32>
    %551 = arith.divf %549, %550 : vector<32x1xf32>
    %552 = vector.broadcast %551 : vector<32x1xf32> to vector<32x32xf32>
    %553 = arith.subf %543, %552 : vector<32x32xf32>
    %554 = arith.mulf %553, %553 : vector<32x32xf32>
    %cst_210 = arith.constant dense<0.000000e+00> : vector<32xf32>
    %555 = vector.multi_reduction <add>, %554, %cst_210 [1] : vector<32x32xf32> to vector<32xf32>
    %556 = vector.shape_cast %555 : vector<32xf32> to vector<32x1xf32>
    %cst_211 = arith.constant 3.200000e+01 : f32
    %557 = vector.broadcast %cst_211 : f32 to vector<32x1xf32>
    %558 = arith.divf %556, %557 : vector<32x1xf32>
    %559 = vector.broadcast %551 : vector<32x1xf32> to vector<32x32xf32>
    %560 = arith.subf %543, %559 : vector<32x32xf32>
    %cst_212 = arith.constant 9.99999974E-6 : f32
    %561 = vector.broadcast %cst_212 : f32 to vector<32x1xf32>
    %562 = arith.addf %558, %561 : vector<32x1xf32>
    %563 = math.rsqrt %562 : vector<32x1xf32>
    %564 = vector.broadcast %563 : vector<32x1xf32> to vector<32x32xf32>
    %565 = arith.mulf %560, %564 : vector<32x32xf32>
    %566 = vector.broadcast %545 : vector<1x32xf32> to vector<32x32xf32>
    %567 = arith.mulf %565, %566 : vector<32x32xf32>
    %568 = vector.broadcast %547 : vector<1x32xf32> to vector<32x32xf32>
    %569 = arith.addf %567, %568 : vector<32x32xf32>
    %c1_213 = arith.constant 1 : index
    %c0_214 = arith.constant 0 : index
    %c0_215 = arith.constant 0 : index
    %570 = vector.load %arg15[%c1_213, %c0_214, %c0_215] : memref<3x32x128xf32, #tpu.memory_space<vmem>>, vector<1x32x128xf32>
    %571 = vector.shape_cast %570 : vector<1x32x128xf32> to vector<32x128xf32>
    %cst_216 = arith.constant dense<0.000000e+00> : vector<32x128xf32>
    %572 = tpu.matmul %569, %571, %cst_216 {dimension_numbers = #tpu.dot_dimension_numbers<[1], [0], [0], [1], [0, 0, 1, 1], [], []>} : vector<32x32xf32>, vector<32x128xf32>, vector<32x128xf32> -> vector<32x128xf32>
    %c1_217 = arith.constant 1 : index
    %c0_218 = arith.constant 0 : index
    %c0_219 = arith.constant 0 : index
    %573 = vector.load %arg16[%c1_217, %c0_218, %c0_219] : memref<3x1x128xf32, #tpu.memory_space<vmem>>, vector<1x1x128xf32>
    %574 = vector.shape_cast %573 : vector<1x1x128xf32> to vector<1x128xf32>
    %575 = vector.broadcast %574 : vector<1x128xf32> to vector<32x128xf32>
    %576 = arith.addf %572, %575 : vector<32x128xf32>
    %577 = arith.mulf %576, %576 : vector<32x128xf32>
    %578 = arith.mulf %576, %577 : vector<32x128xf32>
    %cst_220 = arith.constant 4.471500e-02 : f32
    %579 = vector.broadcast %cst_220 : f32 to vector<32x128xf32>
    %580 = arith.mulf %579, %578 : vector<32x128xf32>
    %581 = arith.addf %576, %580 : vector<32x128xf32>
    %cst_221 = arith.constant 0.797884583 : f32
    %582 = vector.broadcast %cst_221 : f32 to vector<32x128xf32>
    %583 = arith.mulf %582, %581 : vector<32x128xf32>
    %584 = math.tanh %583 : vector<32x128xf32>
    %cst_222 = arith.constant 1.000000e+00 : f32
    %585 = vector.broadcast %cst_222 : f32 to vector<32x128xf32>
    %586 = arith.addf %585, %584 : vector<32x128xf32>
    %cst_223 = arith.constant 5.000000e-01 : f32
    %587 = vector.broadcast %cst_223 : f32 to vector<32x128xf32>
    %588 = arith.mulf %587, %586 : vector<32x128xf32>
    %589 = arith.mulf %576, %588 : vector<32x128xf32>
    %c1_224 = arith.constant 1 : index
    %c0_225 = arith.constant 0 : index
    %c0_226 = arith.constant 0 : index
    %590 = vector.load %arg17[%c1_224, %c0_225, %c0_226] : memref<3x128x32xf32, #tpu.memory_space<vmem>>, vector<1x128x32xf32>
    %591 = vector.shape_cast %590 : vector<1x128x32xf32> to vector<128x32xf32>
    %cst_227 = arith.constant dense<0.000000e+00> : vector<32x32xf32>
    %592 = tpu.matmul %589, %591, %cst_227 {dimension_numbers = #tpu.dot_dimension_numbers<[1], [0], [0], [1], [0, 0, 1, 1], [], []>} : vector<32x128xf32>, vector<128x32xf32>, vector<32x32xf32> -> vector<32x32xf32>
    %c1_228 = arith.constant 1 : index
    %c0_229 = arith.constant 0 : index
    %c0_230 = arith.constant 0 : index
    %593 = vector.load %arg18[%c1_228, %c0_229, %c0_230] : memref<3x1x32xf32, #tpu.memory_space<vmem>>, vector<1x1x32xf32>
    %594 = vector.shape_cast %593 : vector<1x1x32xf32> to vector<1x32xf32>
    %595 = vector.broadcast %594 : vector<1x32xf32> to vector<32x32xf32>
    %596 = arith.addf %592, %595 : vector<32x32xf32>
    %597 = arith.addf %543, %596 : vector<32x32xf32>
    %c2_231 = arith.constant 2 : index
    %c0_232 = arith.constant 0 : index
    %c0_233 = arith.constant 0 : index
    %598 = vector.load %arg4[%c2_231, %c0_232, %c0_233] : memref<3x8x8xf32, #tpu.memory_space<vmem>>, vector<1x8x8xf32>
    %599 = vector.shape_cast %598 : vector<1x8x8xf32> to vector<8x8xf32>
    %600 = vector.shape_cast %599 : vector<8x8xf32> to vector<1x8x8xf32>
    %601 = vector.shape_cast %600 : vector<1x8x8xf32> to vector<1x8x8xf32>
    %602 = vector.broadcast %601 : vector<1x8x8xf32> to vector<4x8x8xf32>
    "tpu.trace_start"() <{level = 10 : i32, message = "man,mnp->map"}> : () -> ()
    %cst_234 = arith.constant dense<0.000000e+00> : vector<4x8x3xf32>
    %603 = tpu.matmul %602, %3, %cst_234 {dimension_numbers = #tpu.dot_dimension_numbers<[2], [1], [1], [2], [0, 0, 0, 1, 1, 2], [0], [0]>} : vector<4x8x8xf32>, vector<4x8x3xf32>, vector<4x8x3xf32> -> vector<4x8x3xf32>
    "tpu.trace_stop"() : () -> ()
    %604 = vector.shape_cast %603 : vector<4x8x3xf32> to vector<32x3xf32>
    %c2_235 = arith.constant 2 : index
    %c0_236 = arith.constant 0 : index
    %c0_237 = arith.constant 0 : index
    %605 = vector.load %arg5[%c2_235, %c0_236, %c0_237] : memref<3x3x32xf32, #tpu.memory_space<vmem>>, vector<1x3x32xf32>
    %606 = vector.shape_cast %605 : vector<1x3x32xf32> to vector<3x32xf32>
    %cst_238 = arith.constant dense<0.000000e+00> : vector<32x32xf32>
    %607 = tpu.matmul %604, %606, %cst_238 {dimension_numbers = #tpu.dot_dimension_numbers<[1], [0], [0], [1], [0, 0, 1, 1], [], []>} : vector<32x3xf32>, vector<3x32xf32>, vector<32x32xf32> -> vector<32x32xf32>
    %c2_239 = arith.constant 2 : index
    %c0_240 = arith.constant 0 : index
    %c0_241 = arith.constant 0 : index
    %608 = vector.load %arg6[%c2_239, %c0_240, %c0_241] : memref<3x1x32xf32, #tpu.memory_space<vmem>>, vector<1x1x32xf32>
    %609 = vector.shape_cast %608 : vector<1x1x32xf32> to vector<1x32xf32>
    %610 = vector.broadcast %609 : vector<1x32xf32> to vector<32x32xf32>
    %611 = arith.addf %607, %610 : vector<32x32xf32>
    %612 = arith.addf %597, %611 : vector<32x32xf32>
    %c2_242 = arith.constant 2 : index
    %c0_243 = arith.constant 0 : index
    %c0_244 = arith.constant 0 : index
    %613 = vector.load %arg7[%c2_242, %c0_243, %c0_244] : memref<3x1x32xf32, #tpu.memory_space<vmem>>, vector<1x1x32xf32>
    %614 = vector.shape_cast %613 : vector<1x1x32xf32> to vector<1x32xf32>
    %c2_245 = arith.constant 2 : index
    %c0_246 = arith.constant 0 : index
    %c0_247 = arith.constant 0 : index
    %615 = vector.load %arg8[%c2_245, %c0_246, %c0_247] : memref<3x1x32xf32, #tpu.memory_space<vmem>>, vector<1x1x32xf32>
    %616 = vector.shape_cast %615 : vector<1x1x32xf32> to vector<1x32xf32>
    %cst_248 = arith.constant dense<0.000000e+00> : vector<32xf32>
    %617 = vector.multi_reduction <add>, %612, %cst_248 [1] : vector<32x32xf32> to vector<32xf32>
    %618 = vector.shape_cast %617 : vector<32xf32> to vector<32x1xf32>
    %cst_249 = arith.constant 3.200000e+01 : f32
    %619 = vector.broadcast %cst_249 : f32 to vector<32x1xf32>
    %620 = arith.divf %618, %619 : vector<32x1xf32>
    %621 = vector.broadcast %620 : vector<32x1xf32> to vector<32x32xf32>
    %622 = arith.subf %612, %621 : vector<32x32xf32>
    %623 = arith.mulf %622, %622 : vector<32x32xf32>
    %cst_250 = arith.constant dense<0.000000e+00> : vector<32xf32>
    %624 = vector.multi_reduction <add>, %623, %cst_250 [1] : vector<32x32xf32> to vector<32xf32>
    %625 = vector.shape_cast %624 : vector<32xf32> to vector<32x1xf32>
    %cst_251 = arith.constant 3.200000e+01 : f32
    %626 = vector.broadcast %cst_251 : f32 to vector<32x1xf32>
    %627 = arith.divf %625, %626 : vector<32x1xf32>
    %628 = vector.broadcast %620 : vector<32x1xf32> to vector<32x32xf32>
    %629 = arith.subf %612, %628 : vector<32x32xf32>
    %cst_252 = arith.constant 9.99999974E-6 : f32
    %630 = vector.broadcast %cst_252 : f32 to vector<32x1xf32>
    %631 = arith.addf %627, %630 : vector<32x1xf32>
    %632 = math.rsqrt %631 : vector<32x1xf32>
    %633 = vector.broadcast %632 : vector<32x1xf32> to vector<32x32xf32>
    %634 = arith.mulf %629, %633 : vector<32x32xf32>
    %635 = vector.broadcast %614 : vector<1x32xf32> to vector<32x32xf32>
    %636 = arith.mulf %634, %635 : vector<32x32xf32>
    %637 = vector.broadcast %616 : vector<1x32xf32> to vector<32x32xf32>
    %638 = arith.addf %636, %637 : vector<32x32xf32>
    %c2_253 = arith.constant 2 : index
    %c0_254 = arith.constant 0 : index
    %c0_255 = arith.constant 0 : index
    %639 = vector.load %arg9[%c2_253, %c0_254, %c0_255] : memref<3x32x96xf32, #tpu.memory_space<vmem>>, vector<1x32x96xf32>
    %640 = vector.shape_cast %639 : vector<1x32x96xf32> to vector<32x96xf32>
    %cst_256 = arith.constant dense<0.000000e+00> : vector<32x96xf32>
    %641 = tpu.matmul %638, %640, %cst_256 {dimension_numbers = #tpu.dot_dimension_numbers<[1], [0], [0], [1], [0, 0, 1, 1], [], []>} : vector<32x32xf32>, vector<32x96xf32>, vector<32x96xf32> -> vector<32x96xf32>
    %c2_257 = arith.constant 2 : index
    %c0_258 = arith.constant 0 : index
    %c0_259 = arith.constant 0 : index
    %642 = vector.load %arg10[%c2_257, %c0_258, %c0_259] : memref<3x1x96xf32, #tpu.memory_space<vmem>>, vector<1x1x96xf32>
    %643 = vector.shape_cast %642 : vector<1x1x96xf32> to vector<1x96xf32>
    %644 = vector.broadcast %643 : vector<1x96xf32> to vector<32x96xf32>
    %645 = arith.addf %641, %644 : vector<32x96xf32>
    %646 = vector.extract_strided_slice %645 {offsets = [0, 0], sizes = [32, 32], strides = [1, 1]} : vector<32x96xf32> to vector<32x32xf32>
    %647 = vector.shape_cast %646 : vector<32x32xf32> to vector<4x8x32xf32>
    %648 = vector.extract_strided_slice %645 {offsets = [0, 32], sizes = [32, 32], strides = [1, 1]} : vector<32x96xf32> to vector<32x32xf32>
    %649 = vector.shape_cast %648 : vector<32x32xf32> to vector<4x8x32xf32>
    %650 = vector.extract_strided_slice %645 {offsets = [0, 64], sizes = [32, 32], strides = [1, 1]} : vector<32x96xf32> to vector<32x32xf32>
    %651 = vector.shape_cast %650 : vector<32x32xf32> to vector<4x8x32xf32>
    %c2_260 = arith.constant 2 : index
    %c0_261 = arith.constant 0 : index
    %c0_262 = arith.constant 0 : index
    %652 = vector.load %arg11[%c2_260, %c0_261, %c0_262] : memref<3x32x32xf32, #tpu.memory_space<vmem>>, vector<1x32x32xf32>
    %653 = vector.shape_cast %652 : vector<1x32x32xf32> to vector<32x32xf32>
    %654 = vector.extract_strided_slice %647 {offsets = [0, 0, 0], sizes = [4, 8, 8], strides = [1, 1, 1]} : vector<4x8x32xf32> to vector<4x8x8xf32>
    %655 = vector.extract_strided_slice %649 {offsets = [0, 0, 0], sizes = [4, 8, 8], strides = [1, 1, 1]} : vector<4x8x32xf32> to vector<4x8x8xf32>
    "tpu.trace_start"() <{level = 10 : i32, message = "bnd,bmd->bnm"}> : () -> ()
    %cst_263 = arith.constant dense<0.000000e+00> : vector<4x8x8xf32>
    %656 = tpu.matmul %654, %655, %cst_263 {dimension_numbers = #tpu.dot_dimension_numbers<[2], [2], [1], [1], [0, 0, 0, 1, 1, 1], [0], [0]>} : vector<4x8x8xf32>, vector<4x8x8xf32>, vector<4x8x8xf32> -> vector<4x8x8xf32>
    "tpu.trace_stop"() : () -> ()
    %cst_264 = arith.constant 1.000000e-03 : f32
    %657 = vector.broadcast %cst_264 : f32 to vector<4x8x8xf32>
    %658 = arith.mulf %656, %657 : vector<4x8x8xf32>
    %659 = vector.shape_cast %13 : vector<8x8xi1> to vector<1x8x8xi1>
    %cst_265 = arith.constant -1.000000e+30 : f32
    %660 = vector.shape_cast %659 : vector<1x8x8xi1> to vector<1x8x8xi1>
    %661 = vector.broadcast %660 : vector<1x8x8xi1> to vector<4x8x8xi1>
    %662 = vector.broadcast %cst_265 : f32 to vector<4x8x8xf32>
    %663 = arith.select %661, %658, %662 : vector<4x8x8xi1>, vector<4x8x8xf32>
    %cst_266 = arith.constant dense<0xFF800000> : vector<4x8xf32>
    %664 = vector.multi_reduction <maximumf>, %663, %cst_266 [2] : vector<4x8x8xf32> to vector<4x8xf32>
    %665 = vector.shape_cast %664 : vector<4x8xf32> to vector<4x8x1xf32>
    %666 = vector.broadcast %665 : vector<4x8x1xf32> to vector<4x8x8xf32>
    %667 = arith.subf %663, %666 : vector<4x8x8xf32>
    %668 = math.exp %667 : vector<4x8x8xf32>
    %cst_267 = arith.constant dense<0.000000e+00> : vector<4x8xf32>
    %669 = vector.multi_reduction <add>, %668, %cst_267 [2] : vector<4x8x8xf32> to vector<4x8xf32>
    %670 = vector.shape_cast %669 : vector<4x8xf32> to vector<4x8x1xf32>
    %671 = vector.broadcast %670 : vector<4x8x1xf32> to vector<4x8x8xf32>
    %672 = arith.divf %668, %671 : vector<4x8x8xf32>
    %673 = vector.extract_strided_slice %651 {offsets = [0, 0, 0], sizes = [4, 8, 8], strides = [1, 1, 1]} : vector<4x8x32xf32> to vector<4x8x8xf32>
    "tpu.trace_start"() <{level = 10 : i32, message = "bnm,bmd->bnd"}> : () -> ()
    %cst_268 = arith.constant dense<0.000000e+00> : vector<4x8x8xf32>
    %674 = tpu.matmul %672, %673, %cst_268 {dimension_numbers = #tpu.dot_dimension_numbers<[2], [1], [1], [2], [0, 0, 0, 1, 1, 2], [0], [0]>} : vector<4x8x8xf32>, vector<4x8x8xf32>, vector<4x8x8xf32> -> vector<4x8x8xf32>
    "tpu.trace_stop"() : () -> ()
    %675 = vector.shape_cast %674 : vector<4x8x8xf32> to vector<32x8xf32>
    %676 = vector.extract_strided_slice %653 {offsets = [0, 0], sizes = [8, 32], strides = [1, 1]} : vector<32x32xf32> to vector<8x32xf32>
    %cst_269 = arith.constant dense<0.000000e+00> : vector<32x32xf32>
    %677 = tpu.matmul %675, %676, %cst_269 {dimension_numbers = #tpu.dot_dimension_numbers<[1], [0], [0], [1], [0, 0, 1, 1], [], []>} : vector<32x8xf32>, vector<8x32xf32>, vector<32x32xf32> -> vector<32x32xf32>
    %678 = vector.extract_strided_slice %672 {offsets = [0, 0, 0], sizes = [1, 8, 8], strides = [1, 1, 1]} : vector<4x8x8xf32> to vector<1x8x8xf32>
    %679 = vector.shape_cast %678 : vector<1x8x8xf32> to vector<8x8xf32>
    %680 = vector.extract_strided_slice %672 {offsets = [1, 0, 0], sizes = [1, 8, 8], strides = [1, 1, 1]} : vector<4x8x8xf32> to vector<1x8x8xf32>
    %681 = vector.shape_cast %680 : vector<1x8x8xf32> to vector<8x8xf32>
    %682 = arith.addf %679, %681 : vector<8x8xf32>
    %683 = vector.extract_strided_slice %672 {offsets = [2, 0, 0], sizes = [1, 8, 8], strides = [1, 1, 1]} : vector<4x8x8xf32> to vector<1x8x8xf32>
    %684 = vector.shape_cast %683 : vector<1x8x8xf32> to vector<8x8xf32>
    %685 = arith.addf %682, %684 : vector<8x8xf32>
    %686 = vector.extract_strided_slice %672 {offsets = [3, 0, 0], sizes = [1, 8, 8], strides = [1, 1, 1]} : vector<4x8x8xf32> to vector<1x8x8xf32>
    %687 = vector.shape_cast %686 : vector<1x8x8xf32> to vector<8x8xf32>
    %688 = arith.addf %685, %687 : vector<8x8xf32>
    %689 = tpu.transpose %688, [1, 0] : vector<8x8xf32> -> vector<8x8xf32>
    %690 = arith.addf %688, %689 : vector<8x8xf32>
    %691 = arith.mulf %690, %17 : vector<8x8xf32>
    %cst_270 = arith.constant 0.027777778 : f32
    %692 = vector.broadcast %cst_270 : f32 to vector<8x8xf32>
    %693 = arith.mulf %691, %692 : vector<8x8xf32>
    %c0_271 = arith.constant 0 : index
    %c8 = arith.constant 8 : index
    %c0_272 = arith.constant 0 : index
    %c0_273 = arith.constant 0 : index
    %694 = vector.load %arg28[%c0_271, %c8, %c0_272, %c0_273] : memref<1x12x8x8xf32, #tpu.memory_space<vmem>>, vector<1x1x8x8xf32>
    %695 = vector.shape_cast %694 : vector<1x1x8x8xf32> to vector<8x8xf32>
    %696 = vector.shape_cast %693 : vector<8x8xf32> to vector<1x1x8x8xf32>
    tpu.vector_store %arg28[%c0_271, %c8, %c0_272, %c0_273], %696 {strides = array<i32>} : memref<1x12x8x8xf32, #tpu.memory_space<vmem>>, vector<1x1x8x8xf32>,
    %697 = vector.extract_strided_slice %647 {offsets = [0, 0, 8], sizes = [4, 8, 8], strides = [1, 1, 1]} : vector<4x8x32xf32> to vector<4x8x8xf32>
    %698 = vector.extract_strided_slice %649 {offsets = [0, 0, 8], sizes = [4, 8, 8], strides = [1, 1, 1]} : vector<4x8x32xf32> to vector<4x8x8xf32>
    "tpu.trace_start"() <{level = 10 : i32, message = "bnd,bmd->bnm"}> : () -> ()
    %cst_274 = arith.constant dense<0.000000e+00> : vector<4x8x8xf32>
    %699 = tpu.matmul %697, %698, %cst_274 {dimension_numbers = #tpu.dot_dimension_numbers<[2], [2], [1], [1], [0, 0, 0, 1, 1, 1], [0], [0]>} : vector<4x8x8xf32>, vector<4x8x8xf32>, vector<4x8x8xf32> -> vector<4x8x8xf32>
    "tpu.trace_stop"() : () -> ()
    %cst_275 = arith.constant 1.000000e-03 : f32
    %700 = vector.broadcast %cst_275 : f32 to vector<4x8x8xf32>
    %701 = arith.mulf %699, %700 : vector<4x8x8xf32>
    %702 = vector.shape_cast %13 : vector<8x8xi1> to vector<1x8x8xi1>
    %cst_276 = arith.constant -1.000000e+30 : f32
    %703 = vector.shape_cast %702 : vector<1x8x8xi1> to vector<1x8x8xi1>
    %704 = vector.broadcast %703 : vector<1x8x8xi1> to vector<4x8x8xi1>
    %705 = vector.broadcast %cst_276 : f32 to vector<4x8x8xf32>
    %706 = arith.select %704, %701, %705 : vector<4x8x8xi1>, vector<4x8x8xf32>
    %cst_277 = arith.constant dense<0xFF800000> : vector<4x8xf32>
    %707 = vector.multi_reduction <maximumf>, %706, %cst_277 [2] : vector<4x8x8xf32> to vector<4x8xf32>
    %708 = vector.shape_cast %707 : vector<4x8xf32> to vector<4x8x1xf32>
    %709 = vector.broadcast %708 : vector<4x8x1xf32> to vector<4x8x8xf32>
    %710 = arith.subf %706, %709 : vector<4x8x8xf32>
    %711 = math.exp %710 : vector<4x8x8xf32>
    %cst_278 = arith.constant dense<0.000000e+00> : vector<4x8xf32>
    %712 = vector.multi_reduction <add>, %711, %cst_278 [2] : vector<4x8x8xf32> to vector<4x8xf32>
    %713 = vector.shape_cast %712 : vector<4x8xf32> to vector<4x8x1xf32>
    %714 = vector.broadcast %713 : vector<4x8x1xf32> to vector<4x8x8xf32>
    %715 = arith.divf %711, %714 : vector<4x8x8xf32>
    %716 = vector.extract_strided_slice %651 {offsets = [0, 0, 8], sizes = [4, 8, 8], strides = [1, 1, 1]} : vector<4x8x32xf32> to vector<4x8x8xf32>
    "tpu.trace_start"() <{level = 10 : i32, message = "bnm,bmd->bnd"}> : () -> ()
    %cst_279 = arith.constant dense<0.000000e+00> : vector<4x8x8xf32>
    %717 = tpu.matmul %715, %716, %cst_279 {dimension_numbers = #tpu.dot_dimension_numbers<[2], [1], [1], [2], [0, 0, 0, 1, 1, 2], [0], [0]>} : vector<4x8x8xf32>, vector<4x8x8xf32>, vector<4x8x8xf32> -> vector<4x8x8xf32>
    "tpu.trace_stop"() : () -> ()
    %718 = vector.shape_cast %717 : vector<4x8x8xf32> to vector<32x8xf32>
    %719 = vector.extract_strided_slice %653 {offsets = [8, 0], sizes = [8, 32], strides = [1, 1]} : vector<32x32xf32> to vector<8x32xf32>
    %cst_280 = arith.constant dense<0.000000e+00> : vector<32x32xf32>
    %720 = tpu.matmul %718, %719, %cst_280 {dimension_numbers = #tpu.dot_dimension_numbers<[1], [0], [0], [1], [0, 0, 1, 1], [], []>} : vector<32x8xf32>, vector<8x32xf32>, vector<32x32xf32> -> vector<32x32xf32>
    %721 = arith.addf %677, %720 : vector<32x32xf32>
    %722 = vector.extract_strided_slice %715 {offsets = [0, 0, 0], sizes = [1, 8, 8], strides = [1, 1, 1]} : vector<4x8x8xf32> to vector<1x8x8xf32>
    %723 = vector.shape_cast %722 : vector<1x8x8xf32> to vector<8x8xf32>
    %724 = vector.extract_strided_slice %715 {offsets = [1, 0, 0], sizes = [1, 8, 8], strides = [1, 1, 1]} : vector<4x8x8xf32> to vector<1x8x8xf32>
    %725 = vector.shape_cast %724 : vector<1x8x8xf32> to vector<8x8xf32>
    %726 = arith.addf %723, %725 : vector<8x8xf32>
    %727 = vector.extract_strided_slice %715 {offsets = [2, 0, 0], sizes = [1, 8, 8], strides = [1, 1, 1]} : vector<4x8x8xf32> to vector<1x8x8xf32>
    %728 = vector.shape_cast %727 : vector<1x8x8xf32> to vector<8x8xf32>
    %729 = arith.addf %726, %728 : vector<8x8xf32>
    %730 = vector.extract_strided_slice %715 {offsets = [3, 0, 0], sizes = [1, 8, 8], strides = [1, 1, 1]} : vector<4x8x8xf32> to vector<1x8x8xf32>
    %731 = vector.shape_cast %730 : vector<1x8x8xf32> to vector<8x8xf32>
    %732 = arith.addf %729, %731 : vector<8x8xf32>
    %733 = tpu.transpose %732, [1, 0] : vector<8x8xf32> -> vector<8x8xf32>
    %734 = arith.addf %732, %733 : vector<8x8xf32>
    %735 = arith.mulf %734, %17 : vector<8x8xf32>
    %cst_281 = arith.constant 0.027777778 : f32
    %736 = vector.broadcast %cst_281 : f32 to vector<8x8xf32>
    %737 = arith.mulf %735, %736 : vector<8x8xf32>
    %c0_282 = arith.constant 0 : index
    %c9 = arith.constant 9 : index
    %c0_283 = arith.constant 0 : index
    %c0_284 = arith.constant 0 : index
    %738 = vector.load %arg28[%c0_282, %c9, %c0_283, %c0_284] : memref<1x12x8x8xf32, #tpu.memory_space<vmem>>, vector<1x1x8x8xf32>
    %739 = vector.shape_cast %738 : vector<1x1x8x8xf32> to vector<8x8xf32>
    %740 = vector.shape_cast %737 : vector<8x8xf32> to vector<1x1x8x8xf32>
    tpu.vector_store %arg28[%c0_282, %c9, %c0_283, %c0_284], %740 {strides = array<i32>} : memref<1x12x8x8xf32, #tpu.memory_space<vmem>>, vector<1x1x8x8xf32>,
    %741 = vector.extract_strided_slice %647 {offsets = [0, 0, 16], sizes = [4, 8, 8], strides = [1, 1, 1]} : vector<4x8x32xf32> to vector<4x8x8xf32>
    %742 = vector.extract_strided_slice %649 {offsets = [0, 0, 16], sizes = [4, 8, 8], strides = [1, 1, 1]} : vector<4x8x32xf32> to vector<4x8x8xf32>
    "tpu.trace_start"() <{level = 10 : i32, message = "bnd,bmd->bnm"}> : () -> ()
    %cst_285 = arith.constant dense<0.000000e+00> : vector<4x8x8xf32>
    %743 = tpu.matmul %741, %742, %cst_285 {dimension_numbers = #tpu.dot_dimension_numbers<[2], [2], [1], [1], [0, 0, 0, 1, 1, 1], [0], [0]>} : vector<4x8x8xf32>, vector<4x8x8xf32>, vector<4x8x8xf32> -> vector<4x8x8xf32>
    "tpu.trace_stop"() : () -> ()
    %cst_286 = arith.constant 1.000000e-03 : f32
    %744 = vector.broadcast %cst_286 : f32 to vector<4x8x8xf32>
    %745 = arith.mulf %743, %744 : vector<4x8x8xf32>
    %746 = vector.shape_cast %13 : vector<8x8xi1> to vector<1x8x8xi1>
    %cst_287 = arith.constant -1.000000e+30 : f32
    %747 = vector.shape_cast %746 : vector<1x8x8xi1> to vector<1x8x8xi1>
    %748 = vector.broadcast %747 : vector<1x8x8xi1> to vector<4x8x8xi1>
    %749 = vector.broadcast %cst_287 : f32 to vector<4x8x8xf32>
    %750 = arith.select %748, %745, %749 : vector<4x8x8xi1>, vector<4x8x8xf32>
    %cst_288 = arith.constant dense<0xFF800000> : vector<4x8xf32>
    %751 = vector.multi_reduction <maximumf>, %750, %cst_288 [2] : vector<4x8x8xf32> to vector<4x8xf32>
    %752 = vector.shape_cast %751 : vector<4x8xf32> to vector<4x8x1xf32>
    %753 = vector.broadcast %752 : vector<4x8x1xf32> to vector<4x8x8xf32>
    %754 = arith.subf %750, %753 : vector<4x8x8xf32>
    %755 = math.exp %754 : vector<4x8x8xf32>
    %cst_289 = arith.constant dense<0.000000e+00> : vector<4x8xf32>
    %756 = vector.multi_reduction <add>, %755, %cst_289 [2] : vector<4x8x8xf32> to vector<4x8xf32>
    %757 = vector.shape_cast %756 : vector<4x8xf32> to vector<4x8x1xf32>
    %758 = vector.broadcast %757 : vector<4x8x1xf32> to vector<4x8x8xf32>
    %759 = arith.divf %755, %758 : vector<4x8x8xf32>
    %760 = vector.extract_strided_slice %651 {offsets = [0, 0, 16], sizes = [4, 8, 8], strides = [1, 1, 1]} : vector<4x8x32xf32> to vector<4x8x8xf32>
    "tpu.trace_start"() <{level = 10 : i32, message = "bnm,bmd->bnd"}> : () -> ()
    %cst_290 = arith.constant dense<0.000000e+00> : vector<4x8x8xf32>
    %761 = tpu.matmul %759, %760, %cst_290 {dimension_numbers = #tpu.dot_dimension_numbers<[2], [1], [1], [2], [0, 0, 0, 1, 1, 2], [0], [0]>} : vector<4x8x8xf32>, vector<4x8x8xf32>, vector<4x8x8xf32> -> vector<4x8x8xf32>
    "tpu.trace_stop"() : () -> ()
    %762 = vector.shape_cast %761 : vector<4x8x8xf32> to vector<32x8xf32>
    %763 = vector.extract_strided_slice %653 {offsets = [16, 0], sizes = [8, 32], strides = [1, 1]} : vector<32x32xf32> to vector<8x32xf32>
    %cst_291 = arith.constant dense<0.000000e+00> : vector<32x32xf32>
    %764 = tpu.matmul %762, %763, %cst_291 {dimension_numbers = #tpu.dot_dimension_numbers<[1], [0], [0], [1], [0, 0, 1, 1], [], []>} : vector<32x8xf32>, vector<8x32xf32>, vector<32x32xf32> -> vector<32x32xf32>
    %765 = arith.addf %721, %764 : vector<32x32xf32>
    %766 = vector.extract_strided_slice %759 {offsets = [0, 0, 0], sizes = [1, 8, 8], strides = [1, 1, 1]} : vector<4x8x8xf32> to vector<1x8x8xf32>
    %767 = vector.shape_cast %766 : vector<1x8x8xf32> to vector<8x8xf32>
    %768 = vector.extract_strided_slice %759 {offsets = [1, 0, 0], sizes = [1, 8, 8], strides = [1, 1, 1]} : vector<4x8x8xf32> to vector<1x8x8xf32>
    %769 = vector.shape_cast %768 : vector<1x8x8xf32> to vector<8x8xf32>
    %770 = arith.addf %767, %769 : vector<8x8xf32>
    %771 = vector.extract_strided_slice %759 {offsets = [2, 0, 0], sizes = [1, 8, 8], strides = [1, 1, 1]} : vector<4x8x8xf32> to vector<1x8x8xf32>
    %772 = vector.shape_cast %771 : vector<1x8x8xf32> to vector<8x8xf32>
    %773 = arith.addf %770, %772 : vector<8x8xf32>
    %774 = vector.extract_strided_slice %759 {offsets = [3, 0, 0], sizes = [1, 8, 8], strides = [1, 1, 1]} : vector<4x8x8xf32> to vector<1x8x8xf32>
    %775 = vector.shape_cast %774 : vector<1x8x8xf32> to vector<8x8xf32>
    %776 = arith.addf %773, %775 : vector<8x8xf32>
    %777 = tpu.transpose %776, [1, 0] : vector<8x8xf32> -> vector<8x8xf32>
    %778 = arith.addf %776, %777 : vector<8x8xf32>
    %779 = arith.mulf %778, %17 : vector<8x8xf32>
    %cst_292 = arith.constant 0.027777778 : f32
    %780 = vector.broadcast %cst_292 : f32 to vector<8x8xf32>
    %781 = arith.mulf %779, %780 : vector<8x8xf32>
    %c0_293 = arith.constant 0 : index
    %c10 = arith.constant 10 : index
    %c0_294 = arith.constant 0 : index
    %c0_295 = arith.constant 0 : index
    %782 = vector.load %arg28[%c0_293, %c10, %c0_294, %c0_295] : memref<1x12x8x8xf32, #tpu.memory_space<vmem>>, vector<1x1x8x8xf32>
    %783 = vector.shape_cast %782 : vector<1x1x8x8xf32> to vector<8x8xf32>
    %784 = vector.shape_cast %781 : vector<8x8xf32> to vector<1x1x8x8xf32>
    tpu.vector_store %arg28[%c0_293, %c10, %c0_294, %c0_295], %784 {strides = array<i32>} : memref<1x12x8x8xf32, #tpu.memory_space<vmem>>, vector<1x1x8x8xf32>,
    %785 = vector.extract_strided_slice %647 {offsets = [0, 0, 24], sizes = [4, 8, 8], strides = [1, 1, 1]} : vector<4x8x32xf32> to vector<4x8x8xf32>
    %786 = vector.extract_strided_slice %649 {offsets = [0, 0, 24], sizes = [4, 8, 8], strides = [1, 1, 1]} : vector<4x8x32xf32> to vector<4x8x8xf32>
    "tpu.trace_start"() <{level = 10 : i32, message = "bnd,bmd->bnm"}> : () -> ()
    %cst_296 = arith.constant dense<0.000000e+00> : vector<4x8x8xf32>
    %787 = tpu.matmul %785, %786, %cst_296 {dimension_numbers = #tpu.dot_dimension_numbers<[2], [2], [1], [1], [0, 0, 0, 1, 1, 1], [0], [0]>} : vector<4x8x8xf32>, vector<4x8x8xf32>, vector<4x8x8xf32> -> vector<4x8x8xf32>
    "tpu.trace_stop"() : () -> ()
    %cst_297 = arith.constant 1.000000e-03 : f32
    %788 = vector.broadcast %cst_297 : f32 to vector<4x8x8xf32>
    %789 = arith.mulf %787, %788 : vector<4x8x8xf32>
    %790 = vector.shape_cast %13 : vector<8x8xi1> to vector<1x8x8xi1>
    %cst_298 = arith.constant -1.000000e+30 : f32
    %791 = vector.shape_cast %790 : vector<1x8x8xi1> to vector<1x8x8xi1>
    %792 = vector.broadcast %791 : vector<1x8x8xi1> to vector<4x8x8xi1>
    %793 = vector.broadcast %cst_298 : f32 to vector<4x8x8xf32>
    %794 = arith.select %792, %789, %793 : vector<4x8x8xi1>, vector<4x8x8xf32>
    %cst_299 = arith.constant dense<0xFF800000> : vector<4x8xf32>
    %795 = vector.multi_reduction <maximumf>, %794, %cst_299 [2] : vector<4x8x8xf32> to vector<4x8xf32>
    %796 = vector.shape_cast %795 : vector<4x8xf32> to vector<4x8x1xf32>
    %797 = vector.broadcast %796 : vector<4x8x1xf32> to vector<4x8x8xf32>
    %798 = arith.subf %794, %797 : vector<4x8x8xf32>
    %799 = math.exp %798 : vector<4x8x8xf32>
    %cst_300 = arith.constant dense<0.000000e+00> : vector<4x8xf32>
    %800 = vector.multi_reduction <add>, %799, %cst_300 [2] : vector<4x8x8xf32> to vector<4x8xf32>
    %801 = vector.shape_cast %800 : vector<4x8xf32> to vector<4x8x1xf32>
    %802 = vector.broadcast %801 : vector<4x8x1xf32> to vector<4x8x8xf32>
    %803 = arith.divf %799, %802 : vector<4x8x8xf32>
    %804 = vector.extract_strided_slice %651 {offsets = [0, 0, 24], sizes = [4, 8, 8], strides = [1, 1, 1]} : vector<4x8x32xf32> to vector<4x8x8xf32>
    "tpu.trace_start"() <{level = 10 : i32, message = "bnm,bmd->bnd"}> : () -> ()
    %cst_301 = arith.constant dense<0.000000e+00> : vector<4x8x8xf32>
    %805 = tpu.matmul %803, %804, %cst_301 {dimension_numbers = #tpu.dot_dimension_numbers<[2], [1], [1], [2], [0, 0, 0, 1, 1, 2], [0], [0]>} : vector<4x8x8xf32>, vector<4x8x8xf32>, vector<4x8x8xf32> -> vector<4x8x8xf32>
    "tpu.trace_stop"() : () -> ()
    %806 = vector.shape_cast %805 : vector<4x8x8xf32> to vector<32x8xf32>
    %807 = vector.extract_strided_slice %653 {offsets = [24, 0], sizes = [8, 32], strides = [1, 1]} : vector<32x32xf32> to vector<8x32xf32>
    %cst_302 = arith.constant dense<0.000000e+00> : vector<32x32xf32>
    %808 = tpu.matmul %806, %807, %cst_302 {dimension_numbers = #tpu.dot_dimension_numbers<[1], [0], [0], [1], [0, 0, 1, 1], [], []>} : vector<32x8xf32>, vector<8x32xf32>, vector<32x32xf32> -> vector<32x32xf32>
    %809 = arith.addf %765, %808 : vector<32x32xf32>
    %810 = vector.extract_strided_slice %803 {offsets = [0, 0, 0], sizes = [1, 8, 8], strides = [1, 1, 1]} : vector<4x8x8xf32> to vector<1x8x8xf32>
    %811 = vector.shape_cast %810 : vector<1x8x8xf32> to vector<8x8xf32>
    %812 = vector.extract_strided_slice %803 {offsets = [1, 0, 0], sizes = [1, 8, 8], strides = [1, 1, 1]} : vector<4x8x8xf32> to vector<1x8x8xf32>
    %813 = vector.shape_cast %812 : vector<1x8x8xf32> to vector<8x8xf32>
    %814 = arith.addf %811, %813 : vector<8x8xf32>
    %815 = vector.extract_strided_slice %803 {offsets = [2, 0, 0], sizes = [1, 8, 8], strides = [1, 1, 1]} : vector<4x8x8xf32> to vector<1x8x8xf32>
    %816 = vector.shape_cast %815 : vector<1x8x8xf32> to vector<8x8xf32>
    %817 = arith.addf %814, %816 : vector<8x8xf32>
    %818 = vector.extract_strided_slice %803 {offsets = [3, 0, 0], sizes = [1, 8, 8], strides = [1, 1, 1]} : vector<4x8x8xf32> to vector<1x8x8xf32>
    %819 = vector.shape_cast %818 : vector<1x8x8xf32> to vector<8x8xf32>
    %820 = arith.addf %817, %819 : vector<8x8xf32>
    %821 = tpu.transpose %820, [1, 0] : vector<8x8xf32> -> vector<8x8xf32>
    %822 = arith.addf %820, %821 : vector<8x8xf32>
    %823 = arith.mulf %822, %17 : vector<8x8xf32>
    %cst_303 = arith.constant 0.027777778 : f32
    %824 = vector.broadcast %cst_303 : f32 to vector<8x8xf32>
    %825 = arith.mulf %823, %824 : vector<8x8xf32>
    %c0_304 = arith.constant 0 : index
    %c11 = arith.constant 11 : index
    %c0_305 = arith.constant 0 : index
    %c0_306 = arith.constant 0 : index
    %826 = vector.load %arg28[%c0_304, %c11, %c0_305, %c0_306] : memref<1x12x8x8xf32, #tpu.memory_space<vmem>>, vector<1x1x8x8xf32>
    %827 = vector.shape_cast %826 : vector<1x1x8x8xf32> to vector<8x8xf32>
    %828 = vector.shape_cast %825 : vector<8x8xf32> to vector<1x1x8x8xf32>
    tpu.vector_store %arg28[%c0_304, %c11, %c0_305, %c0_306], %828 {strides = array<i32>} : memref<1x12x8x8xf32, #tpu.memory_space<vmem>>, vector<1x1x8x8xf32>,
    %829 = arith.addf %612, %809 : vector<32x32xf32>
    %c2_307 = arith.constant 2 : index
    %c0_308 = arith.constant 0 : index
    %c0_309 = arith.constant 0 : index
    %830 = vector.load %arg12[%c2_307, %c0_308, %c0_309] : memref<3x1x32xf32, #tpu.memory_space<vmem>>, vector<1x1x32xf32>
    %831 = vector.shape_cast %830 : vector<1x1x32xf32> to vector<1x32xf32>
    %832 = vector.broadcast %831 : vector<1x32xf32> to vector<32x32xf32>
    %833 = arith.addf %829, %832 : vector<32x32xf32>
    %c2_310 = arith.constant 2 : index
    %c0_311 = arith.constant 0 : index
    %c0_312 = arith.constant 0 : index
    %834 = vector.load %arg13[%c2_310, %c0_311, %c0_312] : memref<3x1x32xf32, #tpu.memory_space<vmem>>, vector<1x1x32xf32>
    %835 = vector.shape_cast %834 : vector<1x1x32xf32> to vector<1x32xf32>
    %c2_313 = arith.constant 2 : index
    %c0_314 = arith.constant 0 : index
    %c0_315 = arith.constant 0 : index
    %836 = vector.load %arg14[%c2_313, %c0_314, %c0_315] : memref<3x1x32xf32, #tpu.memory_space<vmem>>, vector<1x1x32xf32>
    %837 = vector.shape_cast %836 : vector<1x1x32xf32> to vector<1x32xf32>
    %cst_316 = arith.constant dense<0.000000e+00> : vector<32xf32>
    %838 = vector.multi_reduction <add>, %833, %cst_316 [1] : vector<32x32xf32> to vector<32xf32>
    %839 = vector.shape_cast %838 : vector<32xf32> to vector<32x1xf32>
    %cst_317 = arith.constant 3.200000e+01 : f32
    %840 = vector.broadcast %cst_317 : f32 to vector<32x1xf32>
    %841 = arith.divf %839, %840 : vector<32x1xf32>
    %842 = vector.broadcast %841 : vector<32x1xf32> to vector<32x32xf32>
    %843 = arith.subf %833, %842 : vector<32x32xf32>
    %844 = arith.mulf %843, %843 : vector<32x32xf32>
    %cst_318 = arith.constant dense<0.000000e+00> : vector<32xf32>
    %845 = vector.multi_reduction <add>, %844, %cst_318 [1] : vector<32x32xf32> to vector<32xf32>
    %846 = vector.shape_cast %845 : vector<32xf32> to vector<32x1xf32>
    %cst_319 = arith.constant 3.200000e+01 : f32
    %847 = vector.broadcast %cst_319 : f32 to vector<32x1xf32>
    %848 = arith.divf %846, %847 : vector<32x1xf32>
    %849 = vector.broadcast %841 : vector<32x1xf32> to vector<32x32xf32>
    %850 = arith.subf %833, %849 : vector<32x32xf32>
    %cst_320 = arith.constant 9.99999974E-6 : f32
    %851 = vector.broadcast %cst_320 : f32 to vector<32x1xf32>
    %852 = arith.addf %848, %851 : vector<32x1xf32>
    %853 = math.rsqrt %852 : vector<32x1xf32>
    %854 = vector.broadcast %853 : vector<32x1xf32> to vector<32x32xf32>
    %855 = arith.mulf %850, %854 : vector<32x32xf32>
    %856 = vector.broadcast %835 : vector<1x32xf32> to vector<32x32xf32>
    %857 = arith.mulf %855, %856 : vector<32x32xf32>
    %858 = vector.broadcast %837 : vector<1x32xf32> to vector<32x32xf32>
    %859 = arith.addf %857, %858 : vector<32x32xf32>
    %c2_321 = arith.constant 2 : index
    %c0_322 = arith.constant 0 : index
    %c0_323 = arith.constant 0 : index
    %860 = vector.load %arg15[%c2_321, %c0_322, %c0_323] : memref<3x32x128xf32, #tpu.memory_space<vmem>>, vector<1x32x128xf32>
    %861 = vector.shape_cast %860 : vector<1x32x128xf32> to vector<32x128xf32>
    %cst_324 = arith.constant dense<0.000000e+00> : vector<32x128xf32>
    %862 = tpu.matmul %859, %861, %cst_324 {dimension_numbers = #tpu.dot_dimension_numbers<[1], [0], [0], [1], [0, 0, 1, 1], [], []>} : vector<32x32xf32>, vector<32x128xf32>, vector<32x128xf32> -> vector<32x128xf32>
    %c2_325 = arith.constant 2 : index
    %c0_326 = arith.constant 0 : index
    %c0_327 = arith.constant 0 : index
    %863 = vector.load %arg16[%c2_325, %c0_326, %c0_327] : memref<3x1x128xf32, #tpu.memory_space<vmem>>, vector<1x1x128xf32>
    %864 = vector.shape_cast %863 : vector<1x1x128xf32> to vector<1x128xf32>
    %865 = vector.broadcast %864 : vector<1x128xf32> to vector<32x128xf32>
    %866 = arith.addf %862, %865 : vector<32x128xf32>
    %867 = arith.mulf %866, %866 : vector<32x128xf32>
    %868 = arith.mulf %866, %867 : vector<32x128xf32>
    %cst_328 = arith.constant 4.471500e-02 : f32
    %869 = vector.broadcast %cst_328 : f32 to vector<32x128xf32>
    %870 = arith.mulf %869, %868 : vector<32x128xf32>
    %871 = arith.addf %866, %870 : vector<32x128xf32>
    %cst_329 = arith.constant 0.797884583 : f32
    %872 = vector.broadcast %cst_329 : f32 to vector<32x128xf32>
    %873 = arith.mulf %872, %871 : vector<32x128xf32>
    %874 = math.tanh %873 : vector<32x128xf32>
    %cst_330 = arith.constant 1.000000e+00 : f32
    %875 = vector.broadcast %cst_330 : f32 to vector<32x128xf32>
    %876 = arith.addf %875, %874 : vector<32x128xf32>
    %cst_331 = arith.constant 5.000000e-01 : f32
    %877 = vector.broadcast %cst_331 : f32 to vector<32x128xf32>
    %878 = arith.mulf %877, %876 : vector<32x128xf32>
    %879 = arith.mulf %866, %878 : vector<32x128xf32>
    %c2_332 = arith.constant 2 : index
    %c0_333 = arith.constant 0 : index
    %c0_334 = arith.constant 0 : index
    %880 = vector.load %arg17[%c2_332, %c0_333, %c0_334] : memref<3x128x32xf32, #tpu.memory_space<vmem>>, vector<1x128x32xf32>
    %881 = vector.shape_cast %880 : vector<1x128x32xf32> to vector<128x32xf32>
    %cst_335 = arith.constant dense<0.000000e+00> : vector<32x32xf32>
    %882 = tpu.matmul %879, %881, %cst_335 {dimension_numbers = #tpu.dot_dimension_numbers<[1], [0], [0], [1], [0, 0, 1, 1], [], []>} : vector<32x128xf32>, vector<128x32xf32>, vector<32x32xf32> -> vector<32x32xf32>
    %c2_336 = arith.constant 2 : index
    %c0_337 = arith.constant 0 : index
    %c0_338 = arith.constant 0 : index
    %883 = vector.load %arg18[%c2_336, %c0_337, %c0_338] : memref<3x1x32xf32, #tpu.memory_space<vmem>>, vector<1x1x32xf32>
    %884 = vector.shape_cast %883 : vector<1x1x32xf32> to vector<1x32xf32>
    %885 = vector.broadcast %884 : vector<1x32xf32> to vector<32x32xf32>
    %886 = arith.addf %882, %885 : vector<32x32xf32>
    %887 = arith.addf %833, %886 : vector<32x32xf32>
    %c0_339 = arith.constant 0 : index
    %c0_340 = arith.constant 0 : index
    %888 = vector.load %arg21[%c0_339, %c0_340] : memref<1x32xf32, #tpu.memory_space<vmem>>, vector<1x32xf32>
    %c0_341 = arith.constant 0 : index
    %c0_342 = arith.constant 0 : index
    %889 = vector.load %arg22[%c0_341, %c0_342] : memref<1x32xf32, #tpu.memory_space<vmem>>, vector<1x32xf32>
    %cst_343 = arith.constant dense<0.000000e+00> : vector<32xf32>
    %890 = vector.multi_reduction <add>, %887, %cst_343 [1] : vector<32x32xf32> to vector<32xf32>
    %891 = vector.shape_cast %890 : vector<32xf32> to vector<32x1xf32>
    %cst_344 = arith.constant 3.200000e+01 : f32
    %892 = vector.broadcast %cst_344 : f32 to vector<32x1xf32>
    %893 = arith.divf %891, %892 : vector<32x1xf32>
    %894 = vector.broadcast %893 : vector<32x1xf32> to vector<32x32xf32>
    %895 = arith.subf %887, %894 : vector<32x32xf32>
    %896 = arith.mulf %895, %895 : vector<32x32xf32>
    %cst_345 = arith.constant dense<0.000000e+00> : vector<32xf32>
    %897 = vector.multi_reduction <add>, %896, %cst_345 [1] : vector<32x32xf32> to vector<32xf32>
    %898 = vector.shape_cast %897 : vector<32xf32> to vector<32x1xf32>
    %cst_346 = arith.constant 3.200000e+01 : f32
    %899 = vector.broadcast %cst_346 : f32 to vector<32x1xf32>
    %900 = arith.divf %898, %899 : vector<32x1xf32>
    %901 = vector.broadcast %893 : vector<32x1xf32> to vector<32x32xf32>
    %902 = arith.subf %887, %901 : vector<32x32xf32>
    %cst_347 = arith.constant 9.99999974E-6 : f32
    %903 = vector.broadcast %cst_347 : f32 to vector<32x1xf32>
    %904 = arith.addf %900, %903 : vector<32x1xf32>
    %905 = math.rsqrt %904 : vector<32x1xf32>
    %906 = vector.broadcast %905 : vector<32x1xf32> to vector<32x32xf32>
    %907 = arith.mulf %902, %906 : vector<32x32xf32>
    %908 = vector.broadcast %888 : vector<1x32xf32> to vector<32x32xf32>
    %909 = arith.mulf %907, %908 : vector<32x32xf32>
    %910 = vector.broadcast %889 : vector<1x32xf32> to vector<32x32xf32>
    %911 = arith.addf %909, %910 : vector<32x32xf32>
    %c0_348 = arith.constant 0 : index
    %c0_349 = arith.constant 0 : index
    %912 = vector.load %arg23[%c0_348, %c0_349] : memref<32x16xf32, #tpu.memory_space<vmem>>, vector<32x16xf32>
    %cst_350 = arith.constant dense<0.000000e+00> : vector<32x16xf32>
    %913 = tpu.matmul %911, %912, %cst_350 {dimension_numbers = #tpu.dot_dimension_numbers<[1], [0], [0], [1], [0, 0, 1, 1], [], []>} : vector<32x32xf32>, vector<32x16xf32>, vector<32x16xf32> -> vector<32x16xf32>
    %c0_351 = arith.constant 0 : index
    %c0_352 = arith.constant 0 : index
    %914 = vector.load %arg24[%c0_351, %c0_352] : memref<1x16xf32, #tpu.memory_space<vmem>>, vector<1x16xf32>
    %915 = vector.broadcast %914 : vector<1x16xf32> to vector<32x16xf32>
    %916 = arith.addf %913, %915 : vector<32x16xf32>
    %917 = vector.shape_cast %916 : vector<32x16xf32> to vector<4x8x16xf32>
    %c0_353 = arith.constant 0 : index
    %c0_354 = arith.constant 0 : index
    %918 = vector.load %arg26[%c0_353, %c0_354] : memref<1x24xf32, #tpu.memory_space<vmem>>, vector<1x24xf32>
    %919 = vector.extract_strided_slice %917 {offsets = [0, 0, 0], sizes = [4, 1, 16], strides = [1, 1, 1]} : vector<4x8x16xf32> to vector<4x1x16xf32>
    %920 = vector.shape_cast %919 : vector<4x1x16xf32> to vector<4x16xf32>
    %c0_355 = arith.constant 0 : index
    %c0_356 = arith.constant 0 : index
    %921 = vector.load %arg25[%c0_355, %c0_356] : memref<128x24xf32, #tpu.memory_space<vmem>>, vector<16x24xf32>
    %cst_357 = arith.constant dense<0.000000e+00> : vector<4x24xf32>
    %922 = tpu.matmul %920, %921, %cst_357 {dimension_numbers = #tpu.dot_dimension_numbers<[1], [0], [0], [1], [0, 0, 1, 1], [], []>} : vector<4x16xf32>, vector<16x24xf32>, vector<4x24xf32> -> vector<4x24xf32>
    %923 = vector.broadcast %918 : vector<1x24xf32> to vector<4x24xf32>
    %924 = arith.addf %923, %922 : vector<4x24xf32>
    %925 = vector.extract_strided_slice %917 {offsets = [0, 1, 0], sizes = [4, 1, 16], strides = [1, 1, 1]} : vector<4x8x16xf32> to vector<4x1x16xf32>
    %926 = vector.shape_cast %925 : vector<4x1x16xf32> to vector<4x16xf32>
    %c16 = arith.constant 16 : index
    %c0_358 = arith.constant 0 : index
    %927 = vector.load %arg25[%c16, %c0_358] : memref<128x24xf32, #tpu.memory_space<vmem>>, vector<16x24xf32>
    %cst_359 = arith.constant dense<0.000000e+00> : vector<4x24xf32>
    %928 = tpu.matmul %926, %927, %cst_359 {dimension_numbers = #tpu.dot_dimension_numbers<[1], [0], [0], [1], [0, 0, 1, 1], [], []>} : vector<4x16xf32>, vector<16x24xf32>, vector<4x24xf32> -> vector<4x24xf32>
    %929 = arith.addf %924, %928 : vector<4x24xf32>
    %930 = vector.extract_strided_slice %917 {offsets = [0, 2, 0], sizes = [4, 1, 16], strides = [1, 1, 1]} : vector<4x8x16xf32> to vector<4x1x16xf32>
    %931 = vector.shape_cast %930 : vector<4x1x16xf32> to vector<4x16xf32>
    %c32 = arith.constant 32 : index
    %c0_360 = arith.constant 0 : index
    %932 = vector.load %arg25[%c32, %c0_360] : memref<128x24xf32, #tpu.memory_space<vmem>>, vector<16x24xf32>
    %cst_361 = arith.constant dense<0.000000e+00> : vector<4x24xf32>
    %933 = tpu.matmul %931, %932, %cst_361 {dimension_numbers = #tpu.dot_dimension_numbers<[1], [0], [0], [1], [0, 0, 1, 1], [], []>} : vector<4x16xf32>, vector<16x24xf32>, vector<4x24xf32> -> vector<4x24xf32>
    %934 = arith.addf %929, %933 : vector<4x24xf32>
    %935 = vector.extract_strided_slice %917 {offsets = [0, 3, 0], sizes = [4, 1, 16], strides = [1, 1, 1]} : vector<4x8x16xf32> to vector<4x1x16xf32>
    %936 = vector.shape_cast %935 : vector<4x1x16xf32> to vector<4x16xf32>
    %c48 = arith.constant 48 : index
    %c0_362 = arith.constant 0 : index
    %937 = vector.load %arg25[%c48, %c0_362] : memref<128x24xf32, #tpu.memory_space<vmem>>, vector<16x24xf32>
    %cst_363 = arith.constant dense<0.000000e+00> : vector<4x24xf32>
    %938 = tpu.matmul %936, %937, %cst_363 {dimension_numbers = #tpu.dot_dimension_numbers<[1], [0], [0], [1], [0, 0, 1, 1], [], []>} : vector<4x16xf32>, vector<16x24xf32>, vector<4x24xf32> -> vector<4x24xf32>
    %939 = arith.addf %934, %938 : vector<4x24xf32>
    %940 = vector.extract_strided_slice %917 {offsets = [0, 4, 0], sizes = [4, 1, 16], strides = [1, 1, 1]} : vector<4x8x16xf32> to vector<4x1x16xf32>
    %941 = vector.shape_cast %940 : vector<4x1x16xf32> to vector<4x16xf32>
    %c64 = arith.constant 64 : index
    %c0_364 = arith.constant 0 : index
    %942 = vector.load %arg25[%c64, %c0_364] : memref<128x24xf32, #tpu.memory_space<vmem>>, vector<16x24xf32>
    %cst_365 = arith.constant dense<0.000000e+00> : vector<4x24xf32>
    %943 = tpu.matmul %941, %942, %cst_365 {dimension_numbers = #tpu.dot_dimension_numbers<[1], [0], [0], [1], [0, 0, 1, 1], [], []>} : vector<4x16xf32>, vector<16x24xf32>, vector<4x24xf32> -> vector<4x24xf32>
    %944 = arith.addf %939, %943 : vector<4x24xf32>
    %945 = vector.extract_strided_slice %917 {offsets = [0, 5, 0], sizes = [4, 1, 16], strides = [1, 1, 1]} : vector<4x8x16xf32> to vector<4x1x16xf32>
    %946 = vector.shape_cast %945 : vector<4x1x16xf32> to vector<4x16xf32>
    %c80 = arith.constant 80 : index
    %c0_366 = arith.constant 0 : index
    %947 = vector.load %arg25[%c80, %c0_366] : memref<128x24xf32, #tpu.memory_space<vmem>>, vector<16x24xf32>
    %cst_367 = arith.constant dense<0.000000e+00> : vector<4x24xf32>
    %948 = tpu.matmul %946, %947, %cst_367 {dimension_numbers = #tpu.dot_dimension_numbers<[1], [0], [0], [1], [0, 0, 1, 1], [], []>} : vector<4x16xf32>, vector<16x24xf32>, vector<4x24xf32> -> vector<4x24xf32>
    %949 = arith.addf %944, %948 : vector<4x24xf32>
    %950 = vector.extract_strided_slice %917 {offsets = [0, 6, 0], sizes = [4, 1, 16], strides = [1, 1, 1]} : vector<4x8x16xf32> to vector<4x1x16xf32>
    %951 = vector.shape_cast %950 : vector<4x1x16xf32> to vector<4x16xf32>
    %c96 = arith.constant 96 : index
    %c0_368 = arith.constant 0 : index
    %952 = vector.load %arg25[%c96, %c0_368] : memref<128x24xf32, #tpu.memory_space<vmem>>, vector<16x24xf32>
    %cst_369 = arith.constant dense<0.000000e+00> : vector<4x24xf32>
    %953 = tpu.matmul %951, %952, %cst_369 {dimension_numbers = #tpu.dot_dimension_numbers<[1], [0], [0], [1], [0, 0, 1, 1], [], []>} : vector<4x16xf32>, vector<16x24xf32>, vector<4x24xf32> -> vector<4x24xf32>
    %954 = arith.addf %949, %953 : vector<4x24xf32>
    %955 = vector.extract_strided_slice %917 {offsets = [0, 7, 0], sizes = [4, 1, 16], strides = [1, 1, 1]} : vector<4x8x16xf32> to vector<4x1x16xf32>
    %956 = vector.shape_cast %955 : vector<4x1x16xf32> to vector<4x16xf32>
    %c112 = arith.constant 112 : index
    %c0_370 = arith.constant 0 : index
    %957 = vector.load %arg25[%c112, %c0_370] : memref<128x24xf32, #tpu.memory_space<vmem>>, vector<16x24xf32>
    %cst_371 = arith.constant dense<0.000000e+00> : vector<4x24xf32>
    %958 = tpu.matmul %956, %957, %cst_371 {dimension_numbers = #tpu.dot_dimension_numbers<[1], [0], [0], [1], [0, 0, 1, 1], [], []>} : vector<4x16xf32>, vector<16x24xf32>, vector<4x24xf32> -> vector<4x24xf32>
    %959 = arith.addf %954, %958 : vector<4x24xf32>
    %c0_372 = arith.constant 0 : index
    %c0_373 = arith.constant 0 : index
    %c0_374 = arith.constant 0 : index
    %960 = vector.load %arg27[%c0_372, %c0_373, %c0_374] : memref<1x4x24xf32, #tpu.memory_space<vmem>>, vector<1x4x24xf32>
    %961 = vector.shape_cast %960 : vector<1x4x24xf32> to vector<4x24xf32>
    %962 = vector.shape_cast %959 : vector<4x24xf32> to vector<1x4x24xf32>
    tpu.vector_store %arg27[%c0_372, %c0_373, %c0_374], %962 {strides = array<i32>} : memref<1x4x24xf32, #tpu.memory_space<vmem>>, vector<1x4x24xf32>,
    return
  }
  func.func @transform_0(%arg0: i32) -> (i32, i32, i32) {
    %c0_i32 = arith.constant 0 : i32
    %c0_i32_0 = arith.constant 0 : i32
    %c0_i32_1 = arith.constant 0 : i32
    return %arg0, %c0_i32, %c0_i32_0 : i32, i32, i32
  }
  func.func @transform_1(%arg0: i32) -> (i32, i32, i32, i32) {
    %c0_i32 = arith.constant 0 : i32
    %c0_i32_0 = arith.constant 0 : i32
    %c0_i32_1 = arith.constant 0 : i32
    %c0_i32_2 = arith.constant 0 : i32
    return %arg0, %c0_i32, %c0_i32_0, %c0_i32_1 : i32, i32, i32, i32
  }
  func.func @transform_2(%arg0: i32) -> (i32, i32) {
    %c0_i32 = arith.constant 0 : i32
    %c0_i32_0 = arith.constant 0 : i32
    %c0_i32_1 = arith.constant 0 : i32
    return %c0_i32, %c0_i32_0 : i32, i32
  }
  func.func @transform_3(%arg0: i32) -> (i32, i32, i32) {
    %c0_i32 = arith.constant 0 : i32
    %c0_i32_0 = arith.constant 0 : i32
    %c0_i32_1 = arith.constant 0 : i32
    %c0_i32_2 = arith.constant 0 : i32
    return %c0_i32, %c0_i32_0, %c0_i32_1 : i32, i32, i32
  }
  func.func @transform_4(%arg0: i32) -> (i32, i32, i32) {
    %c0_i32 = arith.constant 0 : i32
    %c0_i32_0 = arith.constant 0 : i32
    %c0_i32_1 = arith.constant 0 : i32
    %c0_i32_2 = arith.constant 0 : i32
    return %c0_i32, %c0_i32_0, %c0_i32_1 : i32, i32, i32
  }
  func.func @transform_5(%arg0: i32) -> (i32, i32, i32) {
    %c0_i32 = arith.constant 0 : i32
    %c0_i32_0 = arith.constant 0 : i32
    %c0_i32_1 = arith.constant 0 : i32
    %c0_i32_2 = arith.constant 0 : i32
    return %c0_i32, %c0_i32_0, %c0_i32_1 : i32, i32, i32
  }
  func.func @transform_6(%arg0: i32) -> (i32, i32, i32) {
    %c0_i32 = arith.constant 0 : i32
    %c0_i32_0 = arith.constant 0 : i32
    %c0_i32_1 = arith.constant 0 : i32
    %c0_i32_2 = arith.constant 0 : i32
    return %c0_i32, %c0_i32_0, %c0_i32_1 : i32, i32, i32
  }
  func.func @transform_7(%arg0: i32) -> (i32, i32, i32) {
    %c0_i32 = arith.constant 0 : i32
    %c0_i32_0 = arith.constant 0 : i32
    %c0_i32_1 = arith.constant 0 : i32
    %c0_i32_2 = arith.constant 0 : i32
    return %c0_i32, %c0_i32_0, %c0_i32_1 : i32, i32, i32
  }
  func.func @transform_8(%arg0: i32) -> (i32, i32, i32) {
    %c0_i32 = arith.constant 0 : i32
    %c0_i32_0 = arith.constant 0 : i32
    %c0_i32_1 = arith.constant 0 : i32
    %c0_i32_2 = arith.constant 0 : i32
    return %c0_i32, %c0_i32_0, %c0_i32_1 : i32, i32, i32
  }
  func.func @transform_9(%arg0: i32) -> (i32, i32, i32) {
    %c0_i32 = arith.constant 0 : i32
    %c0_i32_0 = arith.constant 0 : i32
    %c0_i32_1 = arith.constant 0 : i32
    %c0_i32_2 = arith.constant 0 : i32
    return %c0_i32, %c0_i32_0, %c0_i32_1 : i32, i32, i32
  }
  func.func @transform_10(%arg0: i32) -> (i32, i32, i32) {
    %c0_i32 = arith.constant 0 : i32
    %c0_i32_0 = arith.constant 0 : i32
    %c0_i32_1 = arith.constant 0 : i32
    %c0_i32_2 = arith.constant 0 : i32
    return %c0_i32, %c0_i32_0, %c0_i32_1 : i32, i32, i32
  }
  func.func @transform_11(%arg0: i32) -> (i32, i32, i32) {
    %c0_i32 = arith.constant 0 : i32
    %c0_i32_0 = arith.constant 0 : i32
    %c0_i32_1 = arith.constant 0 : i32
    %c0_i32_2 = arith.constant 0 : i32
    return %c0_i32, %c0_i32_0, %c0_i32_1 : i32, i32, i32
  }
  func.func @transform_12(%arg0: i32) -> (i32, i32, i32) {
    %c0_i32 = arith.constant 0 : i32
    %c0_i32_0 = arith.constant 0 : i32
    %c0_i32_1 = arith.constant 0 : i32
    %c0_i32_2 = arith.constant 0 : i32
    return %c0_i32, %c0_i32_0, %c0_i32_1 : i32, i32, i32
  }
  func.func @transform_13(%arg0: i32) -> (i32, i32, i32) {
    %c0_i32 = arith.constant 0 : i32
    %c0_i32_0 = arith.constant 0 : i32
    %c0_i32_1 = arith.constant 0 : i32
    %c0_i32_2 = arith.constant 0 : i32
    return %c0_i32, %c0_i32_0, %c0_i32_1 : i32, i32, i32
  }
  func.func @transform_14(%arg0: i32) -> (i32, i32, i32) {
    %c0_i32 = arith.constant 0 : i32
    %c0_i32_0 = arith.constant 0 : i32
    %c0_i32_1 = arith.constant 0 : i32
    %c0_i32_2 = arith.constant 0 : i32
    return %c0_i32, %c0_i32_0, %c0_i32_1 : i32, i32, i32
  }
  func.func @transform_15(%arg0: i32) -> (i32, i32, i32) {
    %c0_i32 = arith.constant 0 : i32
    %c0_i32_0 = arith.constant 0 : i32
    %c0_i32_1 = arith.constant 0 : i32
    %c0_i32_2 = arith.constant 0 : i32
    return %c0_i32, %c0_i32_0, %c0_i32_1 : i32, i32, i32
  }
  func.func @transform_16(%arg0: i32) -> (i32, i32, i32) {
    %c0_i32 = arith.constant 0 : i32
    %c0_i32_0 = arith.constant 0 : i32
    %c0_i32_1 = arith.constant 0 : i32
    %c0_i32_2 = arith.constant 0 : i32
    return %c0_i32, %c0_i32_0, %c0_i32_1 : i32, i32, i32
  }
  func.func @transform_17(%arg0: i32) -> (i32, i32, i32) {
    %c0_i32 = arith.constant 0 : i32
    %c0_i32_0 = arith.constant 0 : i32
    %c0_i32_1 = arith.constant 0 : i32
    %c0_i32_2 = arith.constant 0 : i32
    return %c0_i32, %c0_i32_0, %c0_i32_1 : i32, i32, i32
  }
  func.func @transform_18(%arg0: i32) -> (i32, i32) {
    %c0_i32 = arith.constant 0 : i32
    %c0_i32_0 = arith.constant 0 : i32
    %c0_i32_1 = arith.constant 0 : i32
    return %c0_i32, %c0_i32_0 : i32, i32
  }
  func.func @transform_19(%arg0: i32) -> (i32, i32) {
    %c0_i32 = arith.constant 0 : i32
    %c0_i32_0 = arith.constant 0 : i32
    %c0_i32_1 = arith.constant 0 : i32
    return %c0_i32, %c0_i32_0 : i32, i32
  }
  func.func @transform_20(%arg0: i32) -> (i32, i32) {
    %c0_i32 = arith.constant 0 : i32
    %c0_i32_0 = arith.constant 0 : i32
    %c0_i32_1 = arith.constant 0 : i32
    return %c0_i32, %c0_i32_0 : i32, i32
  }
  func.func @transform_21(%arg0: i32) -> (i32, i32) {
    %c0_i32 = arith.constant 0 : i32
    %c0_i32_0 = arith.constant 0 : i32
    %c0_i32_1 = arith.constant 0 : i32
    return %c0_i32, %c0_i32_0 : i32, i32
  }
  func.func @transform_22(%arg0: i32) -> (i32, i32) {
    %c0_i32 = arith.constant 0 : i32
    %c0_i32_0 = arith.constant 0 : i32
    %c0_i32_1 = arith.constant 0 : i32
    return %c0_i32, %c0_i32_0 : i32, i32
  }
  func.func @transform_23(%arg0: i32) -> (i32, i32) {
    %c0_i32 = arith.constant 0 : i32
    %c0_i32_0 = arith.constant 0 : i32
    %c0_i32_1 = arith.constant 0 : i32
    return %c0_i32, %c0_i32_0 : i32, i32
  }
  func.func @transform_24(%arg0: i32) -> (i32, i32) {
    %c0_i32 = arith.constant 0 : i32
    %c0_i32_0 = arith.constant 0 : i32
    %c0_i32_1 = arith.constant 0 : i32
    return %c0_i32, %c0_i32_0 : i32, i32
  }
  func.func @transform_25(%arg0: i32) -> (i32, i32) {
    %c0_i32 = arith.constant 0 : i32
    %c0_i32_0 = arith.constant 0 : i32
    %c0_i32_1 = arith.constant 0 : i32
    return %c0_i32, %c0_i32_0 : i32, i32
  }
  func.func @transform_26(%arg0: i32) -> (i32, i32, i32) {
    %c0_i32 = arith.constant 0 : i32
    %c0_i32_0 = arith.constant 0 : i32
    %c0_i32_1 = arith.constant 0 : i32
    return %arg0, %c0_i32, %c0_i32_0 : i32, i32, i32
  }
  func.func @transform_27(%arg0: i32) -> (i32, i32, i32, i32) {
    %c0_i32 = arith.constant 0 : i32
    %c0_i32_0 = arith.constant 0 : i32
    %c0_i32_1 = arith.constant 0 : i32
    %c0_i32_2 = arith.constant 0 : i32
    return %arg0, %c0_i32, %c0_i32_0, %c0_i32_1 : i32, i32, i32, i32
  }
}

</mosaic_0001>

<bundles_post_ra>
// kernel: gpt4ts_forward.3
= control target key start
LH: loop header
LB: loop body
LE: loop exit
PB: predicated region body
PF: predicated region fallthrough
CT: control target
= control target key end

     0   :  { %s2441_s15 = smov 0   ;;  %s3074_s0 = inlined_call_operand.vmem [shape: f32[2,4,24], index: 0, kind: input, shape index: {}]   ;;  %s3075_s1 = inlined_call_operand.vmem [shape: f32[36,4], index: 1, kind: input, shape index: {}]   ;;  %s3076_s2 = inlined_call_operand.vmem [shape: f32[36,1], index: 2, kind: input, shape index: {}]   ;;  %s3077_s3 = inlined_call_operand.vmem [shape: f32[24,24], index: 3, kind: input, shape index: {}]   ;;  %s3078_s4 = inlined_call_operand.vmem [shape: f32[2,36,24,24], index: 4, kind: output, shape index: {}]  }
   0x1 LB: > { %s1990_s16 = sadd.s32 4294967295, %s2413_s15   ;;  %p1994_p0 = scmp.ge.s32.totalorder %s2413_s15, 1  ;;  %s2413_s15 = sphi %s2441_s15, %s14_s15  }
   0x2   : > { %p161_p1 = scmp.lt.s32.totalorder %s2413_s15, 3 }
   0x4   : > { %p162_p2 = pnand %p1994_p0, %p161_p1 }
   0x5   : > { %p186_p3 = scmp.lt.s32.totalorder (!%p162_p2), %s1990_s16, 1 }
   0x6   : > { %165 = sbr.rel (%p162_p2) target bundleno = 843 (0x34b), region = 36 }
   0xb   : > { %v2415_v0 = vmov 0   ;;  %v201_v1 = vld [vmem:[%s3076_s2] sm:$0xff]  ;;  %s3084_s16 = smov (!%p186_p3, %s1990_s16), 1  ;;  %v203_v2 = vld [vmem:[%s3076_s2 + $0x10] sm:$0xff]  ;;  %vm247_vm0 = vcmask 1043456   ;;  %vm231_vm1 = vcmask 31744   ;;  %v490_v44 = vlaneseq }
   0xc   : > { %2100 = vset.pattern.permute.xlu0 %v2415_v0  ;;  %2101 = vset.pattern.permute.xlu1 %v2415_v0  ;;  %v205_v3 = vld [vmem:[%s3076_s2 + $0x20] sm:$0xf]  ;;  %s1995_s23 = sshll.u32 %s3084_s16, 2  ;;  %v197_v5 = vld [vmem:[%s3075_s1 + $0x8] sm:$0xff]  ;;  %v198_v8 = vld [vmem:[%s3075_s1 + $0x10] sm:$0xff]  ;;  %s2090_s19 = smul.u32 864, %s3084_s16 }
   0xd   : > { %208 = vperm.xlu0 %2100, %v201_v1   ;;  %2102 = vset.pattern.permute.xlu2 %v2415_v0  ;;  %s189_s26 = scalar_lea.vmem %s3074_s0, %s1995_s23  ;;  %v196_v4 = vld [vmem:[%s3075_s1] sm:$0xff]  ;;  %v202_v7 = vld [vmem:[%s3076_s2 + $0x8] sm:$0xff]  ;;  %v204_v10 = vld [vmem:[%s3076_s2 + $0x18] sm:$0xff]  ;;  %v2494_v54 = vshrl.u32 %v490_v44, 7 }
   0xe   : > { %218 = vperm.xlu1 %2101, %v203_v2   ;;  %228 = vperm.xlu2 %2102, %v205_v3   ;;  %v195_v6 = vld [vmem:[%s189_s26] sm:$0xf]  ;;  %v199_v11 = vld [vmem:[%s3075_s1 + $0x18] sm:$0xff]  ;;  %s2629_s22 = scalar_lea.vmem %s3078_s4, %s2090_s19 }
   0xf   : > { %1997 = vmatpush.msk.msra.mxu0 %vm247_vm0, %v195_v6  ;;  %2087 = vmatpush.msk.msra.mxu1 %vm247_vm0, %v195_v6  ;;  %v200_v9 = vld [vmem:[%s3075_s1 + $0x20] sm:$0xf]  ;;  %v2498_v57 = vadd.s32 16, %v2494_v54 }
  0x10   : > { %1998 = vmatmul.msk.f32.vlgmr.msra.gmra.mxu0 %vm231_vm1, %v196_v4  ;;  %1999 = vmatmul.msk.f32.vlgmr.msra.gmra.mxu1 %vm231_vm1, %v197_v5 }
  0x11   : > { %2088 = vmatpush.msk.msra.mxu2 %vm247_vm0, %v195_v6  ;;  %2089 = vmatpush.msk.msra.mxu3 %vm247_vm0, %v195_v6 }
  0x12   : > { %2000 = vmatmul.msk.f32.vlgmr.msra.gmra.mxu2 %vm231_vm1, %v198_v8  ;;  %2002 = vmatmul.msk.f32.vlgmr.msra.gmra.mxu3 %vm231_vm1, %v200_v9 }
  0x15   : > { %213 = vperm.xlu0 %2100, %v202_v7  }
  0x16   : > { %223 = vperm.xlu1 %2101, %v204_v10   ;;  %2103 = vset.pattern.permute.xlu2 %v2494_v54 }
  0x1a   : > { %2001 = vmatmul.msk.f32.gmra.mxu2 %vm231_vm1, %v199_v11 }
  0x1d   : > { %2107 = vset.pattern.permute.xlu0 %v2494_v54 }
  0x1e   : > { %2104 = vset.pattern.permute.xlu1 %v2498_v57 }
  0x68   : > { %v229_v33 = vpop.permute.xlu2 %228 }
  0x7f   : > { %v209_v12 = vpop.permute.xlu0 %208 }
  0x80   : > { %v219_v22 = vpop.permute.xlu1 %218 }
  0x87   : > { %v214_v13 = vpop.permute.xlu0 %213 }
  0x88   : > { %v224_v31 = vpop.permute.xlu1 %223 }
  0x8d   : > { %v268_v14 = vpop.f32.mrf.mxu0  ;;  %v271_v15 = vpop.f32.mrf.mxu1 }
  0x8e   : > { %v269_v16 = vadd.f32 %v268_v14, %v209_v12  ;;  %v272_v17 = vadd.f32 %v271_v15, %v214_v13 }
  0x90   : > { %v2003_v18 = vmul.f32 -5.0, %v269_v16  ;;  %v2004_v19 = vmul.f32 -5.0, %v272_v17 }
  0x92   : > { %v293_v20 = vmul.f32 1.442695, %v2003_v18  ;;  %v295_v21 = vmul.f32 1.442695, %v2004_v19 }
  0x94   : > { %2151 = vpow2.f32 %v293_v20 }
  0x95   : > { %2153 = vpow2.f32 %v295_v21  ;;  %v274_v23 = vpop.f32.mrf.mxu2  ;;  %v280_v34 = vpop.f32.mrf.mxu3 }
  0x96   : > { %v275_v24 = vadd.f32 %v274_v23, %v219_v22  ;;  %v281_v36 = vadd.f32 %v280_v34, %v229_v33 }
  0x98   : > { %v2005_v25 = vmul.f32 -5.0, %v275_v24  ;;  %v2007_v38 = vmul.f32 -5.0, %v281_v36 }
  0x9a   : > { %v2152_v26 = vpop.eup %2151  ;;  %v297_v27 = vmul.f32 1.442695, %v2005_v25  ;;  %v301_v43 = vmul.f32 1.442695, %v2007_v38 }
  0x9b   : > { %v2154_v28 = vpop.eup %2153  ;;  %v303_v29 = vadd.f32 1.0, %v2152_v26 }
  0x9c   : > { %v304_v30 = vadd.f32 1.0, %v2154_v28  ;;  %2155 = vpow2.f32 %v297_v27 }
  0x9d   : > { %2157 = vrcp.f32 %v303_v29  ;;  %v277_v32 = vpop.f32.mrf.mxu2  ;;  %v317_v47 = vand.u32 2147483647, %v303_v29  ;;  %v319_v50 = vand.u32 2147483648, %v303_v29  ;;  %vm313_vm3 = vweird.f32 %v303_v29 }
  0x9e   : > { %2159 = vrcp.f32 %v304_v30  ;;  %v278_v35 = vadd.f32 %v277_v32, %v224_v31  ;;  %v332_v51 = vand.u32 2147483647, %v304_v30  ;;  %v334_v53 = vand.u32 2147483648, %v304_v30 }
  0x9f   : > { %vm2501_vm5 = vcmp.eq.f32.partialorder %v317_v47, 8.507059e+37  ;;  %v320_v60 = vor.u32 1.1754944e-38, %v319_v50  ;;  %vm328_vm6 = vweird.f32 %v304_v30 }
  0xa0   : > { %v2006_v37 = vmul.f32 -5.0, %v278_v35  ;;  %vm2505_vm8 = vcmp.eq.f32.partialorder %v332_v51, 8.507059e+37  ;;  %v335_v0 = vor.u32 1.1754944e-38, %v334_v53 }
  0xa2   : > { %v2156_v39 = vpop.eup %2155  ;;  %v299_v42 = vmul.f32 1.442695, %v2006_v37 }
  0xa3   : > { %v2158_v40 = vpop.eup %2157  ;;  %v305_v41 = vadd.f32 1.0, %v2156_v39 }
  0xa4   : > { %v2160_v45 = vpop.eup %2159  ;;  %v309_v46 = vmul.f32 %v2158_v40, %v303_v29  ;;  %vm314_vm2 = vweird.f32 %v2158_v40 }
  0xa5   : > { %v324_v48 = vmul.f32 %v2160_v45, %v304_v30  ;;  %2161 = vrcp.f32 %v305_v41  ;;  %vm329_vm4 = vweird.f32 %v2160_v45  ;;  %vm315_vm7 = vmor %vm313_vm3, %vm314_vm2  ;;  %vm343_vm9 = vweird.f32 %v305_v41 }
  0xa6   : > { %v310_v49 = vsub.f32 1.0, %v309_v46  ;;  %2163 = vpow2.f32 %v299_v42  ;;  %vm330_vm10 = vmor %vm328_vm6, %vm329_vm4  ;;  %v347_v4 = vand.u32 2147483647, %v305_v41  ;;  %v349_v5 = vand.u32 2147483648, %v305_v41 }
  0xa7   : > { %v325_v52 = vsub.f32 1.0, %v324_v48  ;;  %2165 = vpow2.f32 %v301_v43 }
  0xa8   : > { %v311_v55 = vmul.f32 %v2158_v40, %v310_v49  ;;  %v350_v18 = vor.u32 1.1754944e-38, %v349_v5  ;;  %vm348_vm13 = vcmp.eq.f32.partialorder %v347_v4, 8.507059e+37 }
  0xa9   : > { %v326_v56 = vmul.f32 %v2160_v45, %v325_v52 }
  0xaa   : > { %v312_v58 = vadd.f32 %v2158_v40, %v311_v55 }
  0xab   : > { %v2162_v61 = vpop.eup %2161  ;;  %v327_v62 = vadd.f32 %v2160_v45, %v326_v56 }
  0xac   : > { %v2164_v1 = vpop.eup %2163  ;;  %v316_v2 = vsel %vm315_vm7, %v2158_v40, %v312_v58  ;;  %v339_v3 = vmul.f32 %v2162_v61, %v305_v41  ;;  %vm344_vm11 = vweird.f32 %v2162_v61 }
  0xad   : > { %v2166_v6 = vpop.eup %2165  ;;  %v321_v7 = vsel %vm2501_vm5, %v320_v60, %v316_v2  ;;  %v331_v8 = vsel %vm330_vm10, %v2160_v45, %v327_v62  ;;  %v306_v9 = vadd.f32 1.0, %v2164_v1  ;;  %vm345_vm12 = vmor %vm343_vm9, %vm344_vm11 }
  0xae   : > { %v383_v10 = vadd.f32 1e-05, %v321_v7  ;;  %v336_v11 = vsel %vm2505_vm8, %v335_v0, %v331_v8  ;;  %v340_v12 = vsub.f32 1.0, %v339_v3  ;;  %v307_v13 = vadd.f32 1.0, %v2166_v6 }
  0xaf   : > { %v384_v14 = vadd.f32 1e-05, %v336_v11  ;;  %2167 = vrcp.f32 %v306_v9  ;;  %vm358_vm14 = vweird.f32 %v306_v9  ;;  %v362_v28 = vand.u32 2147483647, %v306_v9 }
  0xb0   : > { %v388_v15 = vmul.f32 1.0986123, %v383_v10  ;;  %v341_v16 = vmul.f32 %v2162_v61, %v340_v12  ;;  %2169 = vrcp.f32 %v307_v13  ;;  %v364_v29 = vand.u32 2147483648, %v306_v9 }
  0xb1   : > { %v389_v17 = vmul.f32 1.0986123, %v384_v14  ;;  %v379_v33 = vand.u32 2147483648, %v307_v13  ;;  %vm373_vm0 = vweird.f32 %v307_v13  ;;  %v377_v35 = vand.u32 2147483647, %v307_v13 }
  0xb2   : > { %v393_v19 = vmul.f32 1.442695, %v388_v15  ;;  %v342_v20 = vadd.f32 %v2162_v61, %v341_v16  ;;  %vm363_vm3 = vcmp.eq.f32.partialorder %v362_v28, 8.507059e+37  ;;  %v365_v41 = vor.u32 1.1754944e-38, %v364_v29 }
  0xb3   : > { %v395_v21 = vmul.f32 1.442695, %v389_v17  ;;  %v380_v45 = vor.u32 1.1754944e-38, %v379_v33  ;;  %vm378_vm5 = vcmp.eq.f32.partialorder %v377_v35, 8.507059e+37 }
  0xb4   : > { %2171 = vpow2.f32 %v393_v19  ;;  %v346_v22 = vsel %vm345_vm12, %v2162_v61, %v342_v20 }
  0xb5   : > { %v2168_v23 = vpop.eup %2167  ;;  %2173 = vpow2.f32 %v395_v21  ;;  %v351_v24 = vsel %vm348_vm13, %v350_v18, %v346_v22  ;;  %v2538_v18 = vadd.s32 8, %v2494_v54 }
  0xb6   : > { %v2170_v25 = vpop.eup %2169  ;;  %v385_v26 = vadd.f32 1e-05, %v351_v24  ;;  %v354_v27 = vmul.f32 %v2168_v23, %v306_v9  ;;  %vm359_vm15 = vweird.f32 %v2168_v23 }
  0xb7   : > { %v369_v30 = vmul.f32 %v2170_v25, %v307_v13  ;;  %vm374_vm1 = vweird.f32 %v2170_v25  ;;  %vm360_vm2 = vmor %vm358_vm14, %vm359_vm15 }
  0xb8   : > { %v390_v31 = vmul.f32 1.0986123, %v385_v26  ;;  %v355_v32 = vsub.f32 1.0, %v354_v27  ;;  %vm375_vm4 = vmor %vm373_vm0, %vm374_vm1 }
  0xb9   : > { %v370_v34 = vsub.f32 1.0, %v369_v30 }
  0xba   : > { %v2172_v36 = vpop.eup %2171  ;;  %v397_v37 = vmul.f32 1.442695, %v390_v31  ;;  %v356_v38 = vmul.f32 %v2168_v23, %v355_v32 }
  0xbb   : > { %v2174_v39 = vpop.eup %2173  ;;  %v2008_v40 = vadd.f32 -1.0, %v2172_v36  ;;  %v371_v42 = vmul.f32 %v2170_v25, %v370_v34 }
  0xbc   : > { %v2517_v43 = vadd.f32 -1.0, %v2174_v39  ;;  %2175 = vpow2.f32 %v397_v37  ;;  %v357_v44 = vadd.f32 %v2168_v23, %v356_v38 }
  0xbd   : > { %2177 = vrcp.f32 %v2008_v40  ;;  %v372_v46 = vadd.f32 %v2170_v25, %v371_v42  ;;  %v417_v0 = vand.u32 2147483647, %v2008_v40  ;;  %v419_v1 = vand.u32 2147483648, %v2008_v40 }
  0xbe   : > { %v361_v47 = vsel %vm360_vm2, %v2168_v23, %v357_v44  ;;  %2179 = vrcp.f32 %v2517_v43  ;;  %vm413_vm7 = vweird.f32 %v2008_v40  ;;  %v434_v20 = vand.u32 2147483648, %v2517_v43 }
  0xbf   : > { %v366_v48 = vsel %vm363_vm3, %v365_v41, %v361_v47  ;;  %v376_v49 = vsel %vm375_vm4, %v2170_v25, %v372_v46  ;;  %v420_v6 = vor.u32 1.1754944e-38, %v419_v1  ;;  %vm418_vm9 = vcmp.eq.f32.partialorder %v417_v0, 8.507059e+37 }
  0xc0   : > { %v386_v50 = vadd.f32 1e-05, %v366_v48  ;;  %v381_v51 = vsel %vm378_vm5, %v380_v45, %v376_v49  ;;  %vm428_vm11 = vweird.f32 %v2517_v43  ;;  %v432_v23 = vand.u32 2147483647, %v2517_v43 }
  0xc1   : > { %v387_v58 = vadd.f32 1e-05, %v381_v51  ;;  %v435_v28 = vor.u32 1.1754944e-38, %v434_v20 }
  0xc2   : > { %v2176_v52 = vpop.eup %2175  ;;  %v391_v53 = vmul.f32 1.0986123, %v386_v50  ;;  %vm433_vm15 = vcmp.eq.f32.partialorder %v432_v23, 8.507059e+37 }
  0xc3   : > { %v2178_v55 = vpop.eup %2177  ;;  %v2521_v56 = vadd.f32 -1.0, %v2176_v52  ;;  %v392_v63 = vmul.f32 1.0986123, %v387_v58 }
  0xc4   : > { %v399_v59 = vmul.f32 1.442695, %v391_v53  ;;  %v409_v60 = vmul.f32 %v2178_v55, %v2008_v40  ;;  %v2180_v61 = vpop.eup %2179  ;;  %vm414_vm6 = vweird.f32 %v2178_v55 }
  0xc5   : > { %2181 = vrcp.f32 %v2521_v56  ;;  %v424_v3 = vmul.f32 %v2180_v61, %v2517_v43  ;;  %vm415_vm8 = vmor %vm413_vm7, %vm414_vm6  ;;  %v401_v7 = vmul.f32 1.442695, %v392_v63  ;;  %vm429_vm10 = vweird.f32 %v2180_v61 }
  0xc6   : > { %v410_v62 = vsub.f32 1.0, %v409_v60  ;;  %2183 = vpow2.f32 %v399_v59  ;;  %vm430_vm12 = vmor %vm428_vm11, %vm429_vm10  ;;  %vm443_vm13 = vweird.f32 %v2521_v56  ;;  %v449_v29 = vand.u32 2147483648, %v2521_v56 }
  0xc7   : > { %v425_v9 = vsub.f32 1.0, %v424_v3  ;;  %2185 = vpow2.f32 %v401_v7  ;;  %v447_v31 = vand.u32 2147483647, %v2521_v56  ;;  %vm936_vm10 = vcmask 195584  }
  0xc8   : > { %v411_v2 = vmul.f32 %v2178_v55, %v410_v62  ;;  %v450_v34 = vor.u32 1.1754944e-38, %v449_v29 }
  0xc9   : > { %v426_v15 = vmul.f32 %v2180_v61, %v425_v9  ;;  %vm448_vm1 = vcmp.eq.f32.partialorder %v447_v31, 8.507059e+37 }
  0xca   : > { %v412_v4 = vadd.f32 %v2178_v55, %v411_v2 }
  0xcb   : > { %v2182_v5 = vpop.eup %2181  ;;  %v427_v19 = vadd.f32 %v2180_v61, %v426_v15 }
  0xcc   : > { %v416_v8 = vsel %vm415_vm8, %v2178_v55, %v412_v4  ;;  %v2184_v11 = vpop.eup %2183  ;;  %v439_v14 = vmul.f32 %v2182_v5, %v2521_v56  ;;  %vm444_vm14 = vweird.f32 %v2182_v5 }
  0xcd   : > { %v2525_v10 = vsel %vm418_vm9, %v420_v6, %v416_v8  ;;  %v2011_v16 = vadd.f32 -1.0, %v2184_v11  ;;  %v2186_v21 = vpop.eup %2185  ;;  %v431_v26 = vsel %vm430_vm12, %v2180_v61, %v427_v19  ;;  %vm445_vm0 = vmor %vm443_vm13, %vm444_vm14 }
  0xce   : > { %v2528_v12 = vperm.slane %v2525_v10, 2  ;;  %v2531_v13 = vperm.slane %v2525_v10, 0  ;;  %v440_v17 = vsub.f32 1.0, %v439_v14  ;;  %v2542_v22 = vperm.slane %v2525_v10, 7 }
  0xcf   : > { %2187 = vrcp.f32 %v2011_v16  ;;  %v508_v25 = vperm.slane %v2525_v10, 1  ;;  %v2012_v27 = vadd.f32 -1.0, %v2186_v21  ;;  %v2552_v33 = vsel %vm433_vm15, %v435_v28, %v431_v26 }
  0xd0   : > { %532 = vperm.xlu0 %2107, %v2528_v12   ;;  %506 = vperm.xlu1 %2104, %v2531_v13   ;;  %v441_v24 = vmul.f32 %v2182_v5, %v440_v17  ;;  %v2555_v35 = vperm.slane %v2552_v33, 4  ;;  %vm458_vm2 = vweird.f32 %v2011_v16  ;;  %v464_v44 = vand.u32 2147483648, %v2011_v16 }
  0xd1   : > { %494 = vperm.xlu2 %2103, %v2531_v13   ;;  %2189 = vrcp.f32 %v2012_v27  ;;  %v462_v46 = vand.u32 2147483647, %v2011_v16  ;;  %vm473_vm6 = vweird.f32 %v2012_v27  ;;  %v479_v53 = vand.u32 2147483648, %v2012_v27 }
  0xd2   : > { %v442_v30 = vadd.f32 %v2182_v5, %v441_v24  ;;  %v465_v49 = vor.u32 1.1754944e-38, %v464_v44  ;;  %v477_v56 = vand.u32 2147483647, %v2012_v27  ;;  %v546_v60 = vperm.slane %v2525_v10, 3  ;;  %v485_v24 = vld [vmem:[%s3077_s3 + $0x10] sm:$0xff] }
  0xd3   : > { %vm463_vm5 = vcmp.eq.f32.partialorder %v462_v46, 8.507059e+37  ;;  %v480_v59 = vor.u32 1.1754944e-38, %v479_v53  ;;  %v565_v0 = vperm.slane %v2525_v10, 4  ;;  %v2591_v1 = vperm.slane %v2552_v33, 0 }
  0xd4   : > { %v446_v36 = vsel %vm445_vm0, %v2182_v5, %v442_v30  ;;  %vm478_vm9 = vcmp.eq.f32.partialorder %v477_v56, 8.507059e+37  ;;  %v2594_v2 = vperm.slane %v2525_v10, 5  ;;  %v2600_v3 = vperm.slane %v2552_v33, 5  ;;  %v483_v5 = vld [vmem:[%s3077_s3] sm:$0xff] }
  0xd5   : > { %v2188_v32 = vpop.eup %2187  ;;  %v2559_v38 = vsel %vm448_vm1, %v450_v34, %v446_v36  ;;  %v603_v4 = vperm.slane %v2525_v10, 6  ;;  %v486_v7 = vmul.f32 %v483_v5, %v483_v5  ;;  %v488_v26 = vmul.f32 %v485_v24, %v485_v24 }
  0xd6   : > { %v454_v37 = vmul.f32 %v2188_v32, %v2011_v16  ;;  %v2562_v41 = vperm.slane %v2559_v38, 1  ;;  %vm459_vm3 = vweird.f32 %v2188_v32  ;;  %v2567_v48 = vperm.slane %v2559_v38, 6 }
  0xd7   : > { %v2190_v40 = vpop.eup %2189  ;;  %vm460_vm4 = vmor %vm458_vm2, %vm459_vm3  ;;  %v2609_v6 = vperm.slane %v2559_v38, 2  ;;  %v2612_v8 = vmul.f32 -0.5, %v486_v7  ;;  %v2617_v11 = vperm.slane %v2559_v38, 7  ;;  %v2642_v29 = vmul.f32 -0.5, %v488_v26 }
  0xd8   : > { %627 = vperm.xlu0 %2107, %v2542_v22   ;;  %2105 = vset.pattern.permute.xlu1 %v2538_v18  ;;  %v455_v39 = vsub.f32 1.0, %v454_v37  ;;  %v469_v43 = vmul.f32 %v2190_v40, %v2012_v27  ;;  %vm474_vm7 = vweird.f32 %v2190_v40  ;;  %v660_v44 = vperm.slane %v2552_v33, 1 }
  0xd9   : > { %513 = vperm.xlu2 %2103, %v508_v25   ;;  %vm475_vm8 = vmor %vm473_vm6, %vm474_vm7 }
  0xda   : > { %v456_v42 = vmul.f32 %v2188_v32, %v455_v39  ;;  %v470_v47 = vsub.f32 1.0, %v469_v43 }
  0xdc   : > { %v457_v45 = vadd.f32 %v2188_v32, %v456_v42  ;;  %v471_v51 = vmul.f32 %v2190_v40, %v470_v47 }
  0xde   : > { %v461_v50 = vsel %vm460_vm4, %v2188_v32, %v457_v45  ;;  %v472_v55 = vadd.f32 %v2190_v40, %v471_v51 }
  0xdf   : > { %v2572_v52 = vsel %vm463_vm5, %v465_v49, %v461_v50  ;;  %v484_v49 = vld [vmem:[%s3077_s3 + $0x8] sm:$0xff] }
  0xe0   : > { %978 = vperm.xlu0 %2107, %v2555_v35   ;;  %519 = vperm.xlu1 %2105, %v508_v25   ;;  %v2575_v58 = vperm.slane %v2572_v52, 3  ;;  %v476_v61 = vsel %vm475_vm8, %v2190_v40, %v472_v55  ;;  %v2624_v17 = vperm.slane %v2572_v52, 4  ;;  %v487_v55 = vmul.f32 %v484_v49, %v484_v49 }
  0xe1   : > { %2106 = vset.pattern.permute.xlu2 %v2498_v57  ;;  %v2580_v62 = vsel %vm478_vm9, %v480_v59, %v476_v61 }
  0xe2   : > { %v2583_v63 = vperm.slane %v2580_v62, 0  ;;  %v2640_v27 = vperm.slane %v2580_v62, 1  ;;  %v2660_v7 = vmul.f32 -0.5, %v487_v55 }
  0xe8   : > { %1073 = vperm.xlu0 %2107, %v2562_v41   ;;  %538 = vperm.xlu1 %2105, %v2528_v12  }
  0xe9   : > { %525 = vperm.xlu2 %2106, %v508_v25  }
  0xf0   : > { %1168 = vperm.xlu0 %2107, %v2567_v48   ;;  %2108 = vset.pattern.permute.xlu1 %v2494_v54 }
  0xf1   : > { %544 = vperm.xlu2 %2106, %v2528_v12  }
  0xf8   : > { %1516 = vperm.xlu0 %2107, %v2575_v58   ;;  %551 = vperm.xlu1 %2108, %v546_v60  }
  0xf9   : > { %2109 = vset.pattern.permute.xlu2 %v2538_v18 }
 0x100   : > { %1611 = vperm.xlu0 %2107, %v2583_v63   ;;  %570 = vperm.xlu1 %2108, %v565_v0  }
 0x101   : > { %557 = vperm.xlu2 %2109, %v546_v60  }
 0x108   : > { %2144 = vset.pattern.permute.xlu0 %v2498_v57  ;;  %2110 = vset.pattern.permute.xlu1 %v2498_v57 }
 0x109   : > { %576 = vperm.xlu2 %2109, %v565_v0  }
 0x110   : > { %563 = vperm.xlu0 %2144, %v546_v60   ;;  %582 = vperm.xlu1 %2110, %v565_v0  }
 0x111   : > { %2111 = vset.pattern.permute.xlu2 %v2494_v54 }
 0x118   : > { %658 = vperm.xlu0 %2144, %v2591_v1   ;;  %601 = vperm.xlu1 %2110, %v2594_v2  }
 0x119   : > { %589 = vperm.xlu2 %2111, %v2594_v2  }
 0x120   : > { %1009 = vperm.xlu0 %2144, %v2600_v3   ;;  %2112 = vset.pattern.permute.xlu1 %v2538_v18 }
 0x121   : > { %608 = vperm.xlu2 %2111, %v603_v4  }
 0x128   : > { %1104 = vperm.xlu0 %2144, %v2609_v6   ;;  %614 = vperm.xlu1 %2112, %v603_v4  }
 0x129   : > { %2113 = vset.pattern.permute.xlu2 %v2498_v57 }
 0x12b   : > { %v495_v9 = vpop.permute.xlu2 %494 }
 0x12c   : > { %v756_v10 = vmul.f32 %v2612_v8, %v495_v9  ;;  %v717_v20 = vmul.f32 0.3989423, %v495_v9 }
 0x12e   : > { %v792_v12 = vmul.f32 %v756_v10, %v495_v9 }
 0x130   : > { %v828_v14 = vmul.f32 1.442695, %v792_v12  ;;  %1199 = vperm.xlu0 %2144, %v2617_v11   ;;  %633 = vperm.xlu1 %2112, %v2542_v22  }
 0x131   : > { %620 = vperm.xlu2 %2113, %v603_v4  }
 0x132   : > { %2191 = vpow2.f32 %v828_v14 }
 0x133   : > { %v514_v15 = vpop.permute.xlu2 %513 }
 0x134   : > { %v759_v16 = vmul.f32 %v2612_v8, %v514_v15  ;;  %v720_v28 = vmul.f32 0.3989423, %v514_v15 }
 0x136   : > { %v795_v19 = vmul.f32 %v759_v16, %v514_v15 }
 0x138   : > { %v2192_v21 = vpop.eup %2191  ;;  %v834_v23 = vmul.f32 1.442695, %v795_v19  ;;  %1547 = vperm.xlu0 %2144, %v2624_v17   ;;  %2114 = vset.pattern.permute.xlu1 %v2494_v54 }
 0x139   : > { %v900_v25 = vmul.f32 %v2192_v21, %v717_v20  ;;  %639 = vperm.xlu2 %2113, %v2542_v22  }
 0x13a   : > { %2193 = vpow2.f32 %v834_v23 }
 0x13b   : > { %937 = vst.msk [vmem:[%s2629_s22] sm:$0xff] %vm936_vm10, %v900_v25 }
 0x140   : > { %v2194_v30 = vpop.eup %2193  ;;  %1642 = vperm.xlu0 %2144, %v2640_v27   ;;  %646 = vperm.xlu1 %2114, %v2591_v1  }
 0x141   : > { %v903_v31 = vmul.f32 %v2194_v30, %v720_v28  ;;  %2115 = vset.pattern.permute.xlu2 %v2538_v18 }
 0x142   : > { %v533_v32 = vpop.permute.xlu0 %532  ;;  %v507_v22 = vpop.permute.xlu1 %506 }
 0x143   : > { %940 = vst.msk [vmem:[%s2629_s22 + $0x18] sm:$0xff] %vm936_vm10, %v903_v31  ;;  %v762_v34 = vmul.f32 %v2612_v8, %v533_v32  ;;  %v758_v36 = vmul.f32 %v2642_v29, %v507_v22  ;;  %v526_v37 = vpop.permute.xlu2 %525  ;;  %v723_v60 = vmul.f32 0.3989423, %v533_v32  ;;  %v719_v4 = vmul.f32 0.3989423, %v507_v22 }
 0x144   : > { %v761_v39 = vmul.f32 %v2642_v29, %v526_v37  ;;  %v722_v10 = vmul.f32 0.3989423, %v526_v37 }
 0x145   : > { %v798_v40 = vmul.f32 %v762_v34, %v533_v32  ;;  %v794_v42 = vmul.f32 %v758_v36, %v507_v22 }
 0x146   : > { %v797_v43 = vmul.f32 %v761_v39, %v526_v37 }
 0x147   : > { %v840_v45 = vmul.f32 1.442695, %v798_v40  ;;  %v832_v46 = vmul.f32 1.442695, %v794_v42 }
 0x148   : > { %v838_v47 = vmul.f32 1.442695, %v797_v43  ;;  %2147 = vset.pattern.permute.xlu0 %v2538_v18  ;;  %665 = vperm.xlu1 %2114, %v660_v44  }
 0x149   : > { %2195 = vpow2.f32 %v840_v45  ;;  %652 = vperm.xlu2 %2115, %v2591_v1  }
 0x14a   : > { %2197 = vpow2.f32 %v832_v46  ;;  %v628_v50 = vpop.permute.xlu0 %627 }
 0x14b   : > { %2199 = vpow2.f32 %v838_v47  ;;  %v777_v51 = vmul.f32 %v2612_v8, %v628_v50  ;;  %v545_v53 = vpop.permute.xlu2 %544  ;;  %v738_v25 = vmul.f32 0.3989423, %v628_v50  ;;  %v679_v47 = vperm.slane %v2552_v33, 2 }
 0x14c   : > { %v764_v56 = vmul.f32 %v2642_v29, %v545_v53  ;;  %v725_v28 = vmul.f32 0.3989423, %v545_v53 }
 0x14d   : > { %v813_v59 = vmul.f32 %v777_v51, %v628_v50 }
 0x14e   : > { %v800_v61 = vmul.f32 %v764_v56, %v545_v53 }
 0x14f   : > { %v2196_v0 = vpop.eup %2195  ;;  %v870_v5 = vmul.f32 1.442695, %v813_v59 }
 0x150   : > { %v2198_v1 = vpop.eup %2197  ;;  %v906_v9 = vmul.f32 %v2196_v0, %v723_v60  ;;  %v844_v12 = vmul.f32 1.442695, %v800_v61  ;;  %500 = vperm.xlu0 %2147, %v2531_v13   ;;  %2116 = vset.pattern.permute.xlu1 %v2498_v57 }
 0x151   : > { %v2200_v14 = vpop.eup %2199  ;;  %v902_v15 = vmul.f32 %v2198_v1, %v719_v4  ;;  %2201 = vpow2.f32 %v870_v5  ;;  %671 = vperm.xlu2 %2115, %v660_v44  }
 0x152   : > { %943 = vst.msk [vmem:[%s2629_s22 + $0x30] sm:$0xff] %vm936_vm10, %v906_v9  ;;  %v905_v16 = vmul.f32 %v2200_v14, %v722_v10  ;;  %2203 = vpow2.f32 %v844_v12  ;;  %v979_v19 = vpop.permute.xlu0 %978  ;;  %v520_v20 = vpop.permute.xlu1 %519  ;;  %v2689_v14 = vperm.slane %v2552_v33, 7 }
 0x153   : > { %939 = vst.msk [vmem:[%s2629_s22 + $0x10] sm:$0xff] %vm936_vm10, %v902_v15  ;;  %v1237_v21 = vmul.f32 %v979_v19, %v2612_v8  ;;  %v760_v23 = vmul.f32 %v2660_v7, %v520_v20  ;;  %v1201_v45 = vmul.f32 0.3989423, %v979_v19  ;;  %v721_v50 = vmul.f32 0.3989423, %v520_v20 }
 0x154   : > { %942 = vst.msk [vmem:[%s2629_s22 + $0x28] sm:$0xff] %vm936_vm10, %v905_v16 }
 0x155   : > { %v1273_v13 = vmul.f32 %v1237_v21, %v979_v19  ;;  %v796_v24 = vmul.f32 %v760_v23, %v520_v20  ;;  %v698_v19 = vperm.slane %v2552_v33, 3 }
 0x157   : > { %v2202_v26 = vpop.eup %2201  ;;  %v1309_v30 = vmul.f32 1.442695, %v1273_v13  ;;  %v836_v31 = vmul.f32 1.442695, %v796_v24 }
 0x158   : > { %v2204_v32 = vpop.eup %2203  ;;  %v921_v22 = vmul.f32 %v2202_v26, %v738_v25  ;;  %595 = vperm.xlu0 %2147, %v2594_v2   ;;  %677 = vperm.xlu1 %2116, %v660_v44  }
 0x159   : > { %v908_v34 = vmul.f32 %v2204_v32, %v725_v28  ;;  %2205 = vpow2.f32 %v1309_v30  ;;  %2117 = vset.pattern.permute.xlu2 %v2494_v54 }
 0x15a   : > { %958 = vst.msk [vmem:[%s2629_s22 + $0xa8] sm:$0xff] %vm936_vm10, %v921_v22  ;;  %2207 = vpow2.f32 %v836_v31  ;;  %v539_v36 = vpop.permute.xlu1 %538  ;;  %v1074_v37 = vpop.permute.xlu0 %1073 }
 0x15b   : > { %945 = vst.msk [vmem:[%s2629_s22 + $0x40] sm:$0xff] %vm936_vm10, %v908_v34  ;;  %v763_v39 = vmul.f32 %v2660_v7, %v539_v36  ;;  %v558_v40 = vpop.permute.xlu2 %557  ;;  %v1252_v42 = vmul.f32 %v1074_v37, %v2612_v8  ;;  %v724_v9 = vmul.f32 0.3989423, %v539_v36  ;;  %v1216_v10 = vmul.f32 0.3989423, %v1074_v37 }
 0x15c   : > { %v766_v43 = vmul.f32 %v2660_v7, %v558_v40  ;;  %v727_v16 = vmul.f32 0.3989423, %v558_v40 }
 0x15d   : > { %v799_v2 = vmul.f32 %v763_v39, %v539_v36  ;;  %v1288_v44 = vmul.f32 %v1252_v42, %v1074_v37  ;;  %v2703_v37 = vperm.slane %v2559_v38, 4 }
 0x15e   : > { %v802_v46 = vmul.f32 %v766_v43, %v558_v40 }
 0x15f   : > { %v2206_v49 = vpop.eup %2205  ;;  %v842_v51 = vmul.f32 1.442695, %v799_v2  ;;  %v1339_v53 = vmul.f32 1.442695, %v1288_v44 }
 0x160   : > { %v2208_v55 = vpop.eup %2207  ;;  %v1381_v56 = vmul.f32 %v2206_v49, %v1201_v45  ;;  %v848_v59 = vmul.f32 1.442695, %v802_v46  ;;  %690 = vperm.xlu0 %2147, %v679_v47   ;;  %696 = vperm.xlu1 %2116, %v679_v47  }
 0x161   : > { %v904_v60 = vmul.f32 %v2208_v55, %v721_v50  ;;  %2209 = vpow2.f32 %v842_v51  ;;  %684 = vperm.xlu2 %2117, %v679_v47  }
 0x162   : > { %2013 = vst.msk [vmem:[%s2629_s22 + $0x120] sm:$0xff] %vm936_vm10, %v1381_v56  ;;  %2211 = vpow2.f32 %v848_v59  ;;  %v1169_v61 = vpop.permute.xlu0 %1168 }
 0x163   : > { %941 = vst.msk [vmem:[%s2629_s22 + $0x20] sm:$0xff] %vm936_vm10, %v904_v60  ;;  %2213 = vpow2.f32 %v1339_v53  ;;  %v577_v0 = vpop.permute.xlu2 %576  ;;  %v1267_v4 = vmul.f32 %v1169_v61, %v2612_v8  ;;  %v1231_v22 = vmul.f32 0.3989423, %v1169_v61 }
 0x164   : > { %v769_v5 = vmul.f32 %v2660_v7, %v577_v0  ;;  %v730_v40 = vmul.f32 0.3989423, %v577_v0 }
 0x165   : > { %v1303_v1 = vmul.f32 %v1267_v4, %v1169_v61 }
 0x166   : > { %v805_v12 = vmul.f32 %v769_v5, %v577_v0  ;;  %v2715_v0 = vperm.slane %v2572_v52, 1 }
 0x167   : > { %v2210_v15 = vpop.eup %2209  ;;  %v1369_v20 = vmul.f32 1.442695, %v1303_v1 }
 0x168   : > { %v2212_v21 = vpop.eup %2211  ;;  %v907_v23 = vmul.f32 %v2210_v15, %v724_v9  ;;  %v854_v13 = vmul.f32 1.442695, %v805_v12  ;;  %1041 = vperm.xlu0 %2147, %v2689_v14   ;;  %2118 = vset.pattern.permute.xlu1 %v2538_v18 }
 0x169   : > { %v2214_v24 = vpop.eup %2213  ;;  %v910_v25 = vmul.f32 %v2212_v21, %v727_v16  ;;  %703 = vperm.xlu2 %2117, %v698_v19   ;;  %2215 = vpow2.f32 %v1369_v20 }
 0x16a   : > { %944 = vst.msk [vmem:[%s2629_s22 + $0x38] sm:$0xff] %vm936_vm10, %v907_v23  ;;  %v1396_v26 = vmul.f32 %v2214_v24, %v1216_v10  ;;  %2217 = vpow2.f32 %v854_v13  ;;  %v552_v28 = vpop.permute.xlu1 %551  ;;  %v1517_v30 = vpop.permute.xlu0 %1516  ;;  %v2725_v24 = vperm.slane %v2572_v52, 6 }
 0x16b   : > { %947 = vst.msk [vmem:[%s2629_s22 + $0x50] sm:$0xff] %vm936_vm10, %v910_v25  ;;  %v765_v31 = vmul.f32 %v2612_v8, %v552_v28  ;;  %v1727_v32 = vmul.f32 %v1517_v30, %v2612_v8  ;;  %v1691_v55 = vmul.f32 0.3989423, %v1517_v30  ;;  %v726_v60 = vmul.f32 0.3989423, %v552_v28 }
 0x16c   : > { %2028 = vst.msk [vmem:[%s2629_s22 + $0x198] sm:$0xff] %vm936_vm10, %v1396_v26 }
 0x16d   : > { %v801_v34 = vmul.f32 %v765_v31, %v552_v28  ;;  %v1763_v36 = vmul.f32 %v1727_v32, %v1517_v30 }
 0x16f   : > { %v2216_v39 = vpop.eup %2215  ;;  %v846_v42 = vmul.f32 1.442695, %v801_v34  ;;  %v1808_v43 = vmul.f32 1.442695, %v1763_v36 }
 0x170   : > { %v2218_v2 = vpop.eup %2217  ;;  %v1411_v44 = vmul.f32 %v2216_v39, %v1231_v22  ;;  %1136 = vperm.xlu0 %2147, %v2703_v37   ;;  %709 = vperm.xlu1 %2118, %v698_v19  }
 0x171   : > { %v913_v45 = vmul.f32 %v2218_v2, %v730_v40  ;;  %2219 = vpow2.f32 %v846_v42  ;;  %2119 = vset.pattern.permute.xlu2 %v2498_v57  ;;  %v2739_v2 = vperm.slane %v2580_v62, 3 }
 0x172   : > { %2043 = vst.msk [vmem:[%s2629_s22 + $0x210] sm:$0xff] %vm936_vm10, %v1411_v44  ;;  %2221 = vpow2.f32 %v1808_v43  ;;  %v571_v46 = vpop.permute.xlu1 %570  ;;  %v1612_v47 = vpop.permute.xlu0 %1611 }
 0x173   : > { %950 = vst.msk [vmem:[%s2629_s22 + $0x68] sm:$0xff] %vm936_vm10, %v913_v45  ;;  %v768_v49 = vmul.f32 %v2612_v8, %v571_v46  ;;  %v590_v50 = vpop.permute.xlu2 %589  ;;  %v1742_v51 = vmul.f32 %v1612_v47, %v2612_v8  ;;  %v729_v21 = vmul.f32 0.3989423, %v571_v46  ;;  %v1706_v23 = vmul.f32 0.3989423, %v1612_v47 }
 0x174   : > { %v771_v53 = vmul.f32 %v2612_v8, %v590_v50  ;;  %v732_v26 = vmul.f32 0.3989423, %v590_v50 }
 0x175   : > { %v804_v56 = vmul.f32 %v768_v49, %v571_v46  ;;  %v1778_v59 = vmul.f32 %v1742_v51, %v1612_v47 }
 0x176   : > { %v807_v61 = vmul.f32 %v771_v53, %v590_v50 }
 0x177   : > { %v2220_v4 = vpop.eup %2219  ;;  %v852_v5 = vmul.f32 1.442695, %v804_v56  ;;  %v1838_v1 = vmul.f32 1.442695, %v1778_v59 }
 0x178   : > { %v2222_v9 = vpop.eup %2221  ;;  %v909_v10 = vmul.f32 %v2220_v4, %v726_v60  ;;  %v858_v12 = vmul.f32 1.442695, %v807_v61  ;;  %1484 = vperm.xlu0 %2147, %v2715_v0   ;;  %984 = vperm.xlu1 %2118, %v2555_v35  }
 0x179   : > { %v1871_v15 = vmul.f32 %v2222_v9, %v1691_v55  ;;  %2223 = vpow2.f32 %v852_v5  ;;  %715 = vperm.xlu2 %2119, %v698_v19   ;;  %v1011_v5 = vperm.slane %v2552_v33, 6 }
 0x17a   : > { %946 = vst.msk [vmem:[%s2629_s22 + $0x48] sm:$0xff] %vm936_vm10, %v909_v10  ;;  %2225 = vpow2.f32 %v858_v12 }
 0x17b   : > { %2058 = vst.msk [vmem:[%s2629_s22 + $0x288] sm:$0xff] %vm936_vm10, %v1871_v15  ;;  %2227 = vpow2.f32 %v1838_v1  ;;  %v609_v16 = vpop.permute.xlu2 %608 }
 0x17c   : > { %v774_v20 = vmul.f32 %v2612_v8, %v609_v16 }
 0x17e   : > { %v810_v13 = vmul.f32 %v774_v20, %v609_v16 }
 0x17f   : > { %v2224_v25 = vpop.eup %2223 }
 0x180   : > { %v2226_v19 = vpop.eup %2225  ;;  %v912_v28 = vmul.f32 %v2224_v25, %v729_v21  ;;  %v864_v30 = vmul.f32 1.442695, %v810_v13  ;;  %1579 = vperm.xlu0 %2147, %v2725_v24   ;;  %2120 = vset.pattern.permute.xlu1 %v2494_v54 }
 0x181   : > { %v2228_v31 = vpop.eup %2227  ;;  %v915_v32 = vmul.f32 %v2226_v19, %v732_v26  ;;  %990 = vperm.xlu2 %2119, %v2555_v35   ;;  %v735_v35 = vmul.f32 0.3989423, %v609_v16 }
 0x182   : > { %949 = vst.msk [vmem:[%s2629_s22 + $0x60] sm:$0xff] %vm936_vm10, %v912_v28  ;;  %v1886_v22 = vmul.f32 %v2228_v31, %v1706_v23  ;;  %2229 = vpow2.f32 %v864_v30  ;;  %v564_v34 = vpop.permute.xlu0 %563  ;;  %v583_v36 = vpop.permute.xlu1 %582 }
 0x183   : > { %952 = vst.msk [vmem:[%s2629_s22 + $0x78] sm:$0xff] %vm936_vm10, %v915_v32  ;;  %v767_v39 = vmul.f32 %v2642_v29, %v564_v34  ;;  %v770_v40 = vmul.f32 %v2642_v29, %v583_v36  ;;  %v728_v61 = vmul.f32 0.3989423, %v564_v34  ;;  %v731_v9 = vmul.f32 0.3989423, %v583_v36 }
 0x184   : > { %2073 = vst.msk [vmem:[%s2629_s22 + $0x300] sm:$0xff] %vm936_vm10, %v1886_v22 }
 0x185   : > { %v803_v42 = vmul.f32 %v767_v39, %v564_v34  ;;  %v806_v43 = vmul.f32 %v770_v40, %v583_v36 }
 0x187   : > { %v850_v44 = vmul.f32 1.442695, %v803_v42  ;;  %v856_v45 = vmul.f32 1.442695, %v806_v43 }
 0x188   : > { %v2230_v46 = vpop.eup %2229  ;;  %1674 = vperm.xlu0 %2147, %v2739_v2   ;;  %997 = vperm.xlu1 %2120, %v2600_v3  }
 0x189   : > { %v918_v47 = vmul.f32 %v2230_v46, %v735_v35  ;;  %2231 = vpow2.f32 %v850_v44  ;;  %2121 = vset.pattern.permute.xlu2 %v2538_v18 }
 0x18a   : > { %2233 = vpow2.f32 %v856_v45  ;;  %v659_v49 = vpop.permute.xlu0 %658  ;;  %v602_v50 = vpop.permute.xlu1 %601 }
 0x18b   : > { %955 = vst.msk [vmem:[%s2629_s22 + $0x90] sm:$0xff] %vm936_vm10, %v918_v47  ;;  %v782_v51 = vmul.f32 %v2642_v29, %v659_v49  ;;  %v773_v53 = vmul.f32 %v2642_v29, %v602_v50  ;;  %v621_v55 = vpop.permute.xlu2 %620  ;;  %v743_v19 = vmul.f32 0.3989423, %v659_v49  ;;  %v734_v31 = vmul.f32 0.3989423, %v602_v50 }
 0x18c   : > { %v776_v56 = vmul.f32 %v2642_v29, %v621_v55  ;;  %v737_v34 = vmul.f32 0.3989423, %v621_v55 }
 0x18d   : > { %v818_v59 = vmul.f32 %v782_v51, %v659_v49  ;;  %v809_v60 = vmul.f32 %v773_v53, %v602_v50 }
 0x18e   : > { %v812_v4 = vmul.f32 %v776_v56, %v621_v55 }
 0x18f   : > { %v2232_v1 = vpop.eup %2231  ;;  %v880_v10 = vmul.f32 1.442695, %v818_v59  ;;  %v862_v12 = vmul.f32 1.442695, %v809_v60 }
 0x190   : > { %v2234_v15 = vpop.eup %2233  ;;  %v911_v16 = vmul.f32 %v2232_v1, %v728_v61  ;;  %v868_v20 = vmul.f32 1.442695, %v812_v4  ;;  %1016 = vperm.xlu1 %2120, %v1011_v5   ;;  %2150 = vset.pattern.permute.xlu0 %v2498_v57 }
 0x191   : > { %v914_v21 = vmul.f32 %v2234_v15, %v731_v9  ;;  %2235 = vpow2.f32 %v880_v10  ;;  %1003 = vperm.xlu2 %2121, %v2600_v3  }
 0x192   : > { %948 = vst.msk [vmem:[%s2629_s22 + $0x58] sm:$0xff] %vm936_vm10, %v911_v16  ;;  %2237 = vpow2.f32 %v862_v12  ;;  %v1010_v23 = vpop.permute.xlu0 %1009 }
 0x193   : > { %951 = vst.msk [vmem:[%s2629_s22 + $0x70] sm:$0xff] %vm936_vm10, %v914_v21  ;;  %2239 = vpow2.f32 %v868_v20  ;;  %v1242_v33 = vmul.f32 %v1010_v23, %v2642_v29  ;;  %v640_v13 = vpop.permute.xlu2 %639  ;;  %v1206_v49 = vmul.f32 0.3989423, %v1010_v23 }
 0x194   : > { %v779_v25 = vmul.f32 %v2642_v29, %v640_v13  ;;  %v740_v51 = vmul.f32 0.3989423, %v640_v13 }
 0x195   : > { %v1278_v26 = vmul.f32 %v1242_v33, %v1010_v23 }
 0x196   : > { %v815_v28 = vmul.f32 %v779_v25, %v640_v13 }
 0x197   : > { %v2236_v30 = vpop.eup %2235  ;;  %v1319_v3 = vmul.f32 1.442695, %v1278_v26 }
 0x198   : > { %v2238_v32 = vpop.eup %2237  ;;  %v926_v22 = vmul.f32 %v2236_v30, %v743_v19  ;;  %v874_v36 = vmul.f32 1.442695, %v815_v28  ;;  %2122 = vset.pattern.permute.xlu1 %v2498_v57 }
 0x199   : > { %v2240_v39 = vpop.eup %2239  ;;  %v917_v40 = vmul.f32 %v2238_v32, %v734_v31  ;;  %2241 = vpow2.f32 %v1319_v3  ;;  %1022 = vperm.xlu2 %2121, %v1011_v5  }
 0x19a   : > { %963 = vst.msk [vmem:[%s2629_s22 + $0xd0] sm:$0xff] %vm936_vm10, %v926_v22  ;;  %v920_v42 = vmul.f32 %v2240_v39, %v737_v34  ;;  %2243 = vpow2.f32 %v874_v36  ;;  %v615_v43 = vpop.permute.xlu1 %614  ;;  %v1105_v35 = vpop.permute.xlu0 %1104 }
 0x19b   : > { %954 = vst.msk [vmem:[%s2629_s22 + $0x88] sm:$0xff] %vm936_vm10, %v917_v40  ;;  %v775_v44 = vmul.f32 %v2660_v7, %v615_v43  ;;  %v1257_v45 = vmul.f32 %v1105_v35, %v2642_v29  ;;  %v736_v20 = vmul.f32 0.3989423, %v615_v43 }
 0x19c   : > { %957 = vst.msk [vmem:[%s2629_s22 + $0xa0] sm:$0xff] %vm936_vm10, %v920_v42 }
 0x19d   : > { %v811_v46 = vmul.f32 %v775_v44, %v615_v43  ;;  %v1293_v47 = vmul.f32 %v1257_v45, %v1105_v35 }
 0x19f   : > { %v2242_v50 = vpop.eup %2241  ;;  %v866_v53 = vmul.f32 1.442695, %v811_v46  ;;  %v1349_v55 = vmul.f32 1.442695, %v1293_v47 }
 0x1a0   : > { %v2244_v56 = vpop.eup %2243  ;;  %v1386_v59 = vmul.f32 %v2242_v50, %v1206_v49  ;;  %1028 = vperm.xlu1 %2122, %v1011_v5   ;;  %v1221_v5 = vmul.f32 0.3989423, %v1105_v35 }
 0x1a1   : > { %v923_v60 = vmul.f32 %v2244_v56, %v740_v51  ;;  %2245 = vpow2.f32 %v866_v53  ;;  %2123 = vset.pattern.permute.xlu2 %v2494_v54 }
 0x1a2   : > { %2018 = vst.msk [vmem:[%s2629_s22 + $0x148] sm:$0xff] %vm936_vm10, %v1386_v59  ;;  %2247 = vpow2.f32 %v1349_v55  ;;  %v634_v61 = vpop.permute.xlu1 %633  ;;  %v1200_v4 = vpop.permute.xlu0 %1199 }
 0x1a3   : > { %960 = vst.msk [vmem:[%s2629_s22 + $0xb8] sm:$0xff] %vm936_vm10, %v923_v60  ;;  %v778_v1 = vmul.f32 %v2660_v7, %v634_v61  ;;  %v653_v9 = vpop.permute.xlu2 %652  ;;  %v1272_v10 = vmul.f32 %v1200_v4, %v2642_v29  ;;  %v739_v34 = vmul.f32 0.3989423, %v634_v61  ;;  %v1236_v36 = vmul.f32 0.3989423, %v1200_v4 }
 0x1a4   : > { %v781_v12 = vmul.f32 %v2660_v7, %v653_v9  ;;  %v742_v42 = vmul.f32 0.3989423, %v653_v9 }
 0x1a5   : > { %v814_v15 = vmul.f32 %v778_v1, %v634_v61  ;;  %v1308_v16 = vmul.f32 %v1272_v10, %v1200_v4 }
 0x1a6   : > { %v817_v21 = vmul.f32 %v781_v12, %v653_v9 }
 0x1a7   : > { %v2246_v23 = vpop.eup %2245  ;;  %v872_v33 = vmul.f32 1.442695, %v814_v15  ;;  %v1379_v13 = vmul.f32 1.442695, %v1308_v16 }
 0x1a8   : > { %v2248_v25 = vpop.eup %2247  ;;  %v919_v26 = vmul.f32 %v2246_v23, %v736_v20  ;;  %v878_v19 = vmul.f32 1.442695, %v817_v21  ;;  %1047 = vperm.xlu1 %2122, %v2689_v14  }
 0x1a9   : > { %v1401_v28 = vmul.f32 %v2248_v25, %v1221_v5  ;;  %2249 = vpow2.f32 %v872_v33  ;;  %1035 = vperm.xlu2 %2123, %v2689_v14   ;;  %v1049_v14 = vperm.slane %v2559_v38, 0 }
 0x1aa   : > { %956 = vst.msk [vmem:[%s2629_s22 + $0x98] sm:$0xff] %vm936_vm10, %v919_v26  ;;  %2251 = vpow2.f32 %v878_v19  ;;  %v1548_v30 = vpop.permute.xlu0 %1547 }
 0x1ab   : > { %2033 = vst.msk [vmem:[%s2629_s22 + $0x1c0] sm:$0xff] %vm936_vm10, %v1401_v28  ;;  %2253 = vpow2.f32 %v1379_v13  ;;  %v672_v31 = vpop.permute.xlu2 %671  ;;  %v1732_v3 = vmul.f32 %v1548_v30, %v2642_v29  ;;  %v1696_v56 = vmul.f32 0.3989423, %v1548_v30 }
 0x1ac   : > { %v784_v32 = vmul.f32 %v2660_v7, %v672_v31  ;;  %v745_v4 = vmul.f32 0.3989423, %v672_v31 }
 0x1ad   : > { %v1768_v22 = vmul.f32 %v1732_v3, %v1548_v30 }
 0x1ae   : > { %v820_v39 = vmul.f32 %v784_v32, %v672_v31 }
 0x1af   : > { %v2250_v40 = vpop.eup %2249  ;;  %v1818_v43 = vmul.f32 1.442695, %v1768_v22 }
 0x1b0   : > { %v2252_v35 = vpop.eup %2251  ;;  %v922_v44 = vmul.f32 %v2250_v40, %v739_v34  ;;  %v884_v45 = vmul.f32 1.442695, %v820_v39  ;;  %2124 = vset.pattern.permute.xlu1 %v2538_v18 }
 0x1b1   : > { %v2254_v46 = vpop.eup %2253  ;;  %v925_v47 = vmul.f32 %v2252_v35, %v742_v42  ;;  %1054 = vperm.xlu2 %2123, %v1049_v14   ;;  %2255 = vpow2.f32 %v1818_v43 }
 0x1b2   : > { %959 = vst.msk [vmem:[%s2629_s22 + $0xb0] sm:$0xff] %vm936_vm10, %v922_v44  ;;  %v1416_v49 = vmul.f32 %v2254_v46, %v1236_v36  ;;  %2257 = vpow2.f32 %v884_v45  ;;  %v647_v50 = vpop.permute.xlu1 %646  ;;  %v1643_v51 = vpop.permute.xlu0 %1642 }
 0x1b3   : > { %962 = vst.msk [vmem:[%s2629_s22 + $0xc8] sm:$0xff] %vm936_vm10, %v925_v47  ;;  %v780_v53 = vmul.f32 %v2612_v8, %v647_v50  ;;  %v1747_v55 = vmul.f32 %v1643_v51, %v2642_v29  ;;  %v1711_v23 = vmul.f32 0.3989423, %v1643_v51  ;;  %v741_v13 = vmul.f32 0.3989423, %v647_v50 }
 0x1b4   : > { %2048 = vst.msk [vmem:[%s2629_s22 + $0x238] sm:$0xff] %vm936_vm10, %v1416_v49 }
 0x1b5   : > { %v816_v59 = vmul.f32 %v780_v53, %v647_v50  ;;  %v1783_v60 = vmul.f32 %v1747_v55, %v1643_v51 }
 0x1b7   : > { %v2256_v61 = vpop.eup %2255  ;;  %v876_v1 = vmul.f32 1.442695, %v816_v59  ;;  %v1848_v9 = vmul.f32 1.442695, %v1783_v60 }
 0x1b8   : > { %v2258_v10 = vpop.eup %2257  ;;  %v1876_v12 = vmul.f32 %v2256_v61, %v1696_v56  ;;  %1060 = vperm.xlu1 %2124, %v1049_v14  }
 0x1b9   : > { %v928_v5 = vmul.f32 %v2258_v10, %v745_v4  ;;  %2259 = vpow2.f32 %v876_v1  ;;  %2125 = vset.pattern.permute.xlu2 %v2498_v57 }
 0x1ba   : > { %2063 = vst.msk [vmem:[%s2629_s22 + $0x2b0] sm:$0xff] %vm936_vm10, %v1876_v12  ;;  %2261 = vpow2.f32 %v1848_v9  ;;  %v666_v15 = vpop.permute.xlu1 %665 }
 0x1bb   : > { %965 = vst.msk [vmem:[%s2629_s22 + $0xe0] sm:$0xff] %vm936_vm10, %v928_v5  ;;  %v783_v16 = vmul.f32 %v2612_v8, %v666_v15  ;;  %v685_v20 = vpop.permute.xlu2 %684  ;;  %v744_v40 = vmul.f32 0.3989423, %v666_v15 }
 0x1bc   : > { %v786_v21 = vmul.f32 %v2612_v8, %v685_v20  ;;  %v747_v35 = vmul.f32 0.3989423, %v685_v20 }
 0x1bd   : > { %v819_v33 = vmul.f32 %v783_v16, %v666_v15 }
 0x1be   : > { %v822_v25 = vmul.f32 %v786_v21, %v685_v20 }
 0x1bf   : > { %v2260_v26 = vpop.eup %2259  ;;  %v882_v19 = vmul.f32 1.442695, %v819_v33 }
 0x1c0   : > { %v2262_v28 = vpop.eup %2261  ;;  %v924_v30 = vmul.f32 %v2260_v26, %v741_v13  ;;  %v888_v31 = vmul.f32 1.442695, %v822_v25  ;;  %1079 = vperm.xlu1 %2124, %v2562_v41   ;;  %v1106_v26 = vperm.slane %v2559_v38, 3 }
 0x1c1   : > { %v1891_v3 = vmul.f32 %v2262_v28, %v1711_v23  ;;  %2263 = vpow2.f32 %v882_v19  ;;  %1066 = vperm.xlu2 %2125, %v1049_v14  }
 0x1c2   : > { %961 = vst.msk [vmem:[%s2629_s22 + $0xc0] sm:$0xff] %vm936_vm10, %v924_v30  ;;  %2265 = vpow2.f32 %v888_v31  ;;  %v501_v32 = vpop.permute.xlu0 %500 }
 0x1c3   : > { %2078 = vst.msk [vmem:[%s2629_s22 + $0x328] sm:$0xff] %vm936_vm10, %v1891_v3  ;;  %v757_v22 = vmul.f32 %v2660_v7, %v501_v32  ;;  %v704_v34 = vpop.permute.xlu2 %703  ;;  %v718_v59 = vmul.f32 0.3989423, %v501_v32 }
 0x1c4   : > { %v789_v36 = vmul.f32 %v2612_v8, %v704_v34  ;;  %v750_v61 = vmul.f32 0.3989423, %v704_v34 }
 0x1c5   : > { %v793_v39 = vmul.f32 %v757_v22, %v501_v32 }
 0x1c6   : > { %v825_v42 = vmul.f32 %v789_v36, %v704_v34 }
 0x1c7   : > { %v2264_v43 = vpop.eup %2263  ;;  %v830_v44 = vmul.f32 1.442695, %v793_v39 }
 0x1c8   : > { %v2266_v14 = vpop.eup %2265  ;;  %v927_v45 = vmul.f32 %v2264_v43, %v744_v40  ;;  %v894_v46 = vmul.f32 1.442695, %v825_v42  ;;  %2126 = vset.pattern.permute.xlu1 %v2494_v54 }
 0x1c9   : > { %v930_v47 = vmul.f32 %v2266_v14, %v747_v35  ;;  %2267 = vpow2.f32 %v830_v44  ;;  %1085 = vperm.xlu2 %2125, %v2562_v41  }
 0x1ca   : > { %964 = vst.msk [vmem:[%s2629_s22 + $0xd8] sm:$0xff] %vm936_vm10, %v927_v45  ;;  %2269 = vpow2.f32 %v894_v46  ;;  %v596_v49 = vpop.permute.xlu0 %595  ;;  %v678_v50 = vpop.permute.xlu1 %677 }
 0x1cb   : > { %967 = vst.msk [vmem:[%s2629_s22 + $0xf0] sm:$0xff] %vm936_vm10, %v930_v47  ;;  %v772_v51 = vmul.f32 %v2660_v7, %v596_v49  ;;  %v785_v53 = vmul.f32 %v2642_v29, %v678_v50  ;;  %v733_v13 = vmul.f32 0.3989423, %v596_v49  ;;  %v746_v28 = vmul.f32 0.3989423, %v678_v50 }
 0x1cd   : > { %v808_v55 = vmul.f32 %v772_v51, %v596_v49  ;;  %v821_v56 = vmul.f32 %v785_v53, %v678_v50 }
 0x1cf   : > { %v2268_v60 = vpop.eup %2267  ;;  %v860_v4 = vmul.f32 1.442695, %v808_v55  ;;  %v886_v41 = vmul.f32 1.442695, %v821_v56 }
 0x1d0   : > { %v2270_v1 = vpop.eup %2269  ;;  %v901_v9 = vmul.f32 %v2268_v60, %v718_v59  ;;  %1092 = vperm.xlu1 %2126, %v2609_v6  }
 0x1d1   : > { %v933_v10 = vmul.f32 %v2270_v1, %v750_v61  ;;  %2271 = vpow2.f32 %v860_v4  ;;  %2127 = vset.pattern.permute.xlu2 %v2538_v18 }
 0x1d2   : > { %938 = vst.msk [vmem:[%s2629_s22 + $0x8] sm:$0xff] %vm936_vm10, %v901_v9  ;;  %2273 = vpow2.f32 %v886_v41  ;;  %v691_v12 = vpop.permute.xlu0 %690  ;;  %v697_v5 = vpop.permute.xlu1 %696 }
 0x1d3   : > { %970 = vst.msk [vmem:[%s2629_s22 + $0x108] sm:$0xff] %vm936_vm10, %v933_v10  ;;  %v787_v15 = vmul.f32 %v2660_v7, %v691_v12  ;;  %v788_v16 = vmul.f32 %v2642_v29, %v697_v5  ;;  %v716_v20 = vpop.permute.xlu2 %715  ;;  %v748_v35 = vmul.f32 0.3989423, %v691_v12  ;;  %v749_v45 = vmul.f32 0.3989423, %v697_v5 }
 0x1d4   : > { %v791_v21 = vmul.f32 %v2642_v29, %v716_v20  ;;  %v752_v49 = vmul.f32 0.3989423, %v716_v20 }
 0x1d5   : > { %v823_v23 = vmul.f32 %v787_v15, %v691_v12  ;;  %v824_v33 = vmul.f32 %v788_v16, %v697_v5 }
 0x1d6   : > { %v827_v25 = vmul.f32 %v791_v21, %v716_v20 }
 0x1d7   : > { %v2272_v19 = vpop.eup %2271  ;;  %v890_v30 = vmul.f32 1.442695, %v823_v23  ;;  %v892_v31 = vmul.f32 1.442695, %v824_v33 }
 0x1d8   : > { %v2274_v3 = vpop.eup %2273  ;;  %v916_v32 = vmul.f32 %v2272_v19, %v733_v13  ;;  %v898_v22 = vmul.f32 1.442695, %v827_v25  ;;  %1111 = vperm.xlu1 %2126, %v1106_v26  }
 0x1d9   : > { %v929_v34 = vmul.f32 %v2274_v3, %v746_v28  ;;  %2275 = vpow2.f32 %v890_v30  ;;  %1098 = vperm.xlu2 %2127, %v2609_v6  }
 0x1da   : > { %953 = vst.msk [vmem:[%s2629_s22 + $0x80] sm:$0xff] %vm936_vm10, %v916_v32  ;;  %2277 = vpow2.f32 %v892_v31  ;;  %v1042_v36 = vpop.permute.xlu0 %1041 }
 0x1db   : > { %966 = vst.msk [vmem:[%s2629_s22 + $0xe8] sm:$0xff] %vm936_vm10, %v929_v34  ;;  %2279 = vpow2.f32 %v898_v22  ;;  %v1247_v39 = vmul.f32 %v1042_v36, %v2660_v7  ;;  %v991_v40 = vpop.permute.xlu2 %990  ;;  %v1211_v1 = vmul.f32 0.3989423, %v1042_v36 }
 0x1dc   : > { %v1239_v42 = vmul.f32 %v991_v40, %v2642_v29  ;;  %v1203_v10 = vmul.f32 0.3989423, %v991_v40 }
 0x1dd   : > { %v1283_v43 = vmul.f32 %v1247_v39, %v1042_v36 }
 0x1de   : > { %v1275_v44 = vmul.f32 %v1239_v42, %v991_v40 }
 0x1df   : > { %v2276_v14 = vpop.eup %2275  ;;  %v1329_v6 = vmul.f32 1.442695, %v1283_v43 }
 0x1e0   : > { %v2278_v46 = vpop.eup %2277  ;;  %v931_v47 = vmul.f32 %v2276_v14, %v748_v35  ;;  %v1313_v50 = vmul.f32 1.442695, %v1275_v44  ;;  %2128 = vset.pattern.permute.xlu1 %v2498_v57 }
 0x1e1   : > { %v2280_v51 = vpop.eup %2279  ;;  %v932_v53 = vmul.f32 %v2278_v46, %v749_v45  ;;  %2281 = vpow2.f32 %v1329_v6  ;;  %1117 = vperm.xlu2 %2127, %v1106_v26  }
 0x1e2   : > { %968 = vst.msk [vmem:[%s2629_s22 + $0xf8] sm:$0xff] %vm936_vm10, %v931_v47  ;;  %v935_v55 = vmul.f32 %v2280_v51, %v752_v49  ;;  %2283 = vpow2.f32 %v1313_v50  ;;  %v1137_v56 = vpop.permute.xlu0 %1136  ;;  %v710_v59 = vpop.permute.xlu1 %709 }
 0x1e3   : > { %969 = vst.msk [vmem:[%s2629_s22 + $0x100] sm:$0xff] %vm936_vm10, %v932_v53  ;;  %v1262_v60 = vmul.f32 %v1137_v56, %v2660_v7  ;;  %v790_v61 = vmul.f32 %v2660_v7, %v710_v59  ;;  %v1226_v30 = vmul.f32 0.3989423, %v1137_v56  ;;  %v751_v32 = vmul.f32 0.3989423, %v710_v59 }
 0x1e4   : > { %972 = vst.msk [vmem:[%s2629_s22 + $0x118] sm:$0xff] %vm936_vm10, %v935_v55 }
 0x1e5   : > { %v1298_v4 = vmul.f32 %v1262_v60, %v1137_v56  ;;  %v826_v41 = vmul.f32 %v790_v61, %v710_v59 }
 0x1e7   : > { %v2282_v9 = vpop.eup %2281  ;;  %v1359_v12 = vmul.f32 1.442695, %v1298_v4  ;;  %v896_v5 = vmul.f32 1.442695, %v826_v41 }
 0x1e8   : > { %v2284_v15 = vpop.eup %2283  ;;  %v1391_v16 = vmul.f32 %v2282_v9, %v1211_v1  ;;  %1123 = vperm.xlu1 %2128, %v1106_v26  }
 0x1e9   : > { %v1383_v20 = vmul.f32 %v2284_v15, %v1203_v10  ;;  %2285 = vpow2.f32 %v1359_v12  ;;  %2129 = vset.pattern.permute.xlu2 %v2494_v54 }
 0x1ea   : > { %2023 = vst.msk [vmem:[%s2629_s22 + $0x170] sm:$0xff] %vm936_vm10, %v1391_v16  ;;  %2287 = vpow2.f32 %v896_v5  ;;  %v1485_v21 = vpop.permute.xlu0 %1484  ;;  %v985_v23 = vpop.permute.xlu1 %984 }
 0x1eb   : > { %2015 = vst.msk [vmem:[%s2629_s22 + $0x130] sm:$0xff] %vm936_vm10, %v1383_v20  ;;  %v1722_v33 = vmul.f32 %v1485_v21, %v2660_v7  ;;  %v1238_v13 = vmul.f32 %v985_v23, %v2660_v7  ;;  %v1004_v25 = vpop.permute.xlu2 %1003  ;;  %v1686_v6 = vmul.f32 0.3989423, %v1485_v21  ;;  %v1202_v49 = vmul.f32 0.3989423, %v985_v23 }
 0x1ec   : > { %v1241_v19 = vmul.f32 %v1004_v25, %v2660_v7  ;;  %v1205_v55 = vmul.f32 0.3989423, %v1004_v25 }
 0x1ed   : > { %v1758_v26 = vmul.f32 %v1722_v33, %v1485_v21  ;;  %v1274_v28 = vmul.f32 %v1238_v13, %v985_v23 }
 0x1ee   : > { %v1277_v31 = vmul.f32 %v1241_v19, %v1004_v25 }
 0x1ef   : > { %v2286_v3 = vpop.eup %2285  ;;  %v1798_v22 = vmul.f32 1.442695, %v1758_v26  ;;  %v1311_v34 = vmul.f32 1.442695, %v1274_v28 }
 0x1f0   : > { %v2288_v36 = vpop.eup %2287  ;;  %v1406_v39 = vmul.f32 %v2286_v3, %v1226_v30  ;;  %v1317_v40 = vmul.f32 1.442695, %v1277_v31  ;;  %1142 = vperm.xlu1 %2128, %v2703_v37  }
 0x1f1   : > { %v934_v42 = vmul.f32 %v2288_v36, %v751_v32  ;;  %2289 = vpow2.f32 %v1798_v22  ;;  %1130 = vperm.xlu2 %2129, %v2703_v37   ;;  %v1144_v37 = vperm.slane %v2559_v38, 5 }
 0x1f2   : > { %2038 = vst.msk [vmem:[%s2629_s22 + $0x1e8] sm:$0xff] %vm936_vm10, %v1406_v39  ;;  %2291 = vpow2.f32 %v1311_v34  ;;  %v1580_v43 = vpop.permute.xlu0 %1579 }
 0x1f3   : > { %971 = vst.msk [vmem:[%s2629_s22 + $0x110] sm:$0xff] %vm936_vm10, %v934_v42  ;;  %2293 = vpow2.f32 %v1317_v40  ;;  %v1737_v35 = vmul.f32 %v1580_v43, %v2660_v7  ;;  %v1023_v44 = vpop.permute.xlu2 %1022  ;;  %v1701_v12 = vmul.f32 0.3989423, %v1580_v43 }
 0x1f4   : > { %v1244_v14 = vmul.f32 %v1023_v44, %v2660_v7  ;;  %v1208_v15 = vmul.f32 0.3989423, %v1023_v44 }
 0x1f5   : > { %v1773_v45 = vmul.f32 %v1737_v35, %v1580_v43 }
 0x1f6   : > { %v1280_v46 = vmul.f32 %v1244_v14, %v1023_v44 }
 0x1f7   : > { %v2290_v47 = vpop.eup %2289  ;;  %v1828_v50 = vmul.f32 1.442695, %v1773_v45 }
 0x1f8   : > { %v2292_v51 = vpop.eup %2291  ;;  %v1866_v53 = vmul.f32 %v2290_v47, %v1686_v6  ;;  %v1323_v56 = vmul.f32 1.442695, %v1280_v46  ;;  %2130 = vset.pattern.permute.xlu1 %v2538_v18 }
 0x1f9   : > { %v2294_v59 = vpop.eup %2293  ;;  %v1382_v60 = vmul.f32 %v2292_v51, %v1202_v49  ;;  %2295 = vpow2.f32 %v1828_v50  ;;  %1149 = vperm.xlu2 %2129, %v1144_v37  }
 0x1fa   : > { %2053 = vst.msk [vmem:[%s2629_s22 + $0x260] sm:$0xff] %vm936_vm10, %v1866_v53  ;;  %v1385_v61 = vmul.f32 %v2294_v59, %v1205_v55  ;;  %2297 = vpow2.f32 %v1323_v56  ;;  %v1675_v4 = vpop.permute.xlu0 %1674  ;;  %v998_v41 = vpop.permute.xlu1 %997 }
 0x1fb   : > { %2014 = vst.msk [vmem:[%s2629_s22 + $0x128] sm:$0xff] %vm936_vm10, %v1382_v60  ;;  %v1752_v38 = vmul.f32 %v1675_v4, %v2660_v7  ;;  %v1240_v1 = vmul.f32 %v998_v41, %v2612_v8  ;;  %v1716_v30 = vmul.f32 0.3989423, %v1675_v4  ;;  %v1204_v32 = vmul.f32 0.3989423, %v998_v41 }
 0x1fc   : > { %2017 = vst.msk [vmem:[%s2629_s22 + $0x140] sm:$0xff] %vm936_vm10, %v1385_v61 }
 0x1fd   : > { %v1788_v9 = vmul.f32 %v1752_v38, %v1675_v4  ;;  %v1276_v10 = vmul.f32 %v1240_v1, %v998_v41 }
 0x1ff   : > { %v2296_v5 = vpop.eup %2295  ;;  %v1858_v16 = vmul.f32 1.442695, %v1788_v9  ;;  %v1315_v20 = vmul.f32 1.442695, %v1276_v10  ;;  %v1454_v9 = vperm.slane %v2572_v52, 0 }
 0x200   : > { %v2298_v21 = vpop.eup %2297  ;;  %v1881_v23 = vmul.f32 %v2296_v5, %v1701_v12  ;;  %1155 = vperm.xlu1 %2130, %v1144_v37  }
 0x201   : > { %v1388_v33 = vmul.f32 %v2298_v21, %v1208_v15  ;;  %2299 = vpow2.f32 %v1858_v16  ;;  %2131 = vset.pattern.permute.xlu2 %v2498_v57 }
 0x202   : > { %2068 = vst.msk [vmem:[%s2629_s22 + $0x2d8] sm:$0xff] %vm936_vm10, %v1881_v23  ;;  %2301 = vpow2.f32 %v1315_v20  ;;  %v1017_v13 = vpop.permute.xlu1 %1016 }
 0x203   : > { %2020 = vst.msk [vmem:[%s2629_s22 + $0x158] sm:$0xff] %vm936_vm10, %v1388_v33  ;;  %v1243_v25 = vmul.f32 %v1017_v13, %v2612_v8  ;;  %v1036_v19 = vpop.permute.xlu2 %1035  ;;  %v1207_v35 = vmul.f32 0.3989423, %v1017_v13 }
 0x204   : > { %v1246_v26 = vmul.f32 %v1036_v19, %v2612_v8  ;;  %v1210_v45 = vmul.f32 0.3989423, %v1036_v19 }
 0x205   : > { %v1279_v28 = vmul.f32 %v1243_v25, %v1017_v13 }
 0x206   : > { %v1282_v31 = vmul.f32 %v1246_v26, %v1036_v19 }
 0x207   : > { %v2300_v3 = vpop.eup %2299  ;;  %v1321_v22 = vmul.f32 1.442695, %v1279_v28 }
 0x208   : > { %v2302_v34 = vpop.eup %2301  ;;  %v1896_v36 = vmul.f32 %v2300_v3, %v1716_v30  ;;  %v1327_v39 = vmul.f32 1.442695, %v1282_v31  ;;  %1174 = vperm.xlu1 %2130, %v2567_v48  }
 0x209   : > { %v1384_v40 = vmul.f32 %v2302_v34, %v1204_v32  ;;  %2303 = vpow2.f32 %v1321_v22  ;;  %1161 = vperm.xlu2 %2131, %v1144_v37  }
 0x20a   : > { %2083 = vst.msk [vmem:[%s2629_s22 + $0x350] sm:$0xff] %vm936_vm10, %v1896_v36  ;;  %2305 = vpow2.f32 %v1327_v39 }
 0x20b   : > { %2016 = vst.msk [vmem:[%s2629_s22 + $0x138] sm:$0xff] %vm936_vm10, %v1384_v40  ;;  %v1055_v42 = vpop.permute.xlu2 %1054 }
 0x20c   : > { %v1249_v43 = vmul.f32 %v1055_v42, %v2612_v8  ;;  %v1213_v53 = vmul.f32 0.3989423, %v1055_v42 }
 0x20e   : > { %v1285_v44 = vmul.f32 %v1249_v43, %v1055_v42 }
 0x20f   : > { %v2304_v14 = vpop.eup %2303 }
 0x210   : > { %v2306_v6 = vpop.eup %2305  ;;  %v1387_v46 = vmul.f32 %v2304_v14, %v1207_v35  ;;  %v1333_v47 = vmul.f32 1.442695, %v1285_v44  ;;  %2132 = vset.pattern.permute.xlu1 %v2494_v54 }
 0x211   : > { %v1390_v49 = vmul.f32 %v2306_v6, %v1210_v45  ;;  %1180 = vperm.xlu2 %2131, %v2567_v48  }
 0x212   : > { %2019 = vst.msk [vmem:[%s2629_s22 + $0x150] sm:$0xff] %vm936_vm10, %v1387_v46  ;;  %2307 = vpow2.f32 %v1333_v47  ;;  %v1029_v50 = vpop.permute.xlu1 %1028 }
 0x213   : > { %2022 = vst.msk [vmem:[%s2629_s22 + $0x168] sm:$0xff] %vm936_vm10, %v1390_v49  ;;  %v1245_v37 = vmul.f32 %v1029_v50, %v2642_v29  ;;  %v1209_v38 = vmul.f32 0.3989423, %v1029_v50 }
 0x215   : > { %v1281_v51 = vmul.f32 %v1245_v37, %v1029_v50 }
 0x217   : > { %v1325_v55 = vmul.f32 1.442695, %v1281_v51 }
 0x218   : > { %v2308_v56 = vpop.eup %2307  ;;  %1187 = vperm.xlu1 %2132, %v2617_v11  }
 0x219   : > { %v1393_v59 = vmul.f32 %v2308_v56, %v1213_v53  ;;  %2309 = vpow2.f32 %v1325_v55  ;;  %2133 = vset.pattern.permute.xlu2 %v2538_v18  ;;  %v1492_v55 = vperm.slane %v2572_v52, 2 }
 0x21a   : > { %v1048_v60 = vpop.permute.xlu1 %1047 }
 0x21b   : > { %2025 = vst.msk [vmem:[%s2629_s22 + $0x180] sm:$0xff] %vm936_vm10, %v1393_v59  ;;  %v1248_v48 = vmul.f32 %v1048_v60, %v2642_v29  ;;  %v1067_v61 = vpop.permute.xlu2 %1066  ;;  %v1212_v21 = vmul.f32 0.3989423, %v1048_v60 }
 0x21c   : > { %v1251_v4 = vmul.f32 %v1067_v61, %v2642_v29  ;;  %v1215_v13 = vmul.f32 0.3989423, %v1067_v61 }
 0x21d   : > { %v1284_v41 = vmul.f32 %v1248_v48, %v1048_v60 }
 0x21e   : > { %v1287_v1 = vmul.f32 %v1251_v4, %v1067_v61 }
 0x21f   : > { %v2310_v10 = vpop.eup %2309  ;;  %v1331_v12 = vmul.f32 1.442695, %v1284_v41 }
 0x220   : > { %v1389_v5 = vmul.f32 %v2310_v10, %v1209_v38  ;;  %v1337_v15 = vmul.f32 1.442695, %v1287_v1  ;;  %1459 = vperm.xlu1 %2132, %v1454_v9  }
 0x221   : > { %2311 = vpow2.f32 %v1331_v12  ;;  %1193 = vperm.xlu2 %2133, %v2617_v11  }
 0x222   : > { %2021 = vst.msk [vmem:[%s2629_s22 + $0x160] sm:$0xff] %vm936_vm10, %v1389_v5  ;;  %2313 = vpow2.f32 %v1337_v15 }
 0x223   : > { %v1086_v16 = vpop.permute.xlu2 %1085 }
 0x224   : > { %v1254_v20 = vmul.f32 %v1086_v16, %v2642_v29  ;;  %v1218_v3 = vmul.f32 0.3989423, %v1086_v16 }
 0x226   : > { %v1290_v23 = vmul.f32 %v1254_v20, %v1086_v16 }
 0x227   : > { %v2312_v33 = vpop.eup %2311 }
 0x228   : > { %v2314_v25 = vpop.eup %2313  ;;  %v1392_v19 = vmul.f32 %v2312_v33, %v1212_v21  ;;  %v1343_v26 = vmul.f32 1.442695, %v1290_v23  ;;  %2134 = vset.pattern.permute.xlu1 %v2498_v57 }
 0x229   : > { %v1395_v28 = vmul.f32 %v2314_v25, %v1215_v13  ;;  %1465 = vperm.xlu2 %2133, %v1454_v9  }
 0x22a   : > { %2024 = vst.msk [vmem:[%s2629_s22 + $0x178] sm:$0xff] %vm936_vm10, %v1392_v19  ;;  %2315 = vpow2.f32 %v1343_v26  ;;  %v1061_v11 = vpop.permute.xlu1 %1060 }
 0x22b   : > { %2027 = vst.msk [vmem:[%s2629_s22 + $0x190] sm:$0xff] %vm936_vm10, %v1395_v28  ;;  %v1250_v30 = vmul.f32 %v1061_v11, %v2660_v7  ;;  %v1214_v35 = vmul.f32 0.3989423, %v1061_v11 }
 0x22d   : > { %v1286_v31 = vmul.f32 %v1250_v30, %v1061_v11 }
 0x22f   : > { %v1335_v32 = vmul.f32 1.442695, %v1286_v31 }
 0x230   : > { %v2316_v22 = vpop.eup %2315  ;;  %1471 = vperm.xlu1 %2134, %v1454_v9  }
 0x231   : > { %v1398_v34 = vmul.f32 %v2316_v22, %v1218_v3  ;;  %2317 = vpow2.f32 %v1335_v32  ;;  %2135 = vset.pattern.permute.xlu2 %v2494_v54 }
 0x232   : > { %v1080_v36 = vpop.permute.xlu1 %1079 }
 0x233   : > { %2030 = vst.msk [vmem:[%s2629_s22 + $0x1a8] sm:$0xff] %vm936_vm10, %v1398_v34  ;;  %v1253_v39 = vmul.f32 %v1080_v36, %v2660_v7  ;;  %v1099_v40 = vpop.permute.xlu2 %1098  ;;  %v1217_v50 = vmul.f32 0.3989423, %v1080_v36 }
 0x234   : > { %v1256_v42 = vmul.f32 %v1099_v40, %v2660_v7  ;;  %v1220_v53 = vmul.f32 0.3989423, %v1099_v40 }
 0x235   : > { %v1289_v43 = vmul.f32 %v1253_v39, %v1080_v36 }
 0x236   : > { %v1292_v44 = vmul.f32 %v1256_v42, %v1099_v40 }
 0x237   : > { %v2318_v14 = vpop.eup %2317  ;;  %v1341_v45 = vmul.f32 1.442695, %v1289_v43 }
 0x238   : > { %v1394_v6 = vmul.f32 %v2318_v14, %v1214_v35  ;;  %v1347_v46 = vmul.f32 1.442695, %v1292_v44  ;;  %1490 = vperm.xlu1 %2134, %v2715_v0  }
 0x239   : > { %2319 = vpow2.f32 %v1341_v45  ;;  %1478 = vperm.xlu2 %2135, %v2715_v0  }
 0x23a   : > { %2026 = vst.msk [vmem:[%s2629_s22 + $0x188] sm:$0xff] %vm936_vm10, %v1394_v6  ;;  %2321 = vpow2.f32 %v1347_v46 }
 0x23b   : > { %v1118_v47 = vpop.permute.xlu2 %1117 }
 0x23c   : > { %v1259_v49 = vmul.f32 %v1118_v47, %v2660_v7  ;;  %v1223_v41 = vmul.f32 0.3989423, %v1118_v47 }
 0x23e   : > { %v1295_v37 = vmul.f32 %v1259_v49, %v1118_v47 }
 0x23f   : > { %v2320_v51 = vpop.eup %2319 }
 0x240   : > { %v2322_v56 = vpop.eup %2321  ;;  %v1397_v59 = vmul.f32 %v2320_v51, %v1217_v50  ;;  %v1353_v60 = vmul.f32 1.442695, %v1295_v37  ;;  %2136 = vset.pattern.permute.xlu1 %v2538_v18  ;;  %v1549_v50 = vperm.slane %v2572_v52, 5 }
 0x241   : > { %v1400_v0 = vmul.f32 %v2322_v56, %v1220_v53  ;;  %1497 = vperm.xlu2 %2135, %v1492_v55  }
 0x242   : > { %2029 = vst.msk [vmem:[%s2629_s22 + $0x1a0] sm:$0xff] %vm936_vm10, %v1397_v59  ;;  %2323 = vpow2.f32 %v1353_v60  ;;  %v1093_v48 = vpop.permute.xlu1 %1092 }
 0x243   : > { %2032 = vst.msk [vmem:[%s2629_s22 + $0x1b8] sm:$0xff] %vm936_vm10, %v1400_v0  ;;  %v1255_v61 = vmul.f32 %v1093_v48, %v2612_v8  ;;  %v1219_v20 = vmul.f32 0.3989423, %v1093_v48 }
 0x245   : > { %v1291_v4 = vmul.f32 %v1255_v61, %v1093_v48 }
 0x247   : > { %v1345_v38 = vmul.f32 1.442695, %v1291_v4 }
 0x248   : > { %v2324_v1 = vpop.eup %2323  ;;  %1503 = vperm.xlu1 %2136, %v1492_v55  }
 0x249   : > { %v1403_v9 = vmul.f32 %v2324_v1, %v1223_v41  ;;  %2325 = vpow2.f32 %v1345_v38  ;;  %2137 = vset.pattern.permute.xlu2 %v2498_v57 }
 0x24a   : > { %v1112_v10 = vpop.permute.xlu1 %1111 }
 0x24b   : > { %2035 = vst.msk [vmem:[%s2629_s22 + $0x1d0] sm:$0xff] %vm936_vm10, %v1403_v9  ;;  %v1258_v12 = vmul.f32 %v1112_v10, %v2612_v8  ;;  %v1131_v5 = vpop.permute.xlu2 %1130  ;;  %v1222_v28 = vmul.f32 0.3989423, %v1112_v10 }
 0x24c   : > { %v1261_v15 = vmul.f32 %v1131_v5, %v2612_v8  ;;  %v1225_v31 = vmul.f32 0.3989423, %v1131_v5 }
 0x24d   : > { %v1294_v16 = vmul.f32 %v1258_v12, %v1112_v10 }
 0x24e   : > { %v1297_v21 = vmul.f32 %v1261_v15, %v1131_v5 }
 0x24f   : > { %v2326_v23 = vpop.eup %2325  ;;  %v1351_v33 = vmul.f32 1.442695, %v1294_v16 }
 0x250   : > { %v1399_v13 = vmul.f32 %v2326_v23, %v1219_v20  ;;  %v1357_v25 = vmul.f32 1.442695, %v1297_v21  ;;  %1522 = vperm.xlu1 %2136, %v2575_v58  }
 0x251   : > { %2327 = vpow2.f32 %v1351_v33  ;;  %1509 = vperm.xlu2 %2137, %v1492_v55  }
 0x252   : > { %2031 = vst.msk [vmem:[%s2629_s22 + $0x1b0] sm:$0xff] %vm936_vm10, %v1399_v13  ;;  %2329 = vpow2.f32 %v1357_v25 }
 0x253   : > { %v1150_v19 = vpop.permute.xlu2 %1149 }
 0x254   : > { %v1264_v26 = vmul.f32 %v1150_v19, %v2612_v8  ;;  %v1228_v42 = vmul.f32 0.3989423, %v1150_v19 }
 0x256   : > { %v1300_v11 = vmul.f32 %v1264_v26, %v1150_v19 }
 0x257   : > { %v2328_v30 = vpop.eup %2327 }
 0x258   : > { %v2330_v3 = vpop.eup %2329  ;;  %v1402_v32 = vmul.f32 %v2328_v30, %v1222_v28  ;;  %v1363_v22 = vmul.f32 1.442695, %v1300_v11  ;;  %2138 = vset.pattern.permute.xlu1 %v2494_v54 }
 0x259   : > { %v1405_v34 = vmul.f32 %v2330_v3, %v1225_v31  ;;  %1528 = vperm.xlu2 %2137, %v2575_v58  }
 0x25a   : > { %2034 = vst.msk [vmem:[%s2629_s22 + $0x1c8] sm:$0xff] %vm936_vm10, %v1402_v32  ;;  %2331 = vpow2.f32 %v1363_v22  ;;  %v1124_v36 = vpop.permute.xlu1 %1123 }
 0x25b   : > { %2037 = vst.msk [vmem:[%s2629_s22 + $0x1e0] sm:$0xff] %vm936_vm10, %v1405_v34  ;;  %v1260_v39 = vmul.f32 %v1124_v36, %v2642_v29  ;;  %v1224_v47 = vmul.f32 0.3989423, %v1124_v36 }
 0x25d   : > { %v1296_v40 = vmul.f32 %v1260_v39, %v1124_v36  ;;  %v1587_v39 = vperm.slane %v2572_v52, 7 }
 0x25f   : > { %v1355_v43 = vmul.f32 1.442695, %v1296_v40 }
 0x260   : > { %v2332_v35 = vpop.eup %2331  ;;  %1535 = vperm.xlu1 %2138, %v2624_v17  }
 0x261   : > { %v1408_v44 = vmul.f32 %v2332_v35, %v1228_v42  ;;  %2333 = vpow2.f32 %v1355_v43  ;;  %2139 = vset.pattern.permute.xlu2 %v2538_v18 }
 0x262   : > { %v1143_v14 = vpop.permute.xlu1 %1142 }
 0x263   : > { %2040 = vst.msk [vmem:[%s2629_s22 + $0x1f8] sm:$0xff] %vm936_vm10, %v1408_v44  ;;  %v1263_v58 = vmul.f32 %v1143_v14, %v2642_v29  ;;  %v1162_v45 = vpop.permute.xlu2 %1161  ;;  %v1227_v60 = vmul.f32 0.3989423, %v1143_v14 }
 0x264   : > { %v1266_v6 = vmul.f32 %v1162_v45, %v2642_v29  ;;  %v1230_v61 = vmul.f32 0.3989423, %v1162_v45 }
 0x265   : > { %v1299_v46 = vmul.f32 %v1263_v58, %v1143_v14 }
 0x266   : > { %v1302_v49 = vmul.f32 %v1266_v6, %v1162_v45 }
 0x267   : > { %v2334_v37 = vpop.eup %2333  ;;  %v1361_v51 = vmul.f32 1.442695, %v1299_v46 }
 0x268   : > { %v1404_v53 = vmul.f32 %v2334_v37, %v1224_v47  ;;  %v1367_v55 = vmul.f32 1.442695, %v1302_v49  ;;  %1554 = vperm.xlu1 %2138, %v1549_v50  }
 0x269   : > { %2335 = vpow2.f32 %v1361_v51  ;;  %1541 = vperm.xlu2 %2139, %v2624_v17  }
 0x26a   : > { %2036 = vst.msk [vmem:[%s2629_s22 + $0x1d8] sm:$0xff] %vm936_vm10, %v1404_v53  ;;  %2337 = vpow2.f32 %v1367_v55 }
 0x26b   : > { %v1181_v56 = vpop.permute.xlu2 %1180 }
 0x26c   : > { %v1269_v59 = vmul.f32 %v1181_v56, %v2642_v29  ;;  %v1233_v12 = vmul.f32 0.3989423, %v1181_v56 }
 0x26e   : > { %v1305_v0 = vmul.f32 %v1269_v59, %v1181_v56 }
 0x26f   : > { %v2336_v48 = vpop.eup %2335 }
 0x270   : > { %v2338_v4 = vpop.eup %2337  ;;  %v1407_v41 = vmul.f32 %v2336_v48, %v1227_v60  ;;  %v1373_v38 = vmul.f32 1.442695, %v1305_v0  ;;  %2140 = vset.pattern.permute.xlu1 %v2498_v57 }
 0x271   : > { %v1410_v1 = vmul.f32 %v2338_v4, %v1230_v61  ;;  %1560 = vperm.xlu2 %2139, %v1549_v50  }
 0x272   : > { %2039 = vst.msk [vmem:[%s2629_s22 + $0x1f0] sm:$0xff] %vm936_vm10, %v1407_v41  ;;  %2339 = vpow2.f32 %v1373_v38  ;;  %v1156_v17 = vpop.permute.xlu1 %1155 }
 0x273   : > { %2042 = vst.msk [vmem:[%s2629_s22 + $0x208] sm:$0xff] %vm936_vm10, %v1410_v1  ;;  %v1265_v9 = vmul.f32 %v1156_v17, %v2660_v7  ;;  %v1229_v25 = vmul.f32 0.3989423, %v1156_v17 }
 0x275   : > { %v1301_v10 = vmul.f32 %v1265_v9, %v1156_v17 }
 0x277   : > { %v1365_v5 = vmul.f32 1.442695, %v1301_v10 }
 0x278   : > { %v2340_v15 = vpop.eup %2339  ;;  %1566 = vperm.xlu1 %2140, %v1549_v50  }
 0x279   : > { %v1413_v16 = vmul.f32 %v2340_v15, %v1233_v12  ;;  %2341 = vpow2.f32 %v1365_v5  ;;  %2141 = vset.pattern.permute.xlu2 %v2494_v54 }
 0x27a   : > { %v1175_v20 = vpop.permute.xlu1 %1174 }
 0x27b   : > { %2045 = vst.msk [vmem:[%s2629_s22 + $0x220] sm:$0xff] %vm936_vm10, %v1413_v16  ;;  %v1268_v21 = vmul.f32 %v1175_v20, %v2660_v7  ;;  %v1194_v23 = vpop.permute.xlu2 %1193  ;;  %v1232_v32 = vmul.f32 0.3989423, %v1175_v20 }
 0x27c   : > { %v1271_v33 = vmul.f32 %v1194_v23, %v2660_v7  ;;  %v1235_v36 = vmul.f32 0.3989423, %v1194_v23 }
 0x27d   : > { %v1304_v13 = vmul.f32 %v1268_v21, %v1175_v20 }
 0x27e   : > { %v1307_v19 = vmul.f32 %v1271_v33, %v1194_v23 }
 0x27f   : > { %v2342_v26 = vpop.eup %2341  ;;  %v1371_v28 = vmul.f32 1.442695, %v1304_v13 }
 0x280   : > { %v1409_v11 = vmul.f32 %v2342_v26, %v1229_v25  ;;  %v1377_v30 = vmul.f32 1.442695, %v1307_v19  ;;  %1585 = vperm.xlu1 %2140, %v2725_v24  }
 0x281   : > { %2343 = vpow2.f32 %v1371_v28  ;;  %1573 = vperm.xlu2 %2141, %v2725_v24  }
 0x282   : > { %2041 = vst.msk [vmem:[%s2629_s22 + $0x200] sm:$0xff] %vm936_vm10, %v1409_v11  ;;  %2345 = vpow2.f32 %v1377_v30  ;;  %v1644_v11 = vperm.slane %v2580_v62, 2 }
 0x283   : > { %v1466_v31 = vpop.permute.xlu2 %1465 }
 0x284   : > { %v1719_v3 = vmul.f32 %v1466_v31, %v2660_v7  ;;  %v1683_v58 = vmul.f32 0.3989423, %v1466_v31 }
 0x286   : > { %v1755_v22 = vmul.f32 %v1719_v3, %v1466_v31 }
 0x287   : > { %v2344_v34 = vpop.eup %2343 }
 0x288   : > { %v2346_v40 = vpop.eup %2345  ;;  %v1412_v42 = vmul.f32 %v2344_v34, %v1232_v32  ;;  %v1792_v43 = vmul.f32 1.442695, %v1755_v22  ;;  %2142 = vset.pattern.permute.xlu1 %v2538_v18 }
 0x289   : > { %v1415_v24 = vmul.f32 %v2346_v40, %v1235_v36  ;;  %1592 = vperm.xlu2 %2141, %v1587_v39  }
 0x28a   : > { %2044 = vst.msk [vmem:[%s2629_s22 + $0x218] sm:$0xff] %vm936_vm10, %v1412_v42  ;;  %2347 = vpow2.f32 %v1792_v43  ;;  %v1188_v35 = vpop.permute.xlu1 %1187 }
 0x28b   : > { %2047 = vst.msk [vmem:[%s2629_s22 + $0x230] sm:$0xff] %vm936_vm10, %v1415_v24  ;;  %v1270_v44 = vmul.f32 %v1188_v35, %v2612_v8  ;;  %v1234_v51 = vmul.f32 0.3989423, %v1188_v35 }
 0x28d   : > { %v1306_v14 = vmul.f32 %v1270_v44, %v1188_v35 }
 0x28f   : > { %v1375_v45 = vmul.f32 1.442695, %v1306_v14 }
 0x290   : > { %v2348_v52 = vpop.eup %2347  ;;  %1598 = vperm.xlu1 %2142, %v1587_v39  }
 0x291   : > { %v1863_v6 = vmul.f32 %v2348_v52, %v1683_v58  ;;  %2349 = vpow2.f32 %v1375_v45  ;;  %2143 = vset.pattern.permute.xlu2 %v2498_v57 }
 0x292   : > { %v1460_v46 = vpop.permute.xlu1 %1459 }
 0x293   : > { %2050 = vst.msk [vmem:[%s2629_s22 + $0x248] sm:$0xff] %vm936_vm10, %v1863_v6  ;;  %v1718_v47 = vmul.f32 %v1460_v46, %v2612_v8  ;;  %v1479_v49 = vpop.permute.xlu2 %1478  ;;  %v1682_v61 = vmul.f32 0.3989423, %v1460_v46 }
 0x294   : > { %v1721_v50 = vmul.f32 %v1479_v49, %v2612_v8  ;;  %v1685_v38 = vmul.f32 0.3989423, %v1479_v49 }
 0x295   : > { %v1754_v37 = vmul.f32 %v1718_v47, %v1460_v46 }
 0x296   : > { %v1757_v53 = vmul.f32 %v1721_v50, %v1479_v49 }
 0x297   : > { %v2350_v55 = vpop.eup %2349  ;;  %v1790_v56 = vmul.f32 1.442695, %v1754_v37 }
 0x298   : > { %v1414_v59 = vmul.f32 %v2350_v55, %v1234_v51  ;;  %v1796_v60 = vmul.f32 1.442695, %v1757_v53  ;;  %1617 = vperm.xlu1 %2142, %v2583_v63  }
 0x299   : > { %2351 = vpow2.f32 %v1790_v56  ;;  %1604 = vperm.xlu2 %2143, %v1587_v39  }
 0x29a   : > { %2046 = vst.msk [vmem:[%s2629_s22 + $0x228] sm:$0xff] %vm936_vm10, %v1414_v59  ;;  %2353 = vpow2.f32 %v1796_v60 }
 0x29b   : > { %v1498_v0 = vpop.permute.xlu2 %1497 }
 0x29c   : > { %v1724_v48 = vmul.f32 %v1498_v0, %v2612_v8  ;;  %v1688_v16 = vmul.f32 0.3989423, %v1498_v0 }
 0x29e   : > { %v1760_v4 = vmul.f32 %v1724_v48, %v1498_v0 }
 0x29f   : > { %v2352_v41 = vpop.eup %2351 }
 0x2a0   : > { %v2354_v1 = vpop.eup %2353  ;;  %v1862_v17 = vmul.f32 %v2352_v41, %v1682_v61  ;;  %v1802_v9 = vmul.f32 1.442695, %v1760_v4  ;;  %2145 = vset.pattern.permute.xlu1 %v2494_v54 }
 0x2a1   : > { %v1865_v10 = vmul.f32 %v2354_v1, %v1685_v38  ;;  %1623 = vperm.xlu2 %2143, %v2583_v63  }
 0x2a2   : > { %2049 = vst.msk [vmem:[%s2629_s22 + $0x240] sm:$0xff] %vm936_vm10, %v1862_v17  ;;  %2355 = vpow2.f32 %v1802_v9  ;;  %v1472_v12 = vpop.permute.xlu1 %1471 }
 0x2a3   : > { %2052 = vst.msk [vmem:[%s2629_s22 + $0x258] sm:$0xff] %vm936_vm10, %v1865_v10  ;;  %v1720_v5 = vmul.f32 %v1472_v12, %v2642_v29  ;;  %v1684_v26 = vmul.f32 0.3989423, %v1472_v12 }
 0x2a5   : > { %v1756_v15 = vmul.f32 %v1720_v5, %v1472_v12 }
 0x2a7   : > { %v1794_v20 = vmul.f32 1.442695, %v1756_v15 }
 0x2a8   : > { %v2356_v21 = vpop.eup %2355  ;;  %1630 = vperm.xlu1 %2145, %v2640_v27  }
 0x2a9   : > { %v1868_v23 = vmul.f32 %v2356_v21, %v1688_v16  ;;  %2357 = vpow2.f32 %v1794_v20  ;;  %2146 = vset.pattern.permute.xlu2 %v2538_v18 }
 0x2aa   : > { %v1491_v33 = vpop.permute.xlu1 %1490 }
 0x2ab   : > { %2055 = vst.msk [vmem:[%s2629_s22 + $0x270] sm:$0xff] %vm936_vm10, %v1868_v23  ;;  %v1723_v63 = vmul.f32 %v1491_v33, %v2642_v29  ;;  %v1510_v13 = vpop.permute.xlu2 %1509  ;;  %v1687_v34 = vmul.f32 0.3989423, %v1491_v33 }
 0x2ac   : > { %v1726_v25 = vmul.f32 %v1510_v13, %v2642_v29  ;;  %v1690_v62 = vmul.f32 0.3989423, %v1510_v13 }
 0x2ad   : > { %v1759_v19 = vmul.f32 %v1723_v63, %v1491_v33 }
 0x2ae   : > { %v1762_v28 = vmul.f32 %v1726_v25, %v1510_v13 }
 0x2af   : > { %v2358_v30 = vpop.eup %2357  ;;  %v1800_v31 = vmul.f32 1.442695, %v1759_v19 }
 0x2b0   : > { %v1864_v3 = vmul.f32 %v2358_v30, %v1684_v26  ;;  %v1806_v32 = vmul.f32 1.442695, %v1762_v28  ;;  %1649 = vperm.xlu1 %2145, %v1644_v11  }
 0x2b1   : > { %2359 = vpow2.f32 %v1800_v31  ;;  %1636 = vperm.xlu2 %2146, %v2640_v27  }
 0x2b2   : > { %2051 = vst.msk [vmem:[%s2629_s22 + $0x250] sm:$0xff] %vm936_vm10, %v1864_v3  ;;  %2361 = vpow2.f32 %v1806_v32 }
 0x2b3   : > { %v1529_v18 = vpop.permute.xlu2 %1528 }
 0x2b4   : > { %v1729_v22 = vmul.f32 %v1529_v18, %v2642_v29  ;;  %v1693_v14 = vmul.f32 0.3989423, %v1529_v18 }
 0x2b6   : > { %v1765_v36 = vmul.f32 %v1729_v22, %v1529_v18 }
 0x2b7   : > { %v2360_v39 = vpop.eup %2359 }
 0x2b8   : > { %v2362_v40 = vpop.eup %2361  ;;  %v1867_v42 = vmul.f32 %v2360_v39, %v1687_v34  ;;  %v1812_v43 = vmul.f32 1.442695, %v1765_v36  ;;  %2148 = vset.pattern.permute.xlu1 %v2498_v57 }
 0x2b9   : > { %v1870_v24 = vmul.f32 %v2362_v40, %v1690_v62  ;;  %1655 = vperm.xlu2 %2146, %v1644_v11  }
 0x2ba   : > { %2054 = vst.msk [vmem:[%s2629_s22 + $0x268] sm:$0xff] %vm936_vm10, %v1867_v42  ;;  %2363 = vpow2.f32 %v1812_v43  ;;  %v1504_v27 = vpop.permute.xlu1 %1503 }
 0x2bb   : > { %2057 = vst.msk [vmem:[%s2629_s22 + $0x280] sm:$0xff] %vm936_vm10, %v1870_v24  ;;  %v1725_v35 = vmul.f32 %v1504_v27, %v2660_v7  ;;  %v1689_v50 = vmul.f32 0.3989423, %v1504_v27 }
 0x2bd   : > { %v1761_v44 = vmul.f32 %v1725_v35, %v1504_v27 }
 0x2bf   : > { %v1804_v58 = vmul.f32 1.442695, %v1761_v44 }
 0x2c0   : > { %v2364_v45 = vpop.eup %2363  ;;  %1661 = vperm.xlu1 %2148, %v1644_v11  }
 0x2c1   : > { %v1873_v52 = vmul.f32 %v2364_v45, %v1693_v14  ;;  %2365 = vpow2.f32 %v1804_v58  ;;  %2149 = vset.pattern.permute.xlu2 %v2494_v54 }
 0x2c2   : > { %v1523_v57 = vpop.permute.xlu1 %1522 }
 0x2c3   : > { %2060 = vst.msk [vmem:[%s2629_s22 + $0x298] sm:$0xff] %vm936_vm10, %v1873_v52  ;;  %v1728_v6 = vmul.f32 %v1523_v57, %v2660_v7  ;;  %v1542_v46 = vpop.permute.xlu2 %1541  ;;  %v1692_v60 = vmul.f32 0.3989423, %v1523_v57 }
 0x2c4   : > { %v1731_v47 = vmul.f32 %v1542_v46, %v2660_v7  ;;  %v1695_v61 = vmul.f32 0.3989423, %v1542_v46 }
 0x2c5   : > { %v1764_v49 = vmul.f32 %v1728_v6, %v1523_v57 }
 0x2c6   : > { %v1767_v37 = vmul.f32 %v1731_v47, %v1542_v46 }
 0x2c7   : > { %v2366_v51 = vpop.eup %2365  ;;  %v1810_v53 = vmul.f32 1.442695, %v1764_v49 }
 0x2c8   : > { %v1869_v55 = vmul.f32 %v2366_v51, %v1689_v50  ;;  %v1816_v56 = vmul.f32 1.442695, %v1767_v37  ;;  %1680 = vperm.xlu1 %2148, %v2739_v2  }
 0x2c9   : > { %2367 = vpow2.f32 %v1810_v53  ;;  %1668 = vperm.xlu2 %2149, %v2739_v2  }
 0x2ca   : > { %2056 = vst.msk [vmem:[%s2629_s22 + $0x278] sm:$0xff] %vm936_vm10, %v1869_v55  ;;  %2369 = vpow2.f32 %v1816_v56 }
 0x2cb   : > { %v1561_v54 = vpop.permute.xlu2 %1560 }
 0x2cc   : > { %v1734_v59 = vmul.f32 %v1561_v54, %v2660_v7  ;;  %v1698_v10 = vmul.f32 0.3989423, %v1561_v54 }
 0x2ce   : > { %v1770_v0 = vmul.f32 %v1734_v59, %v1561_v54 }
 0x2cf   : > { %v2368_v48 = vpop.eup %2367 }
 0x2d0   : > { %v2370_v4 = vpop.eup %2369  ;;  %v1872_v41 = vmul.f32 %v2368_v48, %v1692_v60  ;;  %v1822_v38 = vmul.f32 1.442695, %v1770_v0 }
 0x2d1   : > { %v1875_v1 = vmul.f32 %v2370_v4, %v1695_v61 }
 0x2d2   : > { %2059 = vst.msk [vmem:[%s2629_s22 + $0x290] sm:$0xff] %vm936_vm10, %v1872_v41  ;;  %2371 = vpow2.f32 %v1822_v38  ;;  %v1536_v2 = vpop.permute.xlu1 %1535 }
 0x2d3   : > { %2062 = vst.msk [vmem:[%s2629_s22 + $0x2a8] sm:$0xff] %vm936_vm10, %v1875_v1  ;;  %v1730_v17 = vmul.f32 %v1536_v2, %v2612_v8  ;;  %v1694_v63 = vmul.f32 0.3989423, %v1536_v2 }
 0x2d5   : > { %v1766_v9 = vmul.f32 %v1730_v17, %v1536_v2 }
 0x2d7   : > { %v1814_v12 = vmul.f32 1.442695, %v1766_v9 }
 0x2d8   : > { %v2372_v5 = vpop.eup %2371 }
 0x2d9   : > { %v1878_v15 = vmul.f32 %v2372_v5, %v1698_v10  ;;  %2373 = vpow2.f32 %v1814_v12 }
 0x2da   : > { %v1555_v16 = vpop.permute.xlu1 %1554 }
 0x2db   : > { %2065 = vst.msk [vmem:[%s2629_s22 + $0x2c0] sm:$0xff] %vm936_vm10, %v1878_v15  ;;  %v1733_v20 = vmul.f32 %v1555_v16, %v2612_v8  ;;  %v1574_v21 = vpop.permute.xlu2 %1573  ;;  %v1697_v31 = vmul.f32 0.3989423, %v1555_v16 }
 0x2dc   : > { %v1736_v23 = vmul.f32 %v1574_v21, %v2612_v8  ;;  %v1700_v18 = vmul.f32 0.3989423, %v1574_v21 }
 0x2dd   : > { %v1769_v33 = vmul.f32 %v1733_v20, %v1555_v16 }
 0x2de   : > { %v1772_v13 = vmul.f32 %v1736_v23, %v1574_v21 }
 0x2df   : > { %v2374_v25 = vpop.eup %2373  ;;  %v1820_v19 = vmul.f32 1.442695, %v1769_v33 }
 0x2e0   : > { %v1874_v26 = vmul.f32 %v2374_v25, %v1694_v63  ;;  %v1826_v28 = vmul.f32 1.442695, %v1772_v13 }
 0x2e1   : > { %2375 = vpow2.f32 %v1820_v19 }
 0x2e2   : > { %2061 = vst.msk [vmem:[%s2629_s22 + $0x2a0] sm:$0xff] %vm936_vm10, %v1874_v26  ;;  %2377 = vpow2.f32 %v1826_v28 }
 0x2e3   : > { %v1593_v11 = vpop.permute.xlu2 %1592 }
 0x2e4   : > { %v1739_v30 = vmul.f32 %v1593_v11, %v2612_v8  ;;  %v1703_v43 = vmul.f32 0.3989423, %v1593_v11 }
 0x2e6   : > { %v1775_v3 = vmul.f32 %v1739_v30, %v1593_v11 }
 0x2e7   : > { %v2376_v32 = vpop.eup %2375 }
 0x2e8   : > { %v2378_v22 = vpop.eup %2377  ;;  %v1877_v34 = vmul.f32 %v2376_v32, %v1697_v31  ;;  %v1832_v36 = vmul.f32 1.442695, %v1775_v3 }
 0x2e9   : > { %v1880_v39 = vmul.f32 %v2378_v22, %v1700_v18 }
 0x2ea   : > { %2064 = vst.msk [vmem:[%s2629_s22 + $0x2b8] sm:$0xff] %vm936_vm10, %v1877_v34  ;;  %2379 = vpow2.f32 %v1832_v36  ;;  %v1567_v62 = vpop.permute.xlu1 %1566 }
 0x2eb   : > { %2067 = vst.msk [vmem:[%s2629_s22 + $0x2d0] sm:$0xff] %vm936_vm10, %v1880_v39  ;;  %v1735_v40 = vmul.f32 %v1567_v62, %v2642_v29  ;;  %v1699_v57 = vmul.f32 0.3989423, %v1567_v62 }
 0x2ed   : > { %v1771_v42 = vmul.f32 %v1735_v40, %v1567_v62 }
 0x2ef   : > { %v1824_v24 = vmul.f32 1.442695, %v1771_v42 }
 0x2f0   : > { %v2380_v27 = vpop.eup %2379 }
 0x2f1   : > { %v1883_v35 = vmul.f32 %v2380_v27, %v1703_v43  ;;  %2381 = vpow2.f32 %v1824_v24 }
 0x2f2   : > { %v1586_v44 = vpop.permute.xlu1 %1585 }
 0x2f3   : > { %2070 = vst.msk [vmem:[%s2629_s22 + $0x2e8] sm:$0xff] %vm936_vm10, %v1883_v35  ;;  %v1738_v14 = vmul.f32 %v1586_v44, %v2642_v29  ;;  %v1605_v58 = vpop.permute.xlu2 %1604  ;;  %v1702_v53 = vmul.f32 0.3989423, %v1586_v44 }
 0x2f4   : > { %v1741_v45 = vmul.f32 %v1605_v58, %v2642_v29  ;;  %v1705_v54 = vmul.f32 0.3989423, %v1605_v58 }
 0x2f5   : > { %v1774_v52 = vmul.f32 %v1738_v14, %v1586_v44 }
 0x2f6   : > { %v1777_v6 = vmul.f32 %v1741_v45, %v1605_v58 }
 0x2f7   : > { %v2382_v46 = vpop.eup %2381  ;;  %v1830_v47 = vmul.f32 1.442695, %v1774_v52 }
 0x2f8   : > { %v1879_v49 = vmul.f32 %v2382_v46, %v1699_v57  ;;  %v1836_v50 = vmul.f32 1.442695, %v1777_v6 }
 0x2f9   : > { %2383 = vpow2.f32 %v1830_v47 }
 0x2fa   : > { %2066 = vst.msk [vmem:[%s2629_s22 + $0x2c8] sm:$0xff] %vm936_vm10, %v1879_v49  ;;  %2385 = vpow2.f32 %v1836_v50 }
 0x2fb   : > { %v1624_v37 = vpop.permute.xlu2 %1623 }
 0x2fc   : > { %v1744_v51 = vmul.f32 %v1624_v37, %v2642_v29  ;;  %v1708_v38 = vmul.f32 0.3989423, %v1624_v37 }
 0x2fe   : > { %v1780_v55 = vmul.f32 %v1744_v51, %v1624_v37 }
 0x2ff   : > { %v2384_v56 = vpop.eup %2383 }
 0x300   : > { %v2386_v59 = vpop.eup %2385  ;;  %v1882_v60 = vmul.f32 %v2384_v56, %v1702_v53  ;;  %v1842_v0 = vmul.f32 1.442695, %v1780_v55 }
 0x301   : > { %v1885_v48 = vmul.f32 %v2386_v59, %v1705_v54 }
 0x302   : > { %2069 = vst.msk [vmem:[%s2629_s22 + $0x2e0] sm:$0xff] %vm936_vm10, %v1882_v60  ;;  %2387 = vpow2.f32 %v1842_v0  ;;  %v1599_v61 = vpop.permute.xlu1 %1598 }
 0x303   : > { %2072 = vst.msk [vmem:[%s2629_s22 + $0x2f8] sm:$0xff] %vm936_vm10, %v1885_v48  ;;  %v1740_v4 = vmul.f32 %v1599_v61, %v2660_v7  ;;  %v1704_v16 = vmul.f32 0.3989423, %v1599_v61 }
 0x305   : > { %v1776_v41 = vmul.f32 %v1740_v4, %v1599_v61 }
 0x307   : > { %v1834_v1 = vmul.f32 1.442695, %v1776_v41 }
 0x308   : > { %v2388_v2 = vpop.eup %2387 }
 0x309   : > { %v1888_v17 = vmul.f32 %v2388_v2, %v1708_v38  ;;  %2389 = vpow2.f32 %v1834_v1 }
 0x30a   : > { %v1618_v9 = vpop.permute.xlu1 %1617 }
 0x30b   : > { %2075 = vst.msk [vmem:[%s2629_s22 + $0x310] sm:$0xff] %vm936_vm10, %v1888_v17  ;;  %v1743_v10 = vmul.f32 %v1618_v9, %v2660_v7  ;;  %v1637_v12 = vpop.permute.xlu2 %1636  ;;  %v1707_v19 = vmul.f32 0.3989423, %v1618_v9 }
 0x30c   : > { %v1746_v5 = vmul.f32 %v1637_v12, %v2660_v7  ;;  %v1710_v11 = vmul.f32 0.3989423, %v1637_v12 }
 0x30d   : > { %v1779_v15 = vmul.f32 %v1743_v10, %v1618_v9 }
 0x30e   : > { %v1782_v20 = vmul.f32 %v1746_v5, %v1637_v12 }
 0x30f   : > { %v2390_v21 = vpop.eup %2389  ;;  %v1840_v23 = vmul.f32 1.442695, %v1779_v15 }
 0x310   : > { %v1884_v33 = vmul.f32 %v2390_v21, %v1704_v16  ;;  %v1846_v63 = vmul.f32 1.442695, %v1782_v20 }
 0x311   : > { %2391 = vpow2.f32 %v1840_v23 }
 0x312   : > { %2071 = vst.msk [vmem:[%s2629_s22 + $0x2f0] sm:$0xff] %vm936_vm10, %v1884_v33  ;;  %2393 = vpow2.f32 %v1846_v63 }
 0x313   : > { %v1656_v13 = vpop.permute.xlu2 %1655 }
 0x314   : > { %v1749_v25 = vmul.f32 %v1656_v13, %v2660_v7  ;;  %v1713_v36 = vmul.f32 0.3989423, %v1656_v13 }
 0x316   : > { %v1785_v26 = vmul.f32 %v1749_v25, %v1656_v13 }
 0x317   : > { %v2392_v28 = vpop.eup %2391 }
 0x318   : > { %v2394_v30 = vpop.eup %2393  ;;  %v1887_v31 = vmul.f32 %v2392_v28, %v1707_v19  ;;  %v1852_v3 = vmul.f32 1.442695, %v1785_v26 }
 0x319   : > { %v1890_v32 = vmul.f32 %v2394_v30, %v1710_v11 }
 0x31a   : > { %2074 = vst.msk [vmem:[%s2629_s22 + $0x308] sm:$0xff] %vm936_vm10, %v1887_v31  ;;  %2395 = vpow2.f32 %v1852_v3  ;;  %v1631_v18 = vpop.permute.xlu1 %1630 }
 0x31b   : > { %2077 = vst.msk [vmem:[%s2629_s22 + $0x320] sm:$0xff] %vm936_vm10, %v1890_v32  ;;  %v1745_v22 = vmul.f32 %v1631_v18, %v2612_v8  ;;  %v1709_v35 = vmul.f32 0.3989423, %v1631_v18 }
 0x31d   : > { %v1781_v34 = vmul.f32 %v1745_v22, %v1631_v18 }
 0x31f   : > { %v1844_v7 = vmul.f32 1.442695, %v1781_v34 }
 0x320   : > { %v2396_v39 = vpop.eup %2395 }
 0x321   : > { %v1893_v62 = vmul.f32 %v2396_v39, %v1713_v36  ;;  %2397 = vpow2.f32 %v1844_v7 }
 0x322   : > { %v1650_v40 = vpop.permute.xlu1 %1649 }
 0x323   : > { %2080 = vst.msk [vmem:[%s2629_s22 + $0x338] sm:$0xff] %vm936_vm10, %v1893_v62  ;;  %v1748_v42 = vmul.f32 %v1650_v40, %v2612_v8  ;;  %v1669_v43 = vpop.permute.xlu2 %1668  ;;  %v1712_v57 = vmul.f32 0.3989423, %v1650_v40 }
 0x324   : > { %v1751_v24 = vmul.f32 %v1669_v43, %v2612_v8  ;;  %v1715_v46 = vmul.f32 0.3989423, %v1669_v43 }
 0x325   : > { %v1784_v27 = vmul.f32 %v1748_v42, %v1650_v40 }
 0x326   : > { %v1787_v44 = vmul.f32 %v1751_v24, %v1669_v43 }
 0x327   : > { %v2398_v14 = vpop.eup %2397  ;;  %v1850_v58 = vmul.f32 1.442695, %v1784_v27 }
 0x328   : > { %v1889_v45 = vmul.f32 %v2398_v14, %v1709_v35  ;;  %v1856_v52 = vmul.f32 1.442695, %v1787_v44 }
 0x329   : > { %2399 = vpow2.f32 %v1850_v58 }
 0x32a   : > { %2076 = vst.msk [vmem:[%s2629_s22 + $0x318] sm:$0xff] %vm936_vm10, %v1889_v45  ;;  %2401 = vpow2.f32 %v1856_v52 }
 0x32f   : > { %v2400_v6 = vpop.eup %2399 }
 0x330   : > { %v2402_v47 = vpop.eup %2401  ;;  %v1892_v49 = vmul.f32 %v2400_v6, %v1712_v57 }
 0x331   : > { %v1895_v50 = vmul.f32 %v2402_v47, %v1715_v46 }
 0x332   : > { %2079 = vst.msk [vmem:[%s2629_s22 + $0x330] sm:$0xff] %vm936_vm10, %v1892_v49  ;;  %v1662_v8 = vpop.permute.xlu1 %1661 }
 0x333   : > { %2082 = vst.msk [vmem:[%s2629_s22 + $0x348] sm:$0xff] %vm936_vm10, %v1895_v50  ;;  %v1750_v37 = vmul.f32 %v1662_v8, %v2642_v29  ;;  %v1714_v59 = vmul.f32 0.3989423, %v1662_v8 }
 0x335   : > { %v1786_v51 = vmul.f32 %v1750_v37, %v1662_v8 }
 0x337   : > { %v1854_v53 = vmul.f32 1.442695, %v1786_v51 }
 0x339   : > { %2403 = vpow2.f32 %v1854_v53 }
 0x33a   : > { %v1681_v55 = vpop.permute.xlu1 %1680 }
 0x33b   : > { %v1753_v56 = vmul.f32 %v1681_v55, %v2642_v29  ;;  %v1717_v61 = vmul.f32 0.3989423, %v1681_v55 }
 0x33d   : > { %v1789_v54 = vmul.f32 %v1753_v56, %v1681_v55 }
 0x33f   : > { %v2404_v60 = vpop.eup %2403  ;;  %v1860_v0 = vmul.f32 1.442695, %v1789_v54 }
 0x340   : > { %v1894_v48 = vmul.f32 %v2404_v60, %v1714_v59 }
 0x341   : > { %2405 = vpow2.f32 %v1860_v0 }
 0x342   : > { %2081 = vst.msk [vmem:[%s2629_s22 + $0x340] sm:$0xff] %vm936_vm10, %v1894_v48 }
 0x347   : > { %v2406_v4 = vpop.eup %2405 }
 0x348   : > { %v1897_v41 = vmul.f32 %v2406_v4, %v1717_v61 }
 0x34a   : > { %2084 = vst.msk [vmem:[%s2629_s22 + $0x358] sm:$0xff] %vm936_vm10, %v1897_v41 }
 0x34b PF: > { %s14_s15 = sadd.s32 1, %s2413_s15  }
 0x34c   : > { %p11_p4 = scmp.ge.s32.totalorder %s14_s15, 4  }
 0x34e   :  { %13 = sbr.rel (!%p11_p4) target bundleno = 1 (0x1), region = 68 }

// kernel: gpt4ts_forward.2
= control target key start
LH: loop header
LB: loop body
LE: loop exit
PB: predicated region body
PF: predicated region fallthrough
CT: control target
= control target key end

     0   :  { %s11005_s0 = inlined_call_operand.vmem [shape: f32[2,32,3], index: 0, kind: input, shape index: {}]   ;;  %s11006_s1 = inlined_call_operand.vmem [shape: f32[2,4,8,3], index: 1, kind: input, shape index: {}]   ;;  %s11007_s2 = inlined_call_operand.vmem [shape: f32[32,32], index: 2, kind: input, shape index: {}]   ;;  %s11008_s3 = inlined_call_operand.vmem [shape: f32[3,8,8], index: 3, kind: input, shape index: {}]   ;;  %s11009_s4 = inlined_call_operand.vmem [shape: f32[3,3,32], index: 4, kind: input, shape index: {}]   ;;  %s11010_s5 = inlined_call_operand.vmem [shape: f32[3,1,32], index: 5, kind: input, shape index: {}]   ;;  %s11011_s6 = inlined_call_operand.vmem [shape: f32[3,1,32], index: 6, kind: input, shape index: {}]   ;;  %s11012_s7 = inlined_call_operand.vmem [shape: f32[3,1,32], index: 7, kind: input, shape index: {}]   ;;  %s11013_s8 = inlined_call_operand.vmem [shape: f32[3,32,96], index: 8, kind: input, shape index: {}]   ;;  %s11014_s9 = inlined_call_operand.vmem [shape: f32[3,1,96], index: 9, kind: input, shape index: {}]   ;;  %s11015_s10 = inlined_call_operand.vmem [shape: f32[3,32,32], index: 10, kind: input, shape index: {}]   ;;  %s11016_s11 = inlined_call_operand.vmem [shape: f32[3,1,32], index: 11, kind: input, shape index: {}]   ;;  %s11017_s12 = inlined_call_operand.vmem [shape: f32[3,1,32], index: 12, kind: input, shape index: {}]   ;;  %s11018_s13 = inlined_call_operand.vmem [shape: f32[3,1,32], index: 13, kind: input, shape index: {}]   ;;  %s11019_s14 = inlined_call_operand.vmem [shape: f32[3,32,128], index: 14, kind: input, shape index: {}]   ;;  %s11020_s15 = inlined_call_operand.vmem [shape: f32[3,1,128], index: 15, kind: input, shape index: {}]   ;;  %s11021_s16 = inlined_call_operand.vmem [shape: f32[3,128,32], index: 16, kind: input, shape index: {}]   ;;  %s11022_s17 = inlined_call_operand.vmem [shape: f32[3,1,32], index: 17, kind: input, shape index: {}]   ;;  %s11023_s18 = inlined_call_operand.vmem [shape: f32[3,32], index: 18, kind: input, shape index: {}]   ;;  %s11024_s19 = inlined_call_operand.vmem [shape: f32[1,32], index: 19, kind: input, shape index: {}]   ;;  %s11025_s20 = inlined_call_operand.vmem [shape: f32[1,32], index: 20, kind: input, shape index: {}]   ;;  %s11026_s21 = inlined_call_operand.vmem [shape: f32[1,32], index: 21, kind: input, shape index: {}]   ;;  %s11027_s22 = inlined_call_operand.vmem [shape: f32[32,16], index: 22, kind: input, shape index: {}]   ;;  %s11028_s23 = inlined_call_operand.vmem [shape: f32[1,16], index: 23, kind: input, shape index: {}]   ;;  %s11029_s24 = inlined_call_operand.vmem [shape: f32[128,24], index: 24, kind: input, shape index: {}]   ;;  %s11030_s25 = inlined_call_operand.vmem [shape: f32[1,24], index: 25, kind: input, shape index: {}]   ;;  %s11031_s26 = inlined_call_operand.vmem [shape: f32[2,4,24], index: 26, kind: output, shape index: {0}]   ;;  %s11032_s27 = inlined_call_operand.vmem [shape: f32[2,12,8,8], index: 27, kind: output, shape index: {1}]  }
   0x1   :  { %11087 = sst [smem:[#allocation14_spill]] %s11005_s0 }
   0x2   :  { %11088 = sst [smem:[#allocation15_spill]] %s11006_s1 }
   0x3   :  { %11089 = sst [smem:[#allocation16_spill]] %s11007_s2 }
   0x4   :  { %11090 = sst [smem:[#allocation17_spill]] %s11008_s3 }
   0x5   :  { %11091 = sst [smem:[#allocation18_spill]] %s11009_s4 }
   0x6   :  { %11092 = sst [smem:[#allocation19_spill]] %s11010_s5 }
   0x7   :  { %11093 = sst [smem:[#allocation20_spill]] %s11011_s6 }
   0x8   :  { %11094 = sst [smem:[#allocation21_spill]] %s11012_s7  ;;  %s8841_s7 = smov 0  }
   0x9   :  { %11095 = sst [smem:[#allocation22_spill]] %s11013_s8 }
   0xa   :  { %11096 = sst [smem:[#allocation23_spill]] %s11014_s9 }
   0xb   :  { %11097 = sst [smem:[#allocation24_spill]] %s11015_s10 }
   0xc   :  { %11098 = sst [smem:[#allocation25_spill]] %s11016_s11 }
   0xd   :  { %11099 = sst [smem:[#allocation26_spill]] %s11023_s18 }
   0xe   :  { %11100 = sst [smem:[#allocation27_spill]] %s11024_s19 }
   0xf   :  { %11101 = sst [smem:[#allocation28_spill]] %s11025_s20 }
  0x10   :  { %11102 = sst [smem:[#allocation29_spill]] %s11026_s21 }
  0x11   :  { %11103 = sst [smem:[#allocation30_spill]] %s11027_s22 }
  0x12   :  { %11104 = sst [smem:[#allocation31_spill]] %s11028_s23 }
  0x13   :  { %11105 = sst [smem:[#allocation32_spill]] %s11029_s24 }
  0x14   :  { %11106 = sst [smem:[#allocation33_spill]] %s11030_s25 }
  0x15   :  { %11107 = sst [smem:[#allocation34_spill]] %s11031_s26 }
  0x16   :  { %11108 = sst [smem:[#allocation35_spill]] %s11032_s27 }
  0x17 LB: > { %11109 = sst [smem:[#allocation2_spill]] %s8686_s7  ;;  %s7949_s4 = sadd.s32 4294967295, %s8686_s7   ;;  %s8686_s7 = sphi %s8841_s7, %s38_s7  }
  0x18   : > { %p7953_p0 = scmp.ge.s32.totalorder %s8686_s7, 1  ;;  %p750_p1 = scmp.lt.s32.totalorder %s8686_s7, 3 }
  0x1a   : > { %p751_p2 = pnand %p7953_p0, %p750_p1 }
  0x1c   : > { %754 = sbr.rel (%p751_p2) target bundleno = 9797 (0x2645), region = 124 }
  0x21   : > { %p831_p3 = scmp.lt.s32.totalorder %s7949_s4, 1  ;;  %s11111_s9 = sld [smem:[#allocation17_spill]]  ;;  %vm925_vm0 = vcmask 64512   ;;  %vm876_vm1 = vcmask 1042432   ;;  %vm863_vm2 = vcmask 23552   ;;  %vm1064_vm3 = vcmask 261120  }
  0x22   : > { %s11112_s10 = sld [smem:[#allocation15_spill]]  ;;  %v8688_v49 = vmov 32.0   ;;  %s11052_s0 = smov 88  }
  0x23   : > { %s11177_s4 = smov (!%p831_p3, %s7949_s4), 1  ;;  %s11113_s11 = sld [smem:[#allocation14_spill]]  ;;  %8398 = vrcp.f32 %v8688_v49 }
  0x24   : > { %11110 = sst [smem:[#allocation3_spill]] %s11177_s4  ;;  %s8311_s5 = sshll.u32 %s11177_s4, 5 }
  0x25   : > { %s11114_s30 = sld [smem:[#allocation18_spill]]  ;;  %s11054_s1 = smov 64  }
  0x26   : > { %s11115_s18 = sld [smem:[#allocation26_spill]]  ;;  %s11050_s6 = smov 80  }
  0x27   : > { %v924_v0 = vld [vmem:[%s11111_s9] sm:$0xff]  ;;  %s11116_s19 = sld [smem:[#allocation27_spill]]  ;;  %s11136_s20 = smov 96  }
  0x28   : > { %s8858_s29 = scalar_lea.vmem %s11112_s10, %s8311_s5  ;;  %s11118_s8 = sld [smem:[#allocation19_spill]] }
  0x29   : > { %v854_v1 = vld [vmem:[%s8858_s29] sm:$0xff]  ;;  %v855_v2 = vld [vmem:[%s8858_s29 + $0x8] sm:$0xff]  ;;  %v856_v3 = vld [vmem:[%s8858_s29 + $0x10] sm:$0xff]  ;;  %s835_s2 = scalar_lea.vmem %s11113_s11, %s8311_s5  ;;  %s11117_s11 = sld [smem:[#allocation16_spill]]  ;;  %v8399_v50 = vpop.eup %8398 }
  0x2a   : > { %944 = vmatpush.msra.mxu1 %v854_v1  ;;  %964 = vmatpush.msra.mxu2 %v855_v2  ;;  %v857_v4 = vld [vmem:[%s8858_s29 + $0x18] sm:$0xff]  ;;  %v850_v7 = vld [vmem:[%s835_s2] sm:$0xff]  ;;  %v851_v8 = vld [vmem:[%s835_s2 + $0x8] sm:$0xff]  ;;  %v1078_v51 = vmul.f32 32.0, %v8399_v50  ;;  %vm1082_vm4 = vweird.f32 %v8399_v50  ;;  %s11119_s28 = sld [smem:[#allocation22_spill]]  ;;  %s11046_s5 = smov 120  }
  0x2b   : > { %7965 = vmatmul.msk.f32.vlgmr.msra.gmra.mxu1 %vm925_vm0, %v924_v0  ;;  %7966 = vmatmul.msk.f32.vlgmr.msra.gmra.mxu2 %vm925_vm0, %v924_v0  ;;  %v1009_v5 = vld [vmem:[%s11114_s30] sm:$0x7]  ;;  %v852_v9 = vld [vmem:[%s835_s2 + $0x10] sm:$0xff]  ;;  %v853_v10 = vld [vmem:[%s835_s2 + $0x18] sm:$0xff]  ;;  %s11120_s3 = sld [smem:[#allocation20_spill]]  ;;  %s11044_s2 = smov 96  }
  0x2c   : > { %984 = vmatpush.msra.mxu3 %v856_v3  ;;  %1004 = vmatpush.msrb.mxu1 %v857_v4  ;;  %v858_v6 = vld [vmem:[%s11115_s18] sm:$0x7]  ;;  %v1079_v52 = vsub.f32 1.0, %v1078_v51  ;;  %s11121_s10 = sld [smem:[#allocation21_spill]]  ;;  %s11064_s18 = smov 40  }
  0x2d   : > { %7967 = vmatmul.msk.f32.vlgmr.msra.gmra.mxu3 %vm925_vm0, %v924_v0  ;;  %7969 = vmatpush.msk.msrb.mxu2 %vm876_vm1, %v1009_v5  ;;  %v8366_v16 = vld [vmem:[%s11116_s19] ss:$0 sm:$0xff]  ;;  %s11137_s21 = smov 64   ;;  %s11138_s23 = smov 88  }
  0x2e   : > { %7960 = vmatpush.msk.msra.mxu0 %vm876_vm1, %v858_v6  ;;  %v8367_v20 = vld [vmem:[%s11118_s8] ss:$0 sm:$0xff]  ;;  %v1080_v53 = vmul.f32 %v8399_v50, %v1079_v52  ;;  %s11139_s24 = smov 80   ;;  %s11140_s25 = smov 112  }
  0x2f   : > { %7961 = vmatmul.msk.f32.vlgmr.msra.gmra.mxu0 %vm863_vm2, %v850_v7  ;;  %v909_v18 = vld [vmem:[%s11117_s11] sm:$0xff]  ;;  %v910_v26 = vld [vmem:[%s11117_s11 + $0x8] sm:$0xff]  ;;  %v911_v34 = vld [vmem:[%s11117_s11 + $0x10] sm:$0xff]  ;;  %s11141_s27 = smov 48   ;;  %s11142_s7 = smov 40  }
  0x30   : > { %v912_v42 = vld [vmem:[%s11117_s11 + $0x18] sm:$0xff]  ;;  %v1081_v54 = vadd.f32 %v8399_v50, %v1080_v53  ;;  %s11122_s11 = sld [smem:[#allocation23_spill]] }
  0x31   : > { %s11167_s22 = sld [smem:[#allocation3_spill]] }
  0x32   : > { %v8921_v55 = vsel %vm1082_vm4, %v8399_v50, %v1081_v54 }
  0x33   : > { %7968 = vmatmul.msk.f32.vlgmr.msrb.gmra.mxu1 %vm925_vm0, %v924_v0 }
  0x37   : > { %7962 = vmatmul.msk.f32.gmra.mxu0 %vm863_vm2, %v851_v8  ;;  %s8313_s19 = smul.u32 96, %s11167_s22  ;;  %s7958_s4 = sshll.u32 %s11167_s22, 2 }
  0x3f   : > { %7963 = vmatmul.msk.f32.gmra.mxu0 %vm863_vm2, %v852_v9 }
  0x47   : > { %7964 = vmatmul.msk.f32.gmra.mxu0 %vm863_vm2, %v853_v10 }
  0xa8   : > { %v946_v11 = vpop.f32.mrf.mxu1 }
  0xa9   : > { %7970 = vmatmul.msk.f32.vlgmr.msrb.gmra.mxu2 %vm863_vm2, %v946_v11 }
  0xac   : > { %v897_v15 = vpop.f32.mrf.mxu0 }
  0xad   : > { %v898_v17 = vadd.f32 %v8366_v16, %v897_v15  ;;  %v1174_v15 = vld [vmem:[%s11119_s28] sm:$0xff] }
  0xae   : > { %v966_v12 = vpop.f32.mrf.mxu2 }
  0xaf   : > { %v913_v21 = vadd.f32 %v909_v18, %v898_v17 }
  0xb0   : > { %v986_v13 = vpop.f32.mrf.mxu3  ;;  %v1006_v14 = vpop.f32.mrf.mxu1 }
  0xb1   : > { %7971 = vmatmul.msk.f32.gmra.mxu2 %vm863_vm2, %v966_v12  ;;  %v1177_v12 = vld [vmem:[%s11119_s28 + $0x18] sm:$0xff] }
  0xb2   : > { %1206 = vmatpush.msrb.mxu3 %v1177_v12 }
  0xb4   : > { %v900_v19 = vpop.f32.mrf.mxu0 }
  0xb5   : > { %v901_v25 = vadd.f32 %v8366_v16, %v900_v19 }
  0xb7   : > { %v914_v29 = vadd.f32 %v910_v26, %v901_v25 }
  0xb9   : > { %7972 = vmatmul.msk.f32.gmra.mxu2 %vm863_vm2, %v986_v13  ;;  %v1176_v13 = vld [vmem:[%s11119_s28 + $0x10] sm:$0xff] }
  0xba   : > { %1207 = vmatpush.msrb.mxu3 %v1176_v13 }
  0xbc   : > { %v903_v28 = vpop.f32.mrf.mxu0 }
  0xbd   : > { %v904_v33 = vadd.f32 %v8366_v16, %v903_v28 }
  0xbf   : > { %v915_v36 = vadd.f32 %v911_v34, %v904_v33 }
  0xc1   : > { %7973 = vmatmul.msk.f32.gmra.mxu2 %vm863_vm2, %v1006_v14  ;;  %v1175_v14 = vld [vmem:[%s11119_s28 + $0x8] sm:$0xff] }
  0xc2   : > { %1208 = vmatpush.msrb.mxu3 %v1175_v14 }
  0xc4   : > { %v906_v38 = vpop.f32.mrf.mxu0  ;;  %1209 = vmatpush.msrb.mxu3 %v1174_v15 }
  0xc5   : > { %v907_v41 = vadd.f32 %v8366_v16, %v906_v38 }
  0xc7   : > { %v916_v44 = vadd.f32 %v912_v42, %v907_v41 }
 0x12c   : > { %v1046_v22 = vpop.f32.mrf.mxu2 }
 0x12d   : > { %v1047_v23 = vadd.f32 %v8367_v20, %v1046_v22 }
 0x12f   : > { %v8896_v24 = vadd.f32 %v1047_v23, %v913_v21 }
 0x131   : > { %v1065_v27 = vsel %vm1064_vm3, %v8896_v24, 0.0 }
 0x132   : > { %1066 = vadd.xlane.f32.xlu0 %v1065_v27 }
 0x134   : > { %v1049_v30 = vpop.f32.mrf.mxu2 }
 0x135   : > { %v1050_v31 = vadd.f32 %v8367_v20, %v1049_v30 }
 0x137   : > { %v8903_v32 = vadd.f32 %v1050_v31, %v914_v29 }
 0x139   : > { %v1068_v35 = vsel %vm1064_vm3, %v8903_v32, 0.0 }
 0x13a   : > { %1069 = vadd.xlane.f32.xlu0 %v1068_v35  ;;  %v8368_v35 = vld [vmem:[%s11120_s3] ss:$0 sm:$0xff] }
 0x13c   : > { %v1052_v37 = vpop.f32.mrf.mxu2 }
 0x13d   : > { %v1053_v39 = vadd.f32 %v8367_v20, %v1052_v37 }
 0x13f   : > { %v8910_v40 = vadd.f32 %v1053_v39, %v915_v36  ;;  %v8369_v39 = vld [vmem:[%s11121_s10] ss:$0 sm:$0xff] }
 0x141   : > { %v1071_v43 = vsel %vm1064_vm3, %v8910_v40, 0.0 }
 0x142   : > { %1072 = vadd.xlane.f32.xlu1 %v1071_v43 }
 0x144   : > { %v1055_v45 = vpop.f32.mrf.mxu2 }
 0x145   : > { %v1056_v46 = vadd.f32 %v8367_v20, %v1055_v45 }
 0x147   : > { %v8917_v47 = vadd.f32 %v1056_v46, %v916_v44 }
 0x149   : > { %v1074_v48 = vsel %vm1064_vm3, %v8917_v47, 0.0 }
 0x14a   : > { %1075 = vadd.xlane.f32.xlu1 %v1074_v48 }
 0x1a5   : > { %v1067_v56 = vpop.xlane.xlu0 %1066 }
 0x1a6   : > { %v1084_v57 = vmul.f32 %v8921_v55, %v1067_v56 }
 0x1a8   : > { %v1088_v58 = vsub.f32 %v8896_v24, %v1084_v57 }
 0x1aa   : > { %v1092_v59 = vmul.f32 %v1088_v58, %v1088_v58 }
 0x1ac   : > { %v1096_v60 = vsel %vm1064_vm3, %v1092_v59, 0.0 }
 0x1ad   : > { %1097 = vadd.xlane.f32.xlu2 %v1096_v60  ;;  %v1070_v61 = vpop.xlane.xlu0 %1069 }
 0x1ae   : > { %v1085_v62 = vmul.f32 %v8921_v55, %v1070_v61 }
 0x1b0   : > { %v8928_v63 = vsub.f32 %v8903_v32, %v1085_v62 }
 0x1b2   : > { %v1093_v0 = vmul.f32 %v8928_v63, %v8928_v63 }
 0x1b4   : > { %v1099_v1 = vsel %vm1064_vm3, %v1093_v0, 0.0 }
 0x1b5   : > { %v1073_v2 = vpop.xlane.xlu1 %1072  ;;  %1100 = vadd.xlane.f32.xlu2 %v1099_v1 }
 0x1b6   : > { %v1086_v3 = vmul.f32 %v8921_v55, %v1073_v2 }
 0x1b8   : > { %v8935_v4 = vsub.f32 %v8910_v40, %v1086_v3 }
 0x1ba   : > { %v1094_v5 = vmul.f32 %v8935_v4, %v8935_v4 }
 0x1bc   : > { %v1102_v6 = vsel %vm1064_vm3, %v1094_v5, 0.0 }
 0x1bd   : > { %v1076_v7 = vpop.xlane.xlu1 %1075  ;;  %1103 = vadd.xlane.f32.xlu0 %v1102_v6 }
 0x1be   : > { %v1087_v8 = vmul.f32 %v8921_v55, %v1076_v7 }
 0x1c0   : > { %v8942_v9 = vsub.f32 %v8917_v47, %v1087_v8 }
 0x1c2   : > { %v1095_v10 = vmul.f32 %v8942_v9, %v8942_v9 }
 0x1c4   : > { %v1105_v11 = vsel %vm1064_vm3, %v1095_v10, 0.0 }
 0x1c5   : > { %1106 = vadd.xlane.f32.xlu1 %v1105_v11 }
 0x220   : > { %v1098_v16 = vpop.xlane.xlu2 %1097 }
 0x221   : > { %v1108_v17 = vmul.f32 %v1098_v16, %v8921_v55 }
 0x223   : > { %v1112_v18 = vadd.f32 1e-05, %v1108_v17 }
 0x225   : > { %8400 = vrsqrt.f32 %v1112_v18  ;;  %vm1122_vm6 = vweird.f32 %v1112_v18 }
 0x228   : > { %v1101_v19 = vpop.xlane.xlu2 %1100 }
 0x229   : > { %v1109_v20 = vmul.f32 %v1101_v19, %v8921_v55 }
 0x22b   : > { %v8401_v21 = vpop.eup %8400  ;;  %v1113_v22 = vadd.f32 1e-05, %v1109_v20 }
 0x22c   : > { %v1117_v23 = vmul.f32 %v8401_v21, %v1112_v18  ;;  %vm1123_vm5 = vweird.f32 %v8401_v21 }
 0x22d   : > { %8402 = vrsqrt.f32 %v1113_v22  ;;  %vm1124_vm7 = vmor %vm1122_vm6, %vm1123_vm5  ;;  %vm1132_vm9 = vweird.f32 %v1113_v22 }
 0x22e   : > { %v1118_v25 = vmul.f32 %v8401_v21, %v1117_v23 }
 0x230   : > { %v1119_v26 = vmul.f32 0.5, %v1118_v25  ;;  %v1104_v27 = vpop.xlane.xlu0 %1103 }
 0x231   : > { %v1110_v28 = vmul.f32 %v1104_v27, %v8921_v55  ;;  %v917_v27 = vlaneseq }
 0x232   : > { %v1120_v29 = vsub.f32 1.5, %v1119_v26 }
 0x233   : > { %v8403_v30 = vpop.eup %8402  ;;  %v1114_v31 = vadd.f32 1e-05, %v1110_v28  ;;  %v9011_v28 = vshrl.u32 %v917_v27, 7 }
 0x234   : > { %v1121_v33 = vmul.f32 %v8401_v21, %v1120_v29  ;;  %v1127_v34 = vmul.f32 %v8403_v30, %v1113_v22  ;;  %vm1133_vm8 = vweird.f32 %v8403_v30  ;;  %v9013_v29 = vand.u32 127, %v917_v27 }
 0x235   : > { %8404 = vrsqrt.f32 %v1114_v31  ;;  %vm1134_vm10 = vmor %vm1132_vm9, %vm1133_vm8  ;;  %vm1142_vm12 = vweird.f32 %v1114_v31  ;;  %11123 = vst [vmem:[#allocation4_spill] sm:$0xff] %v9011_v28 }
 0x236   : > { %v1125_v36 = vsel %vm1124_vm7, %v8401_v21, %v1121_v33  ;;  %v1128_v37 = vmul.f32 %v8403_v30, %v1127_v34  ;;  %11124 = vst [vmem:[#allocation5_spill] sm:$0xff] %v9013_v29  ;;  %vm9017_vm5 = vcmp.ge.s32.totalorder %v9011_v28, %v9013_v29 }
 0x237   : > { %v1156_v38 = vmul.f32 %v1125_v36, %v1088_v58 }
 0x238   : > { %v1129_v41 = vmul.f32 0.5, %v1128_v37  ;;  %v1107_v42 = vpop.xlane.xlu1 %1106 }
 0x239   : > { %v1111_v43 = vmul.f32 %v1107_v42, %v8921_v55  ;;  %v1163_v44 = vmul.f32 %v8368_v35, %v1156_v38 }
 0x23a   : > { %v1130_v45 = vsub.f32 1.5, %v1129_v41 }
 0x23b   : > { %v8405_v46 = vpop.eup %8404  ;;  %v1115_v48 = vadd.f32 1e-05, %v1111_v43  ;;  %v1170_v49 = vadd.f32 %v8369_v39, %v1163_v44 }
 0x23c   : > { %v1131_v50 = vmul.f32 %v8403_v30, %v1130_v45  ;;  %v1137_v51 = vmul.f32 %v8405_v46, %v1114_v31  ;;  %vm1143_vm11 = vweird.f32 %v8405_v46 }
 0x23d   : > { %8406 = vrsqrt.f32 %v1115_v48  ;;  %7974 = vmatmul.msk.f32.vlgmr.msrb.gmra.mxu3 %vm1064_vm3, %v1170_v49  ;;  %vm1144_vm13 = vmor %vm1142_vm12, %vm1143_vm11  ;;  %vm1152_vm15 = vweird.f32 %v1115_v48 }
 0x23e   : > { %v1138_v52 = vmul.f32 %v8405_v46, %v1137_v51  ;;  %v1135_v53 = vsel %vm1134_vm10, %v8403_v30, %v1131_v50 }
 0x23f   : > { %v1157_v54 = vmul.f32 %v1135_v53, %v8928_v63 }
 0x240   : > { %v1139_v56 = vmul.f32 0.5, %v1138_v52 }
 0x241   : > { %v1164_v57 = vmul.f32 %v8368_v35, %v1157_v54 }
 0x242   : > { %v1140_v58 = vsub.f32 1.5, %v1139_v56 }
 0x243   : > { %v8407_v59 = vpop.eup %8406  ;;  %v1171_v60 = vadd.f32 %v8369_v39, %v1164_v57 }
 0x244   : > { %v1141_v61 = vmul.f32 %v8405_v46, %v1140_v58  ;;  %v1147_v62 = vmul.f32 %v8407_v59, %v1115_v48  ;;  %vm1153_vm14 = vweird.f32 %v8407_v59 }
 0x245   : > { %7975 = vmatmul.msk.f32.gmra.mxu3 %vm1064_vm3, %v1171_v60  ;;  %vm1154_vm4 = vmor %vm1152_vm15, %vm1153_vm14 }
 0x246   : > { %v1148_v0 = vmul.f32 %v8407_v59, %v1147_v62  ;;  %v1145_v1 = vsel %vm1144_vm13, %v8405_v46, %v1141_v61 }
 0x247   : > { %v1158_v2 = vmul.f32 %v1145_v1, %v8935_v4  ;;  %v8370_v4 = vld [vmem:[%s11122_s11] ss:$0 sm:$0xff] }
 0x248   : > { %v1149_v3 = vmul.f32 0.5, %v1148_v0 }
 0x249   : > { %v1165_v5 = vmul.f32 %v8368_v35, %v1158_v2 }
 0x24a   : > { %v1150_v6 = vsub.f32 1.5, %v1149_v3 }
 0x24b   : > { %v1172_v63 = vadd.f32 %v8369_v39, %v1165_v5 }
 0x24c   : > { %v1151_v7 = vmul.f32 %v8407_v59, %v1150_v6 }
 0x24d   : > { %7976 = vmatmul.msk.f32.gmra.mxu3 %vm1064_vm3, %v1172_v63 }
 0x24e   : > { %v1155_v8 = vsel %vm1154_vm4, %v8407_v59, %v1151_v7 }
 0x24f   : > { %v1159_v10 = vmul.f32 %v1155_v8, %v8942_v9 }
 0x251   : > { %v1166_v11 = vmul.f32 %v8368_v35, %v1159_v10 }
 0x253   : > { %v1173_v12 = vadd.f32 %v8369_v39, %v1166_v11 }
 0x255   : > { %7977 = vmatmul.msk.f32.gmra.mxu3 %vm1064_vm3, %v1173_v12 }
 0x2c0   : > { %v1211_v13 = vpop.f32.mrf.mxu3 }
 0x2c1   : > { %v8979_v14 = vadd.f32 %v8370_v4, %v1211_v13 }
 0x2c3   : > { %1228 = vrot.lane.b32.xlu2 %v8979_v14, %s11044_s2 }
 0x2c8   : > { %v1214_v15 = vpop.f32.mrf.mxu3 }
 0x2c9   : > { %v8983_v16 = vadd.f32 %v8370_v4, %v1214_v15 }
 0x2cb   : > { %1255 = vrot.lane.b32.xlu1 %v8983_v16, %s11044_s2 }
 0x2d0   : > { %v1217_v9 = vpop.f32.mrf.mxu3 }
 0x2d1   : > { %v8987_v17 = vadd.f32 %v8370_v4, %v1217_v9 }
 0x2d3   : > { %1642 = vrot.lane.b32.xlu1 %v8987_v17, %s11052_s0  ;;  %1282 = vrot.lane.b32.xlu0 %v8987_v17, %s11044_s2 }
 0x2d8   : > { %v1220_v18 = vpop.f32.mrf.mxu3 }
 0x2d9   : > { %v8993_v19 = vadd.f32 %v8370_v4, %v1220_v18 }
 0x2db   : > { %1309 = vrot.lane.b32.xlu2 %v8993_v19, %s11044_s2  ;;  %s11056_s2 = smov 56  }
 0x31d   : > { %v1229_v20 = vpop.permute.xlu2 %1228 }
 0x31e   : > { %7978 = vmatpush.xpose.msk.msra.mxu1 %vm925_vm0, %v1229_v20 }
 0x321   : > { %7979 = vmatmul.msk.f32.vlgmr.msra.gmra.mxu1 %vm925_vm0, %v8979_v14 }
 0x335   : > { %v1310_v22 = vpop.permute.xlu2 %1309 }
 0x33d   : > { %v1256_v21 = vpop.permute.xlu1 %1255 }
 0x33e   : > { %7980 = vmatpush.xpose.msk.msrb.mxu1 %vm925_vm0, %v1256_v21 }
 0x341   : > { %7981 = vmatmul.msk.f32.vlgmr.msrb.gmra.mxu1 %vm925_vm0, %v8983_v16 }
 0x342   : > { %7984 = vmatpush.xpose.msk.msra.mxu1 %vm925_vm0, %v1310_v22 }
 0x345   : > { %v1283_v23 = vpop.permute.xlu0 %1282  ;;  %v1643_v52 = vpop.permute.xlu1 %1642 }
 0x346   : > { %7982 = vmatpush.xpose.msk.msrb.mxu0 %vm925_vm0, %v1283_v23 }
 0x349   : > { %7983 = vmatmul.msk.f32.vlgmr.msrb.gmra.mxu0 %vm925_vm0, %v8987_v17  ;;  %7985 = vmatmul.msk.f32.vlgmr.msra.gmra.mxu1 %vm925_vm0, %v8993_v19 }
 0x39e   : > { %v9009_v25 = vpop.f32.mrf.mxu1 }
 0x3be   : > { %v1278_v26 = vpop.f32.mrf.mxu1 }
 0x3bf   : > { %v1336_v41 = vmul.f32 0.001, %v1278_v26 }
 0x3c1   : > { %v1342_v42 = vsel %vm9017_vm5, %v1336_v41, -1e+30 }
 0x3c2   : > { %v1348_v43 = vsel %vm925_vm0, %v1342_v42, -inf }
 0x3c6   : > { %v1305_v30 = vpop.f32.mrf.mxu0  ;;  %v1332_v31 = vpop.f32.mrf.mxu1 }
 0x3c7   : > { %v1337_v33 = vmul.f32 0.001, %v1305_v30  ;;  %v1338_v34 = vmul.f32 0.001, %v1332_v31 }
 0x3c9   : > { %v1344_v36 = vsel %vm9017_vm5, %v1338_v34, -1e+30  ;;  %v1343_v37 = vsel %vm9017_vm5, %v1337_v33, -1e+30 }
 0x3ca   : > { %v1354_v38 = vsel %vm925_vm0, %v1344_v36, -inf  ;;  %v1351_v39 = vsel %vm925_vm0, %v1343_v37, -inf }
 0x3cb   : > { %1355 = vmax.xlane.f32.xlu2 %v1354_v38  ;;  %1352 = vmax.xlane.f32.xlu0 %v1351_v39 }
 0x3df   : > { %1640 = vrot.lane.b32.xlu0 %v8987_v17, %s11046_s5 }
 0x3e3   : > { %1493 = vrot.lane.b32.xlu2 %v8987_v17, %s11054_s1 }
 0x3eb   : > { %1519 = vrot.lane.b32.xlu2 %v8993_v19, %s11054_s1 }
 0x414   : > { %1349 = vmax.xlane.f32.xlu2 %v1348_v43 }
 0x43e   : > { %v1356_v44 = vpop.xlane.xlu2 %1355  ;;  %v1353_v45 = vpop.xlane.xlu0 %1352 }
 0x43f   : > { %v1360_v46 = vsub.f32 %v1344_v36, %v1356_v44  ;;  %v1359_v48 = vsub.f32 %v1343_v37, %v1353_v45 }
 0x441   : > { %v1367_v49 = vmul.f32 1.442695, %v1360_v46  ;;  %v1365_v50 = vmul.f32 1.442695, %v1359_v48 }
 0x443   : > { %8408 = vpow2.f32 %v1367_v49 }
 0x444   : > { %8410 = vpow2.f32 %v1365_v50 }
 0x446   : > { %v1494_v51 = vpop.permute.xlu2 %1493 }
 0x447   : > { %1514 = vmatpush.msra.mxu2 %v1494_v51 }
 0x449   : > { %7994 = vmatpush.xpose.msk.msrb.mxu2 %vm925_vm0, %v1643_v52  ;;  %v8409_v53 = vpop.eup %8408 }
 0x44a   : > { %v8411_v54 = vpop.eup %8410  ;;  %v1378_v56 = vsel %vm925_vm0, %v8409_v53, 0.0 }
 0x44b   : > { %1379 = vadd.xlane.f32.xlu0 %v1378_v56  ;;  %v1375_v57 = vsel %vm925_vm0, %v8411_v54, 0.0 }
 0x44c   : > { %1376 = vadd.xlane.f32.xlu1 %v1375_v57 }
 0x44e   : > { %v1520_v58 = vpop.permute.xlu2 %1519 }
 0x44f   : > { %1540 = vmatpush.msra.mxu3 %v1520_v58 }
 0x451   : > { %v1641_v1 = vpop.permute.xlu0 %1640 }
 0x45f   : > { %1670 = vrot.lane.b32.xlu0 %v8993_v19, %s11052_s0 }
 0x465   : > { %1668 = vrot.lane.b32.xlu1 %v8993_v19, %s11046_s5 }
 0x46d   : > { %1612 = vrot.lane.b32.xlu1 %v8983_v16, %s11046_s5  ;;  %s11048_s5 = smov 112  }
 0x475   : > { %2028 = vrot.lane.b32.xlu1 %v8979_v14, %s11050_s6 }
 0x47d   : > { %1878 = vrot.lane.b32.xlu1 %v8993_v19, %s11056_s2 }
 0x487   : > { %v1350_v59 = vpop.xlane.xlu2 %1349 }
 0x488   : > { %v1358_v60 = vsub.f32 %v1342_v42, %v1350_v59 }
 0x48a   : > { %v1363_v61 = vmul.f32 1.442695, %v1358_v60 }
 0x48c   : > { %8412 = vpow2.f32 %v1363_v61 }
 0x492   : > { %v9049_v62 = vpop.eup %8412 }
 0x493   : > { %v1372_v0 = vsel %vm925_vm0, %v9049_v62, 0.0 }
 0x494   : > { %1373 = vadd.xlane.f32.xlu2 %v1372_v0 }
 0x4ac   : > { %1614 = vrot.lane.b32.xlu2 %v8983_v16, %s11052_s0 }
 0x4b4   : > { %1852 = vrot.lane.b32.xlu2 %v8987_v17, %s11056_s2 }
 0x4bc   : > { %2026 = vrot.lane.b32.xlu2 %v8979_v14, %s11048_s5 }
 0x4be   : > { %v1380_v2 = vpop.xlane.xlu0 %1379 }
 0x4bf   : > { %v1377_v3 = vpop.xlane.xlu1 %1376  ;;  %8414 = vrcp.f32 %v1380_v2  ;;  %v1437_v11 = vand.u32 2147483648, %v1380_v2  ;;  %v1435_v13 = vand.u32 2147483647, %v1380_v2  ;;  %vm1431_vm8 = vweird.f32 %v1380_v2 }
 0x4c0   : > { %8416 = vrcp.f32 %v1377_v3  ;;  %v1422_v12 = vand.u32 2147483648, %v1377_v3  ;;  %v1420_v9 = vand.u32 2147483647, %v1377_v3  ;;  %vm1416_vm9 = vweird.f32 %v1377_v3 }
 0x4c1   : > { %v1438_v21 = vor.u32 1.1754944e-38, %v1437_v11  ;;  %vm1436_vm12 = vcmp.eq.f32.partialorder %v1435_v13, 8.507059e+37 }
 0x4c2   : > { %v1423_v22 = vor.u32 1.1754944e-38, %v1422_v12  ;;  %vm1421_vm13 = vcmp.eq.f32.partialorder %v1420_v9, 8.507059e+37 }
 0x4c4   : > { %2084 = vrot.lane.b32.xlu2 %v8987_v17, %s11050_s6 }
 0x4c5   : > { %v8415_v5 = vpop.eup %8414 }
 0x4c6   : > { %v8417_v6 = vpop.eup %8416  ;;  %v1427_v63 = vmul.f32 %v8415_v5, %v1380_v2  ;;  %vm1432_vm6 = vweird.f32 %v8415_v5 }
 0x4c7   : > { %v1412_v7 = vmul.f32 %v8417_v6, %v1377_v3  ;;  %vm1417_vm7 = vweird.f32 %v8417_v6  ;;  %vm1433_vm10 = vmor %vm1431_vm8, %vm1432_vm6 }
 0x4c8   : > { %v1428_v8 = vsub.f32 1.0, %v1427_v63  ;;  %vm1418_vm11 = vmor %vm1416_vm9, %vm1417_vm7 }
 0x4c9   : > { %v1413_v10 = vsub.f32 1.0, %v1412_v7 }
 0x4ca   : > { %v1429_v4 = vmul.f32 %v8415_v5, %v1428_v8 }
 0x4cb   : > { %v1414_v15 = vmul.f32 %v8417_v6, %v1413_v10 }
 0x4cc   : > { %v1430_v18 = vadd.f32 %v8415_v5, %v1429_v4  ;;  %2056 = vrot.lane.b32.xlu2 %v8983_v16, %s11050_s6 }
 0x4cd   : > { %v1415_v20 = vadd.f32 %v8417_v6, %v1414_v15 }
 0x4ce   : > { %v1434_v23 = vsel %vm1433_vm10, %v8415_v5, %v1430_v18 }
 0x4cf   : > { %v1419_v26 = vsel %vm1418_vm11, %v8417_v6, %v1415_v20  ;;  %v1439_v27 = vsel %vm1436_vm12, %v1438_v21, %v1434_v23 }
 0x4d0   : > { %v1424_v30 = vsel %vm1421_vm13, %v1423_v22, %v1419_v26  ;;  %v9063_v31 = vmul.f32 %v8409_v53, %v1439_v27 }
 0x4d1   : > { %v1671_v33 = vpop.permute.xlu0 %1670  ;;  %v9065_v34 = vmul.f32 %v8411_v54, %v1424_v30 }
 0x4d2   : > { %7989 = vmatmul.msk.f32.vlgmr.msra.gmra.mxu3 %vm925_vm0, %v9063_v31 }
 0x4d3   : > { %7988 = vmatmul.msk.f32.vlgmr.msra.gmra.mxu2 %vm925_vm0, %v9065_v34  ;;  %7996 = vmatpush.xpose.msk.msrb.mxu3 %vm925_vm0, %v1671_v33 }
 0x4d4   : > { %2110 = vrot.lane.b32.xlu2 %v8993_v19, %s11048_s5 }
 0x4d7   : > { %v1669_v36 = vpop.permute.xlu1 %1668 }
 0x4da   : > { %7997 = vmatmul.msk.f32.vlgmr.msrb.gmra.mxu3 %vm925_vm0, %v1669_v36 }
 0x4db   : > { %7995 = vmatmul.msk.f32.vlgmr.msrb.gmra.mxu2 %vm925_vm0, %v1641_v1 }
 0x4df   : > { %v1613_v37 = vpop.permute.xlu1 %1612 }
 0x4e7   : > { %v2029_v38 = vpop.permute.xlu1 %2028 }
 0x4ef   : > { %v1879_v39 = vpop.permute.xlu1 %1878 }
 0x4f0   : > { %1899 = vmatpush.msra.mxu3 %v1879_v39 }
 0x507   : > { %v1374_v41 = vpop.xlane.xlu2 %1373 }
 0x508   : > { %8418 = vrcp.f32 %v1374_v41  ;;  %v1407_v10 = vand.u32 2147483648, %v1374_v41  ;;  %vm1401_vm15 = vweird.f32 %v1374_v41  ;;  %v1405_v12 = vand.u32 2147483647, %v1374_v41 }
 0x50a   : > { %v1408_v9 = vor.u32 1.1754944e-38, %v1407_v10  ;;  %vm1406_vm6 = vcmp.eq.f32.partialorder %v1405_v12, 8.507059e+37 }
 0x50e   : > { %v8419_v59 = vpop.eup %8418 }
 0x50f   : > { %v1615_v42 = vpop.permute.xlu2 %1614  ;;  %v1397_v60 = vmul.f32 %v8419_v59, %v1374_v41  ;;  %vm1402_vm14 = vweird.f32 %v8419_v59 }
 0x510   : > { %vm1403_vm4 = vmor %vm1401_vm15, %vm1402_vm14 }
 0x511   : > { %v1398_v2 = vsub.f32 1.0, %v1397_v60 }
 0x513   : > { %v1399_v63 = vmul.f32 %v8419_v59, %v1398_v2 }
 0x515   : > { %v1400_v7 = vadd.f32 %v8419_v59, %v1399_v63 }
 0x517   : > { %v1853_v43 = vpop.permute.xlu2 %1852  ;;  %v1404_v15 = vsel %vm1403_vm4, %v8419_v59, %v1400_v7 }
 0x518   : > { %1873 = vmatpush.msra.mxu2 %v1853_v43  ;;  %v1409_v18 = vsel %vm1406_vm6, %v1408_v9, %v1404_v15 }
 0x519   : > { %v9099_v21 = vmul.f32 %v9049_v62, %v1409_v18  ;;  %v1335_v62 = vmul.f32 0.001, %v9009_v25 }
 0x51a   : > { %8011 = vmatpush.xpose.msk.msrb.mxu2 %vm925_vm0, %v2029_v38 }
 0x51b   : > { %v9114_v22 = vsel %vm9017_vm5, %v1335_v62, -1e+30 }
 0x51c   : > { %v1345_v23 = vsel %vm925_vm0, %v9114_v22, -inf }
 0x51f   : > { %v9077_v44 = vpop.permute.xlu2 %2026 }
 0x527   : > { %v9079_v45 = vpop.permute.xlu2 %2084 }
 0x52f   : > { %v2057_v46 = vpop.permute.xlu2 %2056 }
 0x530   : > { %8013 = vmatpush.xpose.msk.msrb.mxu3 %vm925_vm0, %v2057_v46 }
 0x537   : > { %v2111_v10 = vpop.permute.xlu2 %2110 }
 0x555   : > { %v9082_v48 = vpop.f32.mrf.mxu3 }
 0x556   : > { %v9084_v49 = vpop.f32.mrf.mxu2 }
 0x55d   : > { %v1693_v50 = vpop.f32.mrf.mxu3 }
 0x55e   : > { %v1665_v51 = vpop.f32.mrf.mxu2  ;;  %v1699_v52 = vmul.f32 0.001, %v1693_v50 }
 0x55f   : > { %v1698_v53 = vmul.f32 0.001, %v1665_v51 }
 0x560   : > { %v1703_v54 = vsel %vm9017_vm5, %v1699_v52, -1e+30 }
 0x561   : > { %v1702_v56 = vsel %vm9017_vm5, %v1698_v53, -1e+30  ;;  %v1713_v57 = vsel %vm925_vm0, %v1703_v54, -inf }
 0x562   : > { %v1710_v58 = vsel %vm925_vm0, %v1702_v56, -inf  ;;  %1714 = vmax.xlane.f32.xlu1 %v1713_v57 }
 0x563   : > { %1711 = vmax.xlane.f32.xlu0 %v1710_v58 }
 0x577   : > { %1467 = vrot.lane.b32.xlu0 %v8983_v16, %s11054_s1 }
 0x57b   : > { %2082 = vrot.lane.b32.xlu1 %v8987_v17, %s11048_s5 }
 0x5d5   : > { %v1715_v61 = vpop.xlane.xlu1 %1714 }
 0x5d6   : > { %v1719_v0 = vsub.f32 %v1703_v54, %v1715_v61  ;;  %v1712_v1 = vpop.xlane.xlu0 %1711 }
 0x5d7   : > { %v1718_v3 = vsub.f32 %v1702_v56, %v1712_v1 }
 0x5d8   : > { %v1726_v5 = vmul.f32 1.442695, %v1719_v0 }
 0x5d9   : > { %v1724_v6 = vmul.f32 1.442695, %v1718_v3 }
 0x5da   : > { %8420 = vpow2.f32 %v1726_v5 }
 0x5db   : > { %8422 = vpow2.f32 %v1724_v6 }
 0x5e0   : > { %v8421_v8 = vpop.eup %8420 }
 0x5e1   : > { %v8423_v11 = vpop.eup %8422  ;;  %v1737_v4 = vsel %vm925_vm0, %v8421_v8, 0.0 }
 0x5e2   : > { %1738 = vadd.xlane.f32.xlu0 %v1737_v4  ;;  %v1734_v13 = vsel %vm925_vm0, %v8423_v11, 0.0 }
 0x5e3   : > { %1735 = vadd.xlane.f32.xlu1 %v1734_v13 }
 0x5e9   : > { %v1468_v20 = vpop.permute.xlu0 %1467 }
 0x5ea   : > { %1488 = vmatpush.msrb.mxu1 %v1468_v20 }
 0x5eb   : > { %7987 = vmatmul.msk.f32.vlgmr.msrb.gmra.mxu1 %vm925_vm0, %v9099_v21 }
 0x5ec   : > { %7992 = vmatpush.xpose.msk.msra.mxu1 %vm925_vm0, %v1615_v42 }
 0x5ed   : > { %v2083_v26 = vpop.permute.xlu1 %2082 }
 0x5f3   : > { %7993 = vmatmul.msk.f32.vlgmr.msra.gmra.mxu1 %vm925_vm0, %v1613_v37 }
 0x5f6   : > { %2112 = vrot.lane.b32.xlu0 %v8993_v19, %s11050_s6  ;;  %s11060_s6 = smov 72  }
 0x5fc   : > { %2054 = vrot.lane.b32.xlu1 %v8983_v16, %s11048_s5  ;;  %s11062_s5 = smov 48  }
 0x5fe   : > { %1441 = vrot.lane.b32.xlu0 %v8979_v14, %s11054_s1  ;;  %s11127_s1 = smov 120  }
 0x626   : > { %1346 = vmax.xlane.f32.xlu1 %v1345_v23 }
 0x655   : > { %v1739_v27 = vpop.xlane.xlu0 %1738 }
 0x656   : > { %v1736_v30 = vpop.xlane.xlu1 %1735  ;;  %8424 = vrcp.f32 %v1739_v27  ;;  %v1796_v25 = vand.u32 2147483648, %v1739_v27  ;;  %v1794_v46 = vand.u32 2147483647, %v1739_v27  ;;  %vm1790_vm9 = vweird.f32 %v1739_v27 }
 0x657   : > { %8426 = vrcp.f32 %v1736_v30  ;;  %v1781_v42 = vand.u32 2147483648, %v1736_v30  ;;  %v1779_v51 = vand.u32 2147483647, %v1736_v30  ;;  %vm1775_vm10 = vweird.f32 %v1736_v30 }
 0x658   : > { %v1797_v54 = vor.u32 1.1754944e-38, %v1796_v25  ;;  %vm1795_vm13 = vcmp.eq.f32.partialorder %v1794_v46, 8.507059e+37 }
 0x659   : > { %v1782_v56 = vor.u32 1.1754944e-38, %v1781_v42  ;;  %vm1780_vm14 = vcmp.eq.f32.partialorder %v1779_v51, 8.507059e+37 }
 0x65c   : > { %v8425_v33 = vpop.eup %8424 }
 0x65d   : > { %v8427_v36 = vpop.eup %8426  ;;  %v1786_v37 = vmul.f32 %v8425_v33, %v1739_v27  ;;  %vm1791_vm7 = vweird.f32 %v8425_v33 }
 0x65e   : > { %v1771_v38 = vmul.f32 %v8427_v36, %v1736_v30  ;;  %vm1776_vm8 = vweird.f32 %v8427_v36  ;;  %vm1792_vm11 = vmor %vm1790_vm9, %vm1791_vm7 }
 0x65f   : > { %v1787_v39 = vsub.f32 1.0, %v1786_v37  ;;  %vm1777_vm12 = vmor %vm1775_vm10, %vm1776_vm8 }
 0x660   : > { %v1772_v41 = vsub.f32 1.0, %v1771_v38 }
 0x661   : > { %v1788_v43 = vmul.f32 %v8425_v33, %v1787_v39 }
 0x662   : > { %v1773_v50 = vmul.f32 %v8427_v36, %v1772_v41 }
 0x663   : > { %v1789_v52 = vadd.f32 %v8425_v33, %v1788_v43 }
 0x664   : > { %v1774_v53 = vadd.f32 %v8427_v36, %v1773_v50 }
 0x665   : > { %v1793_v57 = vsel %vm1792_vm11, %v8425_v33, %v1789_v52 }
 0x666   : > { %v1778_v58 = vsel %vm1777_vm12, %v8427_v36, %v1774_v53  ;;  %v1798_v59 = vsel %vm1795_vm13, %v1797_v54, %v1793_v57 }
 0x667   : > { %v1783_v60 = vsel %vm1780_vm14, %v1782_v56, %v1778_v58  ;;  %v9118_v61 = vmul.f32 %v8421_v8, %v1798_v59 }
 0x668   : > { %v9120_v0 = vpop.f32.mrf.mxu1  ;;  %v2113_v1 = vpop.permute.xlu0 %2112  ;;  %v9122_v2 = vmul.f32 %v8423_v11, %v1783_v60 }
 0x669   : > { %8001 = vmatmul.msk.f32.vlgmr.msra.gmra.mxu3 %vm925_vm0, %v9118_v61 }
 0x66a   : > { %8000 = vmatmul.msk.f32.vlgmr.msra.gmra.mxu2 %vm925_vm0, %v9122_v2  ;;  %8017 = vmatpush.xpose.msk.msra.mxu3 %vm925_vm0, %v2113_v1 }
 0x66b   : > { %8015 = vmatpush.xpose.msk.msra.mxu2 %vm925_vm0, %v9079_v45  ;;  %v8336_v45 = vpack.i.bf16 %v8987_v17, %v8979_v14 }
 0x66e   : > { %v2055_v3 = vpop.permute.xlu1 %2054 }
 0x670   : > { %v1637_v5 = vpop.f32.mrf.mxu1  ;;  %v1442_v6 = vpop.permute.xlu0 %1441 }
 0x671   : > { %v1697_v63 = vmul.f32 0.001, %v1637_v5  ;;  %1462 = vmatpush.msra.mxu0 %v1442_v6  ;;  %8014 = vmatmul.msk.f32.vlgmr.msrb.gmra.mxu3 %vm925_vm0, %v2055_v3 }
 0x672   : > { %8012 = vmatmul.msk.f32.vlgmr.msrb.gmra.mxu2 %vm925_vm0, %v9077_v44 }
 0x673   : > { %v1701_v7 = vsel %vm9017_vm5, %v1697_v63, -1e+30 }
 0x674   : > { %v1707_v8 = vsel %vm925_vm0, %v1701_v7, -inf }
 0x675   : > { %1708 = vmax.xlane.f32.xlu0 %v1707_v8 }
 0x679   : > { %8018 = vmatmul.msk.f32.vlgmr.msra.gmra.mxu3 %vm925_vm0, %v2111_v10 }
 0x67a   : > { %8016 = vmatmul.msk.f32.vlgmr.msra.gmra.mxu2 %vm925_vm0, %v2083_v26 }
 0x689   : > { %1586 = vrot.lane.b32.xlu0 %v8979_v14, %s11052_s0  ;;  %s11058_s0 = smov 104  }
 0x691   : > { %8337 = vrot.lane.b32.xlu0 %v8336_v45, %s11062_s5 }
 0x699   : > { %v1347_v44 = vpop.xlane.xlu1 %1346  ;;  %2433 = vrot.lane.b32.xlu0 %v8979_v14, %s11060_s6 }
 0x69a   : > { %v1357_v11 = vsub.f32 %v9114_v22, %v1347_v44 }
 0x69c   : > { %v1361_v12 = vmul.f32 1.442695, %v1357_v11 }
 0x69e   : > { %8428 = vpow2.f32 %v1361_v12 }
 0x6a1   : > { %2268 = vrot.lane.b32.xlu0 %v8983_v16, %s11062_s5 }
 0x6a4   : > { %v9149_v4 = vpop.eup %8428 }
 0x6a5   : > { %v1369_v13 = vsel %vm925_vm0, %v9149_v4, 0.0 }
 0x6a6   : > { %1370 = vadd.xlane.f32.xlu2 %v1369_v13 }
 0x6a9   : > { %2461 = vrot.lane.b32.xlu0 %v8983_v16, %s11060_s6  ;;  %s11128_s6 = sld [smem:[#allocation24_spill]] }
 0x6b1   : > { %2431 = vrot.lane.b32.xlu0 %v8979_v14, %s11058_s0  ;;  %s11130_s0 = smov 104  }
 0x6e8   : > { %v1709_v15 = vpop.xlane.xlu0 %1708 }
 0x6e9   : > { %v1717_v9 = vsub.f32 %v1701_v7, %v1709_v15 }
 0x6eb   : > { %v1722_v18 = vmul.f32 1.442695, %v1717_v9 }
 0x6ec   : > { %v9157_v20 = vpop.f32.mrf.mxu3 }
 0x6ed   : > { %8430 = vpow2.f32 %v1722_v18  ;;  %v9159_v62 = vpop.f32.mrf.mxu2 }
 0x6f3   : > { %v9161_v22 = vpop.eup %8430 }
 0x6f4   : > { %v1731_v23 = vsel %vm925_vm0, %v9161_v22, 0.0  ;;  %v2079_v27 = vpop.f32.mrf.mxu3 }
 0x6f5   : > { %v2051_v26 = vpop.f32.mrf.mxu2  ;;  %1732 = vadd.xlane.f32.xlu1 %v1731_v23  ;;  %v2139_v38 = vmul.f32 0.001, %v2079_v27 }
 0x6f6   : > { %v2138_v30 = vmul.f32 0.001, %v2051_v26 }
 0x6f7   : > { %v2143_v46 = vsel %vm9017_vm5, %v2139_v38, -1e+30 }
 0x6f8   : > { %v2142_v33 = vsel %vm9017_vm5, %v2138_v30, -1e+30  ;;  %v2149_v54 = vsel %vm925_vm0, %v2143_v46, -inf }
 0x6f9   : > { %v2146_v37 = vsel %vm925_vm0, %v2142_v33, -inf }
 0x6fb   : > { %v1587_v36 = vpop.permute.xlu0 %1586 }
 0x6fc   : > { %7990 = vmatpush.xpose.msk.msrb.mxu0 %vm925_vm0, %v1587_v36  ;;  %v2135_v25 = vpop.f32.mrf.mxu3 }
 0x6fd   : > { %v2107_v39 = vpop.f32.mrf.mxu2  ;;  %2147 = vmax.xlane.f32.xlu1 %v2146_v37  ;;  %v2141_v50 = vmul.f32 0.001, %v2135_v25 }
 0x6fe   : > { %v2140_v41 = vmul.f32 0.001, %v2107_v39 }
 0x6ff   : > { %v2145_v56 = vsel %vm9017_vm5, %v2141_v50, -1e+30 }
 0x700   : > { %v2144_v42 = vsel %vm9017_vm5, %v2140_v41, -1e+30  ;;  %v2155_v57 = vsel %vm925_vm0, %v2145_v56, -inf }
 0x701   : > { %v2152_v43 = vsel %vm925_vm0, %v2144_v42, -inf }
 0x702   : > { %2153 = vmax.xlane.f32.xlu2 %v2152_v43 }
 0x703   : > { %v8338_v51 = vpop.permute.xlu0 %8337 }
 0x704   : > { %v8340_v52 = vunpack.i.h.bf16 %v8338_v51  ;;  %v8339_v53 = vunpack.i.l.bf16 %v8338_v51 }
 0x705   : > { %2150 = vmax.xlane.f32.xlu1 %v2149_v54 }
 0x706   : > { %2263 = vmatpush.msrb.mxu2 %v8339_v53 }
 0x708   : > { %2315 = vmatpush.msra.mxu2 %v8340_v52 }
 0x70a   : > { %2156 = vmax.xlane.f32.xlu2 %v2155_v57 }
 0x70b   : > { %v9178_v58 = vpop.permute.xlu0 %2433 }
 0x713   : > { %v2269_v59 = vpop.permute.xlu0 %2268 }
 0x714   : > { %2289 = vmatpush.msrb.mxu3 %v2269_v59 }
 0x719   : > { %v1371_v60 = vpop.xlane.xlu2 %1370 }
 0x71a   : > { %8432 = vrcp.f32 %v1371_v60  ;;  %v1392_v6 = vand.u32 2147483648, %v1371_v60  ;;  %v1390_v7 = vand.u32 2147483647, %v1371_v60  ;;  %vm1386_vm4 = vweird.f32 %v1371_v60 }
 0x71c   : > { %v1393_v10 = vor.u32 1.1754944e-38, %v1392_v6  ;;  %vm1391_vm7 = vcmp.eq.f32.partialorder %v1390_v7, 8.507059e+37  ;;  %v2462_v7 = vpop.permute.xlu0 %2461 }
 0x71e   : > { %1584 = vrot.lane.b32.xlu1 %v8979_v14, %s11127_s1 }
 0x720   : > { %v8433_v1 = vpop.eup %8432 }
 0x721   : > { %v1382_v3 = vmul.f32 %v8433_v1, %v1371_v60  ;;  %vm1387_vm15 = vweird.f32 %v8433_v1 }
 0x722   : > { %1826 = vrot.lane.b32.xlu2 %v8983_v16, %s11056_s2  ;;  %vm1388_vm6 = vmor %vm1386_vm4, %vm1387_vm15  ;;  %s11129_s2 = smov 72  }
 0x723   : > { %v1383_v5 = vsub.f32 1.0, %v1382_v3 }
 0x725   : > { %v1384_v63 = vmul.f32 %v8433_v1, %v1383_v5  ;;  %v1223_v5 = vld [vmem:[%s11128_s6] sm:$0xff] }
 0x727   : > { %v1385_v8 = vadd.f32 %v8433_v1, %v1384_v63 }
 0x729   : > { %v1389_v45 = vsel %vm1388_vm6, %v8433_v1, %v1385_v8  ;;  %v2432_v8 = vpop.permute.xlu0 %2431 }
 0x72a   : > { %v1394_v44 = vsel %vm1391_vm7, %v1393_v10, %v1389_v45 }
 0x72b   : > { %v9185_v11 = vmul.f32 %v9149_v4, %v1394_v44 }
 0x72d   : > { %7986 = vmatmul.msk.f32.vlgmr.msra.gmra.mxu0 %vm925_vm0, %v9185_v11 }
 0x768   : > { %v1733_v12 = vpop.xlane.xlu1 %1732 }
 0x769   : > { %8434 = vrcp.f32 %v1733_v12  ;;  %v1766_v43 = vand.u32 2147483648, %v1733_v12  ;;  %vm1760_vm9 = vweird.f32 %v1733_v12 }
 0x76f   : > { %v8435_v13 = vpop.eup %8434 }
 0x770   : > { %v1756_v15 = vmul.f32 %v8435_v13, %v1733_v12  ;;  %v2148_v9 = vpop.xlane.xlu1 %2147  ;;  %vm1761_vm8 = vweird.f32 %v8435_v13 }
 0x771   : > { %v2158_v18 = vsub.f32 %v2142_v33, %v2148_v9  ;;  %v1764_v33 = vand.u32 2147483647, %v1733_v12  ;;  %vm1762_vm10 = vmor %vm1760_vm9, %vm1761_vm8 }
 0x772   : > { %v1757_v23 = vsub.f32 1.0, %v1756_v15 }
 0x773   : > { %v2162_v26 = vmul.f32 1.442695, %v2158_v18  ;;  %vm1765_vm11 = vcmp.eq.f32.partialorder %v1764_v33, 8.507059e+37 }
 0x774   : > { %v1758_v36 = vmul.f32 %v8435_v13, %v1757_v23 }
 0x775   : > { %8436 = vpow2.f32 %v2162_v26  ;;  %v2154_v27 = vpop.xlane.xlu2 %2153 }
 0x776   : > { %v2160_v30 = vsub.f32 %v2144_v42, %v2154_v27  ;;  %v1759_v41 = vadd.f32 %v8435_v13, %v1758_v36 }
 0x778   : > { %v2166_v37 = vmul.f32 1.442695, %v2160_v30  ;;  %v2151_v38 = vpop.xlane.xlu1 %2150  ;;  %v1763_v52 = vsel %vm1762_vm10, %v8435_v13, %v1759_v41 }
 0x779   : > { %v2159_v39 = vsub.f32 %v2143_v46, %v2151_v38  ;;  %v1767_v46 = vor.u32 1.1754944e-38, %v1766_v43 }
 0x77a   : > { %8438 = vpow2.f32 %v2166_v37 }
 0x77b   : > { %v9189_v4 = vpop.eup %8436  ;;  %v2164_v25 = vmul.f32 1.442695, %v2159_v39  ;;  %v1768_v59 = vsel %vm1765_vm11, %v1767_v46, %v1763_v52 }
 0x77c   : > { %v2170_v50 = vsel %vm925_vm0, %v9189_v4, 0.0 }
 0x77d   : > { %8440 = vpow2.f32 %v2164_v25  ;;  %v2157_v51 = vpop.xlane.xlu2 %2156  ;;  %2171 = vadd.xlane.f32.xlu0 %v2170_v50 }
 0x77e   : > { %v2161_v42 = vsub.f32 %v2145_v56, %v2157_v51  ;;  %v9202_v56 = vmul.f32 %v9161_v22, %v1768_v59 }
 0x780   : > { %v9193_v53 = vpop.eup %8438  ;;  %v2168_v54 = vmul.f32 1.442695, %v2161_v42 }
 0x781   : > { %v2176_v57 = vsel %vm925_vm0, %v9193_v53, 0.0 }
 0x782   : > { %8442 = vpow2.f32 %v2168_v54  ;;  %2177 = vadd.xlane.f32.xlu1 %v2176_v57 }
 0x783   : > { %v9197_v60 = vpop.eup %8440 }
 0x784   : > { %v2173_v1 = vsel %vm925_vm0, %v9197_v60, 0.0 }
 0x785   : > { %v1827_v3 = vpop.permute.xlu2 %1826  ;;  %2174 = vadd.xlane.f32.xlu2 %v2173_v1 }
 0x786   : > { %1847 = vmatpush.msrb.mxu1 %v1827_v3 }
 0x787   : > { %7999 = vmatmul.msk.f32.vlgmr.msrb.gmra.mxu1 %vm925_vm0, %v9202_v56 }
 0x788   : > { %v9209_v6 = vpop.eup %8442  ;;  %1972 = vmatpush.msra.mxu1 %v1223_v5 }
 0x789   : > { %v2179_v63 = vsel %vm925_vm0, %v9209_v6, 0.0 }
 0x78a   : > { %8028 = vmatpush.xpose.msk.msrb.mxu1 %vm925_vm0, %v9178_v58  ;;  %2180 = vadd.xlane.f32.xlu1 %v2179_v63 }
 0x790   : > { %v1585_v22 = vpop.permute.xlu1 %1584 }
 0x791   : > { %2320 = vrot.lane.b32.xlu0 %v8993_v19, %s11062_s5  ;;  %7991 = vmatmul.msk.f32.vlgmr.msrb.gmra.mxu0 %vm925_vm0, %v1585_v22  ;;  %s11134_s5 = smov 56  }
 0x799   : > { %2489 = vrot.lane.b32.xlu0 %v8987_v17, %s11129_s2 }
 0x79d   : > { %2459 = vrot.lane.b32.xlu2 %v8983_v16, %s11130_s0 }
 0x7a1   : > { %2517 = vrot.lane.b32.xlu0 %v8993_v19, %s11129_s2 }
 0x7a3   : > { %2487 = vrot.lane.b32.xlu1 %v8987_v17, %s11130_s0 }
 0x7a5   : > { %2515 = vrot.lane.b32.xlu2 %v8993_v19, %s11130_s0 }
 0x7aa   : > { %v1464_v58 = vpop.f32.mrf.mxu0 }
 0x7ab   : > { %8006 = vmatmul.msk.f32.vlgmr.msra.gmra.mxu1 %vm925_vm0, %v1464_v58 }
 0x7b3   : > { %8007 = vmatmul.msk.f32.gmra.mxu1 %vm925_vm0, %v9120_v0 }
 0x7bb   : > { %8008 = vmatmul.msk.f32.gmra.mxu1 %vm925_vm0, %v9084_v49 }
 0x7c3   : > { %8009 = vmatmul.msk.f32.gmra.mxu1 %vm925_vm0, %v9082_v48 }
 0x7cb   : > { %8029 = vmatmul.msk.f32.vlgmr.msrb.gmra.mxu1 %vm925_vm0, %v2432_v8 }
 0x7f0   : > { %v2172_v10 = vpop.xlane.xlu0 %2171 }
 0x7f1   : > { %8444 = vrcp.f32 %v2172_v10  ;;  %v2193_v0 = vand.u32 2147483648, %v2172_v10  ;;  %v2191_v49 = vand.u32 2147483647, %v2172_v10  ;;  %vm2187_vm13 = vweird.f32 %v2172_v10 }
 0x7f3   : > { %v2194_v30 = vor.u32 1.1754944e-38, %v2193_v0  ;;  %vm2192_vm15 = vcmp.eq.f32.partialorder %v2191_v49, 8.507059e+37 }
 0x7f5   : > { %v2178_v45 = vpop.xlane.xlu1 %2177 }
 0x7f6   : > { %8446 = vrcp.f32 %v2178_v45  ;;  %v2223_v41 = vand.u32 2147483648, %v2178_v45  ;;  %v2221_v43 = vand.u32 2147483647, %v2178_v45  ;;  %vm2217_vm6 = vweird.f32 %v2178_v45 }
 0x7f7   : > { %v8445_v44 = vpop.eup %8444 }
 0x7f8   : > { %v2183_v12 = vmul.f32 %v8445_v44, %v2172_v10  ;;  %v2175_v13 = vpop.xlane.xlu2 %2174  ;;  %vm2188_vm12 = vweird.f32 %v8445_v44  ;;  %v2224_v3 = vor.u32 1.1754944e-38, %v2223_v41  ;;  %vm2222_vm9 = vcmp.eq.f32.partialorder %v2221_v43, 8.507059e+37 }
 0x7f9   : > { %8448 = vrcp.f32 %v2175_v13  ;;  %vm2189_vm14 = vmor %vm2187_vm13, %vm2188_vm12  ;;  %v2208_v42 = vand.u32 2147483648, %v2175_v13  ;;  %v2206_v59 = vand.u32 2147483647, %v2175_v13  ;;  %vm2202_vm10 = vweird.f32 %v2175_v13 }
 0x7fa   : > { %v2184_v15 = vsub.f32 1.0, %v2183_v12 }
 0x7fb   : > { %v2209_v63 = vor.u32 1.1754944e-38, %v2208_v42  ;;  %vm2207_vm12 = vcmp.eq.f32.partialorder %v2206_v59, 8.507059e+37 }
 0x7fc   : > { %v8447_v9 = vpop.eup %8446  ;;  %v2185_v18 = vmul.f32 %v8445_v44, %v2184_v15 }
 0x7fd   : > { %v2213_v23 = vmul.f32 %v8447_v9, %v2178_v45  ;;  %v2181_v26 = vpop.xlane.xlu1 %2180  ;;  %vm2218_vm4 = vweird.f32 %v8447_v9 }
 0x7fe   : > { %v2186_v48 = vadd.f32 %v8445_v44, %v2185_v18  ;;  %8450 = vrcp.f32 %v2181_v26  ;;  %vm9237_vm7 = vmor %vm2217_vm6, %vm2218_vm4  ;;  %v2238_v10 = vand.u32 2147483648, %v2181_v26 }
 0x7ff   : > { %v8449_v27 = vpop.eup %8448  ;;  %v2214_v36 = vsub.f32 1.0, %v2213_v23 }
 0x800   : > { %v2190_v37 = vsel %vm2189_vm14, %v8445_v44, %v2186_v48  ;;  %v2198_v38 = vmul.f32 %v8449_v27, %v2175_v13  ;;  %vm2203_vm8 = vweird.f32 %v8449_v27  ;;  %v2236_v44 = vand.u32 2147483647, %v2181_v26  ;;  %v2460_v23 = vpop.permute.xlu2 %2459 }
 0x801   : > { %v2215_v39 = vmul.f32 %v8447_v9, %v2214_v36  ;;  %v2195_v25 = vsel %vm2192_vm15, %v2194_v30, %v2190_v37  ;;  %vm2204_vm11 = vmor %vm2202_vm10, %vm2203_vm8  ;;  %vm2232_vm14 = vweird.f32 %v2181_v26  ;;  %v2239_v13 = vor.u32 1.1754944e-38, %v2238_v10 }
 0x802   : > { %v2199_v50 = vsub.f32 1.0, %v2198_v38  ;;  %v2196_v33 = vmul.f32 %v9189_v4, %v2195_v25  ;;  %vm2237_vm4 = vcmp.eq.f32.partialorder %v2236_v44, 8.507059e+37 }
 0x803   : > { %v2216_v51 = vadd.f32 %v8447_v9, %v2215_v39  ;;  %v2321_v52 = vpop.permute.xlu0 %2320 }
 0x804   : > { %v8451_v46 = vpop.eup %8450  ;;  %v2200_v57 = vmul.f32 %v8449_v27, %v2199_v50  ;;  %8019 = vmatmul.msk.f32.vlgmr.msrb.gmra.mxu2 %vm925_vm0, %v2196_v33  ;;  %2341 = vmatpush.msra.mxu3 %v2321_v52 }
 0x805   : > { %v2220_v1 = vsel %vm9237_vm7, %v8447_v9, %v2216_v51  ;;  %v2228_v4 = vmul.f32 %v8451_v46, %v2181_v26  ;;  %8030 = vmatpush.xpose.msk.msrb.mxu2 %vm925_vm0, %v2462_v7  ;;  %vm2233_vm13 = vweird.f32 %v8451_v46 }
 0x806   : > { %v2201_v5 = vadd.f32 %v8449_v27, %v2200_v57  ;;  %v2225_v58 = vsel %vm2222_vm9, %v2224_v3, %v2220_v1  ;;  %vm2234_vm15 = vmor %vm2232_vm14, %vm2233_vm13 }
 0x807   : > { %v2229_v22 = vsub.f32 1.0, %v2228_v4  ;;  %v2226_v0 = vmul.f32 %v9193_v53, %v2225_v58 }
 0x808   : > { %v2205_v8 = vsel %vm2204_vm11, %v8449_v27, %v2201_v5  ;;  %v2516_v39 = vpop.permute.xlu2 %2515 }
 0x809   : > { %v2230_v45 = vmul.f32 %v8451_v46, %v2229_v22  ;;  %v2210_v12 = vsel %vm2207_vm12, %v2209_v63, %v2205_v8 }
 0x80a   : > { %v2211_v15 = vmul.f32 %v9197_v60, %v2210_v12 }
 0x80b   : > { %v2231_v9 = vadd.f32 %v8451_v46, %v2230_v45  ;;  %v2490_v7 = vpop.permute.xlu0 %2489 }
 0x80c   : > { %8020 = vmatmul.msk.f32.vlgmr.msrb.gmra.mxu3 %vm925_vm0, %v2211_v15  ;;  %8021 = vmatmul.msk.f32.vlgmr.msra.gmra.mxu2 %vm925_vm0, %v2226_v0  ;;  %v2391_v18 = vadd.f32 %v2211_v15, %v2196_v33 }
 0x80d   : > { %v2235_v49 = vsel %vm2234_vm15, %v8451_v46, %v2231_v9  ;;  %8032 = vmatpush.xpose.msk.msrb.mxu3 %vm925_vm0, %v2490_v7 }
 0x80e   : > { %v1609_v48 = vpop.f32.mrf.mxu0  ;;  %v2240_v27 = vsel %vm2237_vm4, %v2239_v13, %v2235_v49  ;;  %v2392_v60 = vadd.f32 %v2391_v18, %v2226_v0 }
 0x80f   : > { %v1696_v30 = vmul.f32 0.001, %v1609_v48  ;;  %v2241_v53 = vmul.f32 %v9209_v6, %v2240_v27  ;;  %v9261_v6 = vpop.f32.mrf.mxu1 }
 0x811   : > { %v1700_v26 = vsel %vm9017_vm5, %v1696_v30, -1e+30  ;;  %v9253_v36 = vadd.f32 %v2392_v60, %v2241_v53  ;;  %v8341_v30 = vpack.i.bf16 %v8983_v16, %v8979_v14 }
 0x812   : > { %v1704_v37 = vsel %vm925_vm0, %v1700_v26, -inf }
 0x813   : > { %11133 = vst [vmem:[#allocation6_spill] sm:$0xff] %v9253_v36  ;;  %1705 = vmax.xlane.f32.xlu0 %v1704_v37  ;;  %v2518_v38 = vpop.permute.xlu0 %2517 }
 0x814   : > { %8022 = vmatmul.msk.f32.vlgmr.msra.gmra.mxu3 %vm925_vm0, %v2241_v53  ;;  %8031 = vmatmul.msk.f32.vlgmr.msrb.gmra.mxu2 %vm925_vm0, %v2460_v23 }
 0x815   : > { %8034 = vmatpush.xpose.msk.msra.mxu1 %vm925_vm0, %v2518_v38  ;;  %v2488_v41 = vpop.permute.xlu1 %2487 }
 0x818   : > { %8035 = vmatmul.msk.f32.vlgmr.msra.gmra.mxu1 %vm925_vm0, %v2516_v39 }
 0x81c   : > { %8033 = vmatmul.msk.f32.vlgmr.msrb.gmra.mxu3 %vm925_vm0, %v2488_v41 }
 0x828   : > { %v9263_v25 = vpop.f32.mrf.mxu1 }
 0x830   : > { %v9265_v43 = vpop.f32.mrf.mxu1 }
 0x838   : > { %v9267_v50 = vpop.f32.mrf.mxu1 }
 0x840   : > { %v9269_v33 = vpop.f32.mrf.mxu1 }
 0x848   : > { %v2456_v51 = vpop.f32.mrf.mxu1 }
 0x849   : > { %v2543_v42 = vmul.f32 0.001, %v2456_v51 }
 0x84b   : > { %v2547_v52 = vsel %vm9017_vm5, %v2543_v42, -1e+30 }
 0x84c   : > { %v2551_v46 = vsel %vm925_vm0, %v2547_v52, -inf }
 0x84d   : > { %2552 = vmax.xlane.f32.xlu2 %v2551_v46 }
 0x886   : > { %v1706_v54 = vpop.xlane.xlu0 %1705 }
 0x887   : > { %v1716_v57 = vsub.f32 %v1700_v26, %v1706_v54  ;;  %v9274_v59 = vpop.f32.mrf.mxu2 }
 0x889   : > { %v1720_v1 = vmul.f32 1.442695, %v1716_v57 }
 0x88b   : > { %8452 = vpow2.f32 %v1720_v1 }
 0x88f   : > { %v9276_v3 = vpop.f32.mrf.mxu3  ;;  %v9278_v4 = vpop.f32.mrf.mxu2 }
 0x891   : > { %v8453_v5 = vpop.eup %8452 }
 0x892   : > { %v1728_v63 = vsel %vm925_vm0, %v8453_v5, 0.0 }
 0x893   : > { %1729 = vadd.xlane.f32.xlu0 %v1728_v63 }
 0x895   : > { %v2540_v15 = vpop.f32.mrf.mxu1 }
 0x896   : > { %v2546_v7 = vmul.f32 0.001, %v2540_v15 }
 0x897   : > { %v9281_v22 = vpop.f32.mrf.mxu3  ;;  %v2484_v58 = vpop.f32.mrf.mxu2 }
 0x898   : > { %v2544_v8 = vmul.f32 0.001, %v2484_v58  ;;  %v2550_v13 = vsel %vm9017_vm5, %v2546_v7, -1e+30 }
 0x899   : > { %v2560_v18 = vsel %vm925_vm0, %v2550_v13, -inf }
 0x89a   : > { %v2548_v10 = vsel %vm9017_vm5, %v2544_v8, -1e+30 }
 0x89b   : > { %v2554_v45 = vsel %vm925_vm0, %v2548_v10, -inf }
 0x89c   : > { %2555 = vmax.xlane.f32.xlu1 %v2554_v45 }
 0x89f   : > { %v2512_v44 = vpop.f32.mrf.mxu3 }
 0x8a0   : > { %v2545_v12 = vmul.f32 0.001, %v2512_v44 }
 0x8a2   : > { %v2549_v0 = vsel %vm9017_vm5, %v2545_v12, -1e+30 }
 0x8a3   : > { %v2557_v9 = vsel %vm925_vm0, %v2549_v0, -inf }
 0x8a4   : > { %2558 = vmax.xlane.f32.xlu2 %v2557_v9 }
 0x8a7   : > { %1800 = vrot.lane.b32.xlu0 %v8979_v14, %s11134_s5 }
 0x8ac   : > { %2561 = vmax.xlane.f32.xlu2 %v2560_v18 }
 0x8c0   : > { %v2553_v49 = vpop.xlane.xlu2 %2552 }
 0x8c1   : > { %v2563_v23 = vsub.f32 %v2547_v52, %v2553_v49 }
 0x8c3   : > { %v2567_v48 = vmul.f32 1.442695, %v2563_v23 }
 0x8c5   : > { %8454 = vpow2.f32 %v2567_v48 }
 0x8cb   : > { %v9294_v27 = vpop.eup %8454 }
 0x8cc   : > { %v2575_v60 = vsel %vm925_vm0, %v9294_v27, 0.0 }
 0x8cd   : > { %2576 = vadd.xlane.f32.xlu1 %v2575_v60 }
 0x8e6   : > { %8342 = vrot.lane.b32.xlu1 %v8341_v30, %s11064_s18 }
 0x8ee   : > { %2725 = vrot.lane.b32.xlu1 %v8993_v19, %s11064_s18 }
 0x906   : > { %v1730_v53 = vpop.xlane.xlu0 %1729 }
 0x907   : > { %8456 = vrcp.f32 %v1730_v53  ;;  %v1751_v51 = vand.u32 2147483648, %v1730_v53  ;;  %v1749_v52 = vand.u32 2147483647, %v1730_v53  ;;  %vm1745_vm7 = vweird.f32 %v1730_v53 }
 0x909   : > { %v1752_v14 = vor.u32 1.1754944e-38, %v1751_v51  ;;  %vm1750_vm9 = vcmp.eq.f32.partialorder %v1749_v52, 8.507059e+37  ;;  %v8672_v52 = vld [vmem:[%s8858_s29] sm:$0xff] }
 0x90d   : > { %v8457_v26 = vpop.eup %8456 }
 0x90e   : > { %v1741_v37 = vmul.f32 %v8457_v26, %v1730_v53  ;;  %vm1746_vm6 = vweird.f32 %v8457_v26 }
 0x90f   : > { %v2556_v38 = vpop.xlane.xlu1 %2555  ;;  %vm1747_vm8 = vmor %vm1745_vm7, %vm1746_vm6 }
 0x910   : > { %v1742_v39 = vsub.f32 1.0, %v1741_v37  ;;  %v2564_v41 = vsub.f32 %v2548_v10, %v2556_v38 }
 0x912   : > { %v1743_v42 = vmul.f32 %v8457_v26, %v1742_v39  ;;  %v2569_v46 = vmul.f32 1.442695, %v2564_v41 }
 0x914   : > { %v1744_v54 = vadd.f32 %v8457_v26, %v1743_v42  ;;  %8458 = vpow2.f32 %v2569_v46  ;;  %v1224_v46 = vld [vmem:[%s11128_s6 + $0x8] sm:$0xff] }
 0x916   : > { %v1748_v16 = vsel %vm1747_vm8, %v8457_v26, %v1744_v54 }
 0x917   : > { %v2559_v19 = vpop.xlane.xlu2 %2558  ;;  %v1753_v57 = vsel %vm1750_vm9, %v1752_v14, %v1748_v16  ;;  %v1225_v14 = vld [vmem:[%s11128_s6 + $0x10] sm:$0xff] }
 0x918   : > { %v2565_v1 = vsub.f32 %v2549_v0, %v2559_v19  ;;  %v9303_v63 = vmul.f32 %v8453_v5, %v1753_v57 }
 0x919   : > { %v1801_v58 = vpop.permute.xlu0 %1800 }
 0x91a   : > { %v9305_v8 = vpop.eup %8458  ;;  %v2571_v10 = vmul.f32 1.442695, %v2565_v1  ;;  %1821 = vmatpush.msra.mxu0 %v1801_v58 }
 0x91b   : > { %7998 = vmatmul.msk.f32.vlgmr.msra.gmra.mxu0 %vm925_vm0, %v9303_v63  ;;  %v2578_v45 = vsel %vm925_vm0, %v9305_v8, 0.0 }
 0x91c   : > { %8460 = vpow2.f32 %v2571_v10  ;;  %2579 = vadd.xlane.f32.xlu2 %v2578_v45  ;;  %1931 = vmatpush.msrb.mxu0 %v1224_v46 }
 0x91e   : > { %2373 = vmatpush.msra.mxu0 %v1225_v14 }
 0x91f   : > { %v2562_v44 = vpop.xlane.xlu2 %2561 }
 0x920   : > { %v2566_v12 = vsub.f32 %v2550_v13, %v2562_v44 }
 0x922   : > { %v9311_v15 = vpop.eup %8460  ;;  %v2573_v0 = vmul.f32 1.442695, %v2566_v12 }
 0x923   : > { %v2581_v5 = vsel %vm925_vm0, %v9311_v15, 0.0 }
 0x924   : > { %8462 = vpow2.f32 %v2573_v0  ;;  %2582 = vadd.xlane.f32.xlu2 %v2581_v5 }
 0x92a   : > { %v9315_v9 = vpop.eup %8462 }
 0x92b   : > { %v2584_v7 = vsel %vm925_vm0, %v9315_v9, 0.0 }
 0x92c   : > { %2585 = vadd.xlane.f32.xlu0 %v2584_v7 }
 0x93c   : > { %2699 = vrot.lane.b32.xlu2 %v8987_v17, %s11064_s18  ;;  %s11135_s18 = sld [smem:[#allocation25_spill]] }
 0x940   : > { %v2577_v18 = vpop.xlane.xlu1 %2576 }
 0x941   : > { %8464 = vrcp.f32 %v2577_v18  ;;  %v2598_v30 = vand.u32 2147483648, %v2577_v18  ;;  %vm2592_vm11 = vweird.f32 %v2577_v18  ;;  %v2596_v53 = vand.u32 2147483647, %v2577_v18 }
 0x943   : > { %v2599_v37 = vor.u32 1.1754944e-38, %v2598_v30  ;;  %vm2597_vm13 = vcmp.eq.f32.partialorder %v2596_v53, 8.507059e+37 }
 0x947   : > { %v8465_v13 = vpop.eup %8464 }
 0x948   : > { %v2588_v49 = vmul.f32 %v8465_v13, %v2577_v18  ;;  %vm2593_vm10 = vweird.f32 %v8465_v13 }
 0x949   : > { %vm2594_vm12 = vmor %vm2592_vm11, %vm2593_vm10 }
 0x94a   : > { %v2589_v23 = vsub.f32 1.0, %v2588_v49 }
 0x94c   : > { %v2590_v48 = vmul.f32 %v8465_v13, %v2589_v23 }
 0x94e   : > { %v2591_v60 = vadd.f32 %v8465_v13, %v2590_v48 }
 0x950   : > { %v2595_v26 = vsel %vm2594_vm12, %v8465_v13, %v2591_v60 }
 0x951   : > { %v2600_v38 = vsel %vm2597_vm13, %v2599_v37, %v2595_v26 }
 0x952   : > { %v2601_v51 = vmul.f32 %v9294_v27, %v2600_v38 }
 0x958   : > { %v8343_v39 = vpop.permute.xlu1 %8342 }
 0x959   : > { %v8345_v41 = vunpack.i.h.bf16 %v8343_v39  ;;  %v8344_v17 = vunpack.i.l.bf16 %v8343_v39 }
 0x95b   : > { %2668 = vmatpush.msra.mxu2 %v8344_v17  ;;  %2694 = vmatpush.msra.mxu3 %v8345_v41 }
 0x95c   : > { %8036 = vmatmul.msk.f32.vlgmr.msra.gmra.mxu2 %vm925_vm0, %v2601_v51 }
 0x960   : > { %v2726_v42 = vpop.permute.xlu1 %2725 }
 0x961   : > { %2746 = vmatpush.msrb.mxu2 %v2726_v42 }
 0x963   : > { %3110 = vmatpush.msra.mxu2 %v8672_v52 }
 0x98f   : > { %v2580_v54 = vpop.xlane.xlu2 %2579 }
 0x990   : > { %8466 = vrcp.f32 %v2580_v54  ;;  %v2613_v10 = vand.u32 2147483648, %v2580_v54  ;;  %v2611_v45 = vand.u32 2147483647, %v2580_v54  ;;  %vm2607_vm15 = vweird.f32 %v2580_v54 }
 0x992   : > { %v2614_v5 = vor.u32 1.1754944e-38, %v2613_v10  ;;  %vm2612_vm6 = vcmp.eq.f32.partialorder %v2611_v45, 8.507059e+37 }
 0x996   : > { %v8467_v27 = vpop.eup %8466 }
 0x997   : > { %v2603_v16 = vmul.f32 %v8467_v27, %v2580_v54  ;;  %v2583_v19 = vpop.xlane.xlu2 %2582  ;;  %vm2608_vm14 = vweird.f32 %v8467_v27 }
 0x998   : > { %8468 = vrcp.f32 %v2583_v19  ;;  %v1823_v57 = vpop.f32.mrf.mxu0  ;;  %vm2609_vm4 = vmor %vm2607_vm15, %vm2608_vm14  ;;  %v2628_v48 = vand.u32 2147483648, %v2583_v19  ;;  %v2626_v53 = vand.u32 2147483647, %v2583_v19  ;;  %vm2622_vm8 = vweird.f32 %v2583_v19 }
 0x999   : > { %v2604_v1 = vsub.f32 1.0, %v2603_v16  ;;  %8002 = vmatmul.msk.f32.vlgmr.msrb.gmra.mxu0 %vm925_vm0, %v1823_v57 }
 0x99a   : > { %v2629_v38 = vor.u32 1.1754944e-38, %v2628_v48  ;;  %vm2627_vm10 = vcmp.eq.f32.partialorder %v2626_v53, 8.507059e+37 }
 0x99b   : > { %v2605_v58 = vmul.f32 %v8467_v27, %v2604_v1  ;;  %v1226_v1 = vld [vmem:[%s11128_s6 + $0x18] sm:$0xff] }
 0x99c   : > { %2778 = vmatpush.msrb.mxu3 %v1226_v1 }
 0x99d   : > { %v2606_v44 = vadd.f32 %v8467_v27, %v2605_v58 }
 0x99e   : > { %v8469_v12 = vpop.eup %8468 }
 0x99f   : > { %v2610_v0 = vsel %vm2609_vm4, %v8467_v27, %v2606_v44  ;;  %v2618_v7 = vmul.f32 %v8469_v12, %v2583_v19  ;;  %v2586_v18 = vpop.xlane.xlu0 %2585  ;;  %v2700_v13 = vpop.permute.xlu2 %2699  ;;  %vm2623_vm7 = vweird.f32 %v8469_v12 }
 0x9a0   : > { %8470 = vrcp.f32 %v2586_v18  ;;  %2720 = vmatpush.msrb.mxu1 %v2700_v13  ;;  %v2615_v23 = vsel %vm2612_vm6, %v2614_v5, %v2610_v0  ;;  %vm2624_vm9 = vmor %vm2622_vm8, %vm2623_vm7  ;;  %v2643_v52 = vand.u32 2147483648, %v2586_v18  ;;  %v2641_v54 = vand.u32 2147483647, %v2586_v18 }
 0x9a1   : > { %v2619_v49 = vsub.f32 1.0, %v2618_v7  ;;  %8003 = vmatmul.msk.f32.gmra.mxu0 %vm925_vm0, %v9261_v6  ;;  %v2616_v60 = vmul.f32 %v9305_v8, %v2615_v23  ;;  %vm2637_vm12 = vweird.f32 %v2586_v18  ;;  %v8371_v7 = vld [vmem:[%s11135_s18] ss:$0 sm:$0xff] }
 0x9a2   : > { %v2644_v16 = vor.u32 1.1754944e-38, %v2643_v52  ;;  %vm2642_vm14 = vcmp.eq.f32.partialorder %v2641_v54, 8.507059e+37 }
 0x9a3   : > { %v2620_v30 = vmul.f32 %v8469_v12, %v2619_v49  ;;  %8037 = vmatmul.msk.f32.vlgmr.msra.gmra.mxu3 %vm925_vm0, %v2616_v60  ;;  %v2796_v8 = vadd.f32 %v2616_v60, %v2601_v51  ;;  %v8673_v51 = vld [vmem:[%s8858_s29 + $0x8] sm:$0xff] }
 0x9a5   : > { %v2621_v26 = vadd.f32 %v8469_v12, %v2620_v30 }
 0x9a6   : > { %v8471_v37 = vpop.eup %8470 }
 0x9a7   : > { %v2625_v39 = vsel %vm2624_vm9, %v8469_v12, %v2621_v26  ;;  %v2633_v41 = vmul.f32 %v8471_v37, %v2586_v18  ;;  %vm2638_vm11 = vweird.f32 %v8471_v37 }
 0x9a8   : > { %v2630_v17 = vsel %vm2627_vm10, %v2629_v38, %v2625_v39  ;;  %vm2639_vm13 = vmor %vm2637_vm12, %vm2638_vm11 }
 0x9a9   : > { %v2634_v42 = vsub.f32 1.0, %v2633_v41  ;;  %8004 = vmatmul.msk.f32.gmra.mxu0 %vm925_vm0, %v9159_v62  ;;  %v2631_v6 = vmul.f32 %v9311_v15, %v2630_v17 }
 0x9ab   : > { %v2635_v46 = vmul.f32 %v8471_v37, %v2634_v42  ;;  %8038 = vmatmul.msk.f32.vlgmr.msrb.gmra.mxu1 %vm925_vm0, %v2631_v6  ;;  %v2797_v14 = vadd.f32 %v2796_v8, %v2631_v6 }
 0x9ad   : > { %v2636_v27 = vadd.f32 %v8471_v37, %v2635_v46 }
 0x9af   : > { %v2640_v19 = vsel %vm2639_vm13, %v8471_v37, %v2636_v27 }
 0x9b0   : > { %v2645_v57 = vsel %vm2642_vm14, %v2644_v16, %v2640_v19 }
 0x9b1   : > { %8005 = vmatmul.msk.f32.gmra.mxu0 %vm925_vm0, %v9157_v20  ;;  %v2646_v62 = vmul.f32 %v9315_v9, %v2645_v57 }
 0x9b3   : > { %8039 = vmatmul.msk.f32.vlgmr.msrb.gmra.mxu2 %vm925_vm0, %v2646_v62  ;;  %v9343_v15 = vadd.f32 %v2797_v14, %v2646_v62 }
 0x9b4   : > { %3130 = vmatpush.msrb.mxu2 %v8673_v51 }
 0x9b9   : > { %8023 = vmatmul.msk.f32.vlgmr.msra.gmra.mxu0 %vm925_vm0, %v9274_v59 }
 0x9c1   : > { %8024 = vmatmul.msk.f32.gmra.mxu0 %vm925_vm0, %v9276_v3 }
 0x9c9   : > { %8025 = vmatmul.msk.f32.gmra.mxu0 %vm925_vm0, %v9278_v4 }
 0x9d1   : > { %8026 = vmatmul.msk.f32.gmra.mxu0 %vm925_vm0, %v9281_v22 }
 0x9df   : > { %v2670_v20 = vpop.f32.mrf.mxu2 }
 0x9e0   : > { %8040 = vmatmul.msk.f32.vlgmr.msrb.gmra.mxu3 %vm925_vm0, %v2670_v20 }
 0xa16   : > { %v1933_v10 = vpop.f32.mrf.mxu0 }
 0xa17   : > { %v1975_v12 = vadd.f32 %v9263_v25, %v1933_v10 }
 0xa1e   : > { %v1936_v3 = vpop.f32.mrf.mxu0 }
 0xa1f   : > { %v1978_v48 = vadd.f32 %v9265_v43, %v1936_v3 }
 0xa26   : > { %v2696_v9 = vpop.f32.mrf.mxu3  ;;  %v1939_v45 = vpop.f32.mrf.mxu0 }
 0xa27   : > { %8041 = vmatmul.msk.f32.gmra.mxu3 %vm925_vm0, %v2696_v9  ;;  %v1981_v37 = vadd.f32 %v9267_v50, %v1939_v45 }
 0xa28   : > { %v2722_v59 = vpop.f32.mrf.mxu1 }
 0xa2e   : > { %v1942_v44 = vpop.f32.mrf.mxu0 }
 0xa2f   : > { %8042 = vmatmul.msk.f32.gmra.mxu3 %vm925_vm0, %v2722_v59  ;;  %v1984_v6 = vadd.f32 %v9269_v33, %v1942_v44 }
 0xa36   : > { %v2748_v58 = vpop.f32.mrf.mxu2  ;;  %v2375_v4 = vpop.f32.mrf.mxu0 }
 0xa37   : > { %8043 = vmatmul.msk.f32.gmra.mxu3 %vm925_vm0, %v2748_v58  ;;  %v2387_v22 = vadd.f32 %v2375_v4, %v1975_v12 }
 0xa3e   : > { %v2378_v23 = vpop.f32.mrf.mxu0 }
 0xa3f   : > { %v2388_v60 = vadd.f32 %v2378_v23, %v1978_v48  ;;  %v8674_v23 = vld [vmem:[%s8858_s29 + $0x10] sm:$0xff] }
 0xa46   : > { %v2381_v53 = vpop.f32.mrf.mxu0 }
 0xa4e   : > { %v2384_v43 = vpop.f32.mrf.mxu0 }
 0xa4f   : > { %v2390_v52 = vadd.f32 %v2384_v43, %v1984_v6  ;;  %v8373_v6 = vld [vmem:[%s11018_s13] ss:$0 sm:$0xff] }
 0xa63   : > { %v2780_v0 = vpop.f32.mrf.mxu3 }
 0xa64   : > { %v2792_v5 = vadd.f32 %v2780_v0, %v2387_v22  ;;  %v2955_v0 = vld [vmem:[%s11019_s14 + $0x18] sm:$0xff] }
 0xa65   : > { %2984 = vmatpush.msra.mxu1 %v2955_v0 }
 0xa66   : > { %v2836_v18 = vadd.f32 %v2792_v5, %v8896_v24  ;;  %v2389_v24 = vadd.f32 %v2381_v53, %v1981_v37  ;;  %v2954_v5 = vld [vmem:[%s11019_s14 + $0x10] sm:$0xff] }
 0xa67   : > { %2985 = vmatpush.msra.mxu1 %v2954_v5 }
 0xa68   : > { %v9366_v13 = vadd.f32 %v8371_v7, %v2836_v18  ;;  %v2952_v18 = vld [vmem:[%s11019_s14] sm:$0xff] }
 0xa6a   : > { %v2850_v49 = vsel %vm1064_vm3, %v9366_v13, 0.0 }
 0xa6b   : > { %2851 = vadd.xlane.f32.xlu1 %v2850_v49  ;;  %v8049_v49 = vld [vmem:[%s11111_s9 + $0x8] sm:$0xff] }
 0xa6c   : > { %8050 = vmatmul.msk.f32.vlgmr.msra.gmra.mxu2 %vm925_vm0, %v8049_v49 }
 0xa6d   : > { %3150 = vmatpush.msra.mxu2 %v8674_v23 }
 0xa74   : > { %8051 = vmatmul.msk.f32.vlgmr.msrb.gmra.mxu2 %vm925_vm0, %v8049_v49 }
 0xa7c   : > { %8052 = vmatmul.msk.f32.vlgmr.msra.gmra.mxu2 %vm925_vm0, %v8049_v49 }
 0xaaa   : > { %v2783_v25 = vpop.f32.mrf.mxu3 }
 0xaab   : > { %v2793_v30 = vadd.f32 %v2783_v25, %v2388_v60 }
 0xaad   : > { %v2837_v26 = vadd.f32 %v2793_v30, %v8903_v32  ;;  %v8675_v30 = vld [vmem:[%s8858_s29 + $0x18] sm:$0xff] }
 0xaae   : > { %3170 = vmatpush.msrb.mxu2 %v8675_v30 }
 0xaaf   : > { %v9373_v38 = vadd.f32 %v8371_v7, %v2837_v26  ;;  %8053 = vmatmul.msk.f32.vlgmr.msrb.gmra.mxu2 %vm925_vm0, %v8049_v49 }
 0xab1   : > { %v2853_v39 = vsel %vm1064_vm3, %v9373_v38, 0.0 }
 0xab2   : > { %2854 = vadd.xlane.f32.xlu2 %v2853_v39  ;;  %v2786_v41 = vpop.f32.mrf.mxu3 }
 0xab3   : > { %v2794_v17 = vadd.f32 %v2786_v41, %v2389_v24 }
 0xab5   : > { %v2838_v42 = vadd.f32 %v2794_v17, %v8910_v40  ;;  %v9436_v17 = vld [vmem:[%s11017_s12] ss:$0 sm:$0xff] }
 0xab7   : > { %v9379_v8 = vadd.f32 %v8371_v7, %v2838_v42 }
 0xab9   : > { %v2856_v32 = vsel %vm1064_vm3, %v9379_v8, 0.0 }
 0xaba   : > { %v2789_v50 = vpop.f32.mrf.mxu3  ;;  %2857 = vadd.xlane.f32.xlu0 %v2856_v32 }
 0xabb   : > { %v2795_v46 = vadd.f32 %v2789_v50, %v2390_v52 }
 0xabd   : > { %v2839_v54 = vadd.f32 %v2795_v46, %v8917_v47 }
 0xabf   : > { %v9384_v14 = vadd.f32 %v8371_v7, %v2839_v54  ;;  %v2953_v7 = vld [vmem:[%s11019_s14 + $0x8] sm:$0xff] }
 0xac0   : > { %2986 = vmatpush.msra.mxu1 %v2953_v7 }
 0xac1   : > { %v2859_v27 = vsel %vm1064_vm3, %v9384_v14, 0.0 }
 0xac2   : > { %2860 = vadd.xlane.f32.xlu0 %v2859_v27  ;;  %2987 = vmatpush.msra.mxu1 %v2952_v18 }
 0xade   : > { %v2852_v40 = vpop.xlane.xlu1 %2851 }
 0xadf   : > { %v2862_v33 = vmul.f32 %v2852_v40, %v8921_v55 }
 0xae1   : > { %v2866_v16 = vsub.f32 %v9366_v13, %v2862_v33 }
 0xae3   : > { %v2870_v19 = vmul.f32 %v2866_v16, %v2866_v16 }
 0xae5   : > { %v2874_v57 = vsel %vm1064_vm3, %v2870_v19, 0.0 }
 0xae6   : > { %2875 = vadd.xlane.f32.xlu0 %v2874_v57  ;;  %v3052_v57 = vld [vmem:[%s11021_s16 + $0x78] sm:$0xff] }
 0xae7   : > { %3057 = vmatpush.msrb.mxu0 %v3052_v57  ;;  %v3039_v57 = vld [vmem:[%s11021_s16 + $0x10] sm:$0xff] }
 0xb25   : > { %v2855_v62 = vpop.xlane.xlu2 %2854 }
 0xb26   : > { %v2863_v51 = vmul.f32 %v2855_v62, %v8921_v55  ;;  %v3051_v62 = vld [vmem:[%s11021_s16 + $0x70] sm:$0xff] }
 0xb27   : > { %3058 = vmatpush.msrb.mxu0 %v3051_v62  ;;  %v3038_v62 = vld [vmem:[%s11021_s16 + $0x8] sm:$0xff] }
 0xb28   : > { %v9393_v47 = vsub.f32 %v9373_v38, %v2863_v51 }
 0xb2a   : > { %v2871_v1 = vmul.f32 %v9393_v47, %v9393_v47 }
 0xb2c   : > { %v2877_v20 = vsel %vm1064_vm3, %v2871_v1, 0.0  ;;  %v3050_v1 = vld [vmem:[%s11021_s16 + $0x68] sm:$0xff] }
 0xb2d   : > { %2878 = vadd.xlane.f32.xlu1 %v2877_v20  ;;  %v2858_v9 = vpop.xlane.xlu0 %2857  ;;  %3059 = vmatpush.msrb.mxu0 %v3050_v1  ;;  %v8374_v1 = vld [vmem:[%s11020_s15] ss:$0 sm:$0xff] }
 0xb2e   : > { %v2864_v59 = vmul.f32 %v2858_v9, %v8921_v55 }
 0xb30   : > { %v9400_v58 = vsub.f32 %v9379_v8, %v2864_v59 }
 0xb32   : > { %v2872_v10 = vmul.f32 %v9400_v58, %v9400_v58 }
 0xb34   : > { %v2880_v3 = vsel %vm1064_vm3, %v2872_v10, 0.0 }
 0xb35   : > { %2881 = vadd.xlane.f32.xlu0 %v2880_v3  ;;  %v2861_v45 = vpop.xlane.xlu0 %2860 }
 0xb36   : > { %v2865_v44 = vmul.f32 %v2861_v45, %v8921_v55 }
 0xb38   : > { %v9407_v4 = vsub.f32 %v9384_v14, %v2865_v44 }
 0xb3a   : > { %v2873_v12 = vmul.f32 %v9407_v4, %v9407_v4 }
 0xb3c   : > { %v2883_v22 = vsel %vm1064_vm3, %v2873_v12, 0.0 }
 0xb3d   : > { %2884 = vadd.xlane.f32.xlu2 %v2883_v22 }
 0xb59   : > { %v2876_v48 = vpop.xlane.xlu0 %2875 }
 0xb5a   : > { %v2886_v60 = vmul.f32 %v2876_v48, %v8921_v55 }
 0xb5c   : > { %v2890_v25 = vadd.f32 1e-05, %v2886_v60 }
 0xb5e   : > { %8472 = vrsqrt.f32 %v2890_v25  ;;  %vm2900_vm4 = vweird.f32 %v2890_v25 }
 0xb64   : > { %v8473_v53 = vpop.eup %8472 }
 0xb65   : > { %v2895_v26 = vmul.f32 %v8473_v53, %v2890_v25  ;;  %vm2901_vm15 = vweird.f32 %v8473_v53 }
 0xb66   : > { %vm2902_vm6 = vmor %vm2900_vm4, %vm2901_vm15 }
 0xb67   : > { %v2896_v37 = vmul.f32 %v8473_v53, %v2895_v26 }
 0xb69   : > { %v2897_v24 = vmul.f32 0.5, %v2896_v37 }
 0xb6b   : > { %v2898_v39 = vsub.f32 1.5, %v2897_v24 }
 0xb6d   : > { %v2899_v41 = vmul.f32 %v8473_v53, %v2898_v39 }
 0xb6f   : > { %v2903_v42 = vsel %vm2902_vm6, %v8473_v53, %v2899_v41 }
 0xb70   : > { %v2934_v43 = vmul.f32 %v2903_v42, %v2866_v16 }
 0xb72   : > { %v2941_v52 = vmul.f32 %v9436_v17, %v2934_v43 }
 0xb74   : > { %v2948_v32 = vadd.f32 %v8373_v6, %v2941_v52 }
 0xb76   : > { %8045 = vmatmul.msk.f32.vlgmr.msra.gmra.mxu1 %vm1064_vm3, %v2948_v32 }
 0xba0   : > { %v2879_v50 = vpop.xlane.xlu1 %2878 }
 0xba1   : > { %v2887_v46 = vmul.f32 %v2879_v50, %v8921_v55  ;;  %v3048_v50 = vld [vmem:[%s11021_s16 + $0x58] sm:$0xff] }
 0xba3   : > { %v2891_v54 = vadd.f32 1e-05, %v2887_v46  ;;  %v3047_v46 = vld [vmem:[%s11021_s16 + $0x50] sm:$0xff] }
 0xba5   : > { %8474 = vrsqrt.f32 %v2891_v54  ;;  %vm2910_vm8 = vweird.f32 %v2891_v54 }
 0xba8   : > { %v2882_v27 = vpop.xlane.xlu0 %2881 }
 0xba9   : > { %v2888_v40 = vmul.f32 %v2882_v27, %v8921_v55  ;;  %v3042_v27 = vld [vmem:[%s11021_s16 + $0x28] sm:$0xff] }
 0xbab   : > { %v8475_v33 = vpop.eup %8474  ;;  %v2892_v19 = vadd.f32 1e-05, %v2888_v40  ;;  %v3112_v40 = vpop.f32.mrf.mxu2 }
 0xbac   : > { %v2905_v16 = vmul.f32 %v8475_v33, %v2891_v54  ;;  %vm2911_vm7 = vweird.f32 %v8475_v33  ;;  %v3043_v54 = vld [vmem:[%s11021_s16 + $0x30] sm:$0xff] }
 0xbad   : > { %8476 = vrsqrt.f32 %v2892_v19  ;;  %vm2912_vm9 = vmor %vm2910_vm8, %vm2911_vm7  ;;  %vm2920_vm11 = vweird.f32 %v2892_v19 }
 0xbae   : > { %v2906_v51 = vmul.f32 %v8475_v33, %v2905_v16  ;;  %v3040_v16 = vld [vmem:[%s11021_s16 + $0x18] sm:$0xff] }
 0xbb0   : > { %v2907_v20 = vmul.f32 0.5, %v2906_v51  ;;  %v2885_v9 = vpop.xlane.xlu2 %2884  ;;  %v3037_v51 = vld [vmem:[%s11021_s16] sm:$0xff] }
 0xbb1   : > { %v2889_v59 = vmul.f32 %v2885_v9, %v8921_v55 }
 0xbb2   : > { %v2908_v10 = vsub.f32 1.5, %v2907_v20 }
 0xbb3   : > { %v8477_v3 = vpop.eup %8476  ;;  %v2893_v45 = vadd.f32 1e-05, %v2889_v59 }
 0xbb4   : > { %v2909_v44 = vmul.f32 %v8475_v33, %v2908_v10  ;;  %v2915_v12 = vmul.f32 %v8477_v3, %v2892_v19  ;;  %vm2921_vm10 = vweird.f32 %v8477_v3  ;;  %v3041_v19 = vld [vmem:[%s11021_s16 + $0x20] sm:$0xff] }
 0xbb5   : > { %8478 = vrsqrt.f32 %v2893_v45  ;;  %vm2922_vm12 = vmor %vm2920_vm11, %vm2921_vm10  ;;  %vm2930_vm14 = vweird.f32 %v2893_v45 }
 0xbb6   : > { %v2916_v22 = vmul.f32 %v8477_v3, %v2915_v12  ;;  %v2913_v0 = vsel %vm2912_vm9, %v8475_v33, %v2909_v44  ;;  %v8054_v33 = vld [vmem:[%s11114_s30 + $0x4] sm:$0x7] }
 0xbb7   : > { %v2935_v5 = vmul.f32 %v2913_v0, %v9393_v47  ;;  %8056 = vmatpush.msk.msra.mxu3 %vm876_vm1, %v8054_v33 }
 0xbb8   : > { %v2917_v7 = vmul.f32 0.5, %v2916_v22  ;;  %8057 = vmatmul.msk.f32.vlgmr.msra.gmra.mxu3 %vm863_vm2, %v3112_v40 }
 0xbb9   : > { %v2942_v18 = vmul.f32 %v9436_v17, %v2935_v5 }
 0xbba   : > { %v2918_v49 = vsub.f32 1.5, %v2917_v7  ;;  %v3132_v7 = vpop.f32.mrf.mxu2 }
 0xbbb   : > { %v8479_v23 = vpop.eup %8478  ;;  %v2949_v48 = vadd.f32 %v8373_v6, %v2942_v18 }
 0xbbc   : > { %v2919_v60 = vmul.f32 %v8477_v3, %v2918_v49  ;;  %v2925_v25 = vmul.f32 %v8479_v23, %v2893_v45  ;;  %vm2931_vm13 = vweird.f32 %v8479_v23 }
 0xbbd   : > { %8046 = vmatmul.msk.f32.gmra.mxu1 %vm1064_vm3, %v2949_v48  ;;  %vm2932_vm15 = vmor %vm2930_vm14, %vm2931_vm13 }
 0xbbe   : > { %v2926_v30 = vmul.f32 %v8479_v23, %v2925_v25  ;;  %v2923_v53 = vsel %vm2922_vm12, %v8477_v3, %v2919_v60 }
 0xbbf   : > { %v2936_v26 = vmul.f32 %v2923_v53, %v9400_v58  ;;  %v3049_v58 = vld [vmem:[%s11021_s16 + $0x60] sm:$0xff] }
 0xbc0   : > { %v2927_v37 = vmul.f32 0.5, %v2926_v30  ;;  %3060 = vmatpush.msrb.mxu0 %v3049_v58  ;;  %8058 = vmatmul.msk.f32.gmra.mxu3 %vm863_vm2, %v3132_v7 }
 0xbc1   : > { %v2943_v47 = vmul.f32 %v9436_v17, %v2936_v26 }
 0xbc2   : > { %v2928_v24 = vsub.f32 1.5, %v2927_v37  ;;  %3061 = vmatpush.msrb.mxu0 %v3048_v50  ;;  %v3152_v18 = vpop.f32.mrf.mxu2 }
 0xbc3   : > { %v2950_v39 = vadd.f32 %v8373_v6, %v2943_v47 }
 0xbc4   : > { %v2929_v41 = vmul.f32 %v8479_v23, %v2928_v24  ;;  %3062 = vmatpush.msrb.mxu0 %v3047_v46 }
 0xbc5   : > { %8047 = vmatmul.msk.f32.gmra.mxu1 %vm1064_vm3, %v2950_v39 }
 0xbc6   : > { %v2933_v42 = vsel %vm2932_vm15, %v8479_v23, %v2929_v41 }
 0xbc7   : > { %v2937_v43 = vmul.f32 %v2933_v42, %v9407_v4  ;;  %v3046_v4 = vld [vmem:[%s11021_s16 + $0x48] sm:$0xff] }
 0xbc8   : > { %3063 = vmatpush.msrb.mxu0 %v3046_v4  ;;  %8059 = vmatmul.msk.f32.gmra.mxu3 %vm863_vm2, %v3152_v18 }
 0xbc9   : > { %v2944_v52 = vmul.f32 %v9436_v17, %v2937_v43  ;;  %v3045_v17 = vld [vmem:[%s11021_s16 + $0x40] sm:$0xff] }
 0xbca   : > { %3064 = vmatpush.msrb.mxu0 %v3045_v17  ;;  %v3172_v60 = vpop.f32.mrf.mxu2 }
 0xbcb   : > { %v2951_v32 = vadd.f32 %v8373_v6, %v2944_v52  ;;  %v3044_v6 = vld [vmem:[%s11021_s16 + $0x38] sm:$0xff] }
 0xbcc   : > { %3065 = vmatpush.msrb.mxu0 %v3044_v6 }
 0xbcd   : > { %8048 = vmatmul.msk.f32.gmra.mxu1 %vm1064_vm3, %v2951_v32 }
 0xbce   : > { %3066 = vmatpush.msrb.mxu0 %v3043_v54 }
 0xbd0   : > { %3067 = vmatpush.msrb.mxu0 %v3042_v27  ;;  %8060 = vmatmul.msk.f32.gmra.mxu3 %vm863_vm2, %v3172_v60 }
 0xbd2   : > { %3068 = vmatpush.msrb.mxu0 %v3041_v19 }
 0xbd4   : > { %3069 = vmatpush.msrb.mxu0 %v3040_v16 }
 0xbd6   : > { %3070 = vmatpush.msrb.mxu0 %v3039_v57 }
 0xbd8   : > { %3071 = vmatpush.msrb.mxu0 %v3038_v62 }
 0xbda   : > { %3072 = vmatpush.msrb.mxu0 %v3037_v51 }
 0xbf3   : > { %v2989_v20 = vpop.f32.mrf.mxu1 }
 0xbf4   : > { %v2990_v9 = vadd.f32 %v8374_v1, %v2989_v20 }
 0xbf6   : > { %v3001_v59 = vmul.f32 %v2990_v9, %v2990_v9 }
 0xbf8   : > { %v3005_v10 = vmul.f32 %v3001_v59, %v2990_v9  ;;  %v8376_v59 = vld [vmem:[%s11118_s8 + $0x1] ss:$0 sm:$0xff] }
 0xbfa   : > { %v3009_v3 = vmul.f32 0.044715, %v3005_v10 }
 0xbfc   : > { %v3013_v45 = vadd.f32 %v3009_v3, %v2990_v9 }
 0xbfe   : > { %v3017_v44 = vmul.f32 0.7978846, %v3013_v45 }
 0xc00   : > { %8480 = vtanh.f32 %v3017_v44 }
 0xc06   : > { %v8481_v12 = vpop.eup %8480 }
 0xc07   : > { %v3025_v22 = vadd.f32 1.0, %v8481_v12 }
 0xc09   : > { %v3029_v0 = vmul.f32 0.5, %v3025_v22 }
 0xc0b   : > { %v3033_v5 = vmul.f32 %v3029_v0, %v2990_v9  ;;  %v8375_v9 = vld [vmem:[%s11022_s17] ss:$0 sm:$0xff] }
 0xc0d   : > { %3073 = vmatmul.f32.vlgmr.msrb.gmra.mxu0 %v3033_v5 }
 0xc3a   : > { %v2992_v49 = vpop.f32.mrf.mxu1 }
 0xc3b   : > { %v2993_v23 = vadd.f32 %v8374_v1, %v2992_v49  ;;  %v3214_v10 = vpop.f32.mrf.mxu3 }
 0xc3c   : > { %v3215_v44 = vadd.f32 %v8376_v59, %v3214_v10  ;;  %v8064_v10 = vld [vmem:[%s11119_s28 + $0x28] sm:$0xff] }
 0xc3d   : > { %v3002_v48 = vmul.f32 %v2993_v23, %v2993_v23 }
 0xc3f   : > { %v3006_v25 = vmul.f32 %v3002_v48, %v2993_v23 }
 0xc41   : > { %v3010_v30 = vmul.f32 0.044715, %v3006_v25 }
 0xc42   : > { %v2995_v53 = vpop.f32.mrf.mxu1 }
 0xc43   : > { %v2996_v26 = vadd.f32 %v8374_v1, %v2995_v53  ;;  %v3014_v37 = vadd.f32 %v3010_v30, %v2993_v23  ;;  %v3217_v5 = vpop.f32.mrf.mxu3 }
 0xc44   : > { %v3218_v49 = vadd.f32 %v8376_v59, %v3217_v5 }
 0xc45   : > { %v3003_v47 = vmul.f32 %v2996_v26, %v2996_v26  ;;  %v3018_v24 = vmul.f32 0.7978846, %v3014_v37 }
 0xc47   : > { %8482 = vtanh.f32 %v3018_v24  ;;  %v3007_v39 = vmul.f32 %v3003_v47, %v2996_v26 }
 0xc49   : > { %v3011_v41 = vmul.f32 0.044715, %v3007_v39 }
 0xc4a   : > { %v2998_v42 = vpop.f32.mrf.mxu1 }
 0xc4b   : > { %v2999_v43 = vadd.f32 %v8374_v1, %v2998_v42  ;;  %v3015_v52 = vadd.f32 %v3011_v41, %v2996_v26  ;;  %v3220_v48 = vpop.f32.mrf.mxu3 }
 0xc4c   : > { %v3221_v53 = vadd.f32 %v8376_v59, %v3220_v48  ;;  %v8377_v48 = vld [vmem:[%s11120_s3 + $0x1] ss:$0 sm:$0xff] }
 0xc4d   : > { %v8483_v32 = vpop.eup %8482  ;;  %v3004_v58 = vmul.f32 %v2999_v43, %v2999_v43  ;;  %v3019_v50 = vmul.f32 0.7978846, %v3015_v52 }
 0xc4e   : > { %v3026_v46 = vadd.f32 1.0, %v8483_v32 }
 0xc4f   : > { %8484 = vtanh.f32 %v3019_v50  ;;  %v3008_v4 = vmul.f32 %v3004_v58, %v2999_v43 }
 0xc50   : > { %v3030_v17 = vmul.f32 0.5, %v3026_v46 }
 0xc51   : > { %v3012_v6 = vmul.f32 0.044715, %v3008_v4 }
 0xc52   : > { %v3034_v54 = vmul.f32 %v3030_v17, %v2993_v23 }
 0xc53   : > { %v3016_v27 = vadd.f32 %v3012_v6, %v2999_v43  ;;  %v3223_v47 = vpop.f32.mrf.mxu3 }
 0xc54   : > { %3076 = vmatmul.f32.gmra.mxu0 %v3034_v54  ;;  %v3224_v41 = vadd.f32 %v8376_v59, %v3223_v47  ;;  %v8065_v59 = vld [vmem:[%s11119_s28 + $0x30] sm:$0xff] }
 0xc55   : > { %v8485_v40 = vpop.eup %8484  ;;  %v3020_v33 = vmul.f32 0.7978846, %v3016_v27 }
 0xc56   : > { %v3027_v19 = vadd.f32 1.0, %v8485_v40 }
 0xc57   : > { %8486 = vtanh.f32 %v3020_v33 }
 0xc58   : > { %v3031_v16 = vmul.f32 0.5, %v3027_v19 }
 0xc5a   : > { %v3035_v57 = vmul.f32 %v3031_v16, %v2996_v26 }
 0xc5c   : > { %3079 = vmatmul.f32.gmra.mxu0 %v3035_v57 }
 0xc5d   : > { %v8487_v62 = vpop.eup %8486 }
 0xc5e   : > { %v3028_v51 = vadd.f32 1.0, %v8487_v62 }
 0xc60   : > { %v3032_v1 = vmul.f32 0.5, %v3028_v51 }
 0xc62   : > { %v3036_v20 = vmul.f32 %v3032_v1, %v2999_v43 }
 0xc64   : > { %3082 = vmatmul.f32.gmra.mxu0 %v3036_v20 }
 0xc8a   : > { %v3074_v3 = vpop.f32.mrf.mxu0 }
 0xc8b   : > { %v3075_v45 = vadd.f32 %v8375_v9, %v3074_v3  ;;  %v8063_v3 = vld [vmem:[%s11119_s28 + $0x20] sm:$0xff] }
 0xc8d   : > { %v3086_v12 = vadd.f32 %v3075_v45, %v9366_v13 }
 0xc8f   : > { %v9522_v22 = vadd.f32 %v3215_v44, %v3086_v12 }
 0xc91   : > { %v3234_v0 = vsel %vm1064_vm3, %v9522_v22, 0.0 }
 0xc92   : > { %3235 = vadd.xlane.f32.xlu1 %v3234_v0 }
 0xcd1   : > { %v3077_v7 = vpop.f32.mrf.mxu0 }
 0xcd2   : > { %v3078_v18 = vadd.f32 %v8375_v9, %v3077_v7 }
 0xcd4   : > { %v3087_v23 = vadd.f32 %v3078_v18, %v9373_v38 }
 0xcd6   : > { %v9527_v60 = vadd.f32 %v3218_v49, %v3087_v23 }
 0xcd8   : > { %v3237_v25 = vsel %vm1064_vm3, %v9527_v60, 0.0 }
 0xcd9   : > { %3238 = vadd.xlane.f32.xlu0 %v3237_v25  ;;  %v3080_v13 = vpop.f32.mrf.mxu0 }
 0xcda   : > { %v3081_v30 = vadd.f32 %v8375_v9, %v3080_v13 }
 0xcdc   : > { %v3088_v26 = vadd.f32 %v3081_v30, %v9379_v8  ;;  %v8378_v30 = vld [vmem:[%s11121_s10 + $0x1] ss:$0 sm:$0xff] }
 0xcde   : > { %v9532_v37 = vadd.f32 %v3221_v53, %v3088_v26 }
 0xce0   : > { %v3240_v24 = vsel %vm1064_vm3, %v9532_v37, 0.0 }
 0xce1   : > { %v3083_v39 = vpop.f32.mrf.mxu0  ;;  %3241 = vadd.xlane.f32.xlu2 %v3240_v24 }
 0xce2   : > { %v3084_v38 = vadd.f32 %v8375_v9, %v3083_v39  ;;  %v8066_v9 = vld [vmem:[%s11119_s28 + $0x38] sm:$0xff] }
 0xce3   : > { %3370 = vmatpush.msrb.mxu1 %v8066_v9 }
 0xce4   : > { %v3089_v42 = vadd.f32 %v3084_v38, %v9384_v14 }
 0xce5   : > { %3371 = vmatpush.msrb.mxu1 %v8065_v59 }
 0xce6   : > { %v9537_v43 = vadd.f32 %v3224_v41, %v3089_v42 }
 0xce7   : > { %3372 = vmatpush.msrb.mxu1 %v8064_v10 }
 0xce8   : > { %v3243_v52 = vsel %vm1064_vm3, %v9537_v43, 0.0 }
 0xce9   : > { %3244 = vadd.xlane.f32.xlu1 %v3243_v52  ;;  %3373 = vmatpush.msrb.mxu1 %v8063_v3 }
 0xd05   : > { %v3236_v32 = vpop.xlane.xlu1 %3235 }
 0xd06   : > { %v3246_v8 = vmul.f32 %v3236_v32, %v8921_v55 }
 0xd08   : > { %v3250_v58 = vsub.f32 %v9522_v22, %v3246_v8 }
 0xd0a   : > { %v3254_v50 = vmul.f32 %v3250_v58, %v3250_v58 }
 0xd0c   : > { %v3258_v46 = vsel %vm1064_vm3, %v3254_v50, 0.0 }
 0xd0d   : > { %3259 = vadd.xlane.f32.xlu0 %v3258_v46 }
 0xd4c   : > { %v3239_v4 = vpop.xlane.xlu0 %3238 }
 0xd4d   : > { %v3247_v17 = vmul.f32 %v3239_v4, %v8921_v55 }
 0xd4f   : > { %v9546_v14 = vsub.f32 %v9527_v60, %v3247_v17 }
 0xd51   : > { %v3255_v6 = vmul.f32 %v9546_v14, %v9546_v14 }
 0xd53   : > { %v3261_v54 = vsel %vm1064_vm3, %v3255_v6, 0.0 }
 0xd54   : > { %v3242_v27 = vpop.xlane.xlu2 %3241  ;;  %3262 = vadd.xlane.f32.xlu2 %v3261_v54 }
 0xd55   : > { %v3248_v40 = vmul.f32 %v3242_v27, %v8921_v55 }
 0xd57   : > { %v9553_v33 = vsub.f32 %v9532_v37, %v3248_v40 }
 0xd59   : > { %v3256_v19 = vmul.f32 %v9553_v33, %v9553_v33 }
 0xd5b   : > { %v3264_v16 = vsel %vm1064_vm3, %v3256_v19, 0.0 }
 0xd5c   : > { %v3245_v57 = vpop.xlane.xlu1 %3244  ;;  %3265 = vadd.xlane.f32.xlu1 %v3264_v16 }
 0xd5d   : > { %v3249_v62 = vmul.f32 %v3245_v57, %v8921_v55 }
 0xd5f   : > { %v9560_v51 = vsub.f32 %v9537_v43, %v3249_v62 }
 0xd61   : > { %v3257_v1 = vmul.f32 %v9560_v51, %v9560_v51 }
 0xd63   : > { %v3267_v20 = vsel %vm1064_vm3, %v3257_v1, 0.0 }
 0xd64   : > { %3268 = vadd.xlane.f32.xlu0 %v3267_v20 }
 0xd80   : > { %v3260_v45 = vpop.xlane.xlu0 %3259 }
 0xd81   : > { %v3270_v44 = vmul.f32 %v3260_v45, %v8921_v55 }
 0xd83   : > { %v3274_v12 = vadd.f32 1e-05, %v3270_v44 }
 0xd85   : > { %8488 = vrsqrt.f32 %v3274_v12  ;;  %vm3284_vm6 = vweird.f32 %v3274_v12 }
 0xd8b   : > { %v8489_v0 = vpop.eup %8488 }
 0xd8c   : > { %v3279_v5 = vmul.f32 %v8489_v0, %v3274_v12  ;;  %vm3285_vm4 = vweird.f32 %v8489_v0 }
 0xd8d   : > { %vm3286_vm7 = vmor %vm3284_vm6, %vm3285_vm4 }
 0xd8e   : > { %v3280_v7 = vmul.f32 %v8489_v0, %v3279_v5 }
 0xd90   : > { %v3281_v18 = vmul.f32 0.5, %v3280_v7 }
 0xd92   : > { %v3282_v49 = vsub.f32 1.5, %v3281_v18 }
 0xd94   : > { %v3283_v23 = vmul.f32 %v8489_v0, %v3282_v49 }
 0xd96   : > { %v3287_v25 = vsel %vm3286_vm7, %v8489_v0, %v3283_v23 }
 0xd97   : > { %v3318_v13 = vmul.f32 %v3287_v25, %v3250_v58 }
 0xd99   : > { %v3325_v53 = vmul.f32 %v8377_v48, %v3318_v13 }
 0xd9b   : > { %v3332_v26 = vadd.f32 %v8378_v30, %v3325_v53 }
 0xd9d   : > { %8068 = vmatmul.msk.f32.vlgmr.msrb.gmra.mxu1 %vm1064_vm3, %v3332_v26 }
 0xdc7   : > { %v3263_v47 = vpop.xlane.xlu2 %3262 }
 0xdc8   : > { %v3271_v24 = vmul.f32 %v3263_v47, %v8921_v55 }
 0xdca   : > { %v3275_v39 = vadd.f32 1e-05, %v3271_v24 }
 0xdcc   : > { %8490 = vrsqrt.f32 %v3275_v39  ;;  %vm3294_vm9 = vweird.f32 %v3275_v39 }
 0xdcf   : > { %v3266_v38 = vpop.xlane.xlu1 %3265 }
 0xdd0   : > { %v3272_v41 = vmul.f32 %v3266_v38, %v8921_v55 }
 0xdd2   : > { %v8491_v42 = vpop.eup %8490  ;;  %v3276_v52 = vadd.f32 1e-05, %v3272_v41 }
 0xdd3   : > { %v3289_v32 = vmul.f32 %v8491_v42, %v3275_v39  ;;  %vm3295_vm8 = vweird.f32 %v8491_v42 }
 0xdd4   : > { %8492 = vrsqrt.f32 %v3276_v52  ;;  %vm3296_vm10 = vmor %vm3294_vm9, %vm3295_vm8  ;;  %vm3304_vm12 = vweird.f32 %v3276_v52 }
 0xdd5   : > { %v3290_v8 = vmul.f32 %v8491_v42, %v3289_v32 }
 0xdd7   : > { %v3291_v58 = vmul.f32 0.5, %v3290_v8  ;;  %v3269_v50 = vpop.xlane.xlu0 %3268 }
 0xdd8   : > { %v3273_v46 = vmul.f32 %v3269_v50, %v8921_v55 }
 0xdd9   : > { %v3292_v4 = vsub.f32 1.5, %v3291_v58 }
 0xdda   : > { %v8493_v17 = vpop.eup %8492  ;;  %v3277_v6 = vadd.f32 1e-05, %v3273_v46 }
 0xddb   : > { %v3293_v54 = vmul.f32 %v8491_v42, %v3292_v4  ;;  %v3299_v27 = vmul.f32 %v8493_v17, %v3276_v52  ;;  %vm3305_vm11 = vweird.f32 %v8493_v17 }
 0xddc   : > { %8494 = vrsqrt.f32 %v3277_v6  ;;  %vm3306_vm13 = vmor %vm3304_vm12, %vm3305_vm11  ;;  %vm3314_vm15 = vweird.f32 %v3277_v6 }
 0xddd   : > { %v3300_v40 = vmul.f32 %v8493_v17, %v3299_v27  ;;  %v3297_v19 = vsel %vm3296_vm10, %v8491_v42, %v3293_v54 }
 0xdde   : > { %v3319_v16 = vmul.f32 %v3297_v19, %v9546_v14 }
 0xddf   : > { %v3301_v57 = vmul.f32 0.5, %v3300_v40 }
 0xde0   : > { %v3326_v62 = vmul.f32 %v8377_v48, %v3319_v16 }
 0xde1   : > { %v3302_v1 = vsub.f32 1.5, %v3301_v57 }
 0xde2   : > { %v8495_v20 = vpop.eup %8494  ;;  %v3333_v9 = vadd.f32 %v8378_v30, %v3326_v62 }
 0xde3   : > { %v3303_v59 = vmul.f32 %v8493_v17, %v3302_v1  ;;  %v3309_v10 = vmul.f32 %v8495_v20, %v3277_v6  ;;  %vm3315_vm14 = vweird.f32 %v8495_v20 }
 0xde4   : > { %8069 = vmatmul.msk.f32.gmra.mxu1 %vm1064_vm3, %v3333_v9  ;;  %vm3316_vm4 = vmor %vm3314_vm15, %vm3315_vm14 }
 0xde5   : > { %v3310_v3 = vmul.f32 %v8495_v20, %v3309_v10  ;;  %v3307_v45 = vsel %vm3306_vm13, %v8493_v17, %v3303_v59 }
 0xde6   : > { %v3320_v44 = vmul.f32 %v3307_v45, %v9553_v33  ;;  %v8379_v33 = vld [vmem:[%s11122_s11 + $0x1] ss:$0 sm:$0xff] }
 0xde7   : > { %v3311_v12 = vmul.f32 0.5, %v3310_v3 }
 0xde8   : > { %v3327_v0 = vmul.f32 %v8377_v48, %v3320_v44 }
 0xde9   : > { %v3312_v5 = vsub.f32 1.5, %v3311_v12 }
 0xdea   : > { %v3334_v14 = vadd.f32 %v8378_v30, %v3327_v0 }
 0xdeb   : > { %v3313_v7 = vmul.f32 %v8495_v20, %v3312_v5 }
 0xdec   : > { %8070 = vmatmul.msk.f32.gmra.mxu1 %vm1064_vm3, %v3334_v14 }
 0xded   : > { %v3317_v18 = vsel %vm3316_vm4, %v8495_v20, %v3313_v7 }
 0xdee   : > { %v3321_v49 = vmul.f32 %v3317_v18, %v9560_v51 }
 0xdf0   : > { %v3328_v23 = vmul.f32 %v8377_v48, %v3321_v49 }
 0xdf2   : > { %v3335_v25 = vadd.f32 %v8378_v30, %v3328_v23 }
 0xdf4   : > { %8071 = vmatmul.msk.f32.gmra.mxu1 %vm1064_vm3, %v3335_v25 }
 0xe1a   : > { %v3375_v13 = vpop.f32.mrf.mxu1 }
 0xe1b   : > { %v9597_v53 = vadd.f32 %v8379_v33, %v3375_v13 }
 0xe1d   : > { %3393 = vrot.lane.b32.xlu2 %v9597_v53, %s11136_s20 }
 0xe61   : > { %v3378_v26 = vpop.f32.mrf.mxu1 }
 0xe62   : > { %v9601_v47 = vadd.f32 %v8379_v33, %v3378_v26 }
 0xe64   : > { %3420 = vrot.lane.b32.xlu0 %v9601_v47, %s11136_s20 }
 0xe69   : > { %v3381_v51 = vpop.f32.mrf.mxu1 }
 0xe6a   : > { %v9605_v48 = vadd.f32 %v8379_v33, %v3381_v51 }
 0xe6c   : > { %3447 = vrot.lane.b32.xlu1 %v9605_v48, %s11136_s20 }
 0xe71   : > { %v3384_v30 = vpop.f32.mrf.mxu1 }
 0xe72   : > { %v9609_v24 = vadd.f32 %v8379_v33, %v3384_v30 }
 0xe74   : > { %3474 = vrot.lane.b32.xlu2 %v9609_v24, %s11136_s20 }
 0xe77   : > { %v3394_v39 = vpop.permute.xlu2 %3393 }
 0xe78   : > { %8076 = vmatpush.xpose.msk.msra.mxu2 %vm925_vm0, %v3394_v39 }
 0xe7b   : > { %8077 = vmatmul.msk.f32.vlgmr.msra.gmra.mxu2 %vm925_vm0, %v9597_v53 }
 0xece   : > { %v3475_v41 = vpop.permute.xlu2 %3474 }
 0xed6   : > { %v3421_v38 = vpop.permute.xlu0 %3420 }
 0xed7   : > { %8078 = vmatpush.xpose.msk.msra.mxu0 %vm925_vm0, %v3421_v38 }
 0xeda   : > { %8079 = vmatmul.msk.f32.vlgmr.msra.gmra.mxu0 %vm925_vm0, %v9601_v47 }
 0xedb   : > { %8082 = vmatpush.xpose.msk.msrb.mxu0 %vm925_vm0, %v3475_v41 }
 0xede   : > { %v3448_v42 = vpop.permute.xlu1 %3447 }
 0xedf   : > { %8080 = vmatpush.xpose.msk.msrb.mxu2 %vm925_vm0, %v3448_v42 }
 0xee2   : > { %8081 = vmatmul.msk.f32.vlgmr.msrb.gmra.mxu2 %vm925_vm0, %v9605_v48  ;;  %8083 = vmatmul.msk.f32.vlgmr.msrb.gmra.mxu0 %vm925_vm0, %v9609_v24 }
 0xefe   : > { %v3416_v52 = vpop.f32.mrf.mxu2 }
 0xeff   : > { %v3500_v32 = vmul.f32 0.001, %v3416_v52 }
 0xf01   : > { %v3504_v8 = vsel %vm9017_vm5, %v3500_v32, -1e+30 }
 0xf02   : > { %v3508_v58 = vsel %vm925_vm0, %v3504_v8, -inf }
 0xf03   : > { %3509 = vmax.xlane.f32.xlu0 %v3508_v58 }
 0xf57   : > { %v9628_v50 = vpop.f32.mrf.mxu0 }
 0xf5f   : > { %v3497_v46 = vpop.f32.mrf.mxu0 }
 0xf60   : > { %v3503_v4 = vmul.f32 0.001, %v3497_v46 }
 0xf62   : > { %v3507_v17 = vsel %vm9017_vm5, %v3503_v4, -1e+30 }
 0xf63   : > { %v3517_v6 = vsel %vm925_vm0, %v3507_v17, -inf }
 0xf64   : > { %3518 = vmax.xlane.f32.xlu2 %v3517_v6 }
 0xf65   : > { %v3470_v54 = vpop.f32.mrf.mxu2 }
 0xf66   : > { %v3502_v27 = vmul.f32 0.001, %v3470_v54 }
 0xf68   : > { %v3506_v40 = vsel %vm9017_vm5, %v3502_v27, -1e+30 }
 0xf69   : > { %v3514_v19 = vsel %vm925_vm0, %v3506_v40, -inf }
 0xf6a   : > { %3515 = vmax.xlane.f32.xlu1 %v3514_v19 }
 0xf76   : > { %v3510_v16 = vpop.xlane.xlu0 %3509 }
 0xf77   : > { %v3520_v57 = vsub.f32 %v3504_v8, %v3510_v16 }
 0xf79   : > { %v3524_v62 = vmul.f32 1.442695, %v3520_v57 }
 0xf7b   : > { %8496 = vpow2.f32 %v3524_v62 }
 0xf7c   : > { %3604 = vrot.lane.b32.xlu2 %v9597_v53, %s11137_s21 }
 0xf81   : > { %v8497_v1 = vpop.eup %8496 }
 0xf82   : > { %v3532_v20 = vsel %vm925_vm0, %v8497_v1, 0.0 }
 0xf83   : > { %3533 = vadd.xlane.f32.xlu0 %v3532_v20  ;;  %3656 = vrot.lane.b32.xlu1 %v9605_v48, %s11137_s21 }
 0xf84   : > { %3804 = vrot.lane.b32.xlu2 %v9605_v48, %s11127_s1 }
 0xf8c   : > { %3832 = vrot.lane.b32.xlu2 %v9609_v24, %s11127_s1 }
 0xf94   : > { %4016 = vrot.lane.b32.xlu2 %v9605_v48, %s11134_s5 }
 0xf97   : > { %3806 = vrot.lane.b32.xlu0 %v9605_v48, %s11138_s23 }
 0xf9c   : > { %4248 = vrot.lane.b32.xlu2 %v9605_v48, %s11139_s24 }
 0xfd7   : > { %v3519_v9 = vpop.xlane.xlu2 %3518 }
 0xfd8   : > { %v3523_v59 = vsub.f32 %v3507_v17, %v3519_v9 }
 0xfda   : > { %v3530_v10 = vmul.f32 1.442695, %v3523_v59 }
 0xfdc   : > { %8498 = vpow2.f32 %v3530_v10 }
 0xfdd   : > { %v3516_v3 = vpop.xlane.xlu1 %3515 }
 0xfde   : > { %v3522_v45 = vsub.f32 %v3506_v40, %v3516_v3 }
 0xfdf   : > { %v3605_v44 = vpop.permute.xlu2 %3604 }
 0xfe0   : > { %v3528_v12 = vmul.f32 1.442695, %v3522_v45  ;;  %3625 = vmatpush.msra.mxu2 %v3605_v44 }
 0xfe2   : > { %v8499_v0 = vpop.eup %8498  ;;  %8500 = vpow2.f32 %v3528_v12 }
 0xfe3   : > { %v3541_v5 = vsel %vm925_vm0, %v8499_v0, 0.0 }
 0xfe4   : > { %3542 = vadd.xlane.f32.xlu0 %v3541_v5 }
 0xfe7   : > { %v3805_v8 = vpop.permute.xlu2 %3804 }
 0xfe8   : > { %v9652_v14 = vpop.eup %8500 }
 0xfe9   : > { %v3538_v7 = vsel %vm925_vm0, %v9652_v14, 0.0 }
 0xfea   : > { %3539 = vadd.xlane.f32.xlu1 %v3538_v7 }
 0xfef   : > { %v3833_v62 = vpop.permute.xlu2 %3832 }
 0xff5   : > { %v3657_v18 = vpop.permute.xlu1 %3656 }
 0xff6   : > { %v3534_v49 = vpop.xlane.xlu0 %3533  ;;  %3677 = vmatpush.msrb.mxu2 %v3657_v18 }
 0xff7   : > { %8502 = vrcp.f32 %v3534_v49  ;;  %v3555_v13 = vand.u32 2147483648, %v3534_v49  ;;  %v3553_v51 = vand.u32 2147483647, %v3534_v49  ;;  %vm3549_vm7 = vweird.f32 %v3534_v49 }
 0xff8   : > { %3682 = vrot.lane.b32.xlu0 %v9609_v24, %s11137_s21 }
 0xff9   : > { %v3556_v39 = vor.u32 1.1754944e-38, %v3555_v13  ;;  %vm3554_vm9 = vcmp.eq.f32.partialorder %v3553_v51, 8.507059e+37 }
 0xffd   : > { %v8503_v23 = vpop.eup %8502 }
 0xffe   : > { %v3545_v25 = vmul.f32 %v8503_v23, %v3534_v49  ;;  %vm3550_vm6 = vweird.f32 %v8503_v23 }
 0xfff   : > { %vm3551_vm8 = vmor %vm3549_vm7, %vm3550_vm6 }
0x1000   : > { %v3546_v33 = vsub.f32 1.0, %v3545_v25 }
0x1002   : > { %v3547_v26 = vmul.f32 %v8503_v23, %v3546_v33 }
0x1003   : > { %3834 = vrot.lane.b32.xlu1 %v9609_v24, %s11138_s23 }
0x1004   : > { %v3548_v30 = vadd.f32 %v8503_v23, %v3547_v26 }
0x1006   : > { %v3552_v38 = vsel %vm3551_vm8, %v8503_v23, %v3548_v30  ;;  %v4017_v23 = vpop.permute.xlu2 %4016 }
0x1007   : > { %v3557_v41 = vsel %vm3554_vm9, %v3556_v39, %v3552_v38 }
0x1008   : > { %v9660_v42 = vmul.f32 %v8497_v1, %v3557_v41 }
0x1009   : > { %v3807_v52 = vpop.permute.xlu0 %3806 }
0x100a   : > { %8084 = vmatmul.msk.f32.vlgmr.msra.gmra.mxu2 %vm925_vm0, %v9660_v42 }
0x100b   : > { %8093 = vmatpush.xpose.msk.msra.mxu2 %vm925_vm0, %v3807_v52 }
0x1057   : > { %v3543_v32 = vpop.xlane.xlu0 %3542 }
0x1058   : > { %8504 = vrcp.f32 %v3543_v32  ;;  %v3600_v6 = vand.u32 2147483648, %v3543_v32  ;;  %v3598_v27 = vand.u32 2147483647, %v3543_v32  ;;  %vm3594_vm11 = vweird.f32 %v3543_v32 }
0x105a   : > { %v3601_v57 = vor.u32 1.1754944e-38, %v3600_v6  ;;  %vm3599_vm13 = vcmp.eq.f32.partialorder %v3598_v27, 8.507059e+37 }
0x105d   : > { %v3540_v58 = vpop.xlane.xlu1 %3539 }
0x105e   : > { %v8505_v46 = vpop.eup %8504  ;;  %8506 = vrcp.f32 %v3540_v58  ;;  %v3585_v9 = vand.u32 2147483648, %v3540_v58  ;;  %v3583_v3 = vand.u32 2147483647, %v3540_v58  ;;  %vm3579_vm15 = vweird.f32 %v3540_v58 }
0x105f   : > { %v3590_v4 = vmul.f32 %v8505_v46, %v3543_v32  ;;  %vm3595_vm10 = vweird.f32 %v8505_v46 }
0x1060   : > { %vm3596_vm12 = vmor %vm3594_vm11, %vm3595_vm10  ;;  %v3586_v5 = vor.u32 1.1754944e-38, %v3585_v9  ;;  %vm3584_vm6 = vcmp.eq.f32.partialorder %v3583_v3, 8.507059e+37 }
0x1061   : > { %v3591_v17 = vsub.f32 1.0, %v3590_v4 }
0x1063   : > { %v3592_v54 = vmul.f32 %v8505_v46, %v3591_v17 }
0x1064   : > { %v8507_v40 = vpop.eup %8506 }
0x1065   : > { %v3593_v19 = vadd.f32 %v8505_v46, %v3592_v54  ;;  %v3575_v16 = vmul.f32 %v8507_v40, %v3540_v58  ;;  %vm3580_vm14 = vweird.f32 %v8507_v40 }
0x1066   : > { %vm3581_vm4 = vmor %vm3579_vm15, %vm3580_vm14 }
0x1067   : > { %v3597_v1 = vsel %vm3596_vm12, %v8505_v46, %v3593_v19  ;;  %v3576_v20 = vsub.f32 1.0, %v3575_v16 }
0x1068   : > { %v3602_v59 = vsel %vm3599_vm13, %v3601_v57, %v3597_v1 }
0x1069   : > { %v3577_v10 = vmul.f32 %v8507_v40, %v3576_v20  ;;  %v9665_v45 = vmul.f32 %v8499_v0, %v3602_v59  ;;  %v3501_v59 = vmul.f32 0.001, %v9628_v50 }
0x106a   : > { %v3683_v44 = vpop.permute.xlu0 %3682 }
0x106b   : > { %v3578_v12 = vadd.f32 %v8507_v40, %v3577_v10  ;;  %3703 = vmatpush.msrb.mxu3 %v3683_v44  ;;  %v3505_v10 = vsel %vm9017_vm5, %v3501_v59, -1e+30  ;;  %v4249_v44 = vpop.permute.xlu2 %4248 }
0x106c   : > { %8087 = vmatmul.msk.f32.vlgmr.msrb.gmra.mxu3 %vm925_vm0, %v9665_v45  ;;  %v3511_v3 = vsel %vm925_vm0, %v3505_v10, -inf }
0x106d   : > { %v3582_v7 = vsel %vm3581_vm4, %v8507_v40, %v3578_v12 }
0x106e   : > { %v3587_v18 = vsel %vm3584_vm6, %v3586_v5, %v3582_v7 }
0x106f   : > { %v9670_v49 = vmul.f32 %v9652_v14, %v3587_v18 }
0x1071   : > { %8086 = vmatmul.msk.f32.vlgmr.msrb.gmra.mxu2 %vm925_vm0, %v9670_v49 }
0x1072   : > { %4037 = vmatpush.msrb.mxu2 %v4017_v23 }
0x1075   : > { %v3835_v0 = vpop.permute.xlu1 %3834 }
0x1076   : > { %8095 = vmatpush.xpose.msk.msra.mxu3 %vm925_vm0, %v3835_v0 }
0x1079   : > { %8094 = vmatmul.msk.f32.vlgmr.msra.gmra.mxu2 %vm925_vm0, %v3805_v8  ;;  %8096 = vmatmul.msk.f32.vlgmr.msra.gmra.mxu3 %vm925_vm0, %v3833_v62 }
0x108d   : > { %v9677_v25 = vpop.f32.mrf.mxu2 }
0x10ef   : > { %v9679_v33 = vpop.f32.mrf.mxu3 }
0x10f4   : > { %v9681_v13 = vpop.f32.mrf.mxu2 }
0x10fc   : > { %v3829_v14 = vpop.f32.mrf.mxu2  ;;  %v3857_v26 = vpop.f32.mrf.mxu3 }
0x10fd   : > { %v3862_v51 = vmul.f32 0.001, %v3829_v14  ;;  %v3863_v30 = vmul.f32 0.001, %v3857_v26 }
0x10ff   : > { %v3866_v39 = vsel %vm9017_vm5, %v3862_v51, -1e+30  ;;  %v3867_v38 = vsel %vm9017_vm5, %v3863_v30, -1e+30 }
0x1100   : > { %v3874_v41 = vsel %vm925_vm0, %v3866_v39, -inf  ;;  %v3877_v52 = vsel %vm925_vm0, %v3867_v38, -inf }
0x1101   : > { %3875 = vmax.xlane.f32.xlu0 %v3874_v41  ;;  %3878 = vmax.xlane.f32.xlu1 %v3877_v52 }
0x1115   : > { %3778 = vrot.lane.b32.xlu0 %v9601_v47, %s11138_s23 }
0x111a   : > { %3776 = vrot.lane.b32.xlu1 %v9601_v47, %s11127_s1 }
0x111d   : > { %4192 = vrot.lane.b32.xlu0 %v9597_v53, %s11139_s24 }
0x1122   : > { %4190 = vrot.lane.b32.xlu1 %v9597_v53, %s11140_s25 }
0x1125   : > { %4042 = vrot.lane.b32.xlu0 %v9609_v24, %s11134_s5 }
0x112a   : > { %4246 = vrot.lane.b32.xlu1 %v9605_v48, %s11140_s25 }
0x112d   : > { %4220 = vrot.lane.b32.xlu0 %v9601_v47, %s11139_s24 }
0x1132   : > { %4276 = vrot.lane.b32.xlu1 %v9609_v24, %s11139_s24 }
0x1135   : > { %4274 = vrot.lane.b32.xlu0 %v9609_v24, %s11140_s25 }
0x113d   : > { %3630 = vrot.lane.b32.xlu0 %v9601_v47, %s11137_s21 }
0x1174   : > { %v3876_v32 = vpop.xlane.xlu0 %3875  ;;  %v3879_v8 = vpop.xlane.xlu1 %3878 }
0x1175   : > { %v3882_v58 = vsub.f32 %v3866_v39, %v3876_v32  ;;  %v3883_v4 = vsub.f32 %v3867_v38, %v3879_v8 }
0x1177   : > { %v3888_v46 = vmul.f32 1.442695, %v3882_v58  ;;  %v3890_v17 = vmul.f32 1.442695, %v3883_v4 }
0x1179   : > { %8508 = vpow2.f32 %v3888_v46 }
0x117a   : > { %8510 = vpow2.f32 %v3890_v17 }
0x117f   : > { %v8509_v6 = vpop.eup %8508 }
0x1180   : > { %v3898_v54 = vsel %vm925_vm0, %v8509_v6, 0.0  ;;  %v9710_v27 = vpop.eup %8510 }
0x1181   : > { %3899 = vadd.xlane.f32.xlu2 %v3898_v54  ;;  %v3901_v19 = vsel %vm925_vm0, %v9710_v27, 0.0 }
0x1187   : > { %v3779_v40 = vpop.permute.xlu0 %3778 }
0x1188   : > { %8091 = vmatpush.xpose.msk.msra.mxu1 %vm925_vm0, %v3779_v40 }
0x1189   : > { %3902 = vadd.xlane.f32.xlu2 %v3901_v19 }
0x118c   : > { %v3777_v16 = vpop.permute.xlu1 %3776 }
0x118d   : > { %8092 = vmatmul.msk.f32.vlgmr.msra.gmra.mxu1 %vm925_vm0, %v3777_v16 }
0x118f   : > { %v4193_v57 = vpop.permute.xlu0 %4192 }
0x1190   : > { %8110 = vmatpush.xpose.msk.msra.mxu2 %vm925_vm0, %v4193_v57 }
0x1194   : > { %v4191_v7 = vpop.permute.xlu1 %4190 }
0x1197   : > { %v4043_v62 = vpop.permute.xlu0 %4042 }
0x1198   : > { %4063 = vmatpush.msrb.mxu3 %v4043_v62 }
0x119c   : > { %v4247_v32 = vpop.permute.xlu1 %4246 }
0x119f   : > { %v4221_v1 = vpop.permute.xlu0 %4220 }
0x11a0   : > { %8112 = vmatpush.xpose.msk.msra.mxu3 %vm925_vm0, %v4221_v1 }
0x11a1   : > { %4218 = vrot.lane.b32.xlu2 %v9601_v47, %s11140_s25 }
0x11a4   : > { %v4277_v59 = vpop.permute.xlu1 %4276 }
0x11a7   : > { %v4275_v20 = vpop.permute.xlu0 %4274 }
0x11af   : > { %v3631_v9 = vpop.permute.xlu0 %3630 }
0x11b0   : > { %3651 = vmatpush.msra.mxu0 %v3631_v9 }
0x11ca   : > { %3512 = vmax.xlane.f32.xlu2 %v3511_v3 }
0x11f4   : > { %v3900_v12 = vpop.xlane.xlu2 %3899 }
0x11f5   : > { %8512 = vrcp.f32 %v3900_v12  ;;  %v3945_v14 = vand.u32 2147483648, %v3900_v12  ;;  %v3943_v51 = vand.u32 2147483647, %v3900_v12  ;;  %vm3939_vm8 = vweird.f32 %v3900_v12 }
0x11f7   : > { %v3946_v39 = vor.u32 1.1754944e-38, %v3945_v14  ;;  %vm3944_vm10 = vcmp.eq.f32.partialorder %v3943_v51, 8.507059e+37 }
0x11fb   : > { %v8513_v5 = vpop.eup %8512 }
0x11fc   : > { %v3935_v18 = vmul.f32 %v8513_v5, %v3900_v12  ;;  %v3903_v23 = vpop.xlane.xlu2 %3902  ;;  %vm3940_vm7 = vweird.f32 %v8513_v5 }
0x11fd   : > { %8514 = vrcp.f32 %v3903_v23  ;;  %vm3941_vm9 = vmor %vm3939_vm8, %vm3940_vm7  ;;  %v3960_v46 = vand.u32 2147483648, %v3903_v23  ;;  %v3958_v17 = vand.u32 2147483647, %v3903_v23  ;;  %vm3954_vm12 = vweird.f32 %v3903_v23 }
0x11fe   : > { %v3936_v0 = vsub.f32 1.0, %v3935_v18 }
0x11ff   : > { %v3961_v16 = vor.u32 1.1754944e-38, %v3960_v46  ;;  %vm3959_vm14 = vcmp.eq.f32.partialorder %v3958_v17, 8.507059e+37 }
0x1200   : > { %v3937_v26 = vmul.f32 %v8513_v5, %v3936_v0 }
0x1202   : > { %v3938_v50 = vadd.f32 %v8513_v5, %v3937_v26 }
0x1203   : > { %v8515_v30 = vpop.eup %8514 }
0x1204   : > { %v3942_v38 = vsel %vm3941_vm9, %v8513_v5, %v3938_v50  ;;  %v3950_v41 = vmul.f32 %v8515_v30, %v3903_v23  ;;  %vm3955_vm11 = vweird.f32 %v8515_v30  ;;  %v4219_v3 = vpop.permute.xlu2 %4218 }
0x1205   : > { %v3947_v52 = vsel %vm3944_vm10, %v3946_v39, %v3942_v38  ;;  %vm3956_vm13 = vmor %vm3954_vm12, %vm3955_vm11 }
0x1206   : > { %v9724_v8 = vmul.f32 %v8509_v6, %v3947_v52  ;;  %v3951_v58 = vsub.f32 1.0, %v3950_v41 }
0x1208   : > { %v3952_v4 = vmul.f32 %v8515_v30, %v3951_v58  ;;  %8099 = vmatmul.msk.f32.vlgmr.msrb.gmra.mxu2 %vm925_vm0, %v9724_v8 }
0x1209   : > { %8114 = vmatpush.xpose.msk.msrb.mxu2 %vm925_vm0, %v4249_v44 }
0x120a   : > { %v3801_v54 = vpop.f32.mrf.mxu1  ;;  %v3953_v40 = vadd.f32 %v8515_v30, %v3952_v4 }
0x120b   : > { %v3861_v19 = vmul.f32 0.001, %v3801_v54 }
0x120c   : > { %v3957_v57 = vsel %vm3956_vm13, %v8515_v30, %v3953_v40 }
0x120d   : > { %v3865_v6 = vsel %vm9017_vm5, %v3861_v19, -1e+30  ;;  %v3962_v62 = vsel %vm3959_vm14, %v3961_v16, %v3957_v57  ;;  %v8346_v57 = vpack.i.bf16 %v9605_v48, %v9597_v53 }
0x120e   : > { %v3871_v1 = vsel %vm925_vm0, %v3865_v6, -inf  ;;  %v9733_v9 = vmul.f32 %v9710_v27, %v3962_v62 }
0x120f   : > { %3872 = vmax.xlane.f32.xlu0 %v3871_v1 }
0x1210   : > { %8100 = vmatmul.msk.f32.vlgmr.msrb.gmra.mxu3 %vm925_vm0, %v9733_v9  ;;  %8111 = vmatmul.msk.f32.vlgmr.msra.gmra.mxu2 %vm925_vm0, %v4191_v7 }
0x1211   : > { %8116 = vmatpush.xpose.msk.msrb.mxu3 %vm925_vm0, %v4277_v59 }
0x1218   : > { %8113 = vmatmul.msk.f32.vlgmr.msra.gmra.mxu3 %vm925_vm0, %v4219_v3  ;;  %8115 = vmatmul.msk.f32.vlgmr.msrb.gmra.mxu2 %vm925_vm0, %v4247_v32 }
0x1220   : > { %8117 = vmatmul.msk.f32.vlgmr.msrb.gmra.mxu3 %vm925_vm0, %v4275_v20 }
0x123d   : > { %v3513_v44 = vpop.xlane.xlu2 %3512 }
0x123e   : > { %v3521_v12 = vsub.f32 %v3505_v10, %v3513_v44 }
0x1240   : > { %v3526_v27 = vmul.f32 1.442695, %v3521_v12 }
0x1242   : > { %8516 = vpow2.f32 %v3526_v27 }
0x1248   : > { %v8517_v5 = vpop.eup %8516 }
0x1249   : > { %v3535_v18 = vsel %vm925_vm0, %v8517_v5, 0.0 }
0x124a   : > { %3536 = vadd.xlane.f32.xlu1 %v3535_v18 }
0x1282   : > { %v3873_v23 = vpop.xlane.xlu0 %3872 }
0x1283   : > { %v3881_v0 = vsub.f32 %v3865_v6, %v3873_v23 }
0x1285   : > { %v3886_v7 = vmul.f32 1.442695, %v3881_v0 }
0x1287   : > { %8518 = vpow2.f32 %v3886_v7 }
0x128b   : > { %v9743_v14 = vpop.f32.mrf.mxu2 }
0x128d   : > { %v9745_v26 = vpop.eup %8518 }
0x128e   : > { %v3895_v51 = vsel %vm925_vm0, %v9745_v26, 0.0 }
0x128f   : > { %3896 = vadd.xlane.f32.xlu0 %v3895_v51 }
0x1293   : > { %v9749_v20 = vpop.f32.mrf.mxu3  ;;  %v4215_v10 = vpop.f32.mrf.mxu2 }
0x1294   : > { %v4302_v50 = vmul.f32 0.001, %v4215_v10 }
0x1296   : > { %v4306_v30 = vsel %vm9017_vm5, %v4302_v50, -1e+30 }
0x1297   : > { %v4310_v39 = vsel %vm925_vm0, %v4306_v30, -inf }
0x1298   : > { %4311 = vmax.xlane.f32.xlu2 %v4310_v39 }
0x129b   : > { %v4243_v38 = vpop.f32.mrf.mxu3  ;;  %v4271_v41 = vpop.f32.mrf.mxu2 }
0x129c   : > { %v4303_v52 = vmul.f32 0.001, %v4243_v38  ;;  %v4304_v32 = vmul.f32 0.001, %v4271_v41 }
0x129e   : > { %v9756_v58 = vsel %vm9017_vm5, %v4304_v32, -1e+30  ;;  %v9760_v46 = vsel %vm9017_vm5, %v4303_v52, -1e+30 }
0x129f   : > { %v4316_v4 = vsel %vm925_vm0, %v9756_v58, -inf  ;;  %v4313_v17 = vsel %vm925_vm0, %v9760_v46, -inf }
0x12a0   : > { %4317 = vmax.xlane.f32.xlu1 %v4316_v4  ;;  %4314 = vmax.xlane.f32.xlu2 %v4313_v17 }
0x12a3   : > { %3748 = vrot.lane.b32.xlu0 %v9597_v53, %s11127_s1  ;;  %v4299_v54 = vpop.f32.mrf.mxu3 }
0x12a4   : > { %v4305_v40 = vmul.f32 0.001, %v4299_v54 }
0x12a6   : > { %v9770_v19 = vsel %vm9017_vm5, %v4305_v40, -1e+30 }
0x12a7   : > { %v4319_v16 = vsel %vm925_vm0, %v9770_v19, -inf }
0x12a8   : > { %4320 = vmax.xlane.f32.xlu1 %v4319_v16 }
0x12ab   : > { %8347 = vrot.lane.b32.xlu0 %v8346_v57, %s11141_s27 }
0x12b3   : > { %4597 = vrot.lane.b32.xlu0 %v9597_v53, %s11129_s2 }
0x12b8   : > { %3990 = vrot.lane.b32.xlu2 %v9601_v47, %s11134_s5 }
0x12bb   : > { %4432 = vrot.lane.b32.xlu0 %v9601_v47, %s11141_s27 }
0x12bd   : > { %v3537_v6 = vpop.xlane.xlu1 %3536 }
0x12be   : > { %8520 = vrcp.f32 %v3537_v6  ;;  %v3570_v3 = vand.u32 2147483648, %v3537_v6  ;;  %v3568_v12 = vand.u32 2147483647, %v3537_v6  ;;  %vm3564_vm4 = vweird.f32 %v3537_v6 }
0x12c0   : > { %v3571_v18 = vor.u32 1.1754944e-38, %v3570_v3  ;;  %vm3569_vm7 = vcmp.eq.f32.partialorder %v3568_v12, 8.507059e+37 }
0x12c1   : > { %3750 = vrot.lane.b32.xlu1 %v9597_v53, %s11138_s23 }
0x12c3   : > { %4625 = vrot.lane.b32.xlu0 %v9601_v47, %s11129_s2 }
0x12c4   : > { %v8521_v62 = vpop.eup %8520 }
0x12c5   : > { %v3560_v1 = vmul.f32 %v8521_v62, %v3537_v6  ;;  %vm3565_vm15 = vweird.f32 %v8521_v62 }
0x12c6   : > { %vm3566_vm6 = vmor %vm3564_vm4, %vm3565_vm15 }
0x12c7   : > { %v3561_v59 = vsub.f32 1.0, %v3560_v1 }
0x12c9   : > { %v3562_v44 = vmul.f32 %v8521_v62, %v3561_v59 }
0x12cb   : > { %4595 = vrot.lane.b32.xlu0 %v9597_v53, %s11130_s0  ;;  %v3563_v27 = vadd.f32 %v8521_v62, %v3562_v44 }
0x12cd   : > { %v3567_v23 = vsel %vm3566_vm6, %v8521_v62, %v3563_v27 }
0x12ce   : > { %v3572_v0 = vsel %vm3569_vm7, %v3571_v18, %v3567_v23  ;;  %v8072_v18 = vld [vmem:[%s11128_s6 + $0x20] sm:$0xff] }
0x12cf   : > { %v9789_v7 = vmul.f32 %v8517_v5, %v3572_v0 }
0x12d1   : > { %8085 = vmatmul.msk.f32.vlgmr.msra.gmra.mxu0 %vm925_vm0, %v9789_v7 }
0x12d3   : > { %4484 = vrot.lane.b32.xlu0 %v9609_v24, %s11141_s27 }
0x1302   : > { %v3897_v51 = vpop.xlane.xlu0 %3896 }
0x1303   : > { %8522 = vrcp.f32 %v3897_v51  ;;  %v3930_v5 = vand.u32 2147483648, %v3897_v51  ;;  %vm3924_vm9 = vweird.f32 %v3897_v51  ;;  %v3928_v17 = vand.u32 2147483647, %v3897_v51 }
0x1305   : > { %vm3929_vm11 = vcmp.eq.f32.partialorder %v3928_v17, 8.507059e+37 }
0x1309   : > { %v8523_v10 = vpop.eup %8522 }
0x130a   : > { %v3920_v50 = vmul.f32 %v8523_v10, %v3897_v51  ;;  %vm3925_vm8 = vweird.f32 %v8523_v10 }
0x130b   : > { %v4312_v38 = vpop.xlane.xlu2 %4311  ;;  %vm3926_vm10 = vmor %vm3924_vm9, %vm3925_vm8 }
0x130c   : > { %v3921_v39 = vsub.f32 1.0, %v3920_v50  ;;  %v4322_v41 = vsub.f32 %v4306_v30, %v4312_v38  ;;  %v3931_v30 = vor.u32 1.1754944e-38, %v3930_v5 }
0x130e   : > { %v3922_v52 = vmul.f32 %v8523_v10, %v3921_v39  ;;  %v4326_v32 = vmul.f32 1.442695, %v4322_v41 }
0x1310   : > { %8524 = vpow2.f32 %v4326_v32  ;;  %v3923_v4 = vadd.f32 %v8523_v10, %v3922_v52 }
0x1312   : > { %v3927_v62 = vsel %vm3926_vm10, %v8523_v10, %v3923_v4 }
0x1313   : > { %v4318_v54 = vpop.xlane.xlu1 %4317  ;;  %v4315_v40 = vpop.xlane.xlu2 %4314  ;;  %v3932_v12 = vsel %vm3929_vm11, %v3931_v30, %v3927_v62 }
0x1314   : > { %v4324_v16 = vsub.f32 %v9756_v58, %v4318_v54  ;;  %v4323_v57 = vsub.f32 %v9760_v46, %v4315_v40  ;;  %v9802_v27 = vmul.f32 %v9745_v26, %v3932_v12 }
0x1315   : > { %v3749_v6 = vpop.permute.xlu0 %3748 }
0x1316   : > { %v9797_v1 = vpop.eup %8524  ;;  %v4330_v59 = vmul.f32 1.442695, %v4324_v16  ;;  %v4328_v3 = vmul.f32 1.442695, %v4323_v57 }
0x1317   : > { %v4334_v44 = vsel %vm925_vm0, %v9797_v1, 0.0 }
0x1318   : > { %8526 = vpow2.f32 %v4330_v59  ;;  %4335 = vadd.xlane.f32.xlu1 %v4334_v44 }
0x1319   : > { %8528 = vpow2.f32 %v4328_v3 }
0x131b   : > { %v3991_v58 = vpop.permute.xlu2 %3990  ;;  %v4321_v46 = vpop.xlane.xlu1 %4320 }
0x131c   : > { %v4325_v23 = vsub.f32 %v9770_v19, %v4321_v46  ;;  %4011 = vmatpush.msrb.mxu1 %v3991_v58 }
0x131d   : > { %v8348_v0 = vpop.permute.xlu0 %8347  ;;  %8098 = vmatmul.msk.f32.vlgmr.msrb.gmra.mxu1 %vm925_vm0, %v9802_v27 }
0x131e   : > { %v8350_v51 = vunpack.i.h.bf16 %v8348_v0  ;;  %v8349_v10 = vunpack.i.l.bf16 %v8348_v0  ;;  %v9810_v50 = vpop.eup %8526  ;;  %v4332_v39 = vmul.f32 1.442695, %v4325_v23  ;;  %4136 = vmatpush.msra.mxu1 %v8072_v18 }
0x131f   : > { %v9812_v26 = vpop.eup %8528  ;;  %v4340_v38 = vsel %vm925_vm0, %v9810_v50, 0.0 }
0x1320   : > { %4427 = vmatpush.msra.mxu2 %v8349_v10  ;;  %8530 = vpow2.f32 %v4332_v39  ;;  %v4337_v19 = vsel %vm925_vm0, %v9812_v26, 0.0  ;;  %4341 = vadd.xlane.f32.xlu0 %v4340_v38 }
0x1321   : > { %4338 = vadd.xlane.f32.xlu2 %v4337_v19 }
0x1322   : > { %4479 = vmatpush.msrb.mxu2 %v8350_v51 }
0x1325   : > { %v4598_v41 = vpop.permute.xlu0 %4597  ;;  %8105 = vmatmul.msk.f32.vlgmr.msra.gmra.mxu1 %vm925_vm0, %v9677_v25 }
0x1326   : > { %v9820_v52 = vpop.eup %8530  ;;  %8127 = vmatpush.xpose.msk.msrb.mxu1 %vm925_vm0, %v4598_v41 }
0x1327   : > { %v4343_v32 = vsel %vm925_vm0, %v9820_v52, 0.0 }
0x1328   : > { %4344 = vadd.xlane.f32.xlu1 %v4343_v32 }
0x132d   : > { %v4433_v4 = vpop.permute.xlu0 %4432 }
0x132e   : > { %4453 = vmatpush.msra.mxu3 %v4433_v4 }
0x1333   : > { %v3751_v5 = vpop.permute.xlu1 %3750 }
0x1334   : > { %8089 = vmatpush.xpose.msk.msrb.mxu0 %vm925_vm0, %v3751_v5  ;;  %4651 = vrot.lane.b32.xlu0 %v9605_v48, %s11130_s0 }
0x1335   : > { %v4626_v17 = vpop.permute.xlu0 %4625 }
0x1337   : > { %8090 = vmatmul.msk.f32.vlgmr.msrb.gmra.mxu0 %vm925_vm0, %v3749_v6 }
0x1339   : > { %4623 = vrot.lane.b32.xlu2 %v9601_v47, %s11130_s0 }
0x133c   : > { %4681 = vrot.lane.b32.xlu0 %v9609_v24, %s11129_s2 }
0x133d   : > { %v4596_v25 = vpop.permute.xlu0 %4595 }
0x1341   : > { %4679 = vrot.lane.b32.xlu2 %v9609_v24, %s11130_s0  ;;  %4653 = vrot.lane.b32.xlu1 %v9605_v48, %s11129_s2  ;;  %s11150_s0 = sld [smem:[#allocation24_spill]] }
0x1342   : > { %s11170_s2 = sld [smem:[#allocation35_spill]] }
0x1345   : > { %v4485_v54 = vpop.permute.xlu0 %4484 }
0x1346   : > { %4505 = vmatpush.msrb.mxu3 %v4485_v54 }
0x134e   : > { %v3653_v40 = vpop.f32.mrf.mxu0 }
0x134f   : > { %8106 = vmatmul.msk.f32.gmra.mxu1 %vm925_vm0, %v3653_v40 }
0x1357   : > { %8107 = vmatmul.msk.f32.gmra.mxu1 %vm925_vm0, %v9681_v13 }
0x135f   : > { %8108 = vmatmul.msk.f32.gmra.mxu1 %vm925_vm0, %v9679_v33 }
0x1367   : > { %8128 = vmatmul.msk.f32.vlgmr.msrb.gmra.mxu1 %vm925_vm0, %v4596_v25 }
0x138b   : > { %v4336_v16 = vpop.xlane.xlu1 %4335 }
0x138c   : > { %8532 = vrcp.f32 %v4336_v16  ;;  %v4357_v3 = vand.u32 2147483648, %v4336_v16  ;;  %v4355_v12 = vand.u32 2147483647, %v4336_v16  ;;  %vm4351_vm13 = vweird.f32 %v4336_v16 }
0x138e   : > { %v4358_v33 = vor.u32 1.1754944e-38, %v4357_v3  ;;  %vm4356_vm15 = vcmp.eq.f32.partialorder %v4355_v12, 8.507059e+37 }
0x1392   : > { %v8533_v57 = vpop.eup %8532 }
0x1393   : > { %v4347_v6 = vmul.f32 %v8533_v57, %v4336_v16  ;;  %v4342_v62 = vpop.xlane.xlu0 %4341  ;;  %vm4352_vm12 = vweird.f32 %v8533_v57 }
0x1394   : > { %v4339_v30 = vpop.xlane.xlu2 %4338  ;;  %8534 = vrcp.f32 %v4342_v62  ;;  %vm4353_vm14 = vmor %vm4351_vm13, %vm4352_vm12  ;;  %v4387_v41 = vand.u32 2147483648, %v4342_v62  ;;  %v4385_v5 = vand.u32 2147483647, %v4342_v62  ;;  %vm4381_vm7 = vweird.f32 %v4342_v62 }
0x1395   : > { %v4348_v59 = vsub.f32 1.0, %v4347_v6  ;;  %8536 = vrcp.f32 %v4339_v30  ;;  %v4372_v32 = vand.u32 2147483648, %v4339_v30  ;;  %v4370_v54 = vand.u32 2147483647, %v4339_v30 }
0x1396   : > { %vm4366_vm8 = vweird.f32 %v4339_v30  ;;  %vm4386_vm11 = vcmp.eq.f32.partialorder %v4385_v5, 8.507059e+37 }
0x1397   : > { %v4349_v44 = vmul.f32 %v8533_v57, %v4348_v59  ;;  %v4373_v6 = vor.u32 1.1754944e-38, %v4372_v32  ;;  %vm4371_vm12 = vcmp.eq.f32.partialorder %v4370_v54, 8.507059e+37 }
0x1399   : > { %v4350_v58 = vadd.f32 %v8533_v57, %v4349_v44 }
0x139a   : > { %v8535_v13 = vpop.eup %8534 }
0x139b   : > { %v8537_v46 = vpop.eup %8536  ;;  %v4354_v18 = vsel %vm4353_vm14, %v8533_v57, %v4350_v58  ;;  %v4377_v23 = vmul.f32 %v8535_v13, %v4342_v62  ;;  %v4345_v0 = vpop.xlane.xlu1 %4344  ;;  %vm4382_vm4 = vweird.f32 %v8535_v13 }
0x139c   : > { %v4359_v51 = vsel %vm4356_vm15, %v4358_v33, %v4354_v18  ;;  %v4362_v10 = vmul.f32 %v8537_v46, %v4339_v30  ;;  %8538 = vrcp.f32 %v4345_v0  ;;  %vm4367_vm6 = vweird.f32 %v8537_v46  ;;  %vm4383_vm9 = vmor %vm4381_vm7, %vm4382_vm4 }
0x139d   : > { %v4360_v39 = vmul.f32 %v9797_v1, %v4359_v51  ;;  %v4378_v38 = vsub.f32 1.0, %v4377_v23  ;;  %v4388_v1 = vor.u32 1.1754944e-38, %v4387_v41  ;;  %vm4368_vm10 = vmor %vm4366_vm8, %vm4367_vm6  ;;  %v4402_v62 = vand.u32 2147483648, %v4345_v0  ;;  %v4624_v51 = vpop.permute.xlu2 %4623 }
0x139e   : > { %v4363_v19 = vsub.f32 1.0, %v4362_v10  ;;  %v4400_v10 = vand.u32 2147483647, %v4345_v0  ;;  %vm4396_vm14 = vweird.f32 %v4345_v0 }
0x139f   : > { %v4379_v4 = vmul.f32 %v8535_v13, %v4378_v38  ;;  %8118 = vmatmul.msk.f32.vlgmr.msra.gmra.mxu2 %vm925_vm0, %v4360_v39  ;;  %v4403_v38 = vor.u32 1.1754944e-38, %v4402_v62 }
0x13a0   : > { %v4364_v25 = vmul.f32 %v8537_v46, %v4363_v19  ;;  %8129 = vmatpush.xpose.msk.msra.mxu2 %vm925_vm0, %v4626_v17  ;;  %vm4401_vm4 = vcmp.eq.f32.partialorder %v4400_v10, 8.507059e+37 }
0x13a1   : > { %v4380_v40 = vadd.f32 %v8535_v13, %v4379_v4 }
0x13a2   : > { %v8539_v16 = vpop.eup %8538  ;;  %v4365_v57 = vadd.f32 %v8537_v46, %v4364_v25 }
0x13a3   : > { %v4384_v59 = vsel %vm4383_vm9, %v8535_v13, %v4380_v40  ;;  %v4392_v3 = vmul.f32 %v8539_v16, %v4345_v0  ;;  %vm4397_vm13 = vweird.f32 %v8539_v16  ;;  %v9862_v40 = vpop.f32.mrf.mxu1 }
0x13a4   : > { %v4369_v44 = vsel %vm4368_vm10, %v8537_v46, %v4365_v57  ;;  %v4389_v12 = vsel %vm4386_vm11, %v4388_v1, %v4384_v59  ;;  %vm4398_vm15 = vmor %vm4396_vm14, %vm4397_vm13 }
0x13a5   : > { %v4374_v58 = vsel %vm4371_vm12, %v4373_v6, %v4369_v44  ;;  %v4390_v33 = vmul.f32 %v9810_v50, %v4389_v12  ;;  %v4393_v18 = vsub.f32 1.0, %v4392_v3 }
0x13a6   : > { %v4375_v17 = vmul.f32 %v9812_v26, %v4374_v58  ;;  %v4652_v23 = vpop.permute.xlu0 %4651 }
0x13a7   : > { %v4394_v30 = vmul.f32 %v8539_v16, %v4393_v18  ;;  %8120 = vmatmul.msk.f32.vlgmr.msrb.gmra.mxu2 %vm925_vm0, %v4390_v33 }
0x13a8   : > { %8119 = vmatmul.msk.f32.vlgmr.msra.gmra.mxu3 %vm925_vm0, %v4375_v17  ;;  %v4555_v13 = vadd.f32 %v4375_v17, %v4360_v39  ;;  %v4680_v39 = vpop.permute.xlu2 %4679 }
0x13a9   : > { %v4395_v46 = vadd.f32 %v8539_v16, %v4394_v30 }
0x13aa   : > { %v4556_v19 = vadd.f32 %v4555_v13, %v4390_v33 }
0x13ab   : > { %v4399_v50 = vsel %vm4398_vm15, %v8539_v16, %v4395_v46  ;;  %v9864_v16 = vpop.f32.mrf.mxu1 }
0x13ac   : > { %v4404_v41 = vsel %vm4401_vm4, %v4403_v38, %v4399_v50 }
0x13ad   : > { %v4405_v26 = vmul.f32 %v9820_v52, %v4404_v41 }
0x13ae   : > { %v4682_v32 = vpop.permute.xlu0 %4681 }
0x13af   : > { %8130 = vmatmul.msk.f32.vlgmr.msra.gmra.mxu2 %vm925_vm0, %v4624_v51  ;;  %8133 = vmatpush.xpose.msk.msra.mxu1 %vm925_vm0, %v4682_v32  ;;  %v9853_v4 = vadd.f32 %v4556_v19, %v4405_v26 }
0x13b0   : > { %8121 = vmatmul.msk.f32.vlgmr.msrb.gmra.mxu3 %vm925_vm0, %v4405_v26 }
0x13b2   : > { %8134 = vmatmul.msk.f32.vlgmr.msra.gmra.mxu1 %vm925_vm0, %v4680_v39 }
0x13b3   : > { %v4654_v0 = vpop.permute.xlu1 %4653 }
0x13b4   : > { %v3773_v5 = vpop.f32.mrf.mxu0  ;;  %8131 = vmatpush.xpose.msk.msra.mxu3 %vm925_vm0, %v4654_v0 }
0x13b5   : > { %v3860_v25 = vmul.f32 0.001, %v3773_v5 }
0x13b7   : > { %v3864_v52 = vsel %vm9017_vm5, %v3860_v25, -1e+30 }
0x13b8   : > { %8132 = vmatmul.msk.f32.vlgmr.msra.gmra.mxu3 %vm925_vm0, %v4652_v23  ;;  %v3868_v54 = vsel %vm925_vm0, %v3864_v52, -inf }
0x13b9   : > { %3869 = vmax.xlane.f32.xlu0 %v3868_v54 }
0x13cc   : > { %v9866_v57 = vpop.f32.mrf.mxu1 }
0x13d4   : > { %v9868_v1 = vpop.f32.mrf.mxu1 }
0x13dc   : > { %v9870_v6 = vpop.f32.mrf.mxu1 }
0x13e4   : > { %v4620_v59 = vpop.f32.mrf.mxu1 }
0x13e5   : > { %v4707_v3 = vmul.f32 0.001, %v4620_v59 }
0x13e7   : > { %v4711_v44 = vsel %vm9017_vm5, %v4707_v3, -1e+30 }
0x13e8   : > { %v4715_v12 = vsel %vm925_vm0, %v4711_v44, -inf }
0x13e9   : > { %4716 = vmax.xlane.f32.xlu2 %v4715_v12 }
0x1422   : > { %v9875_v58 = vpop.f32.mrf.mxu2 }
0x142a   : > { %v9877_v33 = vpop.f32.mrf.mxu2 }
0x142b   : > { %v9879_v18 = vpop.f32.mrf.mxu3 }
0x142c   : > { %v3870_v17 = vpop.xlane.xlu0 %3869 }
0x142d   : > { %v3880_v62 = vsub.f32 %v3864_v52, %v3870_v17  ;;  %v8351_v17 = vpack.i.bf16 %v9601_v47, %v9597_v53 }
0x142f   : > { %v3884_v23 = vmul.f32 1.442695, %v3880_v62  ;;  %v4704_v13 = vpop.f32.mrf.mxu1 }
0x1430   : > { %v4710_v50 = vmul.f32 0.001, %v4704_v13 }
0x1431   : > { %8540 = vpow2.f32 %v3884_v23 }
0x1432   : > { %v4648_v51 = vpop.f32.mrf.mxu2  ;;  %v4714_v32 = vsel %vm9017_vm5, %v4710_v50, -1e+30 }
0x1433   : > { %v9881_v30 = vpop.f32.mrf.mxu3  ;;  %v4708_v10 = vmul.f32 0.001, %v4648_v51  ;;  %v4724_v5 = vsel %vm925_vm0, %v4714_v32, -inf }
0x1435   : > { %v4712_v46 = vsel %vm9017_vm5, %v4708_v10, -1e+30 }
0x1436   : > { %v4718_v38 = vsel %vm925_vm0, %v4712_v46, -inf }
0x1437   : > { %v8541_v19 = vpop.eup %8540  ;;  %4719 = vmax.xlane.f32.xlu1 %v4718_v38 }
0x1438   : > { %v3892_v41 = vsel %vm925_vm0, %v8541_v19, 0.0 }
0x1439   : > { %3893 = vadd.xlane.f32.xlu0 %v3892_v41 }
0x143b   : > { %v4676_v26 = vpop.f32.mrf.mxu3 }
0x143c   : > { %v4709_v39 = vmul.f32 0.001, %v4676_v26 }
0x143e   : > { %v4713_v0 = vsel %vm9017_vm5, %v4709_v39, -1e+30 }
0x143f   : > { %v4721_v25 = vsel %vm925_vm0, %v4713_v0, -inf  ;;  %4725 = vmax.xlane.f32.xlu1 %v4724_v5 }
0x1440   : > { %4722 = vmax.xlane.f32.xlu2 %v4721_v25 }
0x1458   : > { %3964 = vrot.lane.b32.xlu2 %v9597_v53, %s11134_s5 }
0x145c   : > { %v4717_v52 = vpop.xlane.xlu2 %4716 }
0x145d   : > { %v4727_v54 = vsub.f32 %v4711_v44, %v4717_v52 }
0x145f   : > { %v4731_v59 = vmul.f32 1.442695, %v4727_v54 }
0x1460   : > { %4863 = vrot.lane.b32.xlu2 %v9605_v48, %s11142_s7 }
0x1461   : > { %8542 = vpow2.f32 %v4731_v59 }
0x1467   : > { %v9897_v3 = vpop.eup %8542 }
0x1468   : > { %v4739_v12 = vsel %vm925_vm0, %v9897_v3, 0.0 }
0x1469   : > { %4740 = vadd.xlane.f32.xlu0 %v4739_v12 }
0x147d   : > { %8352 = vrot.lane.b32.xlu0 %v8351_v17, %s11142_s7 }
0x1485   : > { %4889 = vrot.lane.b32.xlu0 %v9609_v24, %s11142_s7  ;;  %s11158_s7 = sld [smem:[#allocation29_spill]] }
0x14aa   : > { %v4720_v44 = vpop.xlane.xlu1 %4719 }
0x14ab   : > { %v4728_v62 = vsub.f32 %v4712_v46, %v4720_v44 }
0x14ac   : > { %v3894_v23 = vpop.xlane.xlu0 %3893 }
0x14ad   : > { %v4733_v51 = vmul.f32 1.442695, %v4728_v62  ;;  %8544 = vrcp.f32 %v3894_v23  ;;  %v3915_v24 = vand.u32 2147483648, %v3894_v23  ;;  %v3913_v5 = vand.u32 2147483647, %v3894_v23 }
0x14ae   : > { %vm3909_vm7 = vweird.f32 %v3894_v23 }
0x14af   : > { %8546 = vpow2.f32 %v4733_v51  ;;  %v3916_v54 = vor.u32 1.1754944e-38, %v3915_v24  ;;  %vm3914_vm9 = vcmp.eq.f32.partialorder %v3913_v5, 8.507059e+37 }
0x14b2   : > { %v4726_v13 = vpop.xlane.xlu1 %4725 }
0x14b3   : > { %v8545_v48 = vpop.eup %8544  ;;  %v4723_v10 = vpop.xlane.xlu2 %4722  ;;  %v4730_v47 = vsub.f32 %v4714_v32, %v4726_v13 }
0x14b4   : > { %v3905_v38 = vmul.f32 %v8545_v48, %v3894_v23  ;;  %v4729_v50 = vsub.f32 %v4713_v0, %v4723_v10  ;;  %vm3910_vm6 = vweird.f32 %v8545_v48 }
0x14b5   : > { %v9906_v41 = vpop.eup %8546  ;;  %v4737_v52 = vmul.f32 1.442695, %v4730_v47  ;;  %vm3911_vm8 = vmor %vm3909_vm7, %vm3910_vm6 }
0x14b6   : > { %v3906_v26 = vsub.f32 1.0, %v3905_v38  ;;  %v4735_v53 = vmul.f32 1.442695, %v4729_v50  ;;  %v4742_v39 = vsel %vm925_vm0, %v9906_v41, 0.0 }
0x14b7   : > { %4743 = vadd.xlane.f32.xlu1 %v4742_v39 }
0x14b8   : > { %v3907_v46 = vmul.f32 %v8545_v48, %v3906_v26  ;;  %8548 = vpow2.f32 %v4735_v53 }
0x14b9   : > { %8550 = vpow2.f32 %v4737_v52 }
0x14ba   : > { %v3908_v25 = vadd.f32 %v8545_v48, %v3907_v46 }
0x14bb   : > { %v3965_v0 = vpop.permute.xlu2 %3964 }
0x14bc   : > { %v3912_v59 = vsel %vm3911_vm8, %v8545_v48, %v3908_v25  ;;  %3985 = vmatpush.msra.mxu0 %v3965_v0  ;;  %v8676_v0 = vld [vmem:[%s8858_s29] sm:$0xff] }
0x14bd   : > { %v3917_v12 = vsel %vm3914_vm9, %v3916_v54, %v3912_v59  ;;  %v8073_v59 = vld [vmem:[%s11128_s6 + $0x28] sm:$0xff] }
0x14be   : > { %v9910_v32 = vpop.eup %8548  ;;  %v9912_v17 = vmul.f32 %v8541_v19, %v3917_v12  ;;  %4095 = vmatpush.msrb.mxu0 %v8073_v59 }
0x14bf   : > { %v4745_v44 = vsel %vm925_vm0, %v9910_v32, 0.0  ;;  %v9918_v23 = vpop.eup %8550 }
0x14c0   : > { %4746 = vadd.xlane.f32.xlu1 %v4745_v44  ;;  %8097 = vmatmul.msk.f32.vlgmr.msra.gmra.mxu0 %vm925_vm0, %v9912_v17  ;;  %v4748_v51 = vsel %vm925_vm0, %v9918_v23, 0.0 }
0x14c3   : > { %v4864_v62 = vpop.permute.xlu2 %4863 }
0x14c4   : > { %4884 = vmatpush.msrb.mxu1 %v4864_v62 }
0x14c8   : > { %4749 = vadd.xlane.f32.xlu1 %v4748_v51 }
0x14dc   : > { %v4741_v48 = vpop.xlane.xlu0 %4740 }
0x14dd   : > { %8552 = vrcp.f32 %v4741_v48  ;;  %v4762_v50 = vand.u32 2147483648, %v4741_v48  ;;  %v4760_v26 = vand.u32 2147483647, %v4741_v48  ;;  %vm4756_vm11 = vweird.f32 %v4741_v48 }
0x14df   : > { %v4763_v39 = vor.u32 1.1754944e-38, %v4762_v50  ;;  %vm4761_vm13 = vcmp.eq.f32.partialorder %v4760_v26, 8.507059e+37 }
0x14e3   : > { %v8553_v19 = vpop.eup %8552 }
0x14e4   : > { %v4752_v10 = vmul.f32 %v8553_v19, %v4741_v48  ;;  %vm4757_vm10 = vweird.f32 %v8553_v19 }
0x14e5   : > { %vm4758_vm12 = vmor %vm4756_vm11, %vm4757_vm10 }
0x14e6   : > { %v4753_v13 = vsub.f32 1.0, %v4752_v10 }
0x14e8   : > { %v4754_v38 = vmul.f32 %v8553_v19, %v4753_v13  ;;  %v8074_v13 = vld [vmem:[%s11128_s6 + $0x30] sm:$0xff] }
0x14e9   : > { %4537 = vmatpush.msra.mxu0 %v8074_v13 }
0x14ea   : > { %v4755_v53 = vadd.f32 %v8553_v19, %v4754_v38 }
0x14ec   : > { %v4759_v47 = vsel %vm4758_vm12, %v8553_v19, %v4755_v53 }
0x14ed   : > { %v4764_v24 = vsel %vm4761_vm13, %v4763_v39, %v4759_v47 }
0x14ee   : > { %v4765_v52 = vmul.f32 %v9897_v3, %v4764_v24 }
0x14ef   : > { %v8353_v46 = vpop.permute.xlu0 %8352 }
0x14f0   : > { %v8355_v5 = vunpack.i.h.bf16 %v8353_v46  ;;  %v8354_v25 = vunpack.i.l.bf16 %v8353_v46 }
0x14f2   : > { %4832 = vmatpush.msrb.mxu2 %v8354_v25  ;;  %4858 = vmatpush.msrb.mxu3 %v8355_v5 }
0x14f3   : > { %8135 = vmatmul.msk.f32.vlgmr.msrb.gmra.mxu2 %vm925_vm0, %v4765_v52 }
0x14f7   : > { %v4890_v54 = vpop.permute.xlu0 %4889 }
0x14f8   : > { %4910 = vmatpush.msra.mxu2 %v4890_v54 }
0x14fa   : > { %5281 = vmatpush.msrb.mxu2 %v8676_v0 }
0x152a   : > { %v4744_v12 = vpop.xlane.xlu1 %4743 }
0x152b   : > { %8554 = vrcp.f32 %v4744_v12  ;;  %v4777_v3 = vand.u32 2147483648, %v4744_v12  ;;  %v4775_v10 = vand.u32 2147483647, %v4744_v12  ;;  %vm4771_vm15 = vweird.f32 %v4744_v12 }
0x152d   : > { %v4778_v50 = vor.u32 1.1754944e-38, %v4777_v3  ;;  %vm4776_vm6 = vcmp.eq.f32.partialorder %v4775_v10, 8.507059e+37 }
0x1531   : > { %v8555_v44 = vpop.eup %8554 }
0x1532   : > { %v4767_v62 = vmul.f32 %v8555_v44, %v4744_v12  ;;  %vm4772_vm14 = vweird.f32 %v8555_v44 }
0x1533   : > { %v4747_v51 = vpop.xlane.xlu1 %4746  ;;  %vm4773_vm4 = vmor %vm4771_vm15, %vm4772_vm14 }
0x1534   : > { %v4768_v48 = vsub.f32 1.0, %v4767_v62  ;;  %8556 = vrcp.f32 %v4747_v51  ;;  %v4792_v54 = vand.u32 2147483648, %v4747_v51  ;;  %v4790_v59 = vand.u32 2147483647, %v4747_v51 }
0x1535   : > { %vm4786_vm8 = vweird.f32 %v4747_v51 }
0x1536   : > { %v4769_v19 = vmul.f32 %v8555_v44, %v4768_v48  ;;  %v4793_v62 = vor.u32 1.1754944e-38, %v4792_v54  ;;  %vm4791_vm10 = vcmp.eq.f32.partialorder %v4790_v59, 8.507059e+37 }
0x1538   : > { %v4770_v38 = vadd.f32 %v8555_v44, %v4769_v19 }
0x153a   : > { %v8557_v26 = vpop.eup %8556  ;;  %v4774_v53 = vsel %vm4773_vm4, %v8555_v44, %v4770_v38 }
0x153b   : > { %v4779_v47 = vsel %vm4776_vm6, %v4778_v50, %v4774_v53  ;;  %v4782_v39 = vmul.f32 %v8557_v26, %v4747_v51  ;;  %v4750_v24 = vpop.xlane.xlu1 %4749  ;;  %vm4787_vm7 = vweird.f32 %v8557_v26 }
0x153c   : > { %v4780_v46 = vmul.f32 %v9906_v41, %v4779_v47  ;;  %8558 = vrcp.f32 %v4750_v24  ;;  %vm4788_vm9 = vmor %vm4786_vm8, %vm4787_vm7  ;;  %v4807_v38 = vand.u32 2147483648, %v4750_v24  ;;  %v4805_v53 = vand.u32 2147483647, %v4750_v24 }
0x153d   : > { %v4783_v5 = vsub.f32 1.0, %v4782_v39  ;;  %v3987_v25 = vpop.f32.mrf.mxu0  ;;  %vm4801_vm12 = vweird.f32 %v4750_v24 }
0x153e   : > { %8101 = vmatmul.msk.f32.vlgmr.msrb.gmra.mxu0 %vm925_vm0, %v3987_v25  ;;  %8136 = vmatmul.msk.f32.vlgmr.msrb.gmra.mxu3 %vm925_vm0, %v4780_v46  ;;  %v4960_v13 = vadd.f32 %v4780_v46, %v4765_v52  ;;  %vm4806_vm14 = vcmp.eq.f32.partialorder %v4805_v53, 8.507059e+37  ;;  %v8677_v46 = vld [vmem:[%s8858_s29 + $0x8] sm:$0xff] }
0x153f   : > { %v4784_v0 = vmul.f32 %v8557_v26, %v4783_v5 }
0x1541   : > { %v4785_v12 = vadd.f32 %v8557_v26, %v4784_v0 }
0x1542   : > { %v8559_v44 = vpop.eup %8558 }
0x1543   : > { %v4789_v48 = vsel %vm4788_vm9, %v8557_v26, %v4785_v12  ;;  %v4797_v3 = vmul.f32 %v8559_v44, %v4750_v24  ;;  %vm4802_vm11 = vweird.f32 %v8559_v44  ;;  %v4808_v26 = vor.u32 1.1754944e-38, %v4807_v38  ;;  %v8075_v24 = vld [vmem:[%s11128_s6 + $0x38] sm:$0xff]  ;;  %s11155_s6 = sld [smem:[#allocation25_spill]] }
0x1544   : > { %v4794_v41 = vsel %vm4791_vm10, %v4793_v62, %v4789_v48  ;;  %vm4803_vm13 = vmor %vm4801_vm12, %vm4802_vm11  ;;  %4942 = vmatpush.msra.mxu3 %v8075_v24 }
0x1545   : > { %v4795_v19 = vmul.f32 %v9910_v32, %v4794_v41  ;;  %v4798_v10 = vsub.f32 1.0, %v4797_v3 }
0x1546   : > { %8102 = vmatmul.msk.f32.gmra.mxu0 %vm925_vm0, %v9862_v40 }
0x1547   : > { %v4799_v50 = vmul.f32 %v8559_v44, %v4798_v10  ;;  %8137 = vmatmul.msk.f32.vlgmr.msrb.gmra.mxu1 %vm925_vm0, %v4795_v19  ;;  %v4961_v51 = vadd.f32 %v4960_v13, %v4795_v19 }
0x1549   : > { %v4800_v47 = vadd.f32 %v8559_v44, %v4799_v50 }
0x154b   : > { %v4804_v39 = vsel %vm4803_vm13, %v8559_v44, %v4800_v47  ;;  %v8380_v44 = vld [vmem:[%s11135_s18 + $0x1] ss:$0 sm:$0xff] }
0x154c   : > { %v4809_v32 = vsel %vm4806_vm14, %v4808_v26, %v4804_v39 }
0x154d   : > { %v4810_v52 = vmul.f32 %v9918_v23, %v4809_v32 }
0x154e   : > { %8103 = vmatmul.msk.f32.gmra.mxu0 %vm925_vm0, %v9743_v14 }
0x154f   : > { %8138 = vmatmul.msk.f32.vlgmr.msra.gmra.mxu2 %vm925_vm0, %v4810_v52  ;;  %v9942_v40 = vadd.f32 %v4961_v51, %v4810_v52 }
0x1550   : > { %5301 = vmatpush.msra.mxu2 %v8677_v46 }
0x1556   : > { %8104 = vmatmul.msk.f32.gmra.mxu0 %vm925_vm0, %v9749_v20 }
0x155e   : > { %8122 = vmatmul.msk.f32.vlgmr.msra.gmra.mxu0 %vm925_vm0, %v9875_v58 }
0x1566   : > { %8123 = vmatmul.msk.f32.gmra.mxu0 %vm925_vm0, %v9879_v18 }
0x156e   : > { %8124 = vmatmul.msk.f32.gmra.mxu0 %vm925_vm0, %v9877_v33 }
0x1576   : > { %8125 = vmatmul.msk.f32.gmra.mxu0 %vm925_vm0, %v9881_v30  ;;  %v4834_v14 = vpop.f32.mrf.mxu2 }
0x1577   : > { %8139 = vmatmul.msk.f32.vlgmr.msra.gmra.mxu3 %vm925_vm0, %v4834_v14 }
0x15bb   : > { %v4097_v5 = vpop.f32.mrf.mxu0 }
0x15bc   : > { %v4139_v0 = vadd.f32 %v9864_v16, %v4097_v5 }
0x15c1   : > { %v4860_v20 = vpop.f32.mrf.mxu3 }
0x15c2   : > { %8140 = vmatmul.msk.f32.gmra.mxu3 %vm925_vm0, %v4860_v20 }
0x15c3   : > { %v4100_v18 = vpop.f32.mrf.mxu0 }
0x15c4   : > { %v4886_v23 = vpop.f32.mrf.mxu1  ;;  %v4142_v19 = vadd.f32 %v9866_v57, %v4100_v18 }
0x15ca   : > { %8141 = vmatmul.msk.f32.gmra.mxu3 %vm925_vm0, %v4886_v23 }
0x15cb   : > { %v4103_v25 = vpop.f32.mrf.mxu0 }
0x15cc   : > { %v4145_v53 = vadd.f32 %v9868_v1, %v4103_v25 }
0x15d2   : > { %v4912_v58 = vpop.f32.mrf.mxu2 }
0x15d3   : > { %8142 = vmatmul.msk.f32.gmra.mxu3 %vm925_vm0, %v4912_v58  ;;  %v4106_v54 = vpop.f32.mrf.mxu0 }
0x15d4   : > { %v4148_v46 = vadd.f32 %v9870_v6, %v4106_v54 }
0x15db   : > { %v4539_v33 = vpop.f32.mrf.mxu0 }
0x15dc   : > { %v4551_v30 = vadd.f32 %v4539_v33, %v4139_v0 }
0x15e3   : > { %v4542_v41 = vpop.f32.mrf.mxu0 }
0x15e4   : > { %v4552_v10 = vadd.f32 %v4542_v41, %v4142_v19 }
0x15eb   : > { %v4545_v38 = vpop.f32.mrf.mxu0 }
0x15f3   : > { %v4548_v57 = vpop.f32.mrf.mxu0 }
0x15f4   : > { %v4554_v1 = vadd.f32 %v4548_v57, %v4148_v46  ;;  %v8679_v46 = vld [vmem:[%s8858_s29 + $0x18] sm:$0xff] }
0x15fa   : > { %v4944_v59 = vpop.f32.mrf.mxu3 }
0x15fb   : > { %v4956_v12 = vadd.f32 %v4944_v59, %v4551_v30 }
0x15fd   : > { %v5000_v62 = vadd.f32 %v4956_v12, %v9522_v22  ;;  %v4553_v22 = vadd.f32 %v4545_v38, %v4145_v53  ;;  %v8150_v38 = vld [vmem:[%s11019_s14 + $0x38] sm:$0xff]  ;;  %v8148_v53 = vld [vmem:[%s11019_s14 + $0x28] sm:$0xff] }
0x15fe   : > { %5153 = vmatpush.msra.mxu1 %v8150_v38 }
0x15ff   : > { %v9967_v48 = vadd.f32 %v8380_v44, %v5000_v62 }
0x1601   : > { %v5017_v3 = vsel %vm1064_vm3, %v9967_v48, 0.0 }
0x1602   : > { %5018 = vadd.xlane.f32.xlu1 %v5017_v3 }
0x1645   : > { %v4947_v16 = vpop.f32.mrf.mxu3 }
0x1646   : > { %v4957_v13 = vadd.f32 %v4947_v16, %v4552_v10 }
0x1648   : > { %v5001_v50 = vadd.f32 %v4957_v13, %v9527_v60 }
0x164a   : > { %v9974_v51 = vadd.f32 %v8380_v44, %v5001_v50  ;;  %v8149_v50 = vld [vmem:[%s11019_s14 + $0x30] sm:$0xff] }
0x164b   : > { %5154 = vmatpush.msra.mxu1 %v8149_v50  ;;  %v8169_v50 = vld [vmem:[%s11021_s16 + $0xe8] sm:$0xff] }
0x164c   : > { %v5020_v47 = vsel %vm1064_vm3, %v9974_v51, 0.0 }
0x164d   : > { %5021 = vadd.xlane.f32.xlu2 %v5020_v47  ;;  %v4950_v26 = vpop.f32.mrf.mxu3  ;;  %5155 = vmatpush.msra.mxu1 %v8148_v53  ;;  %v8173_v47 = vld [vmem:[%s11111_s9 + $0x10] sm:$0xff] }
0x164e   : > { %v4958_v39 = vadd.f32 %v4950_v26, %v4553_v22  ;;  %v8147_v22 = vld [vmem:[%s11019_s14 + $0x20] sm:$0xff]  ;;  %8174 = vmatmul.msk.f32.vlgmr.msrb.gmra.mxu2 %vm925_vm0, %v8173_v47  ;;  %v8678_v26 = vld [vmem:[%s8858_s29 + $0x10] sm:$0xff]  ;;  %s10845_s29 = scalar_lea.vmem %s11170_s2, %s8313_s19  ;;  %s11173_s19 = sld [smem:[#allocation33_spill]] }
0x164f   : > { %5156 = vmatpush.msra.mxu1 %v8147_v22  ;;  %5321 = vmatpush.msrb.mxu2 %v8678_v26 }
0x1650   : > { %v5002_v32 = vadd.f32 %v4958_v39, %v9532_v37 }
0x1652   : > { %v9979_v52 = vadd.f32 %v8380_v44, %v5002_v32 }
0x1654   : > { %v5023_v60 = vsel %vm1064_vm3, %v9979_v52, 0.0 }
0x1655   : > { %5024 = vadd.xlane.f32.xlu0 %v5023_v60 }
0x1656   : > { %v4953_v24 = vpop.f32.mrf.mxu3  ;;  %8175 = vmatmul.msk.f32.vlgmr.msra.gmra.mxu2 %vm925_vm0, %v8173_v47 }
0x1657   : > { %v4959_v14 = vadd.f32 %v4953_v24, %v4554_v1  ;;  %5341 = vmatpush.msra.mxu2 %v8679_v46 }
0x1659   : > { %v5003_v20 = vadd.f32 %v4959_v14, %v9537_v43 }
0x165b   : > { %v9985_v23 = vadd.f32 %v8380_v44, %v5003_v20 }
0x165d   : > { %v5026_v5 = vsel %vm1064_vm3, %v9985_v23, 0.0 }
0x165e   : > { %5027 = vadd.xlane.f32.xlu1 %v5026_v5  ;;  %8176 = vmatmul.msk.f32.vlgmr.msrb.gmra.mxu2 %vm925_vm0, %v8173_v47 }
0x1666   : > { %8177 = vmatmul.msk.f32.vlgmr.msra.gmra.mxu2 %vm925_vm0, %v8173_v47 }
0x1675   : > { %v5019_v37 = vpop.xlane.xlu1 %5018 }
0x1676   : > { %v5029_v58 = vmul.f32 %v5019_v37, %v8921_v55  ;;  %v10037_v37 = vld [vmem:[%s11017_s12 + $0x1] ss:$0 sm:$0xff] }
0x1678   : > { %v5033_v6 = vsub.f32 %v9967_v48, %v5029_v58 }
0x167a   : > { %v5037_v18 = vmul.f32 %v5033_v6, %v5033_v6 }
0x167c   : > { %v5041_v25 = vsel %vm1064_vm3, %v5037_v18, 0.0  ;;  %v10043_v18 = vld [vmem:[%s11018_s13 + $0x1] ss:$0 sm:$0xff] }
0x167d   : > { %5042 = vadd.xlane.f32.xlu1 %v5041_v25 }
0x16c0   : > { %v5022_v54 = vpop.xlane.xlu2 %5021 }
0x16c1   : > { %v5030_v33 = vmul.f32 %v5022_v54, %v8921_v55 }
0x16c3   : > { %v9994_v43 = vsub.f32 %v9974_v51, %v5030_v33 }
0x16c5   : > { %v5038_v0 = vmul.f32 %v9994_v43, %v9994_v43 }
0x16c7   : > { %v5044_v30 = vsel %vm1064_vm3, %v5038_v0, 0.0 }
0x16c8   : > { %v5025_v59 = vpop.xlane.xlu0 %5024  ;;  %5045 = vadd.xlane.f32.xlu1 %v5044_v30 }
0x16c9   : > { %v5031_v12 = vmul.f32 %v5025_v59, %v8921_v55 }
0x16cb   : > { %v10001_v44 = vsub.f32 %v9979_v52, %v5031_v12 }
0x16cd   : > { %v5039_v62 = vmul.f32 %v10001_v44, %v10001_v44 }
0x16cf   : > { %v5047_v3 = vsel %vm1064_vm3, %v5039_v62, 0.0 }
0x16d0   : > { %5048 = vadd.xlane.f32.xlu1 %v5047_v3 }
0x16d1   : > { %v5028_v41 = vpop.xlane.xlu1 %5027 }
0x16d2   : > { %v5032_v19 = vmul.f32 %v5028_v41, %v8921_v55 }
0x16d4   : > { %v10008_v10 = vsub.f32 %v9985_v23, %v5032_v19 }
0x16d6   : > { %v5040_v16 = vmul.f32 %v10008_v10, %v10008_v10 }
0x16d8   : > { %v5050_v13 = vsel %vm1064_vm3, %v5040_v16, 0.0 }
0x16d9   : > { %5051 = vadd.xlane.f32.xlu1 %v5050_v13  ;;  %v8170_v13 = vld [vmem:[%s11021_s16 + $0xf0] sm:$0xff] }
0x16f0   : > { %v5043_v39 = vpop.xlane.xlu1 %5042 }
0x16f1   : > { %v5053_v32 = vmul.f32 %v5043_v39, %v8921_v55 }
0x16f3   : > { %v5057_v57 = vadd.f32 1e-05, %v5053_v32 }
0x16f5   : > { %8560 = vrsqrt.f32 %v5057_v57  ;;  %vm5067_vm4 = vweird.f32 %v5057_v57 }
0x16fb   : > { %v8561_v60 = vpop.eup %8560 }
0x16fc   : > { %v5062_v1 = vmul.f32 %v8561_v60, %v5057_v57  ;;  %vm5068_vm15 = vweird.f32 %v8561_v60 }
0x16fd   : > { %vm5069_vm6 = vmor %vm5067_vm4, %vm5068_vm15 }
0x16fe   : > { %v5063_v24 = vmul.f32 %v8561_v60, %v5062_v1 }
0x1700   : > { %v5064_v14 = vmul.f32 0.5, %v5063_v24 }
0x1702   : > { %v5065_v20 = vsub.f32 1.5, %v5064_v14 }
0x1704   : > { %v5066_v5 = vmul.f32 %v8561_v60, %v5065_v20 }
0x1706   : > { %v5070_v58 = vsel %vm5069_vm6, %v8561_v60, %v5066_v5 }
0x1707   : > { %v5101_v25 = vmul.f32 %v5070_v58, %v5033_v6  ;;  %v8171_v6 = vld [vmem:[%s11021_s16 + $0xf8] sm:$0xff] }
0x1708   : > { %5228 = vmatpush.msrb.mxu0 %v8171_v6  ;;  %v8168_v6 = vld [vmem:[%s11021_s16 + $0xe0] sm:$0xff] }
0x1709   : > { %v5108_v54 = vmul.f32 %v10037_v37, %v5101_v25 }
0x170a   : > { %5229 = vmatpush.msrb.mxu0 %v8170_v13  ;;  %v8167_v13 = vld [vmem:[%s11021_s16 + $0xd8] sm:$0xff] }
0x170b   : > { %v5115_v33 = vadd.f32 %v10043_v18, %v5108_v54 }
0x170c   : > { %5230 = vmatpush.msrb.mxu0 %v8169_v50  ;;  %v8162_v50 = vld [vmem:[%s11021_s16 + $0xb0] sm:$0xff] }
0x170d   : > { %8152 = vmatmul.msk.f32.vlgmr.msra.gmra.mxu1 %vm1064_vm3, %v5115_v33 }
0x170e   : > { %5231 = vmatpush.msrb.mxu0 %v8168_v6 }
0x1710   : > { %5232 = vmatpush.msrb.mxu0 %v8167_v13 }
0x173b   : > { %v5046_v0 = vpop.xlane.xlu1 %5045 }
0x173c   : > { %v5054_v30 = vmul.f32 %v5046_v0, %v8921_v55 }
0x173e   : > { %v5058_v59 = vadd.f32 1e-05, %v5054_v30 }
0x1740   : > { %8562 = vrsqrt.f32 %v5058_v59  ;;  %vm5077_vm8 = vweird.f32 %v5058_v59 }
0x1743   : > { %v5049_v12 = vpop.xlane.xlu1 %5048 }
0x1744   : > { %v5055_v62 = vmul.f32 %v5049_v12, %v8921_v55 }
0x1746   : > { %v8563_v3 = vpop.eup %8562  ;;  %v5059_v41 = vadd.f32 1e-05, %v5055_v62 }
0x1747   : > { %v5072_v19 = vmul.f32 %v8563_v3, %v5058_v59  ;;  %vm5078_vm7 = vweird.f32 %v8563_v3 }
0x1748   : > { %8564 = vrsqrt.f32 %v5059_v41  ;;  %vm5079_vm9 = vmor %vm5077_vm8, %vm5078_vm7  ;;  %vm5087_vm11 = vweird.f32 %v5059_v41 }
0x1749   : > { %v5073_v16 = vmul.f32 %v8563_v3, %v5072_v19 }
0x174b   : > { %v5074_v38 = vmul.f32 0.5, %v5073_v16 }
0x174c   : > { %v5052_v53 = vpop.xlane.xlu1 %5051 }
0x174d   : > { %v5075_v22 = vsub.f32 1.5, %v5074_v38  ;;  %v5056_v47 = vmul.f32 %v5052_v53, %v8921_v55  ;;  %v8163_v38 = vld [vmem:[%s11021_s16 + $0xb8] sm:$0xff]  ;;  %v8161_v53 = vld [vmem:[%s11021_s16 + $0xa8] sm:$0xff] }
0x174e   : > { %v8565_v26 = vpop.eup %8564 }
0x174f   : > { %v5076_v39 = vmul.f32 %v8563_v3, %v5075_v22  ;;  %v5082_v32 = vmul.f32 %v8565_v26, %v5059_v41  ;;  %v5060_v57 = vadd.f32 1e-05, %v5056_v47  ;;  %vm5088_vm10 = vweird.f32 %v8565_v26  ;;  %v8160_v22 = vld [vmem:[%s11021_s16 + $0xa0] sm:$0xff]  ;;  %v8159_v47 = vld [vmem:[%s11021_s16 + $0x98] sm:$0xff] }
0x1750   : > { %vm5089_vm12 = vmor %vm5087_vm11, %vm5088_vm10 }
0x1751   : > { %v5080_v46 = vsel %vm5079_vm9, %v8563_v3, %v5076_v39  ;;  %v5083_v60 = vmul.f32 %v8565_v26, %v5082_v32  ;;  %8566 = vrsqrt.f32 %v5060_v57  ;;  %vm5097_vm14 = vweird.f32 %v5060_v57  ;;  %v8178_v39 = vld [vmem:[%s11114_s30 + $0x8] sm:$0x7]  ;;  %v5283_v32 = vpop.f32.mrf.mxu2 }
0x1752   : > { %v5102_v1 = vmul.f32 %v5080_v46, %v9994_v43  ;;  %8180 = vmatpush.msk.msrb.mxu3 %vm876_vm1, %v8178_v39  ;;  %v8156_v46 = vld [vmem:[%s11021_s16 + $0x80] sm:$0xff] }
0x1753   : > { %v5084_v24 = vmul.f32 0.5, %v5083_v60  ;;  %8181 = vmatmul.msk.f32.vlgmr.msrb.gmra.mxu3 %vm863_vm2, %v5283_v32  ;;  %v8383_v60 = vld [vmem:[%s11020_s15 + $0x1] ss:$0 sm:$0xff] }
0x1754   : > { %v5109_v14 = vmul.f32 %v10037_v37, %v5102_v1 }
0x1755   : > { %v5085_v20 = vsub.f32 1.5, %v5084_v24 }
0x1756   : > { %v5116_v5 = vadd.f32 %v10043_v18, %v5109_v14 }
0x1757   : > { %v8567_v58 = vpop.eup %8566  ;;  %v5086_v25 = vmul.f32 %v8565_v26, %v5085_v20 }
0x1758   : > { %v5092_v54 = vmul.f32 %v8567_v58, %v5060_v57  ;;  %8153 = vmatmul.msk.f32.gmra.mxu1 %vm1064_vm3, %v5116_v5  ;;  %vm5098_vm13 = vweird.f32 %v8567_v58  ;;  %v8157_v57 = vld [vmem:[%s11021_s16 + $0x88] sm:$0xff] }
0x1759   : > { %v5090_v33 = vsel %vm5089_vm12, %v8565_v26, %v5086_v25  ;;  %vm5099_vm15 = vmor %vm5097_vm14, %vm5098_vm13  ;;  %v8158_v26 = vld [vmem:[%s11021_s16 + $0x90] sm:$0xff] }
0x175a   : > { %v5103_v0 = vmul.f32 %v5090_v33, %v10001_v44  ;;  %v5093_v30 = vmul.f32 %v8567_v58, %v5092_v54 }
0x175c   : > { %v5094_v59 = vmul.f32 0.5, %v5093_v30  ;;  %v5110_v43 = vmul.f32 %v10037_v37, %v5103_v0 }
0x175e   : > { %v5095_v12 = vsub.f32 1.5, %v5094_v59  ;;  %v5117_v62 = vadd.f32 %v10043_v18, %v5110_v43  ;;  %v5303_v59 = vpop.f32.mrf.mxu2 }
0x175f   : > { %8182 = vmatmul.msk.f32.gmra.mxu3 %vm863_vm2, %v5303_v59  ;;  %v8384_v59 = vld [vmem:[%s11022_s17 + $0x1] ss:$0 sm:$0xff] }
0x1760   : > { %v5096_v3 = vmul.f32 %v8567_v58, %v5095_v12  ;;  %8154 = vmatmul.msk.f32.gmra.mxu1 %vm1064_vm3, %v5117_v62 }
0x1762   : > { %v5100_v41 = vsel %vm5099_vm15, %v8567_v58, %v5096_v3 }
0x1763   : > { %v5104_v19 = vmul.f32 %v5100_v41, %v10008_v10  ;;  %v8166_v10 = vld [vmem:[%s11021_s16 + $0xd0] sm:$0xff] }
0x1764   : > { %5233 = vmatpush.msrb.mxu0 %v8166_v10 }
0x1765   : > { %v5111_v16 = vmul.f32 %v10037_v37, %v5104_v19  ;;  %v8165_v37 = vld [vmem:[%s11021_s16 + $0xc8] sm:$0xff] }
0x1766   : > { %5234 = vmatpush.msrb.mxu0 %v8165_v37  ;;  %v5323_v43 = vpop.f32.mrf.mxu2 }
0x1767   : > { %v5118_v44 = vadd.f32 %v10043_v18, %v5111_v16  ;;  %v8164_v18 = vld [vmem:[%s11021_s16 + $0xc0] sm:$0xff]  ;;  %8183 = vmatmul.msk.f32.gmra.mxu3 %vm863_vm2, %v5323_v43 }
0x1768   : > { %5235 = vmatpush.msrb.mxu0 %v8164_v18  ;;  %v8385_v43 = vld [vmem:[%s11118_s8 + $0x2] ss:$0 sm:$0xff] }
0x1769   : > { %8155 = vmatmul.msk.f32.gmra.mxu1 %vm1064_vm3, %v5118_v44 }
0x176a   : > { %5236 = vmatpush.msrb.mxu0 %v8163_v38 }
0x176c   : > { %5237 = vmatpush.msrb.mxu0 %v8162_v50 }
0x176e   : > { %5238 = vmatpush.msrb.mxu0 %v8161_v53  ;;  %v5343_v16 = vpop.f32.mrf.mxu2 }
0x176f   : > { %8184 = vmatmul.msk.f32.gmra.mxu3 %vm863_vm2, %v5343_v16 }
0x1770   : > { %5239 = vmatpush.msrb.mxu0 %v8160_v22 }
0x1772   : > { %5240 = vmatpush.msrb.mxu0 %v8159_v47 }
0x1774   : > { %5241 = vmatpush.msrb.mxu0 %v8158_v26 }
0x1776   : > { %5242 = vmatpush.msrb.mxu0 %v8157_v57 }
0x1778   : > { %5243 = vmatpush.msrb.mxu0 %v8156_v46 }
0x178a   : > { %v5158_v1 = vpop.f32.mrf.mxu1 }
0x178b   : > { %v5159_v24 = vadd.f32 %v8383_v60, %v5158_v1 }
0x178d   : > { %v5170_v14 = vmul.f32 %v5159_v24, %v5159_v24 }
0x178f   : > { %v5174_v20 = vmul.f32 %v5170_v14, %v5159_v24 }
0x1791   : > { %v5178_v5 = vmul.f32 0.044715, %v5174_v20 }
0x1793   : > { %v5182_v58 = vadd.f32 %v5178_v5, %v5159_v24 }
0x1795   : > { %v5186_v25 = vmul.f32 0.7978846, %v5182_v58 }
0x1797   : > { %8568 = vtanh.f32 %v5186_v25 }
0x179d   : > { %v8569_v54 = vpop.eup %8568 }
0x179e   : > { %v5194_v33 = vadd.f32 1.0, %v8569_v54 }
0x17a0   : > { %v5198_v0 = vmul.f32 0.5, %v5194_v33 }
0x17a2   : > { %v5202_v30 = vmul.f32 %v5198_v0, %v5159_v24 }
0x17a4   : > { %5244 = vmatmul.f32.vlgmr.msrb.gmra.mxu0 %v5202_v30 }
0x17d5   : > { %v5161_v12 = vpop.f32.mrf.mxu1 }
0x17d6   : > { %v5162_v62 = vadd.f32 %v8383_v60, %v5161_v12  ;;  %v5385_v12 = vpop.f32.mrf.mxu3 }
0x17d8   : > { %v5171_v3 = vmul.f32 %v5162_v62, %v5162_v62 }
0x17da   : > { %v5175_v41 = vmul.f32 %v5171_v3, %v5162_v62 }
0x17dc   : > { %v5179_v19 = vmul.f32 0.044715, %v5175_v41  ;;  %v5386_v41 = vadd.f32 %v8385_v43, %v5385_v12 }
0x17dd   : > { %v5164_v44 = vpop.f32.mrf.mxu1 }
0x17de   : > { %v5183_v6 = vadd.f32 %v5179_v19, %v5162_v62  ;;  %v5165_v13 = vadd.f32 %v8383_v60, %v5164_v44 }
0x17e0   : > { %v5172_v10 = vmul.f32 %v5165_v13, %v5165_v13  ;;  %v5187_v37 = vmul.f32 0.7978846, %v5183_v6 }
0x17e2   : > { %v5176_v18 = vmul.f32 %v5172_v10, %v5165_v13  ;;  %8570 = vtanh.f32 %v5187_v37  ;;  %v5388_v6 = vpop.f32.mrf.mxu3 }
0x17e3   : > { %v5389_v37 = vadd.f32 %v8385_v43, %v5388_v6 }
0x17e4   : > { %v5180_v38 = vmul.f32 0.044715, %v5176_v18 }
0x17e6   : > { %v5184_v50 = vadd.f32 %v5180_v38, %v5165_v13  ;;  %v5167_v53 = vpop.f32.mrf.mxu1 }
0x17e7   : > { %v5168_v22 = vadd.f32 %v8383_v60, %v5167_v53 }
0x17e8   : > { %v8571_v47 = vpop.eup %8570  ;;  %v5188_v26 = vmul.f32 0.7978846, %v5184_v50 }
0x17e9   : > { %v5173_v39 = vmul.f32 %v5168_v22, %v5168_v22  ;;  %v5195_v32 = vadd.f32 1.0, %v8571_v47 }
0x17ea   : > { %8572 = vtanh.f32 %v5188_v26  ;;  %v5391_v50 = vpop.f32.mrf.mxu3 }
0x17eb   : > { %v5177_v57 = vmul.f32 %v5173_v39, %v5168_v22  ;;  %v5199_v46 = vmul.f32 0.5, %v5195_v32  ;;  %v5392_v47 = vadd.f32 %v8385_v43, %v5391_v50  ;;  %v8187_v50 = vld [vmem:[%s11119_s28 + $0x40] sm:$0xff] }
0x17ed   : > { %v5181_v1 = vmul.f32 0.044715, %v5177_v57  ;;  %v5203_v24 = vmul.f32 %v5199_v46, %v5162_v62 }
0x17ef   : > { %v5185_v14 = vadd.f32 %v5181_v1, %v5168_v22  ;;  %5247 = vmatmul.f32.gmra.mxu0 %v5203_v24 }
0x17f0   : > { %v8573_v20 = vpop.eup %8572 }
0x17f1   : > { %v5196_v5 = vadd.f32 1.0, %v8573_v20  ;;  %v5189_v58 = vmul.f32 0.7978846, %v5185_v14 }
0x17f2   : > { %v5394_v57 = vpop.f32.mrf.mxu3 }
0x17f3   : > { %v5200_v25 = vmul.f32 0.5, %v5196_v5  ;;  %8574 = vtanh.f32 %v5189_v58  ;;  %v5395_v1 = vadd.f32 %v8385_v43, %v5394_v57 }
0x17f5   : > { %v5204_v54 = vmul.f32 %v5200_v25, %v5165_v13 }
0x17f7   : > { %5250 = vmatmul.f32.gmra.mxu0 %v5204_v54 }
0x17f9   : > { %v8575_v33 = vpop.eup %8574 }
0x17fa   : > { %v5197_v60 = vadd.f32 1.0, %v8575_v33 }
0x17fc   : > { %v5201_v0 = vmul.f32 0.5, %v5197_v60 }
0x17fe   : > { %v5205_v30 = vmul.f32 %v5201_v0, %v5168_v22 }
0x1800   : > { %5253 = vmatmul.f32.gmra.mxu0 %v5205_v30 }
0x1821   : > { %v5245_v62 = vpop.f32.mrf.mxu0 }
0x1822   : > { %v5246_v3 = vadd.f32 %v8384_v59, %v5245_v62 }
0x1824   : > { %v5257_v19 = vadd.f32 %v5246_v3, %v9967_v48 }
0x1826   : > { %v10129_v16 = vadd.f32 %v5386_v41, %v5257_v19 }
0x1828   : > { %v5405_v44 = vsel %vm1064_vm3, %v10129_v16, 0.0 }
0x1829   : > { %5406 = vadd.xlane.f32.xlu2 %v5405_v44 }
0x186c   : > { %v5248_v13 = vpop.f32.mrf.mxu0 }
0x186d   : > { %v5249_v10 = vadd.f32 %v8384_v59, %v5248_v13 }
0x186f   : > { %v5258_v18 = vadd.f32 %v5249_v10, %v9974_v51  ;;  %v8190_v10 = vld [vmem:[%s11119_s28 + $0x58] sm:$0xff] }
0x1870   : > { %5541 = vmatpush.msrb.mxu1 %v8190_v10 }
0x1871   : > { %v10134_v38 = vadd.f32 %v5389_v37, %v5258_v18  ;;  %v8189_v37 = vld [vmem:[%s11119_s28 + $0x50] sm:$0xff]  ;;  %v8188_v18 = vld [vmem:[%s11119_s28 + $0x48] sm:$0xff] }
0x1872   : > { %5542 = vmatpush.msrb.mxu1 %v8189_v37 }
0x1873   : > { %v5408_v53 = vsel %vm1064_vm3, %v10134_v38, 0.0 }
0x1874   : > { %5409 = vadd.xlane.f32.xlu1 %v5408_v53  ;;  %v5251_v48 = vpop.f32.mrf.mxu0  ;;  %5543 = vmatpush.msrb.mxu1 %v8188_v18 }
0x1875   : > { %v5252_v22 = vadd.f32 %v8384_v59, %v5251_v48 }
0x1876   : > { %5544 = vmatpush.msrb.mxu1 %v8187_v50 }
0x1877   : > { %v5259_v26 = vadd.f32 %v5252_v22, %v9979_v52 }
0x1879   : > { %v10139_v39 = vadd.f32 %v5392_v47, %v5259_v26 }
0x187b   : > { %v5411_v32 = vsel %vm1064_vm3, %v10139_v39, 0.0 }
0x187c   : > { %5412 = vadd.xlane.f32.xlu0 %v5411_v32 }
0x187d   : > { %v5254_v51 = vpop.f32.mrf.mxu0 }
0x187e   : > { %v5255_v46 = vadd.f32 %v8384_v59, %v5254_v51 }
0x1880   : > { %v5260_v24 = vadd.f32 %v5255_v46, %v9985_v23 }
0x1882   : > { %v10144_v14 = vadd.f32 %v5395_v1, %v5260_v24  ;;  %v8386_v1 = vld [vmem:[%s11120_s3 + $0x2] ss:$0 sm:$0xff] }
0x1884   : > { %v5414_v20 = vsel %vm1064_vm3, %v10144_v14, 0.0 }
0x1885   : > { %5415 = vadd.xlane.f32.xlu2 %v5414_v20  ;;  %v8387_v20 = vld [vmem:[%s11121_s10 + $0x2] ss:$0 sm:$0xff] }
0x189c   : > { %v5407_v5 = vpop.xlane.xlu2 %5406 }
0x189d   : > { %v5417_v52 = vmul.f32 %v5407_v5, %v8921_v55 }
0x189f   : > { %v5421_v58 = vsub.f32 %v10129_v16, %v5417_v52 }
0x18a1   : > { %v5425_v25 = vmul.f32 %v5421_v58, %v5421_v58 }
0x18a3   : > { %v5429_v54 = vsel %vm1064_vm3, %v5425_v25, 0.0 }
0x18a4   : > { %5430 = vadd.xlane.f32.xlu1 %v5429_v54 }
0x18e7   : > { %v5410_v33 = vpop.xlane.xlu1 %5409 }
0x18e8   : > { %v5418_v60 = vmul.f32 %v5410_v33, %v8921_v55 }
0x18ea   : > { %v10153_v23 = vsub.f32 %v10134_v38, %v5418_v60 }
0x18ec   : > { %v5426_v0 = vmul.f32 %v10153_v23, %v10153_v23 }
0x18ee   : > { %v5432_v30 = vsel %vm1064_vm3, %v5426_v0, 0.0 }
0x18ef   : > { %v5413_v59 = vpop.xlane.xlu0 %5412  ;;  %5433 = vadd.xlane.f32.xlu0 %v5432_v30 }
0x18f0   : > { %v5419_v43 = vmul.f32 %v5413_v59, %v8921_v55 }
0x18f2   : > { %v10160_v12 = vsub.f32 %v10139_v39, %v5419_v43 }
0x18f4   : > { %v5427_v62 = vmul.f32 %v10160_v12, %v10160_v12 }
0x18f6   : > { %v5435_v3 = vsel %vm1064_vm3, %v5427_v62, 0.0 }
0x18f7   : > { %5436 = vadd.xlane.f32.xlu2 %v5435_v3 }
0x18f8   : > { %v5416_v41 = vpop.xlane.xlu2 %5415 }
0x18f9   : > { %v5420_v19 = vmul.f32 %v5416_v41, %v8921_v55 }
0x18fb   : > { %v10167_v44 = vsub.f32 %v10144_v14, %v5420_v19 }
0x18fd   : > { %v5428_v6 = vmul.f32 %v10167_v44, %v10167_v44 }
0x18ff   : > { %v5438_v13 = vsel %vm1064_vm3, %v5428_v6, 0.0 }
0x1900   : > { %5439 = vadd.xlane.f32.xlu1 %v5438_v13 }
0x1917   : > { %v5431_v53 = vpop.xlane.xlu1 %5430 }
0x1918   : > { %v5441_v48 = vmul.f32 %v5431_v53, %v8921_v55 }
0x191a   : > { %v5445_v22 = vadd.f32 1e-05, %v5441_v48 }
0x191c   : > { %8576 = vrsqrt.f32 %v5445_v22  ;;  %vm5455_vm2 = vweird.f32 %v5445_v22 }
0x1922   : > { %v8577_v47 = vpop.eup %8576 }
0x1923   : > { %v5450_v26 = vmul.f32 %v8577_v47, %v5445_v22  ;;  %vm5456_vm1 = vweird.f32 %v8577_v47 }
0x1924   : > { %vm5457_vm4 = vmor %vm5455_vm2, %vm5456_vm1 }
0x1925   : > { %v5451_v32 = vmul.f32 %v8577_v47, %v5450_v26 }
0x1927   : > { %v5452_v57 = vmul.f32 0.5, %v5451_v32 }
0x1929   : > { %v5453_v51 = vsub.f32 1.5, %v5452_v57 }
0x192b   : > { %v5454_v46 = vmul.f32 %v8577_v47, %v5453_v51 }
0x192d   : > { %v5458_v24 = vsel %vm5457_vm4, %v8577_v47, %v5454_v46 }
0x192e   : > { %v5489_v5 = vmul.f32 %v5458_v24, %v5421_v58 }
0x1930   : > { %v5496_v52 = vmul.f32 %v8386_v1, %v5489_v5 }
0x1932   : > { %v5503_v25 = vadd.f32 %v8387_v20, %v5496_v52 }
0x1934   : > { %8192 = vmatmul.msk.f32.vlgmr.msrb.gmra.mxu1 %vm1064_vm3, %v5503_v25 }
0x1962   : > { %v5434_v54 = vpop.xlane.xlu0 %5433 }
0x1963   : > { %v5442_v33 = vmul.f32 %v5434_v54, %v8921_v55 }
0x1965   : > { %v5446_v60 = vadd.f32 1e-05, %v5442_v33 }
0x1967   : > { %8578 = vrsqrt.f32 %v5446_v60  ;;  %vm5465_vm7 = vweird.f32 %v5446_v60 }
0x196a   : > { %v5437_v0 = vpop.xlane.xlu2 %5436 }
0x196b   : > { %v5443_v30 = vmul.f32 %v5437_v0, %v8921_v55 }
0x196d   : > { %v8579_v59 = vpop.eup %8578  ;;  %v5447_v43 = vadd.f32 1e-05, %v5443_v30 }
0x196e   : > { %v5460_v62 = vmul.f32 %v8579_v59, %v5446_v60  ;;  %vm5466_vm6 = vweird.f32 %v8579_v59 }
0x196f   : > { %8580 = vrsqrt.f32 %v5447_v43  ;;  %vm5467_vm8 = vmor %vm5465_vm7, %vm5466_vm6  ;;  %vm5475_vm10 = vweird.f32 %v5447_v43 }
0x1970   : > { %v5461_v3 = vmul.f32 %v8579_v59, %v5460_v62 }
0x1972   : > { %v5462_v41 = vmul.f32 0.5, %v5461_v3 }
0x1973   : > { %v5440_v19 = vpop.xlane.xlu1 %5439 }
0x1974   : > { %v5463_v58 = vsub.f32 1.5, %v5462_v41  ;;  %v5444_v6 = vmul.f32 %v5440_v19, %v8921_v55 }
0x1975   : > { %v8581_v13 = vpop.eup %8580 }
0x1976   : > { %v5464_v10 = vmul.f32 %v8579_v59, %v5463_v58  ;;  %v5470_v37 = vmul.f32 %v8581_v13, %v5447_v43  ;;  %v5448_v18 = vadd.f32 1e-05, %v5444_v6  ;;  %vm5476_vm9 = vweird.f32 %v8581_v13 }
0x1977   : > { %vm5477_vm11 = vmor %vm5475_vm10, %vm5476_vm9 }
0x1978   : > { %v5468_v50 = vsel %vm5467_vm8, %v8579_v59, %v5464_v10  ;;  %v5471_v53 = vmul.f32 %v8581_v13, %v5470_v37  ;;  %8582 = vrsqrt.f32 %v5448_v18  ;;  %vm5485_vm13 = vweird.f32 %v5448_v18 }
0x1979   : > { %v5490_v48 = vmul.f32 %v5468_v50, %v10153_v23 }
0x197a   : > { %v5472_v22 = vmul.f32 0.5, %v5471_v53 }
0x197b   : > { %v5497_v47 = vmul.f32 %v8386_v1, %v5490_v48 }
0x197c   : > { %v5473_v26 = vsub.f32 1.5, %v5472_v22 }
0x197d   : > { %v5504_v32 = vadd.f32 %v8387_v20, %v5497_v47 }
0x197e   : > { %v8583_v57 = vpop.eup %8582  ;;  %v5474_v51 = vmul.f32 %v8581_v13, %v5473_v26 }
0x197f   : > { %v5480_v46 = vmul.f32 %v8583_v57, %v5448_v18  ;;  %8193 = vmatmul.msk.f32.gmra.mxu1 %vm1064_vm3, %v5504_v32  ;;  %vm5486_vm12 = vweird.f32 %v8583_v57 }
0x1980   : > { %v5478_v24 = vsel %vm5477_vm11, %v8581_v13, %v5474_v51  ;;  %vm5487_vm14 = vmor %vm5485_vm13, %vm5486_vm12 }
0x1981   : > { %v5491_v5 = vmul.f32 %v5478_v24, %v10160_v12  ;;  %v5481_v52 = vmul.f32 %v8583_v57, %v5480_v46  ;;  %v8388_v12 = vld [vmem:[%s11122_s11 + $0x2] ss:$0 sm:$0xff] }
0x1983   : > { %v5482_v25 = vmul.f32 0.5, %v5481_v52  ;;  %v5498_v54 = vmul.f32 %v8386_v1, %v5491_v5 }
0x1985   : > { %v5483_v33 = vsub.f32 1.5, %v5482_v25  ;;  %v5505_v23 = vadd.f32 %v8387_v20, %v5498_v54 }
0x1987   : > { %v5484_v60 = vmul.f32 %v8583_v57, %v5483_v33  ;;  %8194 = vmatmul.msk.f32.gmra.mxu1 %vm1064_vm3, %v5505_v23 }
0x1989   : > { %v5488_v0 = vsel %vm5487_vm14, %v8583_v57, %v5484_v60 }
0x198a   : > { %v5492_v30 = vmul.f32 %v5488_v0, %v10167_v44 }
0x198c   : > { %v5499_v59 = vmul.f32 %v8386_v1, %v5492_v30 }
0x198e   : > { %v5506_v43 = vadd.f32 %v8387_v20, %v5499_v59 }
0x1990   : > { %8195 = vmatmul.msk.f32.gmra.mxu1 %vm1064_vm3, %v5506_v43 }
0x19b1   : > { %v5546_v62 = vpop.f32.mrf.mxu1 }
0x19b2   : > { %v10204_v3 = vadd.f32 %v8388_v12, %v5546_v62 }
0x19b4   : > { %5564 = vrot.lane.b32.xlu0 %v10204_v3, %s11136_s20 }
0x19fc   : > { %v5549_v41 = vpop.f32.mrf.mxu1 }
0x19fd   : > { %v10208_v19 = vadd.f32 %v8388_v12, %v5549_v41 }
0x19ff   : > { %5591 = vrot.lane.b32.xlu1 %v10208_v19, %s11136_s20 }
0x1a04   : > { %v5552_v44 = vpop.f32.mrf.mxu1 }
0x1a05   : > { %v10212_v1 = vadd.f32 %v8388_v12, %v5552_v44 }
0x1a07   : > { %5618 = vrot.lane.b32.xlu2 %v10212_v1, %s11136_s20 }
0x1a0d   : > { %v5555_v20 = vpop.f32.mrf.mxu1 }
0x1a0e   : > { %v10216_v58 = vadd.f32 %v8388_v12, %v5555_v20 }
0x1a10   : > { %5645 = vrot.lane.b32.xlu0 %v10216_v58, %s11136_s20  ;;  %s11146_s20 = smov 48  }
0x1a26   : > { %v5565_v6 = vpop.permute.xlu0 %5564 }
0x1a27   : > { %8200 = vmatpush.xpose.msk.msrb.mxu2 %vm925_vm0, %v5565_v6 }
0x1a2a   : > { %8201 = vmatmul.msk.f32.vlgmr.msrb.gmra.mxu2 %vm925_vm0, %v10204_v3 }
0x1a61   : > { %v5619_v13 = vpop.permute.xlu2 %5618 }
0x1a62   : > { %8204 = vmatpush.xpose.msk.msra.mxu2 %vm925_vm0, %v5619_v13 }
0x1a65   : > { %8205 = vmatmul.msk.f32.vlgmr.msra.gmra.mxu2 %vm925_vm0, %v10212_v1 }
0x1a71   : > { %v5592_v10 = vpop.permute.xlu1 %5591 }
0x1a72   : > { %8202 = vmatpush.xpose.msk.msra.mxu0 %vm925_vm0, %v5592_v10 }
0x1a75   : > { %8203 = vmatmul.msk.f32.vlgmr.msra.gmra.mxu0 %vm925_vm0, %v10208_v19 }
0x1a82   : > { %v5646_v37 = vpop.permute.xlu0 %5645 }
0x1a83   : > { %8206 = vmatpush.xpose.msk.msrb.mxu0 %vm925_vm0, %v5646_v37 }
0x1a86   : > { %8207 = vmatmul.msk.f32.vlgmr.msrb.gmra.mxu0 %vm925_vm0, %v10216_v58 }
0x1aad   : > { %v5587_v18 = vpop.f32.mrf.mxu2 }
0x1aae   : > { %v5671_v50 = vmul.f32 0.001, %v5587_v18 }
0x1ab0   : > { %v5675_v53 = vsel %vm9017_vm5, %v5671_v50, -1e+30 }
0x1ab1   : > { %v5679_v48 = vsel %vm925_vm0, %v5675_v53, -inf }
0x1ab2   : > { %5680 = vmax.xlane.f32.xlu2 %v5679_v48 }
0x1ae8   : > { %v5641_v22 = vpop.f32.mrf.mxu2 }
0x1ae9   : > { %v5673_v47 = vmul.f32 0.001, %v5641_v22 }
0x1aeb   : > { %v5677_v26 = vsel %vm9017_vm5, %v5673_v47, -1e+30 }
0x1aec   : > { %v5685_v32 = vsel %vm925_vm0, %v5677_v26, -inf }
0x1aed   : > { %5686 = vmax.xlane.f32.xlu0 %v5685_v32 }
0x1af2   : > { %v10238_v57 = vpop.f32.mrf.mxu0 }
0x1b01   : > { %5827 = vrot.lane.b32.xlu0 %v10212_v1, %s11137_s21 }
0x1b03   : > { %v5668_v51 = vpop.f32.mrf.mxu0 }
0x1b04   : > { %v5674_v46 = vmul.f32 0.001, %v5668_v51 }
0x1b06   : > { %v5678_v24 = vsel %vm9017_vm5, %v5674_v46, -1e+30 }
0x1b07   : > { %v5688_v5 = vsel %vm925_vm0, %v5678_v24, -inf }
0x1b08   : > { %5689 = vmax.xlane.f32.xlu1 %v5688_v5 }
0x1b21   : > { %5775 = vrot.lane.b32.xlu1 %v10204_v3, %s11137_s21 }
0x1b25   : > { %v5681_v52 = vpop.xlane.xlu2 %5680 }
0x1b26   : > { %v5691_v25 = vsub.f32 %v5675_v53, %v5681_v52 }
0x1b28   : > { %v5695_v54 = vmul.f32 1.442695, %v5691_v25 }
0x1b29   : > { %5853 = vrot.lane.b32.xlu1 %v10216_v58, %s11137_s21 }
0x1b2a   : > { %8584 = vpow2.f32 %v5695_v54 }
0x1b30   : > { %v8585_v33 = vpop.eup %8584 }
0x1b31   : > { %6003 = vrot.lane.b32.xlu1 %v10216_v58, %s11127_s1  ;;  %v5703_v23 = vsel %vm925_vm0, %v8585_v33, 0.0 }
0x1b32   : > { %5704 = vadd.xlane.f32.xlu2 %v5703_v23 }
0x1b39   : > { %6187 = vrot.lane.b32.xlu1 %v10212_v1, %s11134_s5 }
0x1b41   : > { %6391 = vrot.lane.b32.xlu1 %v10208_v19, %s11139_s24 }
0x1b60   : > { %v5687_v60 = vpop.xlane.xlu0 %5686 }
0x1b61   : > { %v5693_v0 = vsub.f32 %v5677_v26, %v5687_v60 }
0x1b63   : > { %v5699_v30 = vmul.f32 1.442695, %v5693_v0 }
0x1b65   : > { %8586 = vpow2.f32 %v5699_v30 }
0x1b6b   : > { %v8587_v59 = vpop.eup %8586 }
0x1b6c   : > { %v5709_v43 = vsel %vm925_vm0, %v8587_v59, 0.0 }
0x1b6d   : > { %5710 = vadd.xlane.f32.xlu0 %v5709_v43 }
0x1b73   : > { %v5828_v13 = vpop.permute.xlu0 %5827 }
0x1b7b   : > { %v5690_v12 = vpop.xlane.xlu1 %5689 }
0x1b7c   : > { %v5694_v62 = vsub.f32 %v5678_v24, %v5690_v12 }
0x1b7e   : > { %v5701_v41 = vmul.f32 1.442695, %v5694_v62 }
0x1b80   : > { %8588 = vpow2.f32 %v5701_v41 }
0x1b81   : > { %5975 = vrot.lane.b32.xlu0 %v10212_v1, %s11127_s1 }
0x1b86   : > { %v10259_v44 = vpop.eup %8588 }
0x1b87   : > { %v5712_v20 = vsel %vm925_vm0, %v10259_v44, 0.0 }
0x1b88   : > { %5713 = vadd.xlane.f32.xlu2 %v5712_v20 }
0x1b89   : > { %6005 = vrot.lane.b32.xlu0 %v10216_v58, %s11138_s23 }
0x1b93   : > { %v5776_v6 = vpop.permute.xlu1 %5775 }
0x1b94   : > { %5796 = vmatpush.msrb.mxu2 %v5776_v6 }
0x1b96   : > { %5848 = vmatpush.msra.mxu2 %v5828_v13 }
0x1b9b   : > { %v5854_v10 = vpop.permute.xlu1 %5853 }
0x1b9c   : > { %5874 = vmatpush.msra.mxu3 %v5854_v10 }
0x1ba0   : > { %5977 = vrot.lane.b32.xlu2 %v10212_v1, %s11138_s23 }
0x1ba3   : > { %v6004_v20 = vpop.permute.xlu1 %6003 }
0x1ba5   : > { %v5705_v37 = vpop.xlane.xlu2 %5704 }
0x1ba6   : > { %8590 = vrcp.f32 %v5705_v37  ;;  %v5726_v48 = vand.u32 2147483648, %v5705_v37  ;;  %v5724_v47 = vand.u32 2147483647, %v5705_v37  ;;  %vm5720_vm1 = vweird.f32 %v5705_v37 }
0x1ba8   : > { %v5727_v32 = vor.u32 1.1754944e-38, %v5726_v48  ;;  %vm5725_vm4 = vcmp.eq.f32.partialorder %v5724_v47, 8.507059e+37 }
0x1bac   : > { %v8591_v18 = vpop.eup %8590 }
0x1bad   : > { %v5716_v50 = vmul.f32 %v8591_v18, %v5705_v37  ;;  %vm5721_vm15 = vweird.f32 %v8591_v18 }
0x1bae   : > { %vm5722_vm2 = vmor %vm5720_vm1, %vm5721_vm15 }
0x1baf   : > { %v5717_v53 = vsub.f32 1.0, %v5716_v50  ;;  %v6188_v50 = vpop.permute.xlu1 %6187 }
0x1bb1   : > { %v5718_v22 = vmul.f32 %v8591_v18, %v5717_v53 }
0x1bb3   : > { %v5719_v26 = vadd.f32 %v8591_v18, %v5718_v22 }
0x1bb5   : > { %v5723_v51 = vsel %vm5722_vm2, %v8591_v18, %v5719_v26 }
0x1bb6   : > { %v5728_v46 = vsel %vm5725_vm4, %v5727_v32, %v5723_v51 }
0x1bb7   : > { %v10267_v24 = vmul.f32 %v8585_v33, %v5728_v46 }
0x1bb9   : > { %8208 = vmatmul.msk.f32.vlgmr.msrb.gmra.mxu2 %vm925_vm0, %v10267_v24 }
0x1be0   : > { %v5711_v5 = vpop.xlane.xlu0 %5710 }
0x1be1   : > { %8592 = vrcp.f32 %v5711_v5  ;;  %v5756_v23 = vand.u32 2147483648, %v5711_v5  ;;  %v5754_v0 = vand.u32 2147483647, %v5711_v5  ;;  %vm5750_vm7 = vweird.f32 %v5711_v5 }
0x1be3   : > { %v5757_v43 = vor.u32 1.1754944e-38, %v5756_v23  ;;  %vm5755_vm9 = vcmp.eq.f32.partialorder %v5754_v0, 8.507059e+37 }
0x1be7   : > { %v8593_v52 = vpop.eup %8592 }
0x1be8   : > { %v5746_v25 = vmul.f32 %v8593_v52, %v5711_v5  ;;  %vm5751_vm6 = vweird.f32 %v8593_v52 }
0x1be9   : > { %vm5752_vm8 = vmor %vm5750_vm7, %vm5751_vm6 }
0x1bea   : > { %v5747_v54 = vsub.f32 1.0, %v5746_v25 }
0x1bec   : > { %v5748_v60 = vmul.f32 %v8593_v52, %v5747_v54 }
0x1bee   : > { %v5749_v30 = vadd.f32 %v8593_v52, %v5748_v60 }
0x1bf0   : > { %v5753_v12 = vsel %vm5752_vm8, %v8593_v52, %v5749_v30 }
0x1bf1   : > { %v5758_v33 = vsel %vm5755_vm9, %v5757_v43, %v5753_v12 }
0x1bf2   : > { %v10271_v62 = vmul.f32 %v8587_v59, %v5758_v33  ;;  %v5672_v33 = vmul.f32 0.001, %v10238_v57 }
0x1bf3   : > { %v5976_v41 = vpop.permute.xlu0 %5975 }
0x1bf4   : > { %11143 = vst [vmem:[#allocation7_spill] sm:$0xff] %v10271_v62  ;;  %8210 = vmatmul.msk.f32.vlgmr.msra.gmra.mxu2 %vm925_vm0, %v10271_v62 }
0x1bfb   : > { %v5714_v6 = vpop.xlane.xlu2 %5713  ;;  %v6006_v13 = vpop.permute.xlu0 %6005 }
0x1bfc   : > { %8594 = vrcp.f32 %v5714_v6  ;;  %8219 = vmatpush.xpose.msk.msrb.mxu3 %vm925_vm0, %v6006_v13  ;;  %v5771_v59 = vand.u32 2147483648, %v5714_v6  ;;  %v5769_v22 = vand.u32 2147483647, %v5714_v6  ;;  %vm5765_vm11 = vweird.f32 %v5714_v6 }
0x1bfe   : > { %v5772_v26 = vor.u32 1.1754944e-38, %v5771_v59  ;;  %vm5770_vm13 = vcmp.eq.f32.partialorder %v5769_v22, 8.507059e+37 }
0x1c02   : > { %v8595_v10 = vpop.eup %8594 }
0x1c03   : > { %v5761_v37 = vmul.f32 %v8595_v10, %v5714_v6  ;;  %v5978_v18 = vpop.permute.xlu2 %5977  ;;  %vm5766_vm10 = vweird.f32 %v8595_v10 }
0x1c04   : > { %8217 = vmatpush.xpose.msk.msrb.mxu2 %vm925_vm0, %v5978_v18  ;;  %vm5767_vm12 = vmor %vm5765_vm11, %vm5766_vm10 }
0x1c05   : > { %v5762_v53 = vsub.f32 1.0, %v5761_v37 }
0x1c07   : > { %v5763_v48 = vmul.f32 %v8595_v10, %v5762_v53  ;;  %8218 = vmatmul.msk.f32.vlgmr.msrb.gmra.mxu2 %vm925_vm0, %v5976_v41  ;;  %v5676_v41 = vsel %vm9017_vm5, %v5672_v33, -1e+30 }
0x1c08   : > { %6208 = vmatpush.msra.mxu2 %v6188_v50 }
0x1c09   : > { %v5764_v47 = vadd.f32 %v8595_v10, %v5763_v48 }
0x1c0b   : > { %v5768_v32 = vsel %vm5767_vm12, %v8595_v10, %v5764_v47  ;;  %v6392_v47 = vpop.permute.xlu1 %6391 }
0x1c0c   : > { %v5773_v51 = vsel %vm5770_vm13, %v5772_v26, %v5768_v32 }
0x1c0d   : > { %v10279_v46 = vmul.f32 %v10259_v44, %v5773_v51 }
0x1c0f   : > { %11144 = vst [vmem:[#allocation8_spill] sm:$0xff] %v10279_v46  ;;  %8211 = vmatmul.msk.f32.vlgmr.msra.gmra.mxu3 %vm925_vm0, %v10279_v46 }
0x1c17   : > { %8220 = vmatmul.msk.f32.vlgmr.msrb.gmra.mxu3 %vm925_vm0, %v6004_v20  ;;  %v5682_v20 = vsel %vm925_vm0, %v5676_v41, -inf }
0x1c3c   : > { %v10284_v5 = vpop.f32.mrf.mxu2 }
0x1c77   : > { %v10286_v52 = vpop.f32.mrf.mxu2 }
0x1c8a   : > { %v6000_v25 = vpop.f32.mrf.mxu2 }
0x1c8b   : > { %v6033_v54 = vmul.f32 0.001, %v6000_v25 }
0x1c8d   : > { %v6037_v23 = vsel %vm9017_vm5, %v6033_v54, -1e+30 }
0x1c8e   : > { %v6045_v60 = vsel %vm925_vm0, %v6037_v23, -inf }
0x1c8f   : > { %6046 = vmax.xlane.f32.xlu2 %v6045_v60 }
0x1c92   : > { %v10291_v0 = vpop.f32.mrf.mxu3 }
0x1c9a   : > { %v6028_v44 = vpop.f32.mrf.mxu3 }
0x1c9b   : > { %v6034_v30 = vmul.f32 0.001, %v6028_v44 }
0x1c9d   : > { %v6038_v43 = vsel %vm9017_vm5, %v6034_v30, -1e+30 }
0x1c9e   : > { %v6048_v12 = vsel %vm925_vm0, %v6038_v43, -inf }
0x1c9f   : > { %6049 = vmax.xlane.f32.xlu0 %v6048_v12 }
0x1ca7   : > { %5949 = vrot.lane.b32.xlu2 %v10208_v19, %s11138_s23 }
0x1caf   : > { %6363 = vrot.lane.b32.xlu2 %v10204_v3, %s11139_s24 }
0x1cb3   : > { %5947 = vrot.lane.b32.xlu0 %v10208_v19, %s11127_s1 }
0x1cb7   : > { %6213 = vrot.lane.b32.xlu2 %v10216_v58, %s11134_s5 }
0x1cbb   : > { %6361 = vrot.lane.b32.xlu0 %v10204_v3, %s11140_s25 }
0x1cbf   : > { %6417 = vrot.lane.b32.xlu2 %v10212_v1, %s11140_s25 }
0x1cc3   : > { %6419 = vrot.lane.b32.xlu0 %v10212_v1, %s11139_s24 }
0x1cc7   : > { %6447 = vrot.lane.b32.xlu2 %v10216_v58, %s11139_s24  ;;  %s11172_s24 = sld [smem:[#allocation31_spill]] }
0x1ccb   : > { %6389 = vrot.lane.b32.xlu0 %v10208_v19, %s11140_s25 }
0x1cf5   : > { %5683 = vmax.xlane.f32.xlu0 %v5682_v20 }
0x1d02   : > { %v6047_v6 = vpop.xlane.xlu2 %6046 }
0x1d03   : > { %v6053_v13 = vsub.f32 %v6037_v23, %v6047_v6 }
0x1d05   : > { %v6059_v10 = vmul.f32 1.442695, %v6053_v13 }
0x1d07   : > { %8596 = vpow2.f32 %v6059_v10 }
0x1d09   : > { %6161 = vrot.lane.b32.xlu0 %v10208_v19, %s11134_s5 }
0x1d0a   : > { %v5950_v37 = vpop.permute.xlu2 %5949 }
0x1d0b   : > { %8215 = vmatpush.xpose.msk.msra.mxu1 %vm925_vm0, %v5950_v37 }
0x1d0d   : > { %v8597_v18 = vpop.eup %8596 }
0x1d0e   : > { %v6069_v50 = vsel %vm925_vm0, %v8597_v18, 0.0 }
0x1d0f   : > { %6070 = vadd.xlane.f32.xlu1 %v6069_v50 }
0x1d12   : > { %v6364_v57 = vpop.permute.xlu2 %6363  ;;  %v6050_v53 = vpop.xlane.xlu0 %6049 }
0x1d13   : > { %v6054_v59 = vsub.f32 %v6038_v43, %v6050_v53  ;;  %8234 = vmatpush.xpose.msk.msrb.mxu2 %vm925_vm0, %v6364_v57 }
0x1d15   : > { %v6061_v48 = vmul.f32 1.442695, %v6054_v59 }
0x1d17   : > { %8598 = vpow2.f32 %v6061_v48 }
0x1d1a   : > { %v6214_v22 = vpop.permute.xlu2 %6213 }
0x1d1b   : > { %6234 = vmatpush.msra.mxu3 %v6214_v22 }
0x1d1d   : > { %8236 = vmatpush.xpose.msk.msrb.mxu3 %vm925_vm0, %v6392_v47  ;;  %v8599_v26 = vpop.eup %8598  ;;  %v8356_v47 = vpack.i.bf16 %v10212_v1, %v10204_v3 }
0x1d1e   : > { %v6072_v32 = vsel %vm925_vm0, %v8599_v26, 0.0 }
0x1d1f   : > { %6073 = vadd.xlane.f32.xlu1 %v6072_v32 }
0x1d25   : > { %v5948_v51 = vpop.permute.xlu0 %5947 }
0x1d26   : > { %8216 = vmatmul.msk.f32.vlgmr.msra.gmra.mxu1 %vm925_vm0, %v5948_v51 }
0x1d2d   : > { %v6362_v25 = vpop.permute.xlu0 %6361 }
0x1d35   : > { %v6420_v54 = vpop.permute.xlu0 %6419 }
0x1d38   : > { %6445 = vrot.lane.b32.xlu1 %v10216_v58, %s11140_s25 }
0x1d3d   : > { %v10330_v23 = vpop.permute.xlu0 %6389 }
0x1d40   : > { %5801 = vrot.lane.b32.xlu1 %v10208_v19, %s11137_s21  ;;  %s11147_s21 = smov 72  }
0x1d68   : > { %v5684_v60 = vpop.xlane.xlu0 %5683 }
0x1d69   : > { %v5692_v44 = vsub.f32 %v5676_v41, %v5684_v60 }
0x1d6b   : > { %v5697_v30 = vmul.f32 1.442695, %v5692_v44  ;;  %v6418_v44 = vpop.permute.xlu2 %6417 }
0x1d6d   : > { %8600 = vpow2.f32 %v5697_v30 }
0x1d73   : > { %v10332_v43 = vpop.eup %8600 }
0x1d74   : > { %v5706_v12 = vsel %vm925_vm0, %v10332_v43, 0.0 }
0x1d75   : > { %5707 = vadd.xlane.f32.xlu2 %v5706_v12 }
0x1d7b   : > { %v6162_v33 = vpop.permute.xlu0 %6161 }
0x1d7c   : > { %6182 = vmatpush.msrb.mxu1 %v6162_v33 }
0x1d82   : > { %v6071_v20 = vpop.xlane.xlu1 %6070 }
0x1d83   : > { %8602 = vrcp.f32 %v6071_v20  ;;  %v6116_v37 = vand.u32 2147483648, %v6071_v20  ;;  %v6114_v50 = vand.u32 2147483647, %v6071_v20  ;;  %vm6110_vm15 = vweird.f32 %v6071_v20 }
0x1d85   : > { %v6117_v53 = vor.u32 1.1754944e-38, %v6116_v37  ;;  %vm6115_vm2 = vcmp.eq.f32.partialorder %v6114_v50, 8.507059e+37  ;;  %v6448_v50 = vpop.permute.xlu2 %6447 }
0x1d89   : > { %v8603_v6 = vpop.eup %8602 }
0x1d8a   : > { %v6106_v13 = vmul.f32 %v8603_v6, %v6071_v20  ;;  %vm6111_vm14 = vweird.f32 %v8603_v6 }
0x1d8b   : > { %vm6112_vm1 = vmor %vm6110_vm15, %vm6111_vm14 }
0x1d8c   : > { %v6107_v10 = vsub.f32 1.0, %v6106_v13 }
0x1d8d   : > { %5921 = vrot.lane.b32.xlu2 %v10204_v3, %s11138_s23  ;;  %s11149_s23 = smov 104  }
0x1d8e   : > { %v6108_v41 = vmul.f32 %v8603_v6, %v6107_v10 }
0x1d90   : > { %v6109_v57 = vadd.f32 %v8603_v6, %v6108_v41 }
0x1d92   : > { %v6113_v59 = vsel %vm6112_vm1, %v8603_v6, %v6109_v57  ;;  %v6074_v48 = vpop.xlane.xlu1 %6073 }
0x1d93   : > { %v6118_v22 = vsel %vm6115_vm2, %v6117_v53, %v6113_v59  ;;  %8604 = vrcp.f32 %v6074_v48  ;;  %v6131_v12 = vand.u32 2147483648, %v6074_v48  ;;  %v6129_v20 = vand.u32 2147483647, %v6074_v48 }
0x1d94   : > { %v10340_v32 = vmul.f32 %v8597_v18, %v6118_v22  ;;  %vm6125_vm6 = vweird.f32 %v6074_v48 }
0x1d95   : > { %8357 = vrot.lane.b32.xlu2 %v8356_v47, %s11146_s20  ;;  %v6132_v6 = vor.u32 1.1754944e-38, %v6131_v12  ;;  %vm6130_vm8 = vcmp.eq.f32.partialorder %v6129_v20, 8.507059e+37 }
0x1d96   : > { %11145 = vst [vmem:[#allocation9_spill] sm:$0xff] %v10340_v32  ;;  %8223 = vmatmul.msk.f32.vlgmr.msra.gmra.mxu2 %vm925_vm0, %v10340_v32 }
0x1d97   : > { %8238 = vmatpush.xpose.msk.msra.mxu2 %vm925_vm0, %v6420_v54 }
0x1d99   : > { %v8605_v51 = vpop.eup %8604 }
0x1d9a   : > { %v6121_v60 = vmul.f32 %v8605_v51, %v6074_v48  ;;  %vm6126_vm4 = vweird.f32 %v8605_v51 }
0x1d9b   : > { %vm6127_vm7 = vmor %vm6125_vm6, %vm6126_vm4 }
0x1d9c   : > { %v6122_v30 = vsub.f32 1.0, %v6121_v60 }
0x1d9d   : > { %6768 = vrot.lane.b32.xlu2 %v10204_v3, %s11147_s21 }
0x1d9e   : > { %v6123_v33 = vmul.f32 %v8605_v51, %v6122_v30  ;;  %8235 = vmatmul.msk.f32.vlgmr.msrb.gmra.mxu2 %vm925_vm0, %v6362_v25 }
0x1da0   : > { %v6124_v18 = vadd.f32 %v8605_v51, %v6123_v33 }
0x1da2   : > { %v6128_v13 = vsel %vm6127_vm7, %v8605_v51, %v6124_v18 }
0x1da3   : > { %v6133_v54 = vsel %vm6130_vm8, %v6132_v6, %v6128_v13  ;;  %v5972_v10 = vpop.f32.mrf.mxu1 }
0x1da4   : > { %v10349_v37 = vmul.f32 %v8599_v26, %v6133_v54  ;;  %v6032_v41 = vmul.f32 0.001, %v5972_v10 }
0x1da5   : > { %6603 = vrot.lane.b32.xlu2 %v10208_v19, %s11146_s20 }
0x1da6   : > { %11148 = vst [vmem:[#allocation10_spill] sm:$0xff] %v10349_v37  ;;  %v6036_v57 = vsel %vm9017_vm5, %v6032_v41, -1e+30  ;;  %8224 = vmatmul.msk.f32.vlgmr.msra.gmra.mxu3 %vm925_vm0, %v10349_v37  ;;  %8239 = vmatmul.msk.f32.vlgmr.msra.gmra.mxu2 %vm925_vm0, %v6418_v44 }
0x1da7   : > { %8240 = vmatpush.xpose.msk.msra.mxu3 %vm925_vm0, %v6448_v50  ;;  %v6042_v25 = vsel %vm925_vm0, %v6036_v57, -inf }
0x1da8   : > { %6043 = vmax.xlane.f32.xlu1 %v6042_v25 }
0x1daa   : > { %v6446_v26 = vpop.permute.xlu1 %6445 }
0x1dad   : > { %6796 = vrot.lane.b32.xlu2 %v10208_v19, %s11147_s21 }
0x1dae   : > { %8237 = vmatmul.msk.f32.vlgmr.msrb.gmra.mxu3 %vm925_vm0, %v10330_v23 }
0x1db2   : > { %v5802_v53 = vpop.permute.xlu1 %5801 }
0x1db3   : > { %5822 = vmatpush.msra.mxu0 %v5802_v53 }
0x1db6   : > { %8241 = vmatmul.msk.f32.vlgmr.msra.gmra.mxu3 %vm925_vm0, %v6446_v26 }
0x1de8   : > { %v5708_v59 = vpop.xlane.xlu2 %5707 }
0x1de9   : > { %8606 = vrcp.f32 %v5708_v59  ;;  %v5741_v60 = vand.u32 2147483648, %v5708_v59  ;;  %v5739_v30 = vand.u32 2147483647, %v5708_v59  ;;  %vm5735_vm10 = vweird.f32 %v5708_v59 }
0x1deb   : > { %v5742_v23 = vor.u32 1.1754944e-38, %v5741_v60  ;;  %vm5740_vm12 = vcmp.eq.f32.partialorder %v5739_v30, 8.507059e+37 }
0x1def   : > { %v8607_v48 = vpop.eup %8606 }
0x1df0   : > { %v5731_v22 = vmul.f32 %v8607_v48, %v5708_v59  ;;  %v5922_v47 = vpop.permute.xlu2 %5921  ;;  %vm5736_vm9 = vweird.f32 %v8607_v48 }
0x1df1   : > { %8213 = vmatpush.xpose.msk.msrb.mxu0 %vm925_vm0, %v5922_v47  ;;  %vm5737_vm11 = vmor %vm5735_vm10, %vm5736_vm9 }
0x1df2   : > { %v5732_v51 = vsub.f32 1.0, %v5731_v22 }
0x1df4   : > { %v5733_v44 = vmul.f32 %v8607_v48, %v5732_v51 }
0x1df6   : > { %v5734_v12 = vadd.f32 %v8607_v48, %v5733_v44 }
0x1df8   : > { %v5738_v33 = vsel %vm5737_vm11, %v8607_v48, %v5734_v12  ;;  %v8358_v20 = vpop.permute.xlu2 %8357 }
0x1df9   : > { %v5743_v18 = vsel %vm5740_vm12, %v5742_v23, %v5738_v33  ;;  %v8360_v6 = vunpack.i.h.bf16 %v8358_v20  ;;  %v8359_v13 = vunpack.i.l.bf16 %v8358_v20 }
0x1dfa   : > { %v10367_v54 = vmul.f32 %v10332_v43, %v5743_v18 }
0x1dfb   : > { %6598 = vmatpush.msrb.mxu2 %v8359_v13 }
0x1dfc   : > { %8209 = vmatmul.msk.f32.vlgmr.msra.gmra.mxu0 %vm925_vm0, %v10367_v54 }
0x1dfd   : > { %6650 = vmatpush.msra.mxu2 %v8360_v6 }
0x1e00   : > { %v10371_v10 = vpop.permute.xlu2 %6768 }
0x1e08   : > { %v6604_v41 = vpop.permute.xlu2 %6603 }
0x1e09   : > { %6624 = vmatpush.msrb.mxu3 %v6604_v41 }
0x1e19   : > { %v10373_v50 = vpop.f32.mrf.mxu2 }
0x1e1b   : > { %v6044_v25 = vpop.xlane.xlu1 %6043 }
0x1e1c   : > { %v6052_v26 = vsub.f32 %v6036_v57, %v6044_v25 }
0x1e1e   : > { %v6057_v53 = vmul.f32 1.442695, %v6052_v26  ;;  %v8196_v26 = vld [vmem:[%s11150_s0 + $0x40] sm:$0xff] }
0x1e1f   : > { %6307 = vmatpush.msra.mxu1 %v8196_v26 }
0x1e20   : > { %8608 = vpow2.f32 %v6057_v53  ;;  %v10399_v53 = vpop.permute.xlu2 %6796 }
0x1e21   : > { %v6386_v59 = vpop.f32.mrf.mxu2 }
0x1e22   : > { %v6473_v48 = vmul.f32 0.001, %v6386_v59 }
0x1e24   : > { %v6477_v43 = vsel %vm9017_vm5, %v6473_v48, -1e+30 }
0x1e25   : > { %v6481_v22 = vsel %vm925_vm0, %v6477_v43, -inf }
0x1e26   : > { %v8609_v47 = vpop.eup %8608  ;;  %6482 = vmax.xlane.f32.xlu0 %v6481_v22 }
0x1e27   : > { %v6066_v51 = vsel %vm925_vm0, %v8609_v47, 0.0 }
0x1e28   : > { %6067 = vadd.xlane.f32.xlu1 %v6066_v51 }
0x1e29   : > { %v10379_v60 = vpop.f32.mrf.mxu3  ;;  %v6442_v44 = vpop.f32.mrf.mxu2 }
0x1e2a   : > { %v6475_v30 = vmul.f32 0.001, %v6442_v44 }
0x1e2c   : > { %v6479_v57 = vsel %vm9017_vm5, %v6475_v30, -1e+30 }
0x1e2d   : > { %v6487_v12 = vsel %vm925_vm0, %v6479_v57, -inf }
0x1e2e   : > { %6488 = vmax.xlane.f32.xlu2 %v6487_v12 }
0x1e31   : > { %v6414_v23 = vpop.f32.mrf.mxu3 }
0x1e32   : > { %v6474_v33 = vmul.f32 0.001, %v6414_v23 }
0x1e34   : > { %v6478_v20 = vsel %vm9017_vm5, %v6474_v33, -1e+30 }
0x1e35   : > { %v6484_v18 = vsel %vm925_vm0, %v6478_v20, -inf }
0x1e36   : > { %6485 = vmax.xlane.f32.xlu0 %v6484_v18 }
0x1e39   : > { %v6470_v6 = vpop.f32.mrf.mxu3 }
0x1e3a   : > { %v6476_v13 = vmul.f32 0.001, %v6470_v6 }
0x1e3c   : > { %v6480_v41 = vsel %vm9017_vm5, %v6476_v13, -1e+30 }
0x1e3d   : > { %v6490_v25 = vsel %vm925_vm0, %v6480_v41, -inf }
0x1e3e   : > { %6491 = vmax.xlane.f32.xlu2 %v6490_v25 }
0x1e41   : > { %5919 = vrot.lane.b32.xlu1 %v10204_v3, %s11127_s1  ;;  %s11153_s1 = smov 40  }
0x1e4a   : > { %6766 = vrot.lane.b32.xlu0 %v10204_v3, %s11149_s23 }
0x1e56   : > { %6794 = vrot.lane.b32.xlu2 %v10208_v19, %s11149_s23 }
0x1e99   : > { %v6483_v59 = vpop.xlane.xlu0 %6482 }
0x1e9a   : > { %v6493_v48 = vsub.f32 %v6477_v43, %v6483_v59 }
0x1e9b   : > { %v6068_v22 = vpop.xlane.xlu1 %6067 }
0x1e9c   : > { %v6497_v51 = vmul.f32 1.442695, %v6493_v48  ;;  %8610 = vrcp.f32 %v6068_v22  ;;  %v6101_v25 = vand.u32 2147483648, %v6068_v22  ;;  %v6099_v43 = vand.u32 2147483647, %v6068_v22 }
0x1e9d   : > { %vm6095_vm14 = vweird.f32 %v6068_v22 }
0x1e9e   : > { %8612 = vpow2.f32 %v6497_v51  ;;  %v6102_v51 = vor.u32 1.1754944e-38, %v6101_v25  ;;  %vm6100_vm1 = vcmp.eq.f32.partialorder %v6099_v43, 8.507059e+37 }
0x1ea1   : > { %v6489_v44 = vpop.xlane.xlu2 %6488 }
0x1ea2   : > { %v8611_v30 = vpop.eup %8610  ;;  %v6495_v12 = vsub.f32 %v6479_v57, %v6489_v44 }
0x1ea3   : > { %v6091_v23 = vmul.f32 %v8611_v30, %v6068_v22  ;;  %vm6096_vm13 = vweird.f32 %v8611_v30 }
0x1ea4   : > { %v10401_v33 = vpop.eup %8612  ;;  %v6501_v18 = vmul.f32 1.442695, %v6495_v12  ;;  %vm6097_vm15 = vmor %vm6095_vm14, %vm6096_vm13 }
0x1ea5   : > { %v6092_v6 = vsub.f32 1.0, %v6091_v23  ;;  %v6505_v13 = vsel %vm925_vm0, %v10401_v33, 0.0 }
0x1ea6   : > { %8614 = vpow2.f32 %v6501_v18  ;;  %6506 = vadd.xlane.f32.xlu2 %v6505_v13 }
0x1ea7   : > { %v6093_v26 = vmul.f32 %v8611_v30, %v6092_v6 }
0x1ea9   : > { %v6094_v59 = vadd.f32 %v8611_v30, %v6093_v26  ;;  %v6486_v48 = vpop.xlane.xlu0 %6485 }
0x1eaa   : > { %v6494_v57 = vsub.f32 %v6478_v20, %v6486_v48 }
0x1eab   : > { %v6098_v44 = vsel %vm6097_vm15, %v8611_v30, %v6094_v59 }
0x1eac   : > { %v10405_v28 = vpop.eup %8614  ;;  %v6103_v12 = vsel %vm6100_vm1, %v6102_v51, %v6098_v44  ;;  %v6499_v23 = vmul.f32 1.442695, %v6494_v57 }
0x1ead   : > { %v10407_v29 = vmul.f32 %v8609_v47, %v6103_v12  ;;  %v6511_v18 = vsel %vm925_vm0, %v10405_v28, 0.0 }
0x1eae   : > { %8616 = vpow2.f32 %v6499_v23  ;;  %6512 = vadd.xlane.f32.xlu1 %v6511_v18 }
0x1eaf   : > { %11151 = vst [vmem:[#allocation11_spill] sm:$0xff] %v10407_v29  ;;  %8222 = vmatmul.msk.f32.vlgmr.msrb.gmra.mxu1 %vm925_vm0, %v10407_v29 }
0x1eb0   : > { %8251 = vmatpush.xpose.msk.msrb.mxu1 %vm925_vm0, %v10371_v10 }
0x1eb1   : > { %v6492_v20 = vpop.xlane.xlu2 %6491 }
0x1eb2   : > { %v6496_v22 = vsub.f32 %v6480_v41, %v6492_v20  ;;  %v5824_v41 = vpop.f32.mrf.mxu0 }
0x1eb3   : > { %v5920_v30 = vpop.permute.xlu1 %5919 }
0x1eb4   : > { %v10415_v6 = vpop.eup %8616  ;;  %v6503_v13 = vmul.f32 1.442695, %v6496_v22  ;;  %8214 = vmatmul.msk.f32.vlgmr.msrb.gmra.mxu0 %vm925_vm0, %v5920_v30 }
0x1eb5   : > { %v6508_v47 = vsel %vm925_vm0, %v10415_v6, 0.0 }
0x1eb6   : > { %8618 = vpow2.f32 %v6503_v13  ;;  %6509 = vadd.xlane.f32.xlu0 %v6508_v47 }
0x1eb7   : > { %8229 = vmatmul.msk.f32.vlgmr.msra.gmra.mxu1 %vm925_vm0, %v10284_v5 }
0x1eb9   : > { %v10442_v26 = vpop.permute.xlu2 %6794 }
0x1ebc   : > { %v10422_v25 = vpop.eup %8618  ;;  %v6767_v5 = vpop.permute.xlu0 %6766 }
0x1ebd   : > { %v6514_v10 = vsel %vm925_vm0, %v10422_v25, 0.0 }
0x1ebe   : > { %6655 = vrot.lane.b32.xlu2 %v10216_v58, %s11146_s20  ;;  %6515 = vadd.xlane.f32.xlu1 %v6514_v10 }
0x1ebf   : > { %8230 = vmatmul.msk.f32.gmra.mxu1 %vm925_vm0, %v5824_v41 }
0x1ec6   : > { %6852 = vrot.lane.b32.xlu2 %v10216_v58, %s11147_s21 }
0x1ec7   : > { %8231 = vmatmul.msk.f32.gmra.mxu1 %vm925_vm0, %v10286_v52 }
0x1eca   : > { %6822 = vrot.lane.b32.xlu0 %v10212_v1, %s11149_s23 }
0x1ecf   : > { %8232 = vmatmul.msk.f32.gmra.mxu1 %vm925_vm0, %v10291_v0 }
0x1ed2   : > { %6850 = vrot.lane.b32.xlu0 %v10216_v58, %s11149_s23  ;;  %s11171_s23 = sld [smem:[#allocation32_spill]] }
0x1ed7   : > { %6824 = vrot.lane.b32.xlu1 %v10212_v1, %s11147_s21  ;;  %8252 = vmatmul.msk.f32.vlgmr.msrb.gmra.mxu1 %vm925_vm0, %v6767_v5 }
0x1f19   : > { %v6507_v43 = vpop.xlane.xlu2 %6506 }
0x1f1a   : > { %8620 = vrcp.f32 %v6507_v43  ;;  %v6528_v57 = vand.u32 2147483648, %v6507_v43  ;;  %v6526_v12 = vand.u32 2147483647, %v6507_v43  ;;  %vm6522_vm4 = vweird.f32 %v6507_v43 }
0x1f1c   : > { %v6529_v20 = vor.u32 1.1754944e-38, %v6528_v57  ;;  %vm6527_vm7 = vcmp.eq.f32.partialorder %v6526_v12, 8.507059e+37 }
0x1f20   : > { %v8621_v52 = vpop.eup %8620 }
0x1f21   : > { %v6518_v59 = vmul.f32 %v8621_v52, %v6507_v43  ;;  %v6656_v48 = vpop.permute.xlu2 %6655  ;;  %v6513_v51 = vpop.xlane.xlu1 %6512  ;;  %vm6523_vm2 = vweird.f32 %v8621_v52 }
0x1f22   : > { %8622 = vrcp.f32 %v6513_v51  ;;  %6676 = vmatpush.msra.mxu3 %v6656_v48  ;;  %vm6524_vm6 = vmor %vm6522_vm4, %vm6523_vm2  ;;  %v6556_v43 = vand.u32 2147483647, %v6513_v51  ;;  %vm6552_vm9 = vweird.f32 %v6513_v51 }
0x1f23   : > { %v6519_v0 = vsub.f32 1.0, %v6518_v59  ;;  %v6558_v59 = vand.u32 2147483648, %v6513_v51 }
0x1f24   : > { %vm6557_vm11 = vcmp.eq.f32.partialorder %v6556_v43, 8.507059e+37 }
0x1f25   : > { %v6520_v44 = vmul.f32 %v8621_v52, %v6519_v0 }
0x1f27   : > { %v6521_v23 = vadd.f32 %v8621_v52, %v6520_v44  ;;  %v6559_v44 = vor.u32 1.1754944e-38, %v6558_v59 }
0x1f28   : > { %v8623_v18 = vpop.eup %8622 }
0x1f29   : > { %v6525_v22 = vsel %vm6524_vm6, %v8621_v52, %v6521_v23  ;;  %v6548_v30 = vmul.f32 %v8623_v18, %v6513_v51  ;;  %v6510_v13 = vpop.xlane.xlu0 %6509  ;;  %v6853_v47 = vpop.permute.xlu2 %6852  ;;  %vm6553_vm8 = vweird.f32 %v8623_v18 }
0x1f2a   : > { %v6530_v10 = vsel %vm6527_vm7, %v6529_v20, %v6525_v22  ;;  %8624 = vrcp.f32 %v6510_v13  ;;  %8257 = vmatpush.xpose.msk.msra.mxu1 %vm925_vm0, %v6853_v47  ;;  %vm6554_vm10 = vmor %vm6552_vm9, %vm6553_vm8  ;;  %vm6537_vm13 = vweird.f32 %v6510_v13 }
0x1f2b   : > { %v6531_v41 = vmul.f32 %v10401_v33, %v6530_v10  ;;  %v6549_v5 = vsub.f32 1.0, %v6548_v30 }
0x1f2c   : > { %v10446_v48 = vpop.f32.mrf.mxu1 }
0x1f2d   : > { %v6550_v0 = vmul.f32 %v8623_v18, %v6549_v5  ;;  %8242 = vmatmul.msk.f32.vlgmr.msrb.gmra.mxu2 %vm925_vm0, %v6531_v41  ;;  %v6543_v5 = vand.u32 2147483648, %v6510_v13 }
0x1f2e   : > { %8253 = vmatpush.xpose.msk.msrb.mxu2 %vm925_vm0, %v10399_v53 }
0x1f2f   : > { %v6551_v52 = vadd.f32 %v8623_v18, %v6550_v0 }
0x1f30   : > { %v8625_v57 = vpop.eup %8624 }
0x1f31   : > { %v6555_v12 = vsel %vm6554_vm10, %v8623_v18, %v6551_v52  ;;  %v6533_v33 = vmul.f32 %v8625_v57, %v6510_v13  ;;  %v5944_v23 = vpop.f32.mrf.mxu0  ;;  %v6516_v20 = vpop.xlane.xlu1 %6515  ;;  %vm6538_vm12 = vweird.f32 %v8625_v57  ;;  %v6541_v18 = vand.u32 2147483647, %v6510_v13 }
0x1f32   : > { %v6560_v22 = vsel %vm6557_vm11, %v6559_v44, %v6555_v12  ;;  %v6031_v30 = vmul.f32 0.001, %v5944_v23  ;;  %8626 = vrcp.f32 %v6516_v20  ;;  %vm6539_vm14 = vmor %vm6537_vm13, %vm6538_vm12  ;;  %v6544_v52 = vor.u32 1.1754944e-38, %v6543_v5 }
0x1f33   : > { %v6561_v47 = vmul.f32 %v10405_v28, %v6560_v22  ;;  %v6534_v10 = vsub.f32 1.0, %v6533_v33  ;;  %vm6542_vm15 = vcmp.eq.f32.partialorder %v6541_v18, 8.507059e+37  ;;  %v6571_v36 = vand.u32 2147483647, %v6516_v20 }
0x1f34   : > { %v10454_v53 = vsel %vm9017_vm5, %v6031_v30, -1e+30  ;;  %v10456_v51 = vpop.f32.mrf.mxu1  ;;  %v6573_v30 = vand.u32 2147483648, %v6516_v20  ;;  %vm6567_vm2 = vweird.f32 %v6516_v20 }
0x1f35   : > { %v6535_v0 = vmul.f32 %v8625_v57, %v6534_v10  ;;  %8244 = vmatmul.msk.f32.vlgmr.msra.gmra.mxu2 %vm925_vm0, %v6561_v47  ;;  %v6039_v59 = vsel %vm925_vm0, %v10454_v53, -inf  ;;  %vm6572_vm6 = vcmp.eq.f32.partialorder %v6571_v36, 8.507059e+37 }
0x1f36   : > { %6040 = vmax.xlane.f32.xlu2 %v6039_v59 }
0x1f37   : > { %v6536_v43 = vadd.f32 %v8625_v57, %v6535_v0  ;;  %v6574_v0 = vor.u32 1.1754944e-38, %v6573_v30 }
0x1f38   : > { %v8627_v28 = vpop.eup %8626 }
0x1f39   : > { %v6540_v44 = vsel %vm6539_vm14, %v8625_v57, %v6536_v43  ;;  %v6563_v12 = vmul.f32 %v8627_v28, %v6516_v20  ;;  %vm6568_vm1 = vweird.f32 %v8627_v28 }
0x1f3a   : > { %v6545_v33 = vsel %vm6542_vm15, %v6544_v52, %v6540_v44  ;;  %vm6569_vm4 = vmor %vm6567_vm2, %vm6568_vm1 }
0x1f3b   : > { %v6546_v23 = vmul.f32 %v10415_v6, %v6545_v33  ;;  %v6564_v22 = vsub.f32 1.0, %v6563_v12 }
0x1f3c   : > { %v6823_v10 = vpop.permute.xlu0 %6822  ;;  %v10462_v37 = vpop.f32.mrf.mxu1 }
0x1f3d   : > { %v6565_v32 = vmul.f32 %v8627_v28, %v6564_v22  ;;  %8243 = vmatmul.msk.f32.vlgmr.msrb.gmra.mxu3 %vm925_vm0, %v6546_v23  ;;  %8254 = vmatmul.msk.f32.vlgmr.msrb.gmra.mxu2 %vm925_vm0, %v10442_v26  ;;  %v6726_v13 = vadd.f32 %v6546_v23, %v6531_v41 }
0x1f3f   : > { %v6566_v57 = vadd.f32 %v8627_v28, %v6565_v32  ;;  %v6727_v5 = vadd.f32 %v6726_v13, %v6561_v47 }
0x1f41   : > { %v6570_v6 = vsel %vm6569_vm4, %v8627_v28, %v6566_v57 }
0x1f42   : > { %v6575_v18 = vsel %vm6572_vm6, %v6574_v0, %v6570_v6 }
0x1f43   : > { %v6576_v59 = vmul.f32 %v10422_v25, %v6575_v18 }
0x1f44   : > { %v6851_v43 = vpop.permute.xlu0 %6850  ;;  %v10468_v52 = vpop.f32.mrf.mxu1 }
0x1f45   : > { %8245 = vmatmul.msk.f32.vlgmr.msra.gmra.mxu3 %vm925_vm0, %v6576_v59  ;;  %8258 = vmatmul.msk.f32.vlgmr.msra.gmra.mxu1 %vm925_vm0, %v6851_v43  ;;  %v10472_v44 = vadd.f32 %v6727_v5, %v6576_v59 }
0x1f47   : > { %11152 = vst [vmem:[#allocation12_spill] sm:$0xff] %v10472_v44 }
0x1f49   : > { %v6825_v26 = vpop.permute.xlu1 %6824 }
0x1f4a   : > { %8255 = vmatpush.xpose.msk.msrb.mxu3 %vm925_vm0, %v6825_v26 }
0x1f4c   : > { %v10475_v32 = vpop.f32.mrf.mxu1 }
0x1f4d   : > { %8256 = vmatmul.msk.f32.vlgmr.msrb.gmra.mxu3 %vm925_vm0, %v6823_v10 }
0x1f54   : > { %v6791_v36 = vpop.f32.mrf.mxu1 }
0x1f55   : > { %v6878_v41 = vmul.f32 0.001, %v6791_v36 }
0x1f57   : > { %v6882_v25 = vsel %vm9017_vm5, %v6878_v41, -1e+30 }
0x1f58   : > { %v6886_v20 = vsel %vm925_vm0, %v6882_v25, -inf }
0x1f59   : > { %6887 = vmax.xlane.f32.xlu0 %v6886_v20 }
0x1fa9   : > { %v6041_v0 = vpop.xlane.xlu2 %6040 }
0x1faa   : > { %v6051_v18 = vsub.f32 %v10454_v53, %v6041_v0 }
0x1fac   : > { %v6055_v26 = vmul.f32 1.442695, %v6051_v18 }
0x1fb0   : > { %v10481_v47 = vpop.f32.mrf.mxu2 }
0x1fb8   : > { %v10483_v28 = vpop.f32.mrf.mxu2 }
0x1fc0   : > { %v10485_v12 = vpop.f32.mrf.mxu3  ;;  %v6819_v33 = vpop.f32.mrf.mxu2 }
0x1fc1   : > { %v6879_v23 = vmul.f32 0.001, %v6819_v33 }
0x1fc2   : > { %v6875_v22 = vpop.f32.mrf.mxu1 }
0x1fc3   : > { %v6883_v30 = vsel %vm9017_vm5, %v6879_v23, -1e+30  ;;  %v6881_v10 = vmul.f32 0.001, %v6875_v22 }
0x1fc4   : > { %v6889_v13 = vsel %vm925_vm0, %v6883_v30, -inf }
0x1fc5   : > { %v6885_v57 = vsel %vm9017_vm5, %v6881_v10, -1e+30  ;;  %6890 = vmax.xlane.f32.xlu1 %v6889_v13 }
0x1fc6   : > { %v6895_v5 = vsel %vm925_vm0, %v6885_v57, -inf }
0x1fc7   : > { %6896 = vmax.xlane.f32.xlu0 %v6895_v5 }
0x1fc8   : > { %v10493_v6 = vpop.f32.mrf.mxu3 }
0x1fcc   : > { %v6888_v59 = vpop.xlane.xlu0 %6887 }
0x1fcd   : > { %v6898_v43 = vsub.f32 %v6882_v25, %v6888_v59 }
0x1fcf   : > { %v6902_v36 = vmul.f32 1.442695, %v6898_v43 }
0x1fd0   : > { %v6847_v41 = vpop.f32.mrf.mxu3 }
0x1fd1   : > { %8628 = vpow2.f32 %v6902_v36  ;;  %v6880_v20 = vmul.f32 0.001, %v6847_v41 }
0x1fd2   : > { %8630 = vpow2.f32 %v6055_v26 }
0x1fd3   : > { %v6884_v33 = vsel %vm9017_vm5, %v6880_v20, -1e+30 }
0x1fd4   : > { %v6892_v23 = vsel %vm925_vm0, %v6884_v33, -inf }
0x1fd5   : > { %6893 = vmax.xlane.f32.xlu2 %v6892_v23 }
0x1fd7   : > { %v10499_v22 = vpop.eup %8628 }
0x1fd8   : > { %v6910_v10 = vsel %vm925_vm0, %v10499_v22, 0.0  ;;  %v10503_v53 = vpop.eup %8630 }
0x1fd9   : > { %6911 = vadd.xlane.f32.xlu1 %v6910_v10  ;;  %v6063_v25 = vsel %vm925_vm0, %v10503_v53, 0.0 }
0x1fdb   : > { %6135 = vrot.lane.b32.xlu0 %v10204_v3, %s11134_s5  ;;  %s11157_s5 = sld [smem:[#allocation28_spill]] }
0x1fdd   : > { %6064 = vadd.xlane.f32.xlu2 %v6063_v25 }
0x1fe3   : > { %7008 = vrot.lane.b32.xlu0 %v10208_v19, %s11153_s1 }
0x1ff2   : > { %6982 = vrot.lane.b32.xlu1 %v10204_v3, %s11153_s1 }
0x2038   : > { %v6891_v35 = vpop.xlane.xlu1 %6890 }
0x2039   : > { %v6899_v0 = vsub.f32 %v6883_v30, %v6891_v35 }
0x203a   : > { %v6897_v13 = vpop.xlane.xlu0 %6896 }
0x203b   : > { %v6901_v5 = vsub.f32 %v6885_v57, %v6897_v13  ;;  %v6904_v59 = vmul.f32 1.442695, %v6899_v0 }
0x203d   : > { %v6908_v18 = vmul.f32 1.442695, %v6901_v5 }
0x203f   : > { %8632 = vpow2.f32 %v6908_v18 }
0x2040   : > { %8634 = vpow2.f32 %v6904_v59 }
0x2045   : > { %v10513_v43 = vpop.eup %8632 }
0x2046   : > { %v6919_v26 = vsel %vm925_vm0, %v10513_v43, 0.0  ;;  %v10517_v19 = vpop.eup %8634 }
0x2047   : > { %6920 = vadd.xlane.f32.xlu2 %v6919_v26  ;;  %v6913_v30 = vsel %vm925_vm0, %v10517_v19, 0.0 }
0x2048   : > { %v6894_v36 = vpop.xlane.xlu2 %6893 }
0x2049   : > { %v6900_v41 = vsub.f32 %v6884_v33, %v6894_v36 }
0x204b   : > { %v6906_v20 = vmul.f32 1.442695, %v6900_v41 }
0x204c   : > { %v6912_v3 = vpop.xlane.xlu1 %6911 }
0x204d   : > { %8636 = vpow2.f32 %v6906_v20  ;;  %v6136_v23 = vpop.permute.xlu0 %6135  ;;  %vm6927_vm7 = vweird.f32 %v6912_v3  ;;  %v6933_v41 = vand.u32 2147483648, %v6912_v3 }
0x204e   : > { %8638 = vrcp.f32 %v6912_v3  ;;  %6156 = vmatpush.msra.mxu0 %v6136_v23  ;;  %v6931_v23 = vand.u32 2147483647, %v6912_v3 }
0x204f   : > { %6914 = vadd.xlane.f32.xlu2 %v6913_v30  ;;  %v6934_v46 = vor.u32 1.1754944e-38, %v6933_v41 }
0x2050   : > { %v6065_v57 = vpop.xlane.xlu2 %6064  ;;  %vm6932_vm12 = vcmp.eq.f32.partialorder %v6931_v23, 8.507059e+37 }
0x2051   : > { %8640 = vrcp.f32 %v6065_v57  ;;  %v6086_v20 = vand.u32 2147483648, %v6065_v57  ;;  %v6084_v44 = vand.u32 2147483647, %v6065_v57  ;;  %vm6080_vm10 = vweird.f32 %v6065_v57 }
0x2053   : > { %v10521_v10 = vpop.eup %8636  ;;  %vm6085_vm13 = vcmp.eq.f32.partialorder %v6084_v44, 8.507059e+37 }
0x2054   : > { %v8639_v25 = vpop.eup %8638  ;;  %v6916_v33 = vsel %vm925_vm0, %v10521_v10, 0.0 }
0x2055   : > { %v6923_v35 = vmul.f32 %v8639_v25, %v6912_v3  ;;  %v7009_v13 = vpop.permute.xlu0 %7008  ;;  %vm6928_vm5 = vweird.f32 %v8639_v25 }
0x2056   : > { %7029 = vmatpush.msra.mxu3 %v7009_v13  ;;  %vm6929_vm9 = vmor %vm6927_vm7, %vm6928_vm5 }
0x2057   : > { %v8641_v5 = vpop.eup %8640  ;;  %v6924_v0 = vsub.f32 1.0, %v6923_v35  ;;  %6917 = vadd.xlane.f32.xlu2 %v6916_v33  ;;  %v6087_v35 = vor.u32 1.1754944e-38, %v6086_v20 }
0x2058   : > { %v6076_v18 = vmul.f32 %v8641_v5, %v6065_v57  ;;  %vm6081_vm8 = vweird.f32 %v8641_v5 }
0x2059   : > { %v6925_v59 = vmul.f32 %v8639_v25, %v6924_v0  ;;  %vm6082_vm11 = vmor %vm6080_vm10, %vm6081_vm8 }
0x205a   : > { %v6077_v26 = vsub.f32 1.0, %v6076_v18 }
0x205b   : > { %v6926_v36 = vadd.f32 %v8639_v25, %v6925_v59 }
0x205c   : > { %v6078_v30 = vmul.f32 %v8641_v5, %v6077_v26 }
0x205d   : > { %v6930_v13 = vsel %vm6929_vm9, %v8639_v25, %v6926_v36 }
0x205e   : > { %v6079_v29 = vadd.f32 %v8641_v5, %v6078_v30  ;;  %v6935_v0 = vsel %vm6932_vm12, %v6934_v46, %v6930_v13 }
0x205f   : > { %v10529_v3 = vmul.f32 %v10499_v22, %v6935_v0  ;;  %v8197_v22 = vld [vmem:[%s11150_s0 + $0x48] sm:$0xff] }
0x2060   : > { %v6083_v33 = vsel %vm6082_vm11, %v8641_v5, %v6079_v29  ;;  %v8361_v29 = vpack.i.bf16 %v10216_v58, %v10212_v1  ;;  %6266 = vmatpush.msrb.mxu0 %v8197_v22  ;;  %v8199_v1 = vld [vmem:[%s11150_s0 + $0x58] sm:$0xff] }
0x2061   : > { %v6088_v18 = vsel %vm6085_vm13, %v6087_v35, %v6083_v33  ;;  %7113 = vmatpush.msrb.mxu3 %v8199_v1 }
0x2062   : > { %v10526_v59 = vmul.f32 %v10503_v53, %v6088_v18 }
0x2064   : > { %11154 = vst [vmem:[#allocation13_spill] sm:$0xff] %v10526_v59  ;;  %8221 = vmatmul.msk.f32.vlgmr.msra.gmra.mxu0 %vm925_vm0, %v10526_v59  ;;  %v6983_v25 = vpop.permute.xlu1 %6982 }
0x2065   : > { %7003 = vmatpush.msra.mxu2 %v6983_v25 }
0x2066   : > { %8259 = vmatmul.msk.f32.vlgmr.msra.gmra.mxu2 %vm925_vm0, %v10529_v3 }
0x206f   : > { %8362 = vrot.lane.b32.xlu2 %v8361_v29, %s11153_s1 }
0x20ba   : > { %v6921_v46 = vpop.xlane.xlu2 %6920 }
0x20bb   : > { %8642 = vrcp.f32 %v6921_v46  ;;  %v6978_v23 = vand.u32 2147483648, %v6921_v46  ;;  %vm6972_vm15 = vweird.f32 %v6921_v46  ;;  %v6976_v30 = vand.u32 2147483647, %v6921_v46 }
0x20bd   : > { %v6979_v25 = vor.u32 1.1754944e-38, %v6978_v23  ;;  %vm6977_vm4 = vcmp.eq.f32.partialorder %v6976_v30, 8.507059e+37 }
0x20c1   : > { %v8643_v44 = vpop.eup %8642 }
0x20c2   : > { %v6968_v53 = vmul.f32 %v8643_v44, %v6921_v46  ;;  %v6915_v57 = vpop.xlane.xlu2 %6914  ;;  %vm6973_vm14 = vweird.f32 %v8643_v44 }
0x20c3   : > { %8644 = vrcp.f32 %v6915_v57  ;;  %vm6974_vm1 = vmor %vm6972_vm15, %vm6973_vm14  ;;  %v6948_v35 = vand.u32 2147483648, %v6915_v57  ;;  %v6946_v18 = vand.u32 2147483647, %v6915_v57  ;;  %vm6942_vm6 = vweird.f32 %v6915_v57 }
0x20c4   : > { %v6969_v5 = vsub.f32 1.0, %v6968_v53 }
0x20c5   : > { %vm6947_vm7 = vcmp.eq.f32.partialorder %v6946_v18, 8.507059e+37 }
0x20c6   : > { %v6970_v26 = vmul.f32 %v8643_v44, %v6969_v5  ;;  %v6949_v5 = vor.u32 1.1754944e-38, %v6948_v35 }
0x20c8   : > { %v6971_v58 = vadd.f32 %v8643_v44, %v6970_v26 }
0x20c9   : > { %v8645_v36 = vpop.eup %8644 }
0x20ca   : > { %v6938_v41 = vmul.f32 %v8645_v36, %v6915_v57  ;;  %v6918_v20 = vpop.xlane.xlu2 %6917  ;;  %v6975_v33 = vsel %vm6974_vm1, %v8643_v44, %v6971_v58  ;;  %vm6943_vm2 = vweird.f32 %v8645_v36 }
0x20cb   : > { %8646 = vrcp.f32 %v6918_v20  ;;  %v6980_v53 = vsel %vm6977_vm4, %v6979_v25, %v6975_v33  ;;  %vm6944_vm5 = vmor %vm6942_vm6, %vm6943_vm2  ;;  %v6963_v23 = vand.u32 2147483648, %v6918_v20  ;;  %v6961_v30 = vand.u32 2147483647, %v6918_v20 }
0x20cc   : > { %v6939_v13 = vsub.f32 1.0, %v6938_v41  ;;  %v6981_v44 = vmul.f32 %v10513_v43, %v6980_v53  ;;  %vm6957_vm9 = vweird.f32 %v6918_v20  ;;  %v8198_v43 = vld [vmem:[%s11150_s0 + $0x50] sm:$0xff] }
0x20cd   : > { %v6964_v35 = vor.u32 1.1754944e-38, %v6963_v23  ;;  %vm6962_vm11 = vcmp.eq.f32.partialorder %v6961_v30, 8.507059e+37  ;;  %6708 = vmatpush.msra.mxu0 %v8198_v43 }
0x20ce   : > { %v6940_v0 = vmul.f32 %v8645_v36, %v6939_v13 }
0x20d0   : > { %v6941_v29 = vadd.f32 %v8645_v36, %v6940_v0 }
0x20d1   : > { %v8647_v22 = vpop.eup %8646 }
0x20d2   : > { %v6945_v26 = vsel %vm6944_vm5, %v8645_v36, %v6941_v29  ;;  %v6953_v1 = vmul.f32 %v8647_v22, %v6918_v20  ;;  %v8363_v59 = vpop.permute.xlu2 %8362  ;;  %vm6958_vm8 = vweird.f32 %v8647_v22 }
0x20d3   : > { %v6950_v46 = vsel %vm6947_vm7, %v6949_v5, %v6945_v26  ;;  %v8365_v41 = vunpack.i.h.bf16 %v8363_v59  ;;  %v8364_v62 = vunpack.i.l.bf16 %v8363_v59  ;;  %vm6959_vm10 = vmor %vm6957_vm9, %vm6958_vm8 }
0x20d4   : > { %v6951_v58 = vmul.f32 %v10517_v19, %v6950_v46  ;;  %v6954_v13 = vsub.f32 1.0, %v6953_v1 }
0x20d5   : > { %7055 = vmatpush.msrb.mxu1 %v8364_v62  ;;  %7081 = vmatpush.msrb.mxu2 %v8365_v41 }
0x20d6   : > { %v6955_v57 = vmul.f32 %v8647_v22, %v6954_v13  ;;  %8260 = vmatmul.msk.f32.vlgmr.msra.gmra.mxu3 %vm925_vm0, %v6951_v58  ;;  %8262 = vmatmul.msk.f32.vlgmr.msrb.gmra.mxu2 %vm925_vm0, %v6981_v44  ;;  %v7131_v33 = vadd.f32 %v6951_v58, %v10529_v3 }
0x20d8   : > { %v6956_v36 = vadd.f32 %v8647_v22, %v6955_v57 }
0x20da   : > { %v6960_v59 = vsel %vm6959_vm10, %v8647_v22, %v6956_v36 }
0x20db   : > { %v6965_v19 = vsel %vm6962_vm11, %v6964_v35, %v6960_v59 }
0x20dc   : > { %v6966_v62 = vmul.f32 %v10521_v10, %v6965_v19 }
0x20de   : > { %8261 = vmatmul.msk.f32.vlgmr.msrb.gmra.mxu1 %vm925_vm0, %v6966_v62  ;;  %v7132_v0 = vadd.f32 %v7131_v33, %v6966_v62 }
0x20e0   : > { %v10554_v18 = vadd.f32 %v7132_v0, %v6981_v44 }
0x20e1   : > { %v6158_v20 = vpop.f32.mrf.mxu0 }
0x20e2   : > { %8225 = vmatmul.msk.f32.vlgmr.msrb.gmra.mxu0 %vm925_vm0, %v6158_v20 }
0x20e9   : > { %v7005_v25 = vpop.f32.mrf.mxu2 }
0x20ea   : > { %8226 = vmatmul.msk.f32.gmra.mxu0 %vm925_vm0, %v10446_v48  ;;  %8263 = vmatmul.msk.f32.vlgmr.msrb.gmra.mxu3 %vm925_vm0, %v7005_v25 }
0x20f2   : > { %8227 = vmatmul.msk.f32.gmra.mxu0 %vm925_vm0, %v10373_v50 }
0x20fa   : > { %8228 = vmatmul.msk.f32.gmra.mxu0 %vm925_vm0, %v10379_v60 }
0x2102   : > { %8246 = vmatmul.msk.f32.vlgmr.msra.gmra.mxu0 %vm925_vm0, %v10481_v47 }
0x210a   : > { %8247 = vmatmul.msk.f32.gmra.mxu0 %vm925_vm0, %v10485_v12 }
0x2112   : > { %8248 = vmatmul.msk.f32.gmra.mxu0 %vm925_vm0, %v10483_v28 }
0x211a   : > { %8249 = vmatmul.msk.f32.gmra.mxu0 %vm925_vm0, %v10493_v6  ;;  %v8389_v6 = vld [vmem:[%s11155_s6 + $0x2] ss:$0 sm:$0xff]  ;;  %s11156_s6 = sld [smem:[#allocation30_spill]] }
0x2159   : > { %v7031_v48 = vpop.f32.mrf.mxu3  ;;  %v7083_v3 = vpop.f32.mrf.mxu2 }
0x215a   : > { %8264 = vmatmul.msk.f32.gmra.mxu3 %vm925_vm0, %v7031_v48 }
0x215b   : > { %v7057_v50 = vpop.f32.mrf.mxu1 }
0x215f   : > { %v6268_v10 = vpop.f32.mrf.mxu0 }
0x2160   : > { %v6310_v12 = vadd.f32 %v10456_v51, %v6268_v10 }
0x2162   : > { %8265 = vmatmul.msk.f32.gmra.mxu3 %vm925_vm0, %v7057_v50 }
0x2167   : > { %v6271_v60 = vpop.f32.mrf.mxu0 }
0x2168   : > { %v6313_v44 = vadd.f32 %v10462_v37, %v6271_v60 }
0x216a   : > { %8266 = vmatmul.msk.f32.gmra.mxu3 %vm925_vm0, %v7083_v3 }
0x216d   : > { %v7115_v53 = vpop.f32.mrf.mxu3 }
0x216f   : > { %v6274_v47 = vpop.f32.mrf.mxu0 }
0x2170   : > { %v6316_v30 = vadd.f32 %v10468_v52, %v6274_v47 }
0x2177   : > { %v6277_v29 = vpop.f32.mrf.mxu0 }
0x2178   : > { %v6319_v62 = vadd.f32 %v10475_v32, %v6277_v29 }
0x217f   : > { %v6710_v22 = vpop.f32.mrf.mxu0 }
0x2180   : > { %v6722_v28 = vadd.f32 %v6710_v22, %v6310_v12 }
0x2182   : > { %v7127_v5 = vadd.f32 %v7115_v53, %v6722_v28 }
0x2184   : > { %v7171_v26 = vadd.f32 %v7127_v5, %v10129_v16 }
0x2186   : > { %v10580_v1 = vadd.f32 %v8389_v6, %v7171_v26 }
0x2187   : > { %v6713_v41 = vpop.f32.mrf.mxu0 }
0x2188   : > { %v7188_v46 = vsel %vm1064_vm3, %v10580_v1, 0.0  ;;  %v6723_v51 = vadd.f32 %v6713_v41, %v6313_v44 }
0x2189   : > { %7189 = vadd.xlane.f32.xlu0 %v7188_v46 }
0x218f   : > { %v6716_v23 = vpop.f32.mrf.mxu0 }
0x2190   : > { %v6724_v16 = vadd.f32 %v6716_v23, %v6316_v30  ;;  %v8273_v23 = vld [vmem:[%s11019_s14 + $0x50] sm:$0xff]  ;;  %v8271_v30 = vld [vmem:[%s11019_s14 + $0x40] sm:$0xff] }
0x2197   : > { %v6719_v37 = vpop.f32.mrf.mxu0 }
0x2198   : > { %v6725_v0 = vadd.f32 %v6719_v37, %v6319_v62 }
0x21dd   : > { %v7118_v58 = vpop.f32.mrf.mxu3 }
0x21de   : > { %v7128_v13 = vadd.f32 %v7118_v58, %v6723_v51  ;;  %v8274_v58 = vld [vmem:[%s11019_s14 + $0x58] sm:$0xff] }
0x21df   : > { %7324 = vmatpush.msra.mxu1 %v8274_v58 }
0x21e0   : > { %v7172_v57 = vadd.f32 %v7128_v13, %v10134_v38 }
0x21e1   : > { %7325 = vmatpush.msra.mxu1 %v8273_v23 }
0x21e2   : > { %v10587_v36 = vadd.f32 %v8389_v6, %v7172_v57  ;;  %v8272_v57 = vld [vmem:[%s11019_s14 + $0x48] sm:$0xff] }
0x21e3   : > { %7326 = vmatpush.msra.mxu1 %v8272_v57 }
0x21e4   : > { %v7191_v35 = vsel %vm1064_vm3, %v10587_v36, 0.0 }
0x21e5   : > { %7192 = vadd.xlane.f32.xlu1 %v7191_v35  ;;  %v7121_v59 = vpop.f32.mrf.mxu3  ;;  %7327 = vmatpush.msra.mxu1 %v8271_v30 }
0x21e6   : > { %v7129_v43 = vadd.f32 %v7121_v59, %v6724_v16 }
0x21e8   : > { %v7173_v19 = vadd.f32 %v7129_v43, %v10139_v39 }
0x21ea   : > { %v10593_v33 = vadd.f32 %v8389_v6, %v7173_v19 }
0x21ec   : > { %v7194_v38 = vsel %vm1064_vm3, %v10593_v33, 0.0 }
0x21ed   : > { %7195 = vadd.xlane.f32.xlu2 %v7194_v38  ;;  %v7124_v52 = vpop.f32.mrf.mxu3 }
0x21ee   : > { %v7130_v20 = vadd.f32 %v7124_v52, %v6725_v0  ;;  %v10642_v52 = vld [vmem:[%s11017_s12 + $0x2] ss:$0 sm:$0xff] }
0x21f0   : > { %v7174_v25 = vadd.f32 %v7130_v20, %v10144_v14 }
0x21f2   : > { %v10598_v48 = vadd.f32 %v8389_v6, %v7174_v25  ;;  %v10647_v25 = vld [vmem:[%s11018_s13 + $0x2] ss:$0 sm:$0xff] }
0x21f4   : > { %v7197_v10 = vsel %vm1064_vm3, %v10598_v48, 0.0 }
0x21f5   : > { %7198 = vadd.xlane.f32.xlu0 %v7197_v10 }
0x21fc   : > { %v7190_v39 = vpop.xlane.xlu0 %7189 }
0x21fd   : > { %v7200_v32 = vmul.f32 %v7190_v39, %v8921_v55 }
0x21ff   : > { %v7204_v50 = vsub.f32 %v10580_v1, %v7200_v32 }
0x2201   : > { %v7208_v60 = vmul.f32 %v7204_v50, %v7204_v50 }
0x2203   : > { %v7212_v3 = vsel %vm1064_vm3, %v7208_v60, 0.0 }
0x2204   : > { %7213 = vadd.xlane.f32.xlu1 %v7212_v3 }
0x2258   : > { %v7193_v47 = vpop.xlane.xlu1 %7192 }
0x2259   : > { %v7201_v29 = vmul.f32 %v7193_v47, %v8921_v55 }
0x225b   : > { %v10607_v14 = vsub.f32 %v10587_v36, %v7201_v29 }
0x225d   : > { %v7209_v12 = vmul.f32 %v10607_v14, %v10607_v14 }
0x225f   : > { %v7215_v22 = vsel %vm1064_vm3, %v7209_v12, 0.0 }
0x2260   : > { %v7196_v28 = vpop.xlane.xlu2 %7195  ;;  %7216 = vadd.xlane.f32.xlu0 %v7215_v22 }
0x2261   : > { %v7202_v53 = vmul.f32 %v7196_v28, %v8921_v55 }
0x2263   : > { %v10614_v5 = vsub.f32 %v10593_v33, %v7202_v53 }
0x2265   : > { %v7210_v6 = vmul.f32 %v10614_v5, %v10614_v5 }
0x2267   : > { %v7218_v26 = vsel %vm1064_vm3, %v7210_v6, 0.0  ;;  %v8294_v6 = vld [vmem:[%s11021_s16 + $0x170] sm:$0xff] }
0x2268   : > { %7219 = vadd.xlane.f32.xlu1 %v7218_v26  ;;  %v7199_v46 = vpop.xlane.xlu0 %7198 }
0x2269   : > { %v7203_v41 = vmul.f32 %v7199_v46, %v8921_v55  ;;  %v8293_v46 = vld [vmem:[%s11021_s16 + $0x168] sm:$0xff] }
0x226b   : > { %v10621_v44 = vsub.f32 %v10598_v48, %v7203_v41 }
0x226d   : > { %v7211_v51 = vmul.f32 %v10621_v44, %v10621_v44 }
0x226f   : > { %v7221_v13 = vsel %vm1064_vm3, %v7211_v51, 0.0 }
0x2270   : > { %7222 = vadd.xlane.f32.xlu0 %v7221_v13 }
0x2277   : > { %v7214_v16 = vpop.xlane.xlu1 %7213 }
0x2278   : > { %v7224_v35 = vmul.f32 %v7214_v16, %v8921_v55 }
0x227a   : > { %v7228_v59 = vadd.f32 1e-05, %v7224_v35 }
0x227c   : > { %8648 = vrsqrt.f32 %v7228_v59  ;;  %vm7238_vm13 = vweird.f32 %v7228_v59 }
0x2282   : > { %v8649_v43 = vpop.eup %8648 }
0x2283   : > { %v7233_v19 = vmul.f32 %v8649_v43, %v7228_v59  ;;  %vm7239_vm12 = vweird.f32 %v8649_v43 }
0x2284   : > { %vm7240_vm14 = vmor %vm7238_vm13, %vm7239_vm12 }
0x2285   : > { %v7234_v37 = vmul.f32 %v8649_v43, %v7233_v19 }
0x2287   : > { %v7235_v62 = vmul.f32 0.5, %v7234_v37 }
0x2289   : > { %v7236_v0 = vsub.f32 1.5, %v7235_v62 }
0x228b   : > { %v7237_v38 = vmul.f32 %v8649_v43, %v7236_v0 }
0x228d   : > { %v7241_v20 = vsel %vm7240_vm14, %v8649_v43, %v7237_v38 }
0x228e   : > { %v7272_v10 = vmul.f32 %v7241_v20, %v7204_v50  ;;  %v8295_v50 = vld [vmem:[%s11021_s16 + $0x178] sm:$0xff] }
0x228f   : > { %7399 = vmatpush.msrb.mxu0 %v8295_v50 }
0x2290   : > { %v7279_v39 = vmul.f32 %v10642_v52, %v7272_v10 }
0x2291   : > { %7400 = vmatpush.msrb.mxu0 %v8294_v6 }
0x2292   : > { %v7286_v32 = vadd.f32 %v10647_v25, %v7279_v39 }
0x2293   : > { %7401 = vmatpush.msrb.mxu0 %v8293_v46 }
0x2294   : > { %8276 = vmatmul.msk.f32.vlgmr.msra.gmra.mxu1 %vm1064_vm3, %v7286_v32 }
0x22d3   : > { %v7217_v60 = vpop.xlane.xlu0 %7216 }
0x22d4   : > { %v7225_v3 = vmul.f32 %v7217_v60, %v8921_v55 }
0x22d6   : > { %v7229_v47 = vadd.f32 1e-05, %v7225_v3 }
0x22d8   : > { %8650 = vrsqrt.f32 %v7229_v47  ;;  %vm7248_vm1 = vweird.f32 %v7229_v47 }
0x22db   : > { %v7220_v29 = vpop.xlane.xlu1 %7219 }
0x22dc   : > { %v7226_v12 = vmul.f32 %v7220_v29, %v8921_v55  ;;  %v8291_v29 = vld [vmem:[%s11021_s16 + $0x158] sm:$0xff] }
0x22de   : > { %v8651_v22 = vpop.eup %8650  ;;  %v7230_v28 = vadd.f32 1e-05, %v7226_v12 }
0x22df   : > { %v7243_v53 = vmul.f32 %v8651_v22, %v7229_v47  ;;  %vm7249_vm15 = vweird.f32 %v8651_v22 }
0x22e0   : > { %8652 = vrsqrt.f32 %v7230_v28  ;;  %vm7250_vm2 = vmor %vm7248_vm1, %vm7249_vm15  ;;  %vm7258_vm6 = vweird.f32 %v7230_v28 }
0x22e1   : > { %v7244_v26 = vmul.f32 %v8651_v22, %v7243_v53  ;;  %v8289_v53 = vld [vmem:[%s11021_s16 + $0x148] sm:$0xff] }
0x22e3   : > { %v7245_v41 = vmul.f32 0.5, %v7244_v26  ;;  %v7223_v51 = vpop.xlane.xlu0 %7222  ;;  %v8288_v26 = vld [vmem:[%s11021_s16 + $0x140] sm:$0xff] }
0x22e4   : > { %v7227_v58 = vmul.f32 %v7223_v51, %v8921_v55 }
0x22e5   : > { %v7246_v13 = vsub.f32 1.5, %v7245_v41  ;;  %v8287_v41 = vld [vmem:[%s11021_s16 + $0x138] sm:$0xff] }
0x22e6   : > { %v8653_v23 = vpop.eup %8652  ;;  %v7231_v57 = vadd.f32 1e-05, %v7227_v58  ;;  %v8286_v58 = vld [vmem:[%s11021_s16 + $0x130] sm:$0xff] }
0x22e7   : > { %v7247_v30 = vmul.f32 %v8651_v22, %v7246_v13  ;;  %v7253_v16 = vmul.f32 %v8653_v23, %v7230_v28  ;;  %vm7259_vm4 = vweird.f32 %v8653_v23  ;;  %v8282_v13 = vld [vmem:[%s11021_s16 + $0x110] sm:$0xff] }
0x22e8   : > { %8654 = vrsqrt.f32 %v7231_v57  ;;  %vm7260_vm5 = vmor %vm7258_vm6, %vm7259_vm4  ;;  %vm7268_vm8 = vweird.f32 %v7231_v57 }
0x22e9   : > { %v7251_v35 = vsel %vm7250_vm2, %v8651_v22, %v7247_v30  ;;  %v7254_v59 = vmul.f32 %v8653_v23, %v7253_v16  ;;  %v8392_v30 = vld [vmem:[%s11020_s15 + $0x2] ss:$0 sm:$0xff] }
0x22ea   : > { %v7273_v43 = vmul.f32 %v7251_v35, %v10607_v14  ;;  %v8292_v14 = vld [vmem:[%s11021_s16 + $0x160] sm:$0xff] }
0x22eb   : > { %v7255_v19 = vmul.f32 0.5, %v7254_v59  ;;  %7402 = vmatpush.msrb.mxu0 %v8292_v14 }
0x22ec   : > { %v7280_v37 = vmul.f32 %v10642_v52, %v7273_v43 }
0x22ed   : > { %v7256_v62 = vsub.f32 1.5, %v7255_v19  ;;  %7403 = vmatpush.msrb.mxu0 %v8291_v29 }
0x22ee   : > { %v8655_v0 = vpop.eup %8654  ;;  %v7287_v38 = vadd.f32 %v10647_v25, %v7280_v37 }
0x22ef   : > { %v7257_v20 = vmul.f32 %v8653_v23, %v7256_v62  ;;  %v7263_v10 = vmul.f32 %v8655_v0, %v7231_v57  ;;  %vm7269_vm7 = vweird.f32 %v8655_v0  ;;  %v8280_v57 = vld [vmem:[%s11021_s16 + $0x100] sm:$0xff] }
0x22f0   : > { %8277 = vmatmul.msk.f32.gmra.mxu1 %vm1064_vm3, %v7287_v38  ;;  %vm7270_vm9 = vmor %vm7268_vm8, %vm7269_vm7 }
0x22f1   : > { %v7261_v39 = vsel %vm7260_vm5, %v8653_v23, %v7257_v20  ;;  %v7264_v32 = vmul.f32 %v8655_v0, %v7263_v10  ;;  %v8281_v23 = vld [vmem:[%s11021_s16 + $0x108] sm:$0xff] }
0x22f2   : > { %v7274_v60 = vmul.f32 %v7261_v39, %v10614_v5  ;;  %v8290_v5 = vld [vmem:[%s11021_s16 + $0x150] sm:$0xff] }
0x22f3   : > { %v7265_v3 = vmul.f32 0.5, %v7264_v32  ;;  %7404 = vmatpush.msrb.mxu0 %v8290_v5 }
0x22f4   : > { %v7281_v47 = vmul.f32 %v10642_v52, %v7274_v60 }
0x22f5   : > { %v7266_v12 = vsub.f32 1.5, %v7265_v3  ;;  %7405 = vmatpush.msrb.mxu0 %v8289_v53 }
0x22f6   : > { %v7288_v22 = vadd.f32 %v10647_v25, %v7281_v47 }
0x22f7   : > { %v7267_v28 = vmul.f32 %v8655_v0, %v7266_v12  ;;  %7406 = vmatpush.msrb.mxu0 %v8288_v26 }
0x22f8   : > { %8278 = vmatmul.msk.f32.gmra.mxu1 %vm1064_vm3, %v7288_v22 }
0x22f9   : > { %v7271_v50 = vsel %vm7270_vm9, %v8655_v0, %v7267_v28  ;;  %7407 = vmatpush.msrb.mxu0 %v8287_v41  ;;  %vm7599_vm9 = vcmask 1043459  }
0x22fa   : > { %v7275_v6 = vmul.f32 %v7271_v50, %v10621_v44  ;;  %v8285_v44 = vld [vmem:[%s11021_s16 + $0x128] sm:$0xff] }
0x22fb   : > { %7408 = vmatpush.msrb.mxu0 %v8286_v58 }
0x22fc   : > { %v7282_v46 = vmul.f32 %v10642_v52, %v7275_v6  ;;  %v8284_v52 = vld [vmem:[%s11021_s16 + $0x120] sm:$0xff] }
0x22fd   : > { %7409 = vmatpush.msrb.mxu0 %v8285_v44 }
0x22fe   : > { %v7289_v51 = vadd.f32 %v10647_v25, %v7282_v46  ;;  %v8283_v25 = vld [vmem:[%s11021_s16 + $0x118] sm:$0xff] }
0x22ff   : > { %7410 = vmatpush.msrb.mxu0 %v8284_v52 }
0x2300   : > { %8279 = vmatmul.msk.f32.gmra.mxu1 %vm1064_vm3, %v7289_v51 }
0x2301   : > { %7411 = vmatpush.msrb.mxu0 %v8283_v25 }
0x2303   : > { %7412 = vmatpush.msrb.mxu0 %v8282_v13 }
0x2305   : > { %7413 = vmatpush.msrb.mxu0 %v8281_v23 }
0x2307   : > { %7414 = vmatpush.msrb.mxu0 %v8280_v57 }
0x2311   : > { %v7329_v16 = vpop.f32.mrf.mxu1 }
0x2312   : > { %v7330_v35 = vadd.f32 %v8392_v30, %v7329_v16 }
0x2314   : > { %v7341_v59 = vmul.f32 %v7330_v35, %v7330_v35 }
0x2316   : > { %v7345_v43 = vmul.f32 %v7341_v59, %v7330_v35 }
0x2318   : > { %v7349_v19 = vmul.f32 0.044715, %v7345_v43 }
0x231a   : > { %v7353_v37 = vadd.f32 %v7349_v19, %v7330_v35 }
0x231c   : > { %v7357_v62 = vmul.f32 0.7978846, %v7353_v37 }
0x231e   : > { %8656 = vtanh.f32 %v7357_v62 }
0x2324   : > { %v8657_v0 = vpop.eup %8656 }
0x2325   : > { %v7365_v38 = vadd.f32 1.0, %v8657_v0  ;;  %v8393_v0 = vld [vmem:[%s11022_s17 + $0x2] ss:$0 sm:$0xff] }
0x2327   : > { %v7369_v20 = vmul.f32 0.5, %v7365_v38 }
0x2329   : > { %v7373_v10 = vmul.f32 %v7369_v20, %v7330_v35 }
0x232b   : > { %7415 = vmatmul.f32.vlgmr.msrb.gmra.mxu0 %v7373_v10 }
0x236d   : > { %v7332_v39 = vpop.f32.mrf.mxu1 }
0x236e   : > { %v7333_v32 = vadd.f32 %v8392_v30, %v7332_v39 }
0x2370   : > { %v7342_v60 = vmul.f32 %v7333_v32, %v7333_v32 }
0x2372   : > { %v7346_v14 = vmul.f32 %v7342_v60, %v7333_v32 }
0x2374   : > { %v7350_v3 = vmul.f32 0.044715, %v7346_v14 }
0x2375   : > { %v7335_v47 = vpop.f32.mrf.mxu1 }
0x2376   : > { %v7354_v29 = vadd.f32 %v7350_v3, %v7333_v32  ;;  %v7336_v12 = vadd.f32 %v8392_v30, %v7335_v47 }
0x2378   : > { %v7343_v22 = vmul.f32 %v7336_v12, %v7336_v12  ;;  %v7358_v5 = vmul.f32 0.7978846, %v7354_v29 }
0x237a   : > { %v7347_v28 = vmul.f32 %v7343_v22, %v7336_v12  ;;  %8658 = vtanh.f32 %v7358_v5 }
0x237c   : > { %v7351_v53 = vmul.f32 0.044715, %v7347_v28 }
0x237d   : > { %v7338_v50 = vpop.f32.mrf.mxu1 }
0x237e   : > { %v7355_v6 = vadd.f32 %v7351_v53, %v7336_v12  ;;  %v7339_v26 = vadd.f32 %v8392_v30, %v7338_v50 }
0x2380   : > { %v8659_v46 = vpop.eup %8658  ;;  %v7344_v41 = vmul.f32 %v7339_v26, %v7339_v26  ;;  %v7359_v51 = vmul.f32 0.7978846, %v7355_v6 }
0x2381   : > { %v7366_v58 = vadd.f32 1.0, %v8659_v46 }
0x2382   : > { %v7348_v44 = vmul.f32 %v7344_v41, %v7339_v26  ;;  %8660 = vtanh.f32 %v7359_v51 }
0x2383   : > { %v7370_v52 = vmul.f32 0.5, %v7366_v58 }
0x2384   : > { %v7352_v25 = vmul.f32 0.044715, %v7348_v44 }
0x2385   : > { %v7374_v13 = vmul.f32 %v7370_v52, %v7333_v32 }
0x2386   : > { %v7356_v23 = vadd.f32 %v7352_v25, %v7339_v26 }
0x2387   : > { %7418 = vmatmul.f32.gmra.mxu0 %v7374_v13 }
0x2388   : > { %v8661_v57 = vpop.eup %8660  ;;  %v7360_v16 = vmul.f32 0.7978846, %v7356_v23 }
0x2389   : > { %v7367_v35 = vadd.f32 1.0, %v8661_v57 }
0x238a   : > { %8662 = vtanh.f32 %v7360_v16 }
0x238b   : > { %v7371_v59 = vmul.f32 0.5, %v7367_v35 }
0x238d   : > { %v7375_v43 = vmul.f32 %v7371_v59, %v7336_v12 }
0x238f   : > { %7421 = vmatmul.f32.gmra.mxu0 %v7375_v43  ;;  %v7539_v43 = vld [vmem:[%s11156_s6 + $0x18] sm:$0xff] }
0x2390   : > { %v8663_v19 = vpop.eup %8662  ;;  %7568 = vmatpush.msra.mxu2 %v7539_v43 }
0x2391   : > { %v7368_v30 = vadd.f32 1.0, %v8663_v19 }
0x2393   : > { %v7372_v37 = vmul.f32 0.5, %v7368_v30  ;;  %v7538_v30 = vld [vmem:[%s11156_s6 + $0x10] sm:$0xff] }
0x2394   : > { %7569 = vmatpush.msra.mxu2 %v7538_v30 }
0x2395   : > { %v7376_v62 = vmul.f32 %v7372_v37, %v7339_v26  ;;  %v7537_v37 = vld [vmem:[%s11156_s6 + $0x8] sm:$0xff] }
0x2396   : > { %7570 = vmatpush.msra.mxu2 %v7537_v37 }
0x2397   : > { %7424 = vmatmul.f32.gmra.mxu0 %v7376_v62  ;;  %v7536_v62 = vld [vmem:[%s11156_s6] sm:$0xff] }
0x2398   : > { %7571 = vmatpush.msra.mxu2 %v7536_v62 }
0x23a8   : > { %v7416_v38 = vpop.f32.mrf.mxu0 }
0x23a9   : > { %v7417_v20 = vadd.f32 %v8393_v0, %v7416_v38 }
0x23ab   : > { %v7428_v10 = vadd.f32 %v7417_v20, %v10580_v1 }
0x23ad   : > { %v7434_v39 = vsel %vm1064_vm3, %v7428_v10, 0.0 }
0x23ae   : > { %7435 = vadd.xlane.f32.xlu2 %v7434_v39 }
0x2404   : > { %v7419_v32 = vpop.f32.mrf.mxu0 }
0x2405   : > { %v7420_v60 = vadd.f32 %v8393_v0, %v7419_v32 }
0x2407   : > { %v7429_v14 = vadd.f32 %v7420_v60, %v10587_v36 }
0x2409   : > { %v7437_v3 = vsel %vm1064_vm3, %v7429_v14, 0.0 }
0x240a   : > { %7438 = vadd.xlane.f32.xlu1 %v7437_v3 }
0x240c   : > { %v7422_v47 = vpop.f32.mrf.mxu0 }
0x240d   : > { %v7423_v29 = vadd.f32 %v8393_v0, %v7422_v47 }
0x240f   : > { %v7430_v12 = vadd.f32 %v7423_v29, %v10593_v33  ;;  %v1986_v29 = vadd.f32 %v9202_v56, %v9303_v63 }
0x2411   : > { %v7440_v22 = vsel %vm1064_vm3, %v7430_v12, 0.0 }
0x2412   : > { %7441 = vadd.xlane.f32.xlu0 %v7440_v22 }
0x2414   : > { %v7425_v5 = vpop.f32.mrf.mxu0 }
0x2415   : > { %v7426_v28 = vadd.f32 %v8393_v0, %v7425_v5  ;;  %v4150_v5 = vadd.f32 %v9802_v27, %v9912_v17 }
0x2417   : > { %v7431_v1 = vadd.f32 %v7426_v28, %v10598_v48 }
0x2419   : > { %v7443_v53 = vsel %vm1064_vm3, %v7431_v1, 0.0 }
0x241a   : > { %7444 = vadd.xlane.f32.xlu2 %v7443_v53  ;;  %v4151_v53 = vadd.f32 %v4150_v5, %v9724_v8 }
0x2421   : > { %v7436_v50 = vpop.xlane.xlu2 %7435 }
0x2422   : > { %v7446_v36 = vmul.f32 %v7436_v50, %v8921_v55 }
0x2424   : > { %v7450_v6 = vsub.f32 %v7428_v10, %v7446_v36  ;;  %v1545_v10 = vadd.f32 %v9099_v21, %v9185_v11  ;;  %v1987_v21 = vadd.f32 %v1986_v29, %v9122_v2  ;;  %v3708_v2 = vadd.f32 %v9789_v7, %v9660_v42  ;;  %v11160_v7 = vld [vmem:[#allocation8_spill] sm:$0xff]  ;;  %v11162_v36 = vld [vmem:[#allocation11_spill] sm:$0xff] }
0x2425   : > { %v5879_v42 = vadd.f32 %v10367_v54, %v10267_v24  ;;  %v11166_v54 = vld [vmem:[#allocation10_spill] sm:$0xff] }
0x2426   : > { %v7454_v26 = vmul.f32 %v7450_v6, %v7450_v6  ;;  %v1546_v60 = vadd.f32 %v1545_v10, %v9065_v34  ;;  %v10775_v34 = vld [vmem:[%s11157_s5] ss:$0 sm:$0xff]  ;;  %v10783_v63 = vadd.f32 %v1987_v21, %v9118_v61  ;;  %v3709_v50 = vadd.f32 %v3708_v2, %v9670_v49  ;;  %v11159_v49 = vld [vmem:[#allocation7_spill] sm:$0xff] }
0x2427   : > { %v10797_v61 = vadd.f32 %v4151_v53, %v9733_v9  ;;  %v5880_v8 = vadd.f32 %v5879_v42, %v11159_v49  ;;  %v11161_v9 = vld [vmem:[#allocation13_spill] sm:$0xff]  ;;  %v11169_v49 = vld [vmem:[#allocation4_spill] sm:$0xff] }
0x2428   : > { %v7458_v46 = vsel %vm1064_vm3, %v7454_v26, 0.0  ;;  %v10766_v47 = vadd.f32 %v1546_v60, %v9063_v31  ;;  %v10780_v31 = vld [vmem:[%s11158_s7] ss:$0 sm:$0xff]  ;;  %v10800_v27 = vadd.f32 %v3709_v50, %v9665_v45  ;;  %v6321_v45 = vadd.f32 %v11162_v36, %v11161_v9  ;;  %v11164_v26 = vld [vmem:[#allocation6_spill] sm:$0xff]  ;;  %v11168_v42 = vld [vmem:[#allocation5_spill] sm:$0xff] }
0x2429   : > { %7459 = vadd.xlane.f32.xlu1 %v7458_v46  ;;  %v10810_v17 = vadd.f32 %v5880_v8, %v11160_v7  ;;  %v11165_v46 = vld [vmem:[#allocation9_spill] sm:$0xff]  ;;  %vm922_vm8 = vcmp.eq.s32.totalorder %v11169_v49, %v11168_v42  ;;  %v8700_v8 = vmov 1.0   ;;  %v7690_v42 = vld [vmem:[%s11171_s23 + $0x30] sm:$0xff] }
0x242a   : > { %v6322_v24 = vadd.f32 %v6321_v45, %v11165_v46  ;;  %v923_v7 = vsel %vm922_vm8, 0.5, %v8700_v8  ;;  %v7753_v49 = vld [vmem:[%s11171_s23 + $0x50] sm:$0xff]  ;;  %v7785_v8 = vld [vmem:[%s11171_s23 + $0x60] sm:$0xff] }
0x247d   : > { %v7439_v41 = vpop.xlane.xlu1 %7438 }
0x247e   : > { %v7447_v33 = vmul.f32 %v7439_v41, %v8921_v55  ;;  %v10819_v41 = vadd.f32 %v6322_v24, %v11166_v54 }
0x2480   : > { %v10732_v51 = vsub.f32 %v7429_v14, %v7447_v33 }
0x2482   : > { %v7455_v58 = vmul.f32 %v10732_v51, %v10732_v51 }
0x2484   : > { %v7461_v48 = vsel %vm1064_vm3, %v7455_v58, 0.0 }
0x2485   : > { %7462 = vadd.xlane.f32.xlu0 %v7461_v48  ;;  %v7442_v44 = vpop.xlane.xlu0 %7441 }
0x2486   : > { %v7448_v52 = vmul.f32 %v7442_v44, %v8921_v55 }
0x2488   : > { %v10738_v25 = vsub.f32 %v7430_v12, %v7448_v52 }
0x248a   : > { %v7456_v13 = vmul.f32 %v10738_v25, %v10738_v25 }
0x248c   : > { %v7464_v23 = vsel %vm1064_vm3, %v7456_v13, 0.0 }
0x248d   : > { %v7445_v57 = vpop.xlane.xlu2 %7444  ;;  %7465 = vadd.xlane.f32.xlu2 %v7464_v23 }
0x248e   : > { %v7449_v16 = vmul.f32 %v7445_v57, %v8921_v55 }
0x2490   : > { %v10744_v35 = vsub.f32 %v7431_v1, %v7449_v16 }
0x2492   : > { %v7457_v59 = vmul.f32 %v10744_v35, %v10744_v35 }
0x2494   : > { %v7467_v19 = vsel %vm1064_vm3, %v7457_v59, 0.0 }
0x2495   : > { %7468 = vadd.xlane.f32.xlu1 %v7467_v19 }
0x249c   : > { %v7460_v0 = vpop.xlane.xlu1 %7459 }
0x249d   : > { %v7470_v38 = vmul.f32 %v7460_v0, %v8921_v55 }
0x249f   : > { %v7474_v20 = vadd.f32 1e-05, %v7470_v38 }
0x24a1   : > { %8664 = vrsqrt.f32 %v7474_v20  ;;  %vm7484_vm11 = vweird.f32 %v7474_v20 }
0x24a7   : > { %v8665_v39 = vpop.eup %8664 }
0x24a8   : > { %v7479_v32 = vmul.f32 %v8665_v39, %v7474_v20  ;;  %vm7485_vm10 = vweird.f32 %v8665_v39 }
0x24a9   : > { %vm7486_vm12 = vmor %vm7484_vm11, %vm7485_vm10  ;;  %vm7601_vm10 = vcmask 130048   ;;  %vm7849_vm11 = vcmask 191488  }
0x24aa   : > { %v7480_v14 = vmul.f32 %v8665_v39, %v7479_v32 }
0x24ac   : > { %v7481_v3 = vmul.f32 0.5, %v7480_v14 }
0x24ae   : > { %v7482_v12 = vsub.f32 1.5, %v7481_v3  ;;  %1548 = vxpose.xlu0.b32.start.end [1/1] (short) (narrow) %v10766_v47, 8 }
0x24b0   : > { %v7483_v22 = vmul.f32 %v8665_v39, %v7482_v12 }
0x24b2   : > { %v7487_v11 = vsel %vm7486_vm12, %v8665_v39, %v7483_v22 }
0x24b3   : > { %v7518_v56 = vmul.f32 %v7487_v11, %v7450_v6  ;;  %v11163_v6 = vld [vmem:[#allocation12_spill] sm:$0xff] }
0x24b5   : > { %v7525_v28 = vmul.f32 %v10775_v34, %v7518_v56 }
0x24b6   : > { %2799 = vxpose.xlu0.b32.start.end [1/1] (short) (narrow) %v9343_v15, 8  ;;  %1989 = vxpose.xlu2.b32.start.end [1/1] (short) (narrow) %v10783_v63, 8 }
0x24b7   : > { %v7532_v1 = vadd.f32 %v10780_v31, %v7525_v28 }
0x24b9   : > { %8297 = vmatmul.msk.f32.vlgmr.msra.gmra.mxu2 %vm1064_vm3, %v7532_v1 }
0x24be   : > { %4153 = vxpose.xlu0.b32.start.end [1/1] (short) (narrow) %v10797_v61, 8  ;;  %3711 = vxpose.xlu2.b32.start.end [1/1] (short) (narrow) %v10800_v27, 8 }
0x24c6   : > { %4963 = vxpose.xlu0.b32.start.end [1/1] (short) (narrow) %v9942_v40, 8  ;;  %4558 = vxpose.xlu2.b32.start.end [1/1] (short) (narrow) %v9853_v4, 8 }
0x24ce   : > { %6729 = vxpose.xlu0.b32.start.end [1/1] (short) (narrow) %v11163_v6, 8  ;;  %5882 = vxpose.xlu2.b32.start.end [1/1] (short) (narrow) %v10810_v17, 8 }
0x24cf   : > { %2394 = vxpose.xlu1.b32.start.end [1/1] (short) (narrow) %v11164_v26, 8 }
0x24d6   : > { %7134 = vxpose.xlu2.b32.start.end [1/1] (short) (narrow) %v10554_v18, 8 }
0x24d7   : > { %6324 = vxpose.xlu1.b32.start.end [1/1] (short) (narrow) %v10819_v41, 8 }
0x24f8   : > { %v7463_v33 = vpop.xlane.xlu0 %7462 }
0x24f9   : > { %v7471_v58 = vmul.f32 %v7463_v33, %v8921_v55 }
0x24fb   : > { %v7475_v48 = vadd.f32 1e-05, %v7471_v58 }
0x24fd   : > { %8666 = vrsqrt.f32 %v7475_v48  ;;  %vm7494_vm14 = vweird.f32 %v7475_v48 }
0x2500   : > { %v7466_v44 = vpop.xlane.xlu2 %7465 }
0x2501   : > { %v7472_v52 = vmul.f32 %v7466_v44, %v8921_v55 }
0x2503   : > { %v8667_v13 = vpop.eup %8666  ;;  %v7476_v23 = vadd.f32 1e-05, %v7472_v52 }
0x2504   : > { %v7489_v57 = vmul.f32 %v8667_v13, %v7475_v48  ;;  %vm7495_vm13 = vweird.f32 %v8667_v13 }
0x2505   : > { %8668 = vrsqrt.f32 %v7476_v23  ;;  %vm7496_vm15 = vmor %vm7494_vm14, %vm7495_vm13  ;;  %vm7504_vm2 = vweird.f32 %v7476_v23 }
0x2506   : > { %v7490_v16 = vmul.f32 %v8667_v13, %v7489_v57 }
0x2508   : > { %v7491_v59 = vmul.f32 0.5, %v7490_v16  ;;  %v7469_v43 = vpop.xlane.xlu1 %7468 }
0x2509   : > { %v7473_v19 = vmul.f32 %v7469_v43, %v8921_v55 }
0x250a   : > { %v7492_v30 = vsub.f32 1.5, %v7491_v59 }
0x250b   : > { %v8669_v37 = vpop.eup %8668  ;;  %v7477_v62 = vadd.f32 1e-05, %v7473_v19 }
0x250c   : > { %v7493_v0 = vmul.f32 %v8667_v13, %v7492_v30  ;;  %v7499_v38 = vmul.f32 %v8669_v37, %v7476_v23  ;;  %vm7505_vm1 = vweird.f32 %v8669_v37 }
0x250d   : > { %8670 = vrsqrt.f32 %v7477_v62  ;;  %vm7506_vm4 = vmor %vm7504_vm2, %vm7505_vm1  ;;  %vm7514_vm5 = vweird.f32 %v7477_v62 }
0x250e   : > { %v7497_v20 = vsel %vm7496_vm15, %v8667_v13, %v7493_v0  ;;  %v7500_v10 = vmul.f32 %v8669_v37, %v7499_v38 }
0x250f   : > { %v7519_v39 = vmul.f32 %v7497_v20, %v10732_v51 }
0x2510   : > { %v7501_v32 = vmul.f32 0.5, %v7500_v10 }
0x2511   : > { %v7526_v60 = vmul.f32 %v10775_v34, %v7519_v39 }
0x2512   : > { %v7502_v14 = vsub.f32 1.5, %v7501_v32 }
0x2513   : > { %v8671_v3 = vpop.eup %8670  ;;  %v7533_v55 = vadd.f32 %v10780_v31, %v7526_v60 }
0x2514   : > { %v7503_v29 = vmul.f32 %v8669_v37, %v7502_v14  ;;  %v7509_v12 = vmul.f32 %v8671_v3, %v7477_v62  ;;  %vm7515_vm6 = vweird.f32 %v8671_v3 }
0x2515   : > { %8298 = vmatmul.msk.f32.gmra.mxu2 %vm1064_vm3, %v7533_v55  ;;  %vm7516_vm7 = vmor %vm7514_vm5, %vm7515_vm6 }
0x2516   : > { %v7507_v22 = vsel %vm7506_vm4, %v8669_v37, %v7503_v29  ;;  %v7510_v21 = vmul.f32 %v8671_v3, %v7509_v12 }
0x2517   : > { %v7520_v11 = vmul.f32 %v7507_v22, %v10738_v25 }
0x2518   : > { %v7511_v51 = vmul.f32 0.5, %v7510_v21 }
0x2519   : > { %v7527_v56 = vmul.f32 %v10775_v34, %v7520_v11 }
0x251a   : > { %v7512_v5 = vsub.f32 1.5, %v7511_v51  ;;  %v7660_v51 = vld [vmem:[%s11171_s23 + $0x28] sm:$0xff] }
0x251b   : > { %v7534_v2 = vadd.f32 %v10780_v31, %v7527_v56  ;;  %v7586_v56 = vld [vmem:[%s11171_s23] sm:$0xff]  ;;  %7683 = vmatpush.msrb.mxu2 %v7660_v51 }
0x251c   : > { %v7513_v28 = vmul.f32 %v8671_v3, %v7512_v5  ;;  %v7628_v5 = vld [vmem:[%s11171_s23 + $0x10] sm:$0xff] }
0x251d   : > { %8299 = vmatmul.msk.f32.gmra.mxu2 %vm1064_vm3, %v7534_v2  ;;  %v7659_v2 = vld [vmem:[%s11171_s23 + $0x20] sm:$0xff] }
0x251e   : > { %v7517_v1 = vsel %vm7516_vm7, %v8671_v3, %v7513_v28  ;;  %v7721_v28 = vld [vmem:[%s11171_s23 + $0x40] sm:$0xff]  ;;  %7684 = vmatpush.msrb.mxu2 %v7659_v2 }
0x251f   : > { %v7521_v53 = vmul.f32 %v7517_v1, %v10744_v35  ;;  %v7691_v1 = vld [vmem:[%s11171_s23 + $0x38] sm:$0xff] }
0x2521   : > { %v7528_v50 = vmul.f32 %v10775_v34, %v7521_v53  ;;  %v7754_v53 = vld [vmem:[%s11171_s23 + $0x58] sm:$0xff] }
0x2523   : > { %v7535_v25 = vadd.f32 %v10780_v31, %v7528_v50  ;;  %v7786_v50 = vld [vmem:[%s11171_s23 + $0x68] sm:$0xff] }
0x2524   : > { %7810 = vmatpush.msra.mxu2 %v7786_v50 }
0x2525   : > { %8300 = vmatmul.msk.f32.gmra.mxu2 %vm1064_vm3, %v7535_v25  ;;  %vm7596_vm3 = vcmask 1042434  }
0x2526   : > { %7811 = vmatpush.msra.mxu2 %v7785_v8 }
0x253c   : > { %v7573_v25 = vpop.f32.mrf.mxu2 }
0x254f   : > { %v2005_v9 = vpop.trf.xlu2 }
0x2550   : > { %v2021_v36 = vadd.f32 %v2005_v9, %v10783_v63  ;;  %v8396_v9 = vld [vmem:[%s11172_s24] ss:$0 sm:$0xff] }
0x2552   : > { %v2022_v45 = vmul.f32 %v2021_v36, %v923_v7  ;;  %v1564_v46 = vpop.trf.xlu0 }
0x2553   : > { %v1580_v35 = vadd.f32 %v1564_v46, %v10766_v47  ;;  %v10929_v46 = vadd.f32 %v8396_v9, %v7573_v25 }
0x2554   : > { %v2023_v34 = vmul.f32 0.027777778, %v2022_v45 }
0x2555   : > { %v1581_v31 = vmul.f32 %v1580_v35, %v923_v7 }
0x2556   : > { %8010 = vst.msk [vmem:[%s10845_s29 + $0x8] sm:$0xff] %vm925_vm0, %v2023_v34 }
0x2557   : > { %v1582_v24 = vmul.f32 0.027777778, %v1581_v31  ;;  %v3727_v54 = vpop.trf.xlu2 }
0x2558   : > { %v3743_v63 = vadd.f32 %v3727_v54, %v10800_v27  ;;  %v7630_v54 = vrot.slane %v10929_v46, 1 }
0x2559   : > { %1583 = vst.msk [vmem:[%s10845_s29] sm:$0xff] %vm925_vm0, %v1582_v24 }
0x255a   : > { %v3744_v33 = vmul.f32 %v3743_v63, %v923_v7  ;;  %v2815_v58 = vpop.trf.xlu0  ;;  %v7661_v63 = vrot.slane %v10929_v46, 2 }
0x255b   : > { %v2831_v48 = vadd.f32 %v2815_v58, %v9343_v15 }
0x255c   : > { %v3745_v44 = vmul.f32 0.027777778, %v3744_v33 }
0x255d   : > { %v2832_v52 = vmul.f32 %v2831_v48, %v923_v7 }
0x255e   : > { %8088 = vst.msk [vmem:[%s10845_s29 + $0x20] sm:$0xff] %vm925_vm0, %v3745_v44  ;;  %v7723_v44 = vrot.slane %v10929_v46, 4 }
0x255f   : > { %v2833_v47 = vmul.f32 0.027777778, %v2832_v52  ;;  %v4574_v13 = vpop.trf.xlu2 }
0x2560   : > { %v4590_v23 = vadd.f32 %v4574_v13, %v9853_v4 }
0x2561   : > { %8044 = vst.msk [vmem:[%s10845_s29 + $0x18] sm:$0xff] %vm925_vm0, %v2833_v47 }
0x2562   : > { %v4591_v27 = vmul.f32 %v4590_v23, %v923_v7  ;;  %v4169_v57 = vpop.trf.xlu0 }
0x2563   : > { %v4185_v16 = vadd.f32 %v4169_v57, %v10797_v61 }
0x2564   : > { %v4592_v59 = vmul.f32 0.027777778, %v4591_v27 }
0x2565   : > { %v4186_v43 = vmul.f32 %v4185_v16, %v923_v7 }
0x2566   : > { %8126 = vst.msk [vmem:[%s10845_s29 + $0x30] sm:$0xff] %vm925_vm0, %v4592_v59 }
0x2567   : > { %v4187_v15 = vmul.f32 0.027777778, %v4186_v43  ;;  %v5898_v19 = vpop.trf.xlu2 }
0x2568   : > { %v5914_v30 = vadd.f32 %v5898_v19, %v10810_v17 }
0x2569   : > { %8109 = vst.msk [vmem:[%s10845_s29 + $0x28] sm:$0xff] %vm925_vm0, %v4187_v15 }
0x256a   : > { %v5915_v37 = vmul.f32 %v5914_v30, %v923_v7  ;;  %v4979_v4 = vpop.trf.xlu0 }
0x256b   : > { %v4995_v62 = vadd.f32 %v4979_v4, %v9942_v40 }
0x256c   : > { %v5916_v0 = vmul.f32 0.027777778, %v5915_v37 }
0x256d   : > { %v4996_v38 = vmul.f32 %v4995_v62, %v923_v7 }
0x256e   : > { %8212 = vst.msk [vmem:[%s10845_s29 + $0x40] sm:$0xff] %vm925_vm0, %v5916_v0 }
0x256f   : > { %v4997_v61 = vmul.f32 0.027777778, %v4996_v38  ;;  %v7150_v20 = vpop.trf.xlu2 }
0x2570   : > { %v7166_v10 = vadd.f32 %v7150_v20, %v10554_v18  ;;  %v7818_v20 = vld [vmem:[%s11171_s23 + $0x78] sm:$0xff] }
0x2571   : > { %8143 = vst.msk [vmem:[%s10845_s29 + $0x38] sm:$0xff] %vm925_vm0, %v4997_v61 }
0x2572   : > { %v7167_v17 = vmul.f32 %v7166_v10, %v923_v7  ;;  %v6745_v39 = vpop.trf.xlu0 }
0x2573   : > { %v6761_v32 = vadd.f32 %v6745_v39, %v11163_v6  ;;  %v2410_v60 = vpop.trf.xlu1  ;;  %v7587_v6 = vld [vmem:[%s11171_s23 + $0x8] sm:$0xff]  ;;  %v7817_v39 = vld [vmem:[%s11171_s23 + $0x70] sm:$0xff] }
0x2574   : > { %v7168_v14 = vmul.f32 0.027777778, %v7167_v17  ;;  %v2426_v40 = vadd.f32 %v2410_v60, %v11164_v26  ;;  %v7629_v26 = vld [vmem:[%s11171_s23 + $0x18] sm:$0xff]  ;;  %7618 = vmatpush.msra.mxu3 %v7587_v6 }
0x2575   : > { %v6762_v3 = vmul.f32 %v6761_v32, %v923_v7  ;;  %7652 = vmatpush.msrb.mxu1 %v7629_v26 }
0x2576   : > { %8267 = vst.msk [vmem:[%s10845_s29 + $0x58] sm:$0xff] %vm925_vm0, %v7168_v14  ;;  %v2427_v55 = vmul.f32 %v2426_v40, %v923_v7  ;;  %7619 = vmatpush.msra.mxu3 %v7586_v56  ;;  %v7692_v40 = vrot.slane %v10929_v46, 3 }
0x2577   : > { %v6763_v29 = vmul.f32 0.027777778, %v6762_v3  ;;  %7653 = vmatpush.msrb.mxu1 %v7628_v5  ;;  %v7755_v3 = vrot.slane %v10929_v46, 5 }
0x2578   : > { %v2428_v12 = vmul.f32 0.027777778, %v2427_v55  ;;  %7714 = vmatpush.msrb.mxu3 %v7691_v1  ;;  %v7819_v1 = vrot.slane %v10929_v46, 7 }
0x2579   : > { %8250 = vst.msk [vmem:[%s10845_s29 + $0x50] sm:$0xff] %vm925_vm0, %v6763_v29  ;;  %7778 = vmatpush.msra.mxu1 %v7754_v53 }
0x257a   : > { %8027 = vst.msk [vmem:[%s10845_s29 + $0x10] sm:$0xff] %vm925_vm0, %v2428_v12  ;;  %7715 = vmatpush.msrb.mxu3 %v7690_v42  ;;  %v7787_v12 = vrot.slane %v10929_v46, 6 }
0x257b   : > { %v6340_v18 = vpop.trf.xlu1  ;;  %7779 = vmatpush.msra.mxu1 %v7753_v49  ;;  %v8397_v49 = vld [vmem:[%s11173_s19] ss:$0 sm:$0xff] }
0x257c   : > { %v6356_v22 = vadd.f32 %v6340_v18, %v10819_v41  ;;  %v7722_v41 = vld [vmem:[%s11171_s23 + $0x48] sm:$0xff] }
0x257d   : > { %7746 = vmatpush.msra.mxu0 %v7722_v41 }
0x257e   : > { %v6357_v21 = vmul.f32 %v6356_v22, %v923_v7 }
0x257f   : > { %7747 = vmatpush.msra.mxu0 %v7721_v28 }
0x2580   : > { %v6358_v11 = vmul.f32 0.027777778, %v6357_v21 }
0x2582   : > { %8233 = vst.msk [vmem:[%s10845_s29 + $0x48] sm:$0xff] %vm925_vm0, %v6358_v11  ;;  %vm7593_vm0 = vcmask 1041409   ;;  %s11174_s29 = sld [smem:[#allocation34_spill]] }
0x2588   : > { %s844_s20 = scalar_lea.vmem %s11174_s29, %s7958_s4 }
0x2598   : > { %v7576_v7 = vpop.f32.mrf.mxu2 }
0x2599   : > { %v10927_v45 = vadd.f32 %v8396_v9, %v7576_v7 }
0x259b   : > { %v7592_v34 = vrot.slane %v10927_v45, 7  ;;  %v7662_v31 = vrot.slane %v10927_v45, 1  ;;  %v7724_v24 = vrot.slane %v10927_v45, 3  ;;  %v7631_v23 = vsel %vm7593_vm0, %v10927_v45, %v7630_v54 }
0x259c   : > { %v7693_v10 = vrot.slane %v10927_v45, 2  ;;  %v7756_v17 = vrot.slane %v10927_v45, 4  ;;  %v7788_v14 = vrot.slane %v10927_v45, 5  ;;  %v7820_v2 = vrot.slane %v10927_v45, 6 }
0x259d   : > { %v7594_v13 = vsel %vm7593_vm0, %v7592_v34, %v10929_v46  ;;  %v7663_v27 = vsel %vm7593_vm0, %v7662_v31, %v7661_v63  ;;  %v7725_v57 = vsel %vm7593_vm0, %v7724_v24, %v7723_v44 }
0x259e   : > { %v7694_v22 = vsel %vm7593_vm0, %v7693_v10, %v7692_v40  ;;  %v7757_v21 = vsel %vm7593_vm0, %v7756_v17, %v7755_v3  ;;  %v7789_v26 = vsel %vm7593_vm0, %v7788_v14, %v7787_v12  ;;  %v7821_v50 = vsel %vm7593_vm0, %v7820_v2, %v7819_v1 }
0x25a0   : > { %v7579_v36 = vpop.f32.mrf.mxu2 }
0x25a1   : > { %v10931_v35 = vadd.f32 %v8396_v9, %v7579_v36 }
0x25a3   : > { %v7595_v58 = vrot.slane %v10931_v35, 6  ;;  %v7632_v48 = vrot.slane %v10931_v35, 7  ;;  %v7726_v52 = vrot.slane %v10931_v35, 2  ;;  %v7664_v37 = vsel %vm7596_vm3, %v10931_v35, %v7663_v27 }
0x25a4   : > { %v7695_v32 = vrot.slane %v10931_v35, 1  ;;  %v7758_v60 = vrot.slane %v10931_v35, 3  ;;  %v7790_v29 = vrot.slane %v10931_v35, 4  ;;  %v7822_v28 = vrot.slane %v10931_v35, 5 }
0x25a5   : > { %v7597_v19 = vsel %vm7596_vm3, %v7595_v58, %v7594_v13  ;;  %v7633_v30 = vsel %vm7596_vm3, %v7632_v48, %v7631_v23  ;;  %v7727_v4 = vsel %vm7596_vm3, %v7726_v52, %v7725_v57 }
0x25a6   : > { %v7696_v11 = vsel %vm7596_vm3, %v7695_v32, %v7694_v22  ;;  %v7759_v6 = vsel %vm7596_vm3, %v7758_v60, %v7757_v21  ;;  %v7791_v56 = vsel %vm7596_vm3, %v7790_v29, %v7789_v26  ;;  %v7823_v25 = vsel %vm7596_vm3, %v7822_v28, %v7821_v50 }
0x25a8   : > { %v7582_v33 = vpop.f32.mrf.mxu2 }
0x25a9   : > { %v7583_v47 = vadd.f32 %v8396_v9, %v7582_v33 }
0x25ab   : > { %v7598_v16 = vrot.slane %v7583_v47, 5  ;;  %v7634_v59 = vrot.slane %v7583_v47, 6  ;;  %v7665_v43 = vrot.slane %v7583_v47, 7  ;;  %v7728_v15 = vrot.slane %v7583_v47, 1 }
0x25ac   : > { %v7760_v55 = vrot.slane %v7583_v47, 2  ;;  %v7792_v18 = vrot.slane %v7583_v47, 3  ;;  %v7697_v51 = vsel %vm7599_vm9, %v7583_v47, %v7696_v11  ;;  %v7824_v53 = vrot.slane %v7583_v47, 4 }
0x25ad   : > { %v7600_v62 = vsel %vm7599_vm9, %v7598_v16, %v7597_v19  ;;  %v7635_v0 = vsel %vm7599_vm9, %v7634_v59, %v7633_v30  ;;  %v7666_v38 = vsel %vm7599_vm9, %v7665_v43, %v7664_v37  ;;  %v7729_v61 = vsel %vm7599_vm9, %v7728_v15, %v7727_v4 }
0x25ae   : > { %8301 = vmatmul.msk.f32.vlgmr.msra.gmra.mxu3 %vm7601_vm10, %v7600_v62  ;;  %8302 = vmatmul.msk.f32.vlgmr.msrb.gmra.mxu1 %vm7601_vm10, %v7635_v0  ;;  %v7761_v41 = vsel %vm7599_vm9, %v7760_v55, %v7759_v6  ;;  %v7793_v5 = vsel %vm7599_vm9, %v7792_v18, %v7791_v56  ;;  %v7825_v42 = vsel %vm7599_vm9, %v7824_v53, %v7823_v25 }
0x25af   : > { %8303 = vmatmul.msk.f32.vlgmr.msrb.gmra.mxu2 %vm7601_vm10, %v7666_v38  ;;  %8305 = vmatmul.msk.f32.vlgmr.msra.gmra.mxu0 %vm7601_vm10, %v7729_v61 }
0x25b0   : > { %7842 = vmatpush.msra.mxu3 %v7818_v20 }
0x25b2   : > { %7843 = vmatpush.msra.mxu3 %v7817_v39 }
0x25b6   : > { %8304 = vmatmul.msk.f32.vlgmr.msrb.gmra.mxu3 %vm7601_vm10, %v7697_v51  ;;  %8306 = vmatmul.msk.f32.vlgmr.msra.gmra.mxu1 %vm7601_vm10, %v7761_v41 }
0x25b7   : > { %8307 = vmatmul.msk.f32.vlgmr.msra.gmra.mxu2 %vm7601_vm10, %v7793_v5 }
0x25be   : > { %8308 = vmatmul.msk.f32.vlgmr.msra.gmra.mxu3 %vm7601_vm10, %v7825_v42 }
0x262b   : > { %v7655_v9 = vpop.f32.mrf.mxu1 }
0x262c   : > { %v7749_v31 = vpop.f32.mrf.mxu0 }
0x2631   : > { %v7621_v8 = vpop.f32.mrf.mxu3 }
0x2632   : > { %v7627_v7 = vadd.f32 %v8397_v49, %v7621_v8  ;;  %v7686_v45 = vpop.f32.mrf.mxu2 }
0x2633   : > { %v7781_v54 = vpop.f32.mrf.mxu1 }
0x2634   : > { %v7658_v36 = vadd.f32 %v7655_v9, %v7627_v7 }
0x2636   : > { %v7689_v46 = vadd.f32 %v7686_v45, %v7658_v36 }
0x2639   : > { %v7717_v35 = vpop.f32.mrf.mxu3 }
0x263a   : > { %v7720_v34 = vadd.f32 %v7717_v35, %v7689_v46  ;;  %v7813_v33 = vpop.f32.mrf.mxu2 }
0x263c   : > { %v7752_v24 = vadd.f32 %v7749_v31, %v7720_v34 }
0x263e   : > { %v7784_v63 = vadd.f32 %v7781_v54, %v7752_v24 }
0x2640   : > { %v7816_v58 = vadd.f32 %v7813_v33, %v7784_v63 }
0x2641   : > { %v7845_v48 = vpop.f32.mrf.mxu3 }
0x2642   : > { %v7848_v44 = vadd.f32 %v7845_v48, %v7816_v58 }
0x2644   : > { %7850 = vst.msk [vmem:[%s844_s20] sm:$0xf] %vm7849_vm11, %v7848_v44 }
0x2645 PF: > { %s11175_s21 = sld [smem:[#allocation2_spill]] }
0x264b   : > { %s38_s7 = sadd.s32 1, %s11175_s21  }
0x264c   : > { %p35_p4 = scmp.ge.s32.totalorder %s38_s7, 4  }
0x264e   :  { %37 = sbr.rel (!%p35_p4) target bundleno = 23 (0x17), region = 210 }

</bundles_post_ra>
